<compile_context>
chip_gen: v5e
topology: v5e:2x2
jax: 0.10.0
libtpu: 0.0.40
codegen_flags: <defaults>
</compile_context>

<pallas_src>
import functools

import jax
import jax.numpy as jnp
from jax.experimental import pallas as pl
from jax.experimental.pallas import tpu as pltpu


# ----------------------------------------------------------------------------
# Pallas kernels
# ----------------------------------------------------------------------------
def _conv_bias_act_kernel(x_ref, w_ref, b_ref, o_ref, *, kh, kw, act):
    """Stride-1 'valid' conv for one batch element, entirely in VMEM.

    x_ref: (1, IH, IW, Cin)   f32
    w_ref: (kh*kw, Cin, Cout) bf16  (pre-packed at init)
    b_ref: (1, Cout)          f32
    o_ref: (1, OH, OW, Cout)  f32,  OH = IH-kh+1, OW = IW-kw+1
    """
    oh = o_ref.shape[1]
    ow = o_ref.shape[2]
    cout = o_ref.shape[3]
    bias = b_ref[...]                                       # (1, Cout)

    for m in range(oh):                                     # static unroll (<=14)
        acc = jnp.zeros((ow, cout), jnp.float32)
        for di in range(kh):
            for dj in range(kw):
                win = x_ref[0, m + di, pl.ds(dj, ow), :]    # (OW, Cin), contiguous
                acc = acc + jnp.dot(
                    win.astype(jnp.bfloat16),
                    w_ref[di * kw + dj, :, :],
                    preferred_element_type=jnp.float32)
        acc = acc + bias
        if act == "relu":
            acc = jnp.maximum(acc, 0.0)
        elif act == "sigmoid":
            # exp + approx reciprocal both live on the EUP slot; clip keeps the
            # result strictly inside [0, 1] despite the approximate reciprocal.
            acc = jnp.clip(pl.reciprocal(1.0 + jnp.exp(-acc), approx=True),
                           0.0, 1.0)
        o_ref[0, m, :, :] = acc.astype(o_ref.dtype)


def _bottleneck_kernel(x_ref, w3_ref, b3_ref, w4_ref, b4_ref, o_ref):
    """Fused Conv2d(32,64,7) [no act] + ConvTranspose2d(64,32,7) [ReLU].

    Both layers act on a 1x1 spatial extent, so each is a plain matmul:
      x_ref : (1, 1, 1568)  flattened (7,7,32) NHWC patch
      w3    : (1568, 64) bf16,  b3: (1, 64)
      w4    : (64, 1568) bf16,  b4: (1, 1568)
      o_ref : (1, 1, 1568)  flattened (7,7,32) NHWC output
    """
    x = x_ref[0, :, :]                                      # (1, 1568)
    z = jnp.dot(x.astype(jnp.bfloat16), w3_ref[...],
                preferred_element_type=jnp.float32) + b3_ref[...]
    h = jnp.dot(z.astype(jnp.bfloat16), w4_ref[...],
                preferred_element_type=jnp.float32) + b4_ref[...]
    o_ref[0, :, :] = jnp.maximum(h, 0.0)


# ----------------------------------------------------------------------------
# pallas_call wrappers
# ----------------------------------------------------------------------------
def _conv_pallas(x, w_packed, bias, kh, kw, act):
    """x: (B, IH, IW, Cin) NHWC f32; w_packed: (kh*kw, Cin, Cout) bf16."""
    B, IH, IW, Cin = x.shape
    T, Cin2, Cout = w_packed.shape
    assert T == kh * kw and Cin2 == Cin
    OH, OW = IH - kh + 1, IW - kw + 1
    kernel = functools.partial(_conv_bias_act_kernel, kh=kh, kw=kw, act=act)
    return pl.pallas_call(
        kernel,
        out_shape=jax.ShapeDtypeStruct((B, OH, OW, Cout), jnp.float32),
        grid=(B,),
        in_specs=[
            pl.BlockSpec((1, IH, IW, Cin), lambda b: (b, 0, 0, 0)),
            pl.BlockSpec((T, Cin, Cout), lambda b: (0, 0, 0)),
            pl.BlockSpec((1, Cout), lambda b: (0, 0)),
        ],
        out_specs=pl.BlockSpec((1, OH, OW, Cout), lambda b: (b, 0, 0, 0)),
        compiler_params=pltpu.CompilerParams(
            dimension_semantics=("parallel",)),
    )(x, w_packed, bias)


def conv2d_s2_k3_p1(x, layer, act):
    """Conv2d(Cin, Cout, 3, stride=2, padding=1) on NHWC x via space-to-depth
    + a fused stride-1 2x2 Pallas conv (weights pre-packed at init)."""
    w2, b = layer
    B, H, W, C = x.shape
    xp = jnp.pad(x, ((0, 0), (1, 1), (1, 1), (0, 0)))
    Hp, Wp = H + 2, W + 2                      # even for the 28/14 inputs here
    # space-to-depth: free reshapes + one tiny transpose; channel = (ph, pw, c)
    xs = (xp.reshape(B, Hp // 2, 2, Wp // 2, 2, C)
            .transpose(0, 1, 3, 2, 4, 5)
            .reshape(B, Hp // 2, Wp // 2, 4 * C))
    return _conv_pallas(xs, w2, b, 2, 2, act)


def conv_transpose2d_s2_k3_p1_op1(x, layer, act):
    """ConvTranspose2d(Cin, Cout, 3, stride=2, padding=1, output_padding=1) via
    sub-pixel decomposition: stride-1 2x2 conv emitting the 4 output phases as
    channels, then a free depth-to-space reshape (no zero-dilated input)."""
    w2, b4 = layer
    B, H, W, C = x.shape
    xp = jnp.pad(x, ((0, 0), (0, 1), (0, 1), (0, 0)))       # bottom/right halo
    y = _conv_pallas(xp, w2, b4, 2, 2, act)                 # (B, H, W, 4*Cout)
    Cout = w2.shape[2] // 4
    y = (y.reshape(B, H, W, 2, 2, Cout)                     # channel = (p, q, c)
           .transpose(0, 1, 3, 2, 4, 5)
           .reshape(B, 2 * H, 2 * W, Cout))                 # interleave phases
    return y


def bottleneck(x, layer):
    """Fused Conv2d(32,64,7) (no act) + ConvTranspose2d(64,32,7) (ReLU)."""
    w3, b3, w4, b4 = layer
    B = x.shape[0]
    K = 7 * 7 * 32
    xf = x.reshape(B, 1, K)                                 # free NHWC flatten
    out = pl.pallas_call(
        _bottleneck_kernel,
        out_shape=jax.ShapeDtypeStruct((B, 1, K), jnp.float32),
        grid=(B,),
        in_specs=[
            pl.BlockSpec((1, 1, K), lambda b: (b, 0, 0)),
            pl.BlockSpec(w3.shape, lambda b: (0, 0)),
            pl.BlockSpec(b3.shape, lambda b: (0, 0)),
            pl.BlockSpec(w4.shape, lambda b: (0, 0)),
            pl.BlockSpec(b4.shape, lambda b: (0, 0)),
        ],
        out_specs=pl.BlockSpec((1, 1, K), lambda b: (b, 0, 0)),
        compiler_params=pltpu.CompilerParams(
            dimension_semantics=("parallel",)),
    )(xf, w3, b3, w4, b4)
    return out.reshape(B, 7, 7, 32)                         # (kh, kw, cout) order


# ----------------------------------------------------------------------------
# Weight packing (done once at init)
# ----------------------------------------------------------------------------
def _pack_s2d_conv_weight(w_pt, stride):
    """Conv2d weight (Cout, Cin, k, k) -> (taps, stride^2*Cin, Cout) bf16 for a
    stride-1 conv on the space-to-depth input (channel order (ph, pw, cin))."""
    cout, cin, k, _ = w_pt.shape
    k2 = -(-k // stride)
    w2 = jnp.zeros((k2, k2, stride, stride, cin, cout), jnp.float32)
    for di in range(k2):
        for dj in range(k2):
            for ph in range(stride):
                for pw in range(stride):
                    ki, kj = stride * di + ph, stride * dj + pw
                    if ki < k and kj < k:
                        w2 = w2.at[di, dj, ph, pw].set(w_pt[:, :, ki, kj].T)
    return w2.reshape(k2 * k2, stride * stride * cin, cout).astype(jnp.bfloat16)


def _pack_subpixel_convt_weight(w_pt):
    """ConvTranspose2d(k=3, stride=2, padding=1, output_padding=1) weight
    (Cin, Cout, 3, 3) -> (4 taps, Cin, 4*Cout) bf16 for a stride-1 2x2 conv
    whose output channels are the 4 sub-pixel phases (p, q, cout)."""
    cin, cout, k, _ = w_pt.shape
    w2 = jnp.zeros((2, 2, cin, 2, 2, cout), jnp.float32)
    for p in range(2):
        for q in range(2):
            for di in range(2):
                for dj in range(2):
                    ki, kj = p + 1 - 2 * di, q + 1 - 2 * dj
                    if 0 <= ki < k and 0 <= kj < k:
                        w2 = w2.at[di, dj, :, p, q, :].set(w_pt[:, :, ki, kj])
    return w2.reshape(4, cin, 4 * cout).astype(jnp.bfloat16)


def init_raw_params(key):
    """PyTorch-style uniform init for all six layers (deterministic)."""
    def conv_init(k, cout, cin, ksz):
        bound = 1.0 / float(cin * ksz * ksz) ** 0.5
        kw_, kb_ = jax.random.split(k)
        w = jax.random.uniform(kw_, (cout, cin, ksz, ksz), jnp.float32, -bound, bound)
        b = jax.random.uniform(kb_, (cout,), jnp.float32, -bound, bound)
        return w, b

    def convt_init(k, cin, cout, ksz):
        bound = 1.0 / float(cout * ksz * ksz) ** 0.5
        kw_, kb_ = jax.random.split(k)
        w = jax.random.uniform(kw_, (cin, cout, ksz, ksz), jnp.float32, -bound, bound)
        b = jax.random.uniform(kb_, (cout,), jnp.float32, -bound, bound)
        return w, b

    keys = jax.random.split(key, 6)
    return {
        "e1": conv_init(keys[0], 16, 1, 3),    # Conv2d(1, 16, 3, s=2, p=1)
        "e2": conv_init(keys[1], 32, 16, 3),   # Conv2d(16, 32, 3, s=2, p=1)
        "e3": conv_init(keys[2], 64, 32, 7),   # Conv2d(32, 64, 7)
        "d1": convt_init(keys[3], 64, 32, 7),  # ConvT(64, 32, 7)
        "d2": convt_init(keys[4], 32, 16, 3),  # ConvT(32, 16, 3, s=2, p=1, op=1)
        "d3": convt_init(keys[5], 16, 1, 3),   # ConvT(16, 1, 3, s=2, p=1, op=1)
    }


def pack_params(raw):
    w_e1, b_e1 = raw["e1"]
    w_e2, b_e2 = raw["e2"]
    w_e3, b_e3 = raw["e3"]
    w_d1, b_d1 = raw["d1"]
    w_d2, b_d2 = raw["d2"]
    w_d3, b_d3 = raw["d3"]

    packed = {
        "e1": (_pack_s2d_conv_weight(w_e1, 2), b_e1.reshape(1, -1)),
        "e2": (_pack_s2d_conv_weight(w_e2, 2), b_e2.reshape(1, -1)),
        "d2": (_pack_subpixel_convt_weight(w_d2), jnp.tile(b_d2, 4).reshape(1, -1)),
        "d3": (_pack_subpixel_convt_weight(w_d3), jnp.tile(b_d3, 4).reshape(1, -1)),
    }
    # Bottleneck: e3 as X[B,1568] @ W3[1568,64]; d1 as Z[B,64] @ W4[64,1568].
    w3 = w_e3.transpose(2, 3, 1, 0).reshape(7 * 7 * 32, 64).astype(jnp.bfloat16)
    w4 = w_d1.transpose(0, 2, 3, 1).reshape(64, 7 * 7 * 32).astype(jnp.bfloat16)
    b4 = jnp.tile(b_d1, 7 * 7).reshape(1, -1)
    packed["bneck"] = (w3, b_e3.reshape(1, -1), w4, b4)
    return packed


# ----------------------------------------------------------------------------
# Forward pass (semantics of the PyTorch Autoencoder.forward)
# ----------------------------------------------------------------------------
def autoencoder_forward(params, x_nchw):
    x = jnp.transpose(x_nchw, (0, 2, 3, 1))                         # NCHW -> NHWC once
    h = conv2d_s2_k3_p1(x, params["e1"], act="relu")                # (B,14,14,16)
    h = conv2d_s2_k3_p1(h, params["e2"], act="relu")                # (B, 7, 7,32)
    h = bottleneck(h, params["bneck"])                              # (B, 7, 7,32)
    h = conv_transpose2d_s2_k3_p1_op1(h, params["d2"], "relu")      # (B,14,14,16)
    h = conv_transpose2d_s2_k3_p1_op1(h, params["d3"], "sigmoid")   # (B,28,28, 1)
    return jnp.transpose(h, (0, 3, 1, 2))                           # NHWC -> NCHW once


if __name__ == "__main__":
    key = jax.random.PRNGKey(0)
    pkey, xkey = jax.random.split(key)
    params = pack_params(init_raw_params(pkey))
    # 28x28 single-channel input: the 7x7 bottleneck conv implies this size.
    x = jax.random.uniform(xkey, (2, 1, 28, 28), dtype=jnp.float32)

    fwd = jax.jit(autoencoder_forward)
    out = jax.block_until_ready(fwd(params, x))

    assert out.shape == (2, 1, 28, 28), out.shape
    assert bool(jnp.all(jnp.isfinite(out)))
    assert bool(jnp.all((out >= 0.0) & (out <= 1.0)))  # sigmoid output range
    print("KERNEL_OK")
</pallas_src>

<mosaic_0001>
module attributes {stable_mosaic.version = 11 : i64} {
  func.func @_conv_bias_act_kernel(%arg0: i32, %arg1: memref<1x15x15x4xf32, #tpu.memory_space<vmem>>, %arg2: memref<4x4x16xbf16, #tpu.memory_space<vmem>>, %arg3: memref<1x16xf32, #tpu.memory_space<vmem>>, %arg4: memref<1x14x14x16xf32, #tpu.memory_space<vmem>>) attributes {dimension_semantics = [#tpu.dimension_semantics<parallel>], iteration_bounds = array<i64: 2>, scalar_prefetch = 0 : i64, scratch_operands = 0 : i64, tpu.core_type = #tpu.core_type<tc>, window_params = [{transform_indices = @transform_0, window_bounds = array<i64: 1, 15, 15, 4>}, {pipeline_mode = #tpu.pipeline_mode<synchronous>, transform_indices = @transform_1, window_bounds = array<i64: 4, 4, 16>}, {pipeline_mode = #tpu.pipeline_mode<synchronous>, transform_indices = @transform_2, window_bounds = array<i64: 1, 16>}, {transform_indices = @transform_3, window_bounds = array<i64: 1, 14, 14, 16>}]} {
    %c0 = arith.constant 0 : index
    %c0_0 = arith.constant 0 : index
    %0 = vector.load %arg3[%c0, %c0_0] : memref<1x16xf32, #tpu.memory_space<vmem>>, vector<1x16xf32>
    %cst = arith.constant 0.000000e+00 : f32
    %1 = vector.broadcast %cst : f32 to vector<14x16xf32>
    %c0_1 = arith.constant 0 : index
    %c0_2 = arith.constant 0 : index
    %c0_3 = arith.constant 0 : index
    %c0_4 = arith.constant 0 : index
    %2 = vector.load %arg1[%c0_1, %c0_2, %c0_3, %c0_4] : memref<1x15x15x4xf32, #tpu.memory_space<vmem>>, vector<1x1x14x4xf32>
    %3 = vector.shape_cast %2 : vector<1x1x14x4xf32> to vector<14x4xf32>
    %4 = arith.truncf %3 : vector<14x4xf32> to vector<14x4xbf16>
    %c0_5 = arith.constant 0 : index
    %c0_6 = arith.constant 0 : index
    %c0_7 = arith.constant 0 : index
    %5 = vector.load %arg2[%c0_5, %c0_6, %c0_7] : memref<4x4x16xbf16, #tpu.memory_space<vmem>>, vector<1x4x16xbf16>
    %6 = vector.shape_cast %5 : vector<1x4x16xbf16> to vector<4x16xbf16>
    %cst_8 = arith.constant dense<0.000000e+00> : vector<14x16xf32>
    %7 = tpu.matmul %4, %6, %cst_8 {dimension_numbers = #tpu.dot_dimension_numbers<[1], [0], [0], [1], [0, 0, 1, 1], [], []>} : vector<14x4xbf16>, vector<4x16xbf16>, vector<14x16xf32> -> vector<14x16xf32>
    %8 = arith.addf %1, %7 : vector<14x16xf32>
    %c0_9 = arith.constant 0 : index
    %c0_10 = arith.constant 0 : index
    %c1 = arith.constant 1 : index
    %c0_11 = arith.constant 0 : index
    %9 = vector.load %arg1[%c0_9, %c0_10, %c1, %c0_11] : memref<1x15x15x4xf32, #tpu.memory_space<vmem>>, vector<1x1x14x4xf32>
    %10 = vector.shape_cast %9 : vector<1x1x14x4xf32> to vector<14x4xf32>
    %11 = arith.truncf %10 : vector<14x4xf32> to vector<14x4xbf16>
    %c1_12 = arith.constant 1 : index
    %c0_13 = arith.constant 0 : index
    %c0_14 = arith.constant 0 : index
    %12 = vector.load %arg2[%c1_12, %c0_13, %c0_14] : memref<4x4x16xbf16, #tpu.memory_space<vmem>>, vector<1x4x16xbf16>
    %13 = vector.shape_cast %12 : vector<1x4x16xbf16> to vector<4x16xbf16>
    %cst_15 = arith.constant dense<0.000000e+00> : vector<14x16xf32>
    %14 = tpu.matmul %11, %13, %cst_15 {dimension_numbers = #tpu.dot_dimension_numbers<[1], [0], [0], [1], [0, 0, 1, 1], [], []>} : vector<14x4xbf16>, vector<4x16xbf16>, vector<14x16xf32> -> vector<14x16xf32>
    %15 = arith.addf %8, %14 : vector<14x16xf32>
    %c0_16 = arith.constant 0 : index
    %c1_17 = arith.constant 1 : index
    %c0_18 = arith.constant 0 : index
    %c0_19 = arith.constant 0 : index
    %16 = vector.load %arg1[%c0_16, %c1_17, %c0_18, %c0_19] : memref<1x15x15x4xf32, #tpu.memory_space<vmem>>, vector<1x1x14x4xf32>
    %17 = vector.shape_cast %16 : vector<1x1x14x4xf32> to vector<14x4xf32>
    %18 = arith.truncf %17 : vector<14x4xf32> to vector<14x4xbf16>
    %c2 = arith.constant 2 : index
    %c0_20 = arith.constant 0 : index
    %c0_21 = arith.constant 0 : index
    %19 = vector.load %arg2[%c2, %c0_20, %c0_21] : memref<4x4x16xbf16, #tpu.memory_space<vmem>>, vector<1x4x16xbf16>
    %20 = vector.shape_cast %19 : vector<1x4x16xbf16> to vector<4x16xbf16>
    %cst_22 = arith.constant dense<0.000000e+00> : vector<14x16xf32>
    %21 = tpu.matmul %18, %20, %cst_22 {dimension_numbers = #tpu.dot_dimension_numbers<[1], [0], [0], [1], [0, 0, 1, 1], [], []>} : vector<14x4xbf16>, vector<4x16xbf16>, vector<14x16xf32> -> vector<14x16xf32>
    %22 = arith.addf %15, %21 : vector<14x16xf32>
    %c0_23 = arith.constant 0 : index
    %c1_24 = arith.constant 1 : index
    %c1_25 = arith.constant 1 : index
    %c0_26 = arith.constant 0 : index
    %23 = vector.load %arg1[%c0_23, %c1_24, %c1_25, %c0_26] : memref<1x15x15x4xf32, #tpu.memory_space<vmem>>, vector<1x1x14x4xf32>
    %24 = vector.shape_cast %23 : vector<1x1x14x4xf32> to vector<14x4xf32>
    %25 = arith.truncf %24 : vector<14x4xf32> to vector<14x4xbf16>
    %c3 = arith.constant 3 : index
    %c0_27 = arith.constant 0 : index
    %c0_28 = arith.constant 0 : index
    %26 = vector.load %arg2[%c3, %c0_27, %c0_28] : memref<4x4x16xbf16, #tpu.memory_space<vmem>>, vector<1x4x16xbf16>
    %27 = vector.shape_cast %26 : vector<1x4x16xbf16> to vector<4x16xbf16>
    %cst_29 = arith.constant dense<0.000000e+00> : vector<14x16xf32>
    %28 = tpu.matmul %25, %27, %cst_29 {dimension_numbers = #tpu.dot_dimension_numbers<[1], [0], [0], [1], [0, 0, 1, 1], [], []>} : vector<14x4xbf16>, vector<4x16xbf16>, vector<14x16xf32> -> vector<14x16xf32>
    %29 = arith.addf %22, %28 : vector<14x16xf32>
    %30 = vector.broadcast %0 : vector<1x16xf32> to vector<14x16xf32>
    %31 = arith.addf %29, %30 : vector<14x16xf32>
    %cst_30 = arith.constant 0.000000e+00 : f32
    %32 = vector.broadcast %cst_30 : f32 to vector<14x16xf32>
    %33 = arith.maximumf %31, %32 : vector<14x16xf32>
    %c0_31 = arith.constant 0 : index
    %c0_32 = arith.constant 0 : index
    %c0_33 = arith.constant 0 : index
    %c0_34 = arith.constant 0 : index
    %34 = vector.load %arg4[%c0_31, %c0_32, %c0_33, %c0_34] : memref<1x14x14x16xf32, #tpu.memory_space<vmem>>, vector<1x1x14x16xf32>
    %35 = vector.shape_cast %34 : vector<1x1x14x16xf32> to vector<14x16xf32>
    %36 = vector.shape_cast %33 : vector<14x16xf32> to vector<1x1x14x16xf32>
    tpu.vector_store %arg4[%c0_31, %c0_32, %c0_33, %c0_34], %36 {strides = array<i32>} : memref<1x14x14x16xf32, #tpu.memory_space<vmem>>, vector<1x1x14x16xf32>,
    %cst_35 = arith.constant 0.000000e+00 : f32
    %37 = vector.broadcast %cst_35 : f32 to vector<14x16xf32>
    %c0_36 = arith.constant 0 : index
    %c1_37 = arith.constant 1 : index
    %c0_38 = arith.constant 0 : index
    %c0_39 = arith.constant 0 : index
    %38 = vector.load %arg1[%c0_36, %c1_37, %c0_38, %c0_39] : memref<1x15x15x4xf32, #tpu.memory_space<vmem>>, vector<1x1x14x4xf32>
    %39 = vector.shape_cast %38 : vector<1x1x14x4xf32> to vector<14x4xf32>
    %40 = arith.truncf %39 : vector<14x4xf32> to vector<14x4xbf16>
    %c0_40 = arith.constant 0 : index
    %c0_41 = arith.constant 0 : index
    %c0_42 = arith.constant 0 : index
    %41 = vector.load %arg2[%c0_40, %c0_41, %c0_42] : memref<4x4x16xbf16, #tpu.memory_space<vmem>>, vector<1x4x16xbf16>
    %42 = vector.shape_cast %41 : vector<1x4x16xbf16> to vector<4x16xbf16>
    %cst_43 = arith.constant dense<0.000000e+00> : vector<14x16xf32>
    %43 = tpu.matmul %40, %42, %cst_43 {dimension_numbers = #tpu.dot_dimension_numbers<[1], [0], [0], [1], [0, 0, 1, 1], [], []>} : vector<14x4xbf16>, vector<4x16xbf16>, vector<14x16xf32> -> vector<14x16xf32>
    %44 = arith.addf %37, %43 : vector<14x16xf32>
    %c0_44 = arith.constant 0 : index
    %c1_45 = arith.constant 1 : index
    %c1_46 = arith.constant 1 : index
    %c0_47 = arith.constant 0 : index
    %45 = vector.load %arg1[%c0_44, %c1_45, %c1_46, %c0_47] : memref<1x15x15x4xf32, #tpu.memory_space<vmem>>, vector<1x1x14x4xf32>
    %46 = vector.shape_cast %45 : vector<1x1x14x4xf32> to vector<14x4xf32>
    %47 = arith.truncf %46 : vector<14x4xf32> to vector<14x4xbf16>
    %c1_48 = arith.constant 1 : index
    %c0_49 = arith.constant 0 : index
    %c0_50 = arith.constant 0 : index
    %48 = vector.load %arg2[%c1_48, %c0_49, %c0_50] : memref<4x4x16xbf16, #tpu.memory_space<vmem>>, vector<1x4x16xbf16>
    %49 = vector.shape_cast %48 : vector<1x4x16xbf16> to vector<4x16xbf16>
    %cst_51 = arith.constant dense<0.000000e+00> : vector<14x16xf32>
    %50 = tpu.matmul %47, %49, %cst_51 {dimension_numbers = #tpu.dot_dimension_numbers<[1], [0], [0], [1], [0, 0, 1, 1], [], []>} : vector<14x4xbf16>, vector<4x16xbf16>, vector<14x16xf32> -> vector<14x16xf32>
    %51 = arith.addf %44, %50 : vector<14x16xf32>
    %c0_52 = arith.constant 0 : index
    %c2_53 = arith.constant 2 : index
    %c0_54 = arith.constant 0 : index
    %c0_55 = arith.constant 0 : index
    %52 = vector.load %arg1[%c0_52, %c2_53, %c0_54, %c0_55] : memref<1x15x15x4xf32, #tpu.memory_space<vmem>>, vector<1x1x14x4xf32>
    %53 = vector.shape_cast %52 : vector<1x1x14x4xf32> to vector<14x4xf32>
    %54 = arith.truncf %53 : vector<14x4xf32> to vector<14x4xbf16>
    %c2_56 = arith.constant 2 : index
    %c0_57 = arith.constant 0 : index
    %c0_58 = arith.constant 0 : index
    %55 = vector.load %arg2[%c2_56, %c0_57, %c0_58] : memref<4x4x16xbf16, #tpu.memory_space<vmem>>, vector<1x4x16xbf16>
    %56 = vector.shape_cast %55 : vector<1x4x16xbf16> to vector<4x16xbf16>
    %cst_59 = arith.constant dense<0.000000e+00> : vector<14x16xf32>
    %57 = tpu.matmul %54, %56, %cst_59 {dimension_numbers = #tpu.dot_dimension_numbers<[1], [0], [0], [1], [0, 0, 1, 1], [], []>} : vector<14x4xbf16>, vector<4x16xbf16>, vector<14x16xf32> -> vector<14x16xf32>
    %58 = arith.addf %51, %57 : vector<14x16xf32>
    %c0_60 = arith.constant 0 : index
    %c2_61 = arith.constant 2 : index
    %c1_62 = arith.constant 1 : index
    %c0_63 = arith.constant 0 : index
    %59 = vector.load %arg1[%c0_60, %c2_61, %c1_62, %c0_63] : memref<1x15x15x4xf32, #tpu.memory_space<vmem>>, vector<1x1x14x4xf32>
    %60 = vector.shape_cast %59 : vector<1x1x14x4xf32> to vector<14x4xf32>
    %61 = arith.truncf %60 : vector<14x4xf32> to vector<14x4xbf16>
    %c3_64 = arith.constant 3 : index
    %c0_65 = arith.constant 0 : index
    %c0_66 = arith.constant 0 : index
    %62 = vector.load %arg2[%c3_64, %c0_65, %c0_66] : memref<4x4x16xbf16, #tpu.memory_space<vmem>>, vector<1x4x16xbf16>
    %63 = vector.shape_cast %62 : vector<1x4x16xbf16> to vector<4x16xbf16>
    %cst_67 = arith.constant dense<0.000000e+00> : vector<14x16xf32>
    %64 = tpu.matmul %61, %63, %cst_67 {dimension_numbers = #tpu.dot_dimension_numbers<[1], [0], [0], [1], [0, 0, 1, 1], [], []>} : vector<14x4xbf16>, vector<4x16xbf16>, vector<14x16xf32> -> vector<14x16xf32>
    %65 = arith.addf %58, %64 : vector<14x16xf32>
    %66 = vector.broadcast %0 : vector<1x16xf32> to vector<14x16xf32>
    %67 = arith.addf %65, %66 : vector<14x16xf32>
    %cst_68 = arith.constant 0.000000e+00 : f32
    %68 = vector.broadcast %cst_68 : f32 to vector<14x16xf32>
    %69 = arith.maximumf %67, %68 : vector<14x16xf32>
    %c0_69 = arith.constant 0 : index
    %c1_70 = arith.constant 1 : index
    %c0_71 = arith.constant 0 : index
    %c0_72 = arith.constant 0 : index
    %70 = vector.load %arg4[%c0_69, %c1_70, %c0_71, %c0_72] : memref<1x14x14x16xf32, #tpu.memory_space<vmem>>, vector<1x1x14x16xf32>
    %71 = vector.shape_cast %70 : vector<1x1x14x16xf32> to vector<14x16xf32>
    %72 = vector.shape_cast %69 : vector<14x16xf32> to vector<1x1x14x16xf32>
    tpu.vector_store %arg4[%c0_69, %c1_70, %c0_71, %c0_72], %72 {strides = array<i32>} : memref<1x14x14x16xf32, #tpu.memory_space<vmem>>, vector<1x1x14x16xf32>,
    %cst_73 = arith.constant 0.000000e+00 : f32
    %73 = vector.broadcast %cst_73 : f32 to vector<14x16xf32>
    %c0_74 = arith.constant 0 : index
    %c2_75 = arith.constant 2 : index
    %c0_76 = arith.constant 0 : index
    %c0_77 = arith.constant 0 : index
    %74 = vector.load %arg1[%c0_74, %c2_75, %c0_76, %c0_77] : memref<1x15x15x4xf32, #tpu.memory_space<vmem>>, vector<1x1x14x4xf32>
    %75 = vector.shape_cast %74 : vector<1x1x14x4xf32> to vector<14x4xf32>
    %76 = arith.truncf %75 : vector<14x4xf32> to vector<14x4xbf16>
    %c0_78 = arith.constant 0 : index
    %c0_79 = arith.constant 0 : index
    %c0_80 = arith.constant 0 : index
    %77 = vector.load %arg2[%c0_78, %c0_79, %c0_80] : memref<4x4x16xbf16, #tpu.memory_space<vmem>>, vector<1x4x16xbf16>
    %78 = vector.shape_cast %77 : vector<1x4x16xbf16> to vector<4x16xbf16>
    %cst_81 = arith.constant dense<0.000000e+00> : vector<14x16xf32>
    %79 = tpu.matmul %76, %78, %cst_81 {dimension_numbers = #tpu.dot_dimension_numbers<[1], [0], [0], [1], [0, 0, 1, 1], [], []>} : vector<14x4xbf16>, vector<4x16xbf16>, vector<14x16xf32> -> vector<14x16xf32>
    %80 = arith.addf %73, %79 : vector<14x16xf32>
    %c0_82 = arith.constant 0 : index
    %c2_83 = arith.constant 2 : index
    %c1_84 = arith.constant 1 : index
    %c0_85 = arith.constant 0 : index
    %81 = vector.load %arg1[%c0_82, %c2_83, %c1_84, %c0_85] : memref<1x15x15x4xf32, #tpu.memory_space<vmem>>, vector<1x1x14x4xf32>
    %82 = vector.shape_cast %81 : vector<1x1x14x4xf32> to vector<14x4xf32>
    %83 = arith.truncf %82 : vector<14x4xf32> to vector<14x4xbf16>
    %c1_86 = arith.constant 1 : index
    %c0_87 = arith.constant 0 : index
    %c0_88 = arith.constant 0 : index
    %84 = vector.load %arg2[%c1_86, %c0_87, %c0_88] : memref<4x4x16xbf16, #tpu.memory_space<vmem>>, vector<1x4x16xbf16>
    %85 = vector.shape_cast %84 : vector<1x4x16xbf16> to vector<4x16xbf16>
    %cst_89 = arith.constant dense<0.000000e+00> : vector<14x16xf32>
    %86 = tpu.matmul %83, %85, %cst_89 {dimension_numbers = #tpu.dot_dimension_numbers<[1], [0], [0], [1], [0, 0, 1, 1], [], []>} : vector<14x4xbf16>, vector<4x16xbf16>, vector<14x16xf32> -> vector<14x16xf32>
    %87 = arith.addf %80, %86 : vector<14x16xf32>
    %c0_90 = arith.constant 0 : index
    %c3_91 = arith.constant 3 : index
    %c0_92 = arith.constant 0 : index
    %c0_93 = arith.constant 0 : index
    %88 = vector.load %arg1[%c0_90, %c3_91, %c0_92, %c0_93] : memref<1x15x15x4xf32, #tpu.memory_space<vmem>>, vector<1x1x14x4xf32>
    %89 = vector.shape_cast %88 : vector<1x1x14x4xf32> to vector<14x4xf32>
    %90 = arith.truncf %89 : vector<14x4xf32> to vector<14x4xbf16>
    %c2_94 = arith.constant 2 : index
    %c0_95 = arith.constant 0 : index
    %c0_96 = arith.constant 0 : index
    %91 = vector.load %arg2[%c2_94, %c0_95, %c0_96] : memref<4x4x16xbf16, #tpu.memory_space<vmem>>, vector<1x4x16xbf16>
    %92 = vector.shape_cast %91 : vector<1x4x16xbf16> to vector<4x16xbf16>
    %cst_97 = arith.constant dense<0.000000e+00> : vector<14x16xf32>
    %93 = tpu.matmul %90, %92, %cst_97 {dimension_numbers = #tpu.dot_dimension_numbers<[1], [0], [0], [1], [0, 0, 1, 1], [], []>} : vector<14x4xbf16>, vector<4x16xbf16>, vector<14x16xf32> -> vector<14x16xf32>
    %94 = arith.addf %87, %93 : vector<14x16xf32>
    %c0_98 = arith.constant 0 : index
    %c3_99 = arith.constant 3 : index
    %c1_100 = arith.constant 1 : index
    %c0_101 = arith.constant 0 : index
    %95 = vector.load %arg1[%c0_98, %c3_99, %c1_100, %c0_101] : memref<1x15x15x4xf32, #tpu.memory_space<vmem>>, vector<1x1x14x4xf32>
    %96 = vector.shape_cast %95 : vector<1x1x14x4xf32> to vector<14x4xf32>
    %97 = arith.truncf %96 : vector<14x4xf32> to vector<14x4xbf16>
    %c3_102 = arith.constant 3 : index
    %c0_103 = arith.constant 0 : index
    %c0_104 = arith.constant 0 : index
    %98 = vector.load %arg2[%c3_102, %c0_103, %c0_104] : memref<4x4x16xbf16, #tpu.memory_space<vmem>>, vector<1x4x16xbf16>
    %99 = vector.shape_cast %98 : vector<1x4x16xbf16> to vector<4x16xbf16>
    %cst_105 = arith.constant dense<0.000000e+00> : vector<14x16xf32>
    %100 = tpu.matmul %97, %99, %cst_105 {dimension_numbers = #tpu.dot_dimension_numbers<[1], [0], [0], [1], [0, 0, 1, 1], [], []>} : vector<14x4xbf16>, vector<4x16xbf16>, vector<14x16xf32> -> vector<14x16xf32>
    %101 = arith.addf %94, %100 : vector<14x16xf32>
    %102 = vector.broadcast %0 : vector<1x16xf32> to vector<14x16xf32>
    %103 = arith.addf %101, %102 : vector<14x16xf32>
    %cst_106 = arith.constant 0.000000e+00 : f32
    %104 = vector.broadcast %cst_106 : f32 to vector<14x16xf32>
    %105 = arith.maximumf %103, %104 : vector<14x16xf32>
    %c0_107 = arith.constant 0 : index
    %c2_108 = arith.constant 2 : index
    %c0_109 = arith.constant 0 : index
    %c0_110 = arith.constant 0 : index
    %106 = vector.load %arg4[%c0_107, %c2_108, %c0_109, %c0_110] : memref<1x14x14x16xf32, #tpu.memory_space<vmem>>, vector<1x1x14x16xf32>
    %107 = vector.shape_cast %106 : vector<1x1x14x16xf32> to vector<14x16xf32>
    %108 = vector.shape_cast %105 : vector<14x16xf32> to vector<1x1x14x16xf32>
    tpu.vector_store %arg4[%c0_107, %c2_108, %c0_109, %c0_110], %108 {strides = array<i32>} : memref<1x14x14x16xf32, #tpu.memory_space<vmem>>, vector<1x1x14x16xf32>,
    %cst_111 = arith.constant 0.000000e+00 : f32
    %109 = vector.broadcast %cst_111 : f32 to vector<14x16xf32>
    %c0_112 = arith.constant 0 : index
    %c3_113 = arith.constant 3 : index
    %c0_114 = arith.constant 0 : index
    %c0_115 = arith.constant 0 : index
    %110 = vector.load %arg1[%c0_112, %c3_113, %c0_114, %c0_115] : memref<1x15x15x4xf32, #tpu.memory_space<vmem>>, vector<1x1x14x4xf32>
    %111 = vector.shape_cast %110 : vector<1x1x14x4xf32> to vector<14x4xf32>
    %112 = arith.truncf %111 : vector<14x4xf32> to vector<14x4xbf16>
    %c0_116 = arith.constant 0 : index
    %c0_117 = arith.constant 0 : index
    %c0_118 = arith.constant 0 : index
    %113 = vector.load %arg2[%c0_116, %c0_117, %c0_118] : memref<4x4x16xbf16, #tpu.memory_space<vmem>>, vector<1x4x16xbf16>
    %114 = vector.shape_cast %113 : vector<1x4x16xbf16> to vector<4x16xbf16>
    %cst_119 = arith.constant dense<0.000000e+00> : vector<14x16xf32>
    %115 = tpu.matmul %112, %114, %cst_119 {dimension_numbers = #tpu.dot_dimension_numbers<[1], [0], [0], [1], [0, 0, 1, 1], [], []>} : vector<14x4xbf16>, vector<4x16xbf16>, vector<14x16xf32> -> vector<14x16xf32>
    %116 = arith.addf %109, %115 : vector<14x16xf32>
    %c0_120 = arith.constant 0 : index
    %c3_121 = arith.constant 3 : index
    %c1_122 = arith.constant 1 : index
    %c0_123 = arith.constant 0 : index
    %117 = vector.load %arg1[%c0_120, %c3_121, %c1_122, %c0_123] : memref<1x15x15x4xf32, #tpu.memory_space<vmem>>, vector<1x1x14x4xf32>
    %118 = vector.shape_cast %117 : vector<1x1x14x4xf32> to vector<14x4xf32>
    %119 = arith.truncf %118 : vector<14x4xf32> to vector<14x4xbf16>
    %c1_124 = arith.constant 1 : index
    %c0_125 = arith.constant 0 : index
    %c0_126 = arith.constant 0 : index
    %120 = vector.load %arg2[%c1_124, %c0_125, %c0_126] : memref<4x4x16xbf16, #tpu.memory_space<vmem>>, vector<1x4x16xbf16>
    %121 = vector.shape_cast %120 : vector<1x4x16xbf16> to vector<4x16xbf16>
    %cst_127 = arith.constant dense<0.000000e+00> : vector<14x16xf32>
    %122 = tpu.matmul %119, %121, %cst_127 {dimension_numbers = #tpu.dot_dimension_numbers<[1], [0], [0], [1], [0, 0, 1, 1], [], []>} : vector<14x4xbf16>, vector<4x16xbf16>, vector<14x16xf32> -> vector<14x16xf32>
    %123 = arith.addf %116, %122 : vector<14x16xf32>
    %c0_128 = arith.constant 0 : index
    %c4 = arith.constant 4 : index
    %c0_129 = arith.constant 0 : index
    %c0_130 = arith.constant 0 : index
    %124 = vector.load %arg1[%c0_128, %c4, %c0_129, %c0_130] : memref<1x15x15x4xf32, #tpu.memory_space<vmem>>, vector<1x1x14x4xf32>
    %125 = vector.shape_cast %124 : vector<1x1x14x4xf32> to vector<14x4xf32>
    %126 = arith.truncf %125 : vector<14x4xf32> to vector<14x4xbf16>
    %c2_131 = arith.constant 2 : index
    %c0_132 = arith.constant 0 : index
    %c0_133 = arith.constant 0 : index
    %127 = vector.load %arg2[%c2_131, %c0_132, %c0_133] : memref<4x4x16xbf16, #tpu.memory_space<vmem>>, vector<1x4x16xbf16>
    %128 = vector.shape_cast %127 : vector<1x4x16xbf16> to vector<4x16xbf16>
    %cst_134 = arith.constant dense<0.000000e+00> : vector<14x16xf32>
    %129 = tpu.matmul %126, %128, %cst_134 {dimension_numbers = #tpu.dot_dimension_numbers<[1], [0], [0], [1], [0, 0, 1, 1], [], []>} : vector<14x4xbf16>, vector<4x16xbf16>, vector<14x16xf32> -> vector<14x16xf32>
    %130 = arith.addf %123, %129 : vector<14x16xf32>
    %c0_135 = arith.constant 0 : index
    %c4_136 = arith.constant 4 : index
    %c1_137 = arith.constant 1 : index
    %c0_138 = arith.constant 0 : index
    %131 = vector.load %arg1[%c0_135, %c4_136, %c1_137, %c0_138] : memref<1x15x15x4xf32, #tpu.memory_space<vmem>>, vector<1x1x14x4xf32>
    %132 = vector.shape_cast %131 : vector<1x1x14x4xf32> to vector<14x4xf32>
    %133 = arith.truncf %132 : vector<14x4xf32> to vector<14x4xbf16>
    %c3_139 = arith.constant 3 : index
    %c0_140 = arith.constant 0 : index
    %c0_141 = arith.constant 0 : index
    %134 = vector.load %arg2[%c3_139, %c0_140, %c0_141] : memref<4x4x16xbf16, #tpu.memory_space<vmem>>, vector<1x4x16xbf16>
    %135 = vector.shape_cast %134 : vector<1x4x16xbf16> to vector<4x16xbf16>
    %cst_142 = arith.constant dense<0.000000e+00> : vector<14x16xf32>
    %136 = tpu.matmul %133, %135, %cst_142 {dimension_numbers = #tpu.dot_dimension_numbers<[1], [0], [0], [1], [0, 0, 1, 1], [], []>} : vector<14x4xbf16>, vector<4x16xbf16>, vector<14x16xf32> -> vector<14x16xf32>
    %137 = arith.addf %130, %136 : vector<14x16xf32>
    %138 = vector.broadcast %0 : vector<1x16xf32> to vector<14x16xf32>
    %139 = arith.addf %137, %138 : vector<14x16xf32>
    %cst_143 = arith.constant 0.000000e+00 : f32
    %140 = vector.broadcast %cst_143 : f32 to vector<14x16xf32>
    %141 = arith.maximumf %139, %140 : vector<14x16xf32>
    %c0_144 = arith.constant 0 : index
    %c3_145 = arith.constant 3 : index
    %c0_146 = arith.constant 0 : index
    %c0_147 = arith.constant 0 : index
    %142 = vector.load %arg4[%c0_144, %c3_145, %c0_146, %c0_147] : memref<1x14x14x16xf32, #tpu.memory_space<vmem>>, vector<1x1x14x16xf32>
    %143 = vector.shape_cast %142 : vector<1x1x14x16xf32> to vector<14x16xf32>
    %144 = vector.shape_cast %141 : vector<14x16xf32> to vector<1x1x14x16xf32>
    tpu.vector_store %arg4[%c0_144, %c3_145, %c0_146, %c0_147], %144 {strides = array<i32>} : memref<1x14x14x16xf32, #tpu.memory_space<vmem>>, vector<1x1x14x16xf32>,
    %cst_148 = arith.constant 0.000000e+00 : f32
    %145 = vector.broadcast %cst_148 : f32 to vector<14x16xf32>
    %c0_149 = arith.constant 0 : index
    %c4_150 = arith.constant 4 : index
    %c0_151 = arith.constant 0 : index
    %c0_152 = arith.constant 0 : index
    %146 = vector.load %arg1[%c0_149, %c4_150, %c0_151, %c0_152] : memref<1x15x15x4xf32, #tpu.memory_space<vmem>>, vector<1x1x14x4xf32>
    %147 = vector.shape_cast %146 : vector<1x1x14x4xf32> to vector<14x4xf32>
    %148 = arith.truncf %147 : vector<14x4xf32> to vector<14x4xbf16>
    %c0_153 = arith.constant 0 : index
    %c0_154 = arith.constant 0 : index
    %c0_155 = arith.constant 0 : index
    %149 = vector.load %arg2[%c0_153, %c0_154, %c0_155] : memref<4x4x16xbf16, #tpu.memory_space<vmem>>, vector<1x4x16xbf16>
    %150 = vector.shape_cast %149 : vector<1x4x16xbf16> to vector<4x16xbf16>
    %cst_156 = arith.constant dense<0.000000e+00> : vector<14x16xf32>
    %151 = tpu.matmul %148, %150, %cst_156 {dimension_numbers = #tpu.dot_dimension_numbers<[1], [0], [0], [1], [0, 0, 1, 1], [], []>} : vector<14x4xbf16>, vector<4x16xbf16>, vector<14x16xf32> -> vector<14x16xf32>
    %152 = arith.addf %145, %151 : vector<14x16xf32>
    %c0_157 = arith.constant 0 : index
    %c4_158 = arith.constant 4 : index
    %c1_159 = arith.constant 1 : index
    %c0_160 = arith.constant 0 : index
    %153 = vector.load %arg1[%c0_157, %c4_158, %c1_159, %c0_160] : memref<1x15x15x4xf32, #tpu.memory_space<vmem>>, vector<1x1x14x4xf32>
    %154 = vector.shape_cast %153 : vector<1x1x14x4xf32> to vector<14x4xf32>
    %155 = arith.truncf %154 : vector<14x4xf32> to vector<14x4xbf16>
    %c1_161 = arith.constant 1 : index
    %c0_162 = arith.constant 0 : index
    %c0_163 = arith.constant 0 : index
    %156 = vector.load %arg2[%c1_161, %c0_162, %c0_163] : memref<4x4x16xbf16, #tpu.memory_space<vmem>>, vector<1x4x16xbf16>
    %157 = vector.shape_cast %156 : vector<1x4x16xbf16> to vector<4x16xbf16>
    %cst_164 = arith.constant dense<0.000000e+00> : vector<14x16xf32>
    %158 = tpu.matmul %155, %157, %cst_164 {dimension_numbers = #tpu.dot_dimension_numbers<[1], [0], [0], [1], [0, 0, 1, 1], [], []>} : vector<14x4xbf16>, vector<4x16xbf16>, vector<14x16xf32> -> vector<14x16xf32>
    %159 = arith.addf %152, %158 : vector<14x16xf32>
    %c0_165 = arith.constant 0 : index
    %c5 = arith.constant 5 : index
    %c0_166 = arith.constant 0 : index
    %c0_167 = arith.constant 0 : index
    %160 = vector.load %arg1[%c0_165, %c5, %c0_166, %c0_167] : memref<1x15x15x4xf32, #tpu.memory_space<vmem>>, vector<1x1x14x4xf32>
    %161 = vector.shape_cast %160 : vector<1x1x14x4xf32> to vector<14x4xf32>
    %162 = arith.truncf %161 : vector<14x4xf32> to vector<14x4xbf16>
    %c2_168 = arith.constant 2 : index
    %c0_169 = arith.constant 0 : index
    %c0_170 = arith.constant 0 : index
    %163 = vector.load %arg2[%c2_168, %c0_169, %c0_170] : memref<4x4x16xbf16, #tpu.memory_space<vmem>>, vector<1x4x16xbf16>
    %164 = vector.shape_cast %163 : vector<1x4x16xbf16> to vector<4x16xbf16>
    %cst_171 = arith.constant dense<0.000000e+00> : vector<14x16xf32>
    %165 = tpu.matmul %162, %164, %cst_171 {dimension_numbers = #tpu.dot_dimension_numbers<[1], [0], [0], [1], [0, 0, 1, 1], [], []>} : vector<14x4xbf16>, vector<4x16xbf16>, vector<14x16xf32> -> vector<14x16xf32>
    %166 = arith.addf %159, %165 : vector<14x16xf32>
    %c0_172 = arith.constant 0 : index
    %c5_173 = arith.constant 5 : index
    %c1_174 = arith.constant 1 : index
    %c0_175 = arith.constant 0 : index
    %167 = vector.load %arg1[%c0_172, %c5_173, %c1_174, %c0_175] : memref<1x15x15x4xf32, #tpu.memory_space<vmem>>, vector<1x1x14x4xf32>
    %168 = vector.shape_cast %167 : vector<1x1x14x4xf32> to vector<14x4xf32>
    %169 = arith.truncf %168 : vector<14x4xf32> to vector<14x4xbf16>
    %c3_176 = arith.constant 3 : index
    %c0_177 = arith.constant 0 : index
    %c0_178 = arith.constant 0 : index
    %170 = vector.load %arg2[%c3_176, %c0_177, %c0_178] : memref<4x4x16xbf16, #tpu.memory_space<vmem>>, vector<1x4x16xbf16>
    %171 = vector.shape_cast %170 : vector<1x4x16xbf16> to vector<4x16xbf16>
    %cst_179 = arith.constant dense<0.000000e+00> : vector<14x16xf32>
    %172 = tpu.matmul %169, %171, %cst_179 {dimension_numbers = #tpu.dot_dimension_numbers<[1], [0], [0], [1], [0, 0, 1, 1], [], []>} : vector<14x4xbf16>, vector<4x16xbf16>, vector<14x16xf32> -> vector<14x16xf32>
    %173 = arith.addf %166, %172 : vector<14x16xf32>
    %174 = vector.broadcast %0 : vector<1x16xf32> to vector<14x16xf32>
    %175 = arith.addf %173, %174 : vector<14x16xf32>
    %cst_180 = arith.constant 0.000000e+00 : f32
    %176 = vector.broadcast %cst_180 : f32 to vector<14x16xf32>
    %177 = arith.maximumf %175, %176 : vector<14x16xf32>
    %c0_181 = arith.constant 0 : index
    %c4_182 = arith.constant 4 : index
    %c0_183 = arith.constant 0 : index
    %c0_184 = arith.constant 0 : index
    %178 = vector.load %arg4[%c0_181, %c4_182, %c0_183, %c0_184] : memref<1x14x14x16xf32, #tpu.memory_space<vmem>>, vector<1x1x14x16xf32>
    %179 = vector.shape_cast %178 : vector<1x1x14x16xf32> to vector<14x16xf32>
    %180 = vector.shape_cast %177 : vector<14x16xf32> to vector<1x1x14x16xf32>
    tpu.vector_store %arg4[%c0_181, %c4_182, %c0_183, %c0_184], %180 {strides = array<i32>} : memref<1x14x14x16xf32, #tpu.memory_space<vmem>>, vector<1x1x14x16xf32>,
    %cst_185 = arith.constant 0.000000e+00 : f32
    %181 = vector.broadcast %cst_185 : f32 to vector<14x16xf32>
    %c0_186 = arith.constant 0 : index
    %c5_187 = arith.constant 5 : index
    %c0_188 = arith.constant 0 : index
    %c0_189 = arith.constant 0 : index
    %182 = vector.load %arg1[%c0_186, %c5_187, %c0_188, %c0_189] : memref<1x15x15x4xf32, #tpu.memory_space<vmem>>, vector<1x1x14x4xf32>
    %183 = vector.shape_cast %182 : vector<1x1x14x4xf32> to vector<14x4xf32>
    %184 = arith.truncf %183 : vector<14x4xf32> to vector<14x4xbf16>
    %c0_190 = arith.constant 0 : index
    %c0_191 = arith.constant 0 : index
    %c0_192 = arith.constant 0 : index
    %185 = vector.load %arg2[%c0_190, %c0_191, %c0_192] : memref<4x4x16xbf16, #tpu.memory_space<vmem>>, vector<1x4x16xbf16>
    %186 = vector.shape_cast %185 : vector<1x4x16xbf16> to vector<4x16xbf16>
    %cst_193 = arith.constant dense<0.000000e+00> : vector<14x16xf32>
    %187 = tpu.matmul %184, %186, %cst_193 {dimension_numbers = #tpu.dot_dimension_numbers<[1], [0], [0], [1], [0, 0, 1, 1], [], []>} : vector<14x4xbf16>, vector<4x16xbf16>, vector<14x16xf32> -> vector<14x16xf32>
    %188 = arith.addf %181, %187 : vector<14x16xf32>
    %c0_194 = arith.constant 0 : index
    %c5_195 = arith.constant 5 : index
    %c1_196 = arith.constant 1 : index
    %c0_197 = arith.constant 0 : index
    %189 = vector.load %arg1[%c0_194, %c5_195, %c1_196, %c0_197] : memref<1x15x15x4xf32, #tpu.memory_space<vmem>>, vector<1x1x14x4xf32>
    %190 = vector.shape_cast %189 : vector<1x1x14x4xf32> to vector<14x4xf32>
    %191 = arith.truncf %190 : vector<14x4xf32> to vector<14x4xbf16>
    %c1_198 = arith.constant 1 : index
    %c0_199 = arith.constant 0 : index
    %c0_200 = arith.constant 0 : index
    %192 = vector.load %arg2[%c1_198, %c0_199, %c0_200] : memref<4x4x16xbf16, #tpu.memory_space<vmem>>, vector<1x4x16xbf16>
    %193 = vector.shape_cast %192 : vector<1x4x16xbf16> to vector<4x16xbf16>
    %cst_201 = arith.constant dense<0.000000e+00> : vector<14x16xf32>
    %194 = tpu.matmul %191, %193, %cst_201 {dimension_numbers = #tpu.dot_dimension_numbers<[1], [0], [0], [1], [0, 0, 1, 1], [], []>} : vector<14x4xbf16>, vector<4x16xbf16>, vector<14x16xf32> -> vector<14x16xf32>
    %195 = arith.addf %188, %194 : vector<14x16xf32>
    %c0_202 = arith.constant 0 : index
    %c6 = arith.constant 6 : index
    %c0_203 = arith.constant 0 : index
    %c0_204 = arith.constant 0 : index
    %196 = vector.load %arg1[%c0_202, %c6, %c0_203, %c0_204] : memref<1x15x15x4xf32, #tpu.memory_space<vmem>>, vector<1x1x14x4xf32>
    %197 = vector.shape_cast %196 : vector<1x1x14x4xf32> to vector<14x4xf32>
    %198 = arith.truncf %197 : vector<14x4xf32> to vector<14x4xbf16>
    %c2_205 = arith.constant 2 : index
    %c0_206 = arith.constant 0 : index
    %c0_207 = arith.constant 0 : index
    %199 = vector.load %arg2[%c2_205, %c0_206, %c0_207] : memref<4x4x16xbf16, #tpu.memory_space<vmem>>, vector<1x4x16xbf16>
    %200 = vector.shape_cast %199 : vector<1x4x16xbf16> to vector<4x16xbf16>
    %cst_208 = arith.constant dense<0.000000e+00> : vector<14x16xf32>
    %201 = tpu.matmul %198, %200, %cst_208 {dimension_numbers = #tpu.dot_dimension_numbers<[1], [0], [0], [1], [0, 0, 1, 1], [], []>} : vector<14x4xbf16>, vector<4x16xbf16>, vector<14x16xf32> -> vector<14x16xf32>
    %202 = arith.addf %195, %201 : vector<14x16xf32>
    %c0_209 = arith.constant 0 : index
    %c6_210 = arith.constant 6 : index
    %c1_211 = arith.constant 1 : index
    %c0_212 = arith.constant 0 : index
    %203 = vector.load %arg1[%c0_209, %c6_210, %c1_211, %c0_212] : memref<1x15x15x4xf32, #tpu.memory_space<vmem>>, vector<1x1x14x4xf32>
    %204 = vector.shape_cast %203 : vector<1x1x14x4xf32> to vector<14x4xf32>
    %205 = arith.truncf %204 : vector<14x4xf32> to vector<14x4xbf16>
    %c3_213 = arith.constant 3 : index
    %c0_214 = arith.constant 0 : index
    %c0_215 = arith.constant 0 : index
    %206 = vector.load %arg2[%c3_213, %c0_214, %c0_215] : memref<4x4x16xbf16, #tpu.memory_space<vmem>>, vector<1x4x16xbf16>
    %207 = vector.shape_cast %206 : vector<1x4x16xbf16> to vector<4x16xbf16>
    %cst_216 = arith.constant dense<0.000000e+00> : vector<14x16xf32>
    %208 = tpu.matmul %205, %207, %cst_216 {dimension_numbers = #tpu.dot_dimension_numbers<[1], [0], [0], [1], [0, 0, 1, 1], [], []>} : vector<14x4xbf16>, vector<4x16xbf16>, vector<14x16xf32> -> vector<14x16xf32>
    %209 = arith.addf %202, %208 : vector<14x16xf32>
    %210 = vector.broadcast %0 : vector<1x16xf32> to vector<14x16xf32>
    %211 = arith.addf %209, %210 : vector<14x16xf32>
    %cst_217 = arith.constant 0.000000e+00 : f32
    %212 = vector.broadcast %cst_217 : f32 to vector<14x16xf32>
    %213 = arith.maximumf %211, %212 : vector<14x16xf32>
    %c0_218 = arith.constant 0 : index
    %c5_219 = arith.constant 5 : index
    %c0_220 = arith.constant 0 : index
    %c0_221 = arith.constant 0 : index
    %214 = vector.load %arg4[%c0_218, %c5_219, %c0_220, %c0_221] : memref<1x14x14x16xf32, #tpu.memory_space<vmem>>, vector<1x1x14x16xf32>
    %215 = vector.shape_cast %214 : vector<1x1x14x16xf32> to vector<14x16xf32>
    %216 = vector.shape_cast %213 : vector<14x16xf32> to vector<1x1x14x16xf32>
    tpu.vector_store %arg4[%c0_218, %c5_219, %c0_220, %c0_221], %216 {strides = array<i32>} : memref<1x14x14x16xf32, #tpu.memory_space<vmem>>, vector<1x1x14x16xf32>,
    %cst_222 = arith.constant 0.000000e+00 : f32
    %217 = vector.broadcast %cst_222 : f32 to vector<14x16xf32>
    %c0_223 = arith.constant 0 : index
    %c6_224 = arith.constant 6 : index
    %c0_225 = arith.constant 0 : index
    %c0_226 = arith.constant 0 : index
    %218 = vector.load %arg1[%c0_223, %c6_224, %c0_225, %c0_226] : memref<1x15x15x4xf32, #tpu.memory_space<vmem>>, vector<1x1x14x4xf32>
    %219 = vector.shape_cast %218 : vector<1x1x14x4xf32> to vector<14x4xf32>
    %220 = arith.truncf %219 : vector<14x4xf32> to vector<14x4xbf16>
    %c0_227 = arith.constant 0 : index
    %c0_228 = arith.constant 0 : index
    %c0_229 = arith.constant 0 : index
    %221 = vector.load %arg2[%c0_227, %c0_228, %c0_229] : memref<4x4x16xbf16, #tpu.memory_space<vmem>>, vector<1x4x16xbf16>
    %222 = vector.shape_cast %221 : vector<1x4x16xbf16> to vector<4x16xbf16>
    %cst_230 = arith.constant dense<0.000000e+00> : vector<14x16xf32>
    %223 = tpu.matmul %220, %222, %cst_230 {dimension_numbers = #tpu.dot_dimension_numbers<[1], [0], [0], [1], [0, 0, 1, 1], [], []>} : vector<14x4xbf16>, vector<4x16xbf16>, vector<14x16xf32> -> vector<14x16xf32>
    %224 = arith.addf %217, %223 : vector<14x16xf32>
    %c0_231 = arith.constant 0 : index
    %c6_232 = arith.constant 6 : index
    %c1_233 = arith.constant 1 : index
    %c0_234 = arith.constant 0 : index
    %225 = vector.load %arg1[%c0_231, %c6_232, %c1_233, %c0_234] : memref<1x15x15x4xf32, #tpu.memory_space<vmem>>, vector<1x1x14x4xf32>
    %226 = vector.shape_cast %225 : vector<1x1x14x4xf32> to vector<14x4xf32>
    %227 = arith.truncf %226 : vector<14x4xf32> to vector<14x4xbf16>
    %c1_235 = arith.constant 1 : index
    %c0_236 = arith.constant 0 : index
    %c0_237 = arith.constant 0 : index
    %228 = vector.load %arg2[%c1_235, %c0_236, %c0_237] : memref<4x4x16xbf16, #tpu.memory_space<vmem>>, vector<1x4x16xbf16>
    %229 = vector.shape_cast %228 : vector<1x4x16xbf16> to vector<4x16xbf16>
    %cst_238 = arith.constant dense<0.000000e+00> : vector<14x16xf32>
    %230 = tpu.matmul %227, %229, %cst_238 {dimension_numbers = #tpu.dot_dimension_numbers<[1], [0], [0], [1], [0, 0, 1, 1], [], []>} : vector<14x4xbf16>, vector<4x16xbf16>, vector<14x16xf32> -> vector<14x16xf32>
    %231 = arith.addf %224, %230 : vector<14x16xf32>
    %c0_239 = arith.constant 0 : index
    %c7 = arith.constant 7 : index
    %c0_240 = arith.constant 0 : index
    %c0_241 = arith.constant 0 : index
    %232 = vector.load %arg1[%c0_239, %c7, %c0_240, %c0_241] : memref<1x15x15x4xf32, #tpu.memory_space<vmem>>, vector<1x1x14x4xf32>
    %233 = vector.shape_cast %232 : vector<1x1x14x4xf32> to vector<14x4xf32>
    %234 = arith.truncf %233 : vector<14x4xf32> to vector<14x4xbf16>
    %c2_242 = arith.constant 2 : index
    %c0_243 = arith.constant 0 : index
    %c0_244 = arith.constant 0 : index
    %235 = vector.load %arg2[%c2_242, %c0_243, %c0_244] : memref<4x4x16xbf16, #tpu.memory_space<vmem>>, vector<1x4x16xbf16>
    %236 = vector.shape_cast %235 : vector<1x4x16xbf16> to vector<4x16xbf16>
    %cst_245 = arith.constant dense<0.000000e+00> : vector<14x16xf32>
    %237 = tpu.matmul %234, %236, %cst_245 {dimension_numbers = #tpu.dot_dimension_numbers<[1], [0], [0], [1], [0, 0, 1, 1], [], []>} : vector<14x4xbf16>, vector<4x16xbf16>, vector<14x16xf32> -> vector<14x16xf32>
    %238 = arith.addf %231, %237 : vector<14x16xf32>
    %c0_246 = arith.constant 0 : index
    %c7_247 = arith.constant 7 : index
    %c1_248 = arith.constant 1 : index
    %c0_249 = arith.constant 0 : index
    %239 = vector.load %arg1[%c0_246, %c7_247, %c1_248, %c0_249] : memref<1x15x15x4xf32, #tpu.memory_space<vmem>>, vector<1x1x14x4xf32>
    %240 = vector.shape_cast %239 : vector<1x1x14x4xf32> to vector<14x4xf32>
    %241 = arith.truncf %240 : vector<14x4xf32> to vector<14x4xbf16>
    %c3_250 = arith.constant 3 : index
    %c0_251 = arith.constant 0 : index
    %c0_252 = arith.constant 0 : index
    %242 = vector.load %arg2[%c3_250, %c0_251, %c0_252] : memref<4x4x16xbf16, #tpu.memory_space<vmem>>, vector<1x4x16xbf16>
    %243 = vector.shape_cast %242 : vector<1x4x16xbf16> to vector<4x16xbf16>
    %cst_253 = arith.constant dense<0.000000e+00> : vector<14x16xf32>
    %244 = tpu.matmul %241, %243, %cst_253 {dimension_numbers = #tpu.dot_dimension_numbers<[1], [0], [0], [1], [0, 0, 1, 1], [], []>} : vector<14x4xbf16>, vector<4x16xbf16>, vector<14x16xf32> -> vector<14x16xf32>
    %245 = arith.addf %238, %244 : vector<14x16xf32>
    %246 = vector.broadcast %0 : vector<1x16xf32> to vector<14x16xf32>
    %247 = arith.addf %245, %246 : vector<14x16xf32>
    %cst_254 = arith.constant 0.000000e+00 : f32
    %248 = vector.broadcast %cst_254 : f32 to vector<14x16xf32>
    %249 = arith.maximumf %247, %248 : vector<14x16xf32>
    %c0_255 = arith.constant 0 : index
    %c6_256 = arith.constant 6 : index
    %c0_257 = arith.constant 0 : index
    %c0_258 = arith.constant 0 : index
    %250 = vector.load %arg4[%c0_255, %c6_256, %c0_257, %c0_258] : memref<1x14x14x16xf32, #tpu.memory_space<vmem>>, vector<1x1x14x16xf32>
    %251 = vector.shape_cast %250 : vector<1x1x14x16xf32> to vector<14x16xf32>
    %252 = vector.shape_cast %249 : vector<14x16xf32> to vector<1x1x14x16xf32>
    tpu.vector_store %arg4[%c0_255, %c6_256, %c0_257, %c0_258], %252 {strides = array<i32>} : memref<1x14x14x16xf32, #tpu.memory_space<vmem>>, vector<1x1x14x16xf32>,
    %cst_259 = arith.constant 0.000000e+00 : f32
    %253 = vector.broadcast %cst_259 : f32 to vector<14x16xf32>
    %c0_260 = arith.constant 0 : index
    %c7_261 = arith.constant 7 : index
    %c0_262 = arith.constant 0 : index
    %c0_263 = arith.constant 0 : index
    %254 = vector.load %arg1[%c0_260, %c7_261, %c0_262, %c0_263] : memref<1x15x15x4xf32, #tpu.memory_space<vmem>>, vector<1x1x14x4xf32>
    %255 = vector.shape_cast %254 : vector<1x1x14x4xf32> to vector<14x4xf32>
    %256 = arith.truncf %255 : vector<14x4xf32> to vector<14x4xbf16>
    %c0_264 = arith.constant 0 : index
    %c0_265 = arith.constant 0 : index
    %c0_266 = arith.constant 0 : index
    %257 = vector.load %arg2[%c0_264, %c0_265, %c0_266] : memref<4x4x16xbf16, #tpu.memory_space<vmem>>, vector<1x4x16xbf16>
    %258 = vector.shape_cast %257 : vector<1x4x16xbf16> to vector<4x16xbf16>
    %cst_267 = arith.constant dense<0.000000e+00> : vector<14x16xf32>
    %259 = tpu.matmul %256, %258, %cst_267 {dimension_numbers = #tpu.dot_dimension_numbers<[1], [0], [0], [1], [0, 0, 1, 1], [], []>} : vector<14x4xbf16>, vector<4x16xbf16>, vector<14x16xf32> -> vector<14x16xf32>
    %260 = arith.addf %253, %259 : vector<14x16xf32>
    %c0_268 = arith.constant 0 : index
    %c7_269 = arith.constant 7 : index
    %c1_270 = arith.constant 1 : index
    %c0_271 = arith.constant 0 : index
    %261 = vector.load %arg1[%c0_268, %c7_269, %c1_270, %c0_271] : memref<1x15x15x4xf32, #tpu.memory_space<vmem>>, vector<1x1x14x4xf32>
    %262 = vector.shape_cast %261 : vector<1x1x14x4xf32> to vector<14x4xf32>
    %263 = arith.truncf %262 : vector<14x4xf32> to vector<14x4xbf16>
    %c1_272 = arith.constant 1 : index
    %c0_273 = arith.constant 0 : index
    %c0_274 = arith.constant 0 : index
    %264 = vector.load %arg2[%c1_272, %c0_273, %c0_274] : memref<4x4x16xbf16, #tpu.memory_space<vmem>>, vector<1x4x16xbf16>
    %265 = vector.shape_cast %264 : vector<1x4x16xbf16> to vector<4x16xbf16>
    %cst_275 = arith.constant dense<0.000000e+00> : vector<14x16xf32>
    %266 = tpu.matmul %263, %265, %cst_275 {dimension_numbers = #tpu.dot_dimension_numbers<[1], [0], [0], [1], [0, 0, 1, 1], [], []>} : vector<14x4xbf16>, vector<4x16xbf16>, vector<14x16xf32> -> vector<14x16xf32>
    %267 = arith.addf %260, %266 : vector<14x16xf32>
    %c0_276 = arith.constant 0 : index
    %c8 = arith.constant 8 : index
    %c0_277 = arith.constant 0 : index
    %c0_278 = arith.constant 0 : index
    %268 = vector.load %arg1[%c0_276, %c8, %c0_277, %c0_278] : memref<1x15x15x4xf32, #tpu.memory_space<vmem>>, vector<1x1x14x4xf32>
    %269 = vector.shape_cast %268 : vector<1x1x14x4xf32> to vector<14x4xf32>
    %270 = arith.truncf %269 : vector<14x4xf32> to vector<14x4xbf16>
    %c2_279 = arith.constant 2 : index
    %c0_280 = arith.constant 0 : index
    %c0_281 = arith.constant 0 : index
    %271 = vector.load %arg2[%c2_279, %c0_280, %c0_281] : memref<4x4x16xbf16, #tpu.memory_space<vmem>>, vector<1x4x16xbf16>
    %272 = vector.shape_cast %271 : vector<1x4x16xbf16> to vector<4x16xbf16>
    %cst_282 = arith.constant dense<0.000000e+00> : vector<14x16xf32>
    %273 = tpu.matmul %270, %272, %cst_282 {dimension_numbers = #tpu.dot_dimension_numbers<[1], [0], [0], [1], [0, 0, 1, 1], [], []>} : vector<14x4xbf16>, vector<4x16xbf16>, vector<14x16xf32> -> vector<14x16xf32>
    %274 = arith.addf %267, %273 : vector<14x16xf32>
    %c0_283 = arith.constant 0 : index
    %c8_284 = arith.constant 8 : index
    %c1_285 = arith.constant 1 : index
    %c0_286 = arith.constant 0 : index
    %275 = vector.load %arg1[%c0_283, %c8_284, %c1_285, %c0_286] : memref<1x15x15x4xf32, #tpu.memory_space<vmem>>, vector<1x1x14x4xf32>
    %276 = vector.shape_cast %275 : vector<1x1x14x4xf32> to vector<14x4xf32>
    %277 = arith.truncf %276 : vector<14x4xf32> to vector<14x4xbf16>
    %c3_287 = arith.constant 3 : index
    %c0_288 = arith.constant 0 : index
    %c0_289 = arith.constant 0 : index
    %278 = vector.load %arg2[%c3_287, %c0_288, %c0_289] : memref<4x4x16xbf16, #tpu.memory_space<vmem>>, vector<1x4x16xbf16>
    %279 = vector.shape_cast %278 : vector<1x4x16xbf16> to vector<4x16xbf16>
    %cst_290 = arith.constant dense<0.000000e+00> : vector<14x16xf32>
    %280 = tpu.matmul %277, %279, %cst_290 {dimension_numbers = #tpu.dot_dimension_numbers<[1], [0], [0], [1], [0, 0, 1, 1], [], []>} : vector<14x4xbf16>, vector<4x16xbf16>, vector<14x16xf32> -> vector<14x16xf32>
    %281 = arith.addf %274, %280 : vector<14x16xf32>
    %282 = vector.broadcast %0 : vector<1x16xf32> to vector<14x16xf32>
    %283 = arith.addf %281, %282 : vector<14x16xf32>
    %cst_291 = arith.constant 0.000000e+00 : f32
    %284 = vector.broadcast %cst_291 : f32 to vector<14x16xf32>
    %285 = arith.maximumf %283, %284 : vector<14x16xf32>
    %c0_292 = arith.constant 0 : index
    %c7_293 = arith.constant 7 : index
    %c0_294 = arith.constant 0 : index
    %c0_295 = arith.constant 0 : index
    %286 = vector.load %arg4[%c0_292, %c7_293, %c0_294, %c0_295] : memref<1x14x14x16xf32, #tpu.memory_space<vmem>>, vector<1x1x14x16xf32>
    %287 = vector.shape_cast %286 : vector<1x1x14x16xf32> to vector<14x16xf32>
    %288 = vector.shape_cast %285 : vector<14x16xf32> to vector<1x1x14x16xf32>
    tpu.vector_store %arg4[%c0_292, %c7_293, %c0_294, %c0_295], %288 {strides = array<i32>} : memref<1x14x14x16xf32, #tpu.memory_space<vmem>>, vector<1x1x14x16xf32>,
    %cst_296 = arith.constant 0.000000e+00 : f32
    %289 = vector.broadcast %cst_296 : f32 to vector<14x16xf32>
    %c0_297 = arith.constant 0 : index
    %c8_298 = arith.constant 8 : index
    %c0_299 = arith.constant 0 : index
    %c0_300 = arith.constant 0 : index
    %290 = vector.load %arg1[%c0_297, %c8_298, %c0_299, %c0_300] : memref<1x15x15x4xf32, #tpu.memory_space<vmem>>, vector<1x1x14x4xf32>
    %291 = vector.shape_cast %290 : vector<1x1x14x4xf32> to vector<14x4xf32>
    %292 = arith.truncf %291 : vector<14x4xf32> to vector<14x4xbf16>
    %c0_301 = arith.constant 0 : index
    %c0_302 = arith.constant 0 : index
    %c0_303 = arith.constant 0 : index
    %293 = vector.load %arg2[%c0_301, %c0_302, %c0_303] : memref<4x4x16xbf16, #tpu.memory_space<vmem>>, vector<1x4x16xbf16>
    %294 = vector.shape_cast %293 : vector<1x4x16xbf16> to vector<4x16xbf16>
    %cst_304 = arith.constant dense<0.000000e+00> : vector<14x16xf32>
    %295 = tpu.matmul %292, %294, %cst_304 {dimension_numbers = #tpu.dot_dimension_numbers<[1], [0], [0], [1], [0, 0, 1, 1], [], []>} : vector<14x4xbf16>, vector<4x16xbf16>, vector<14x16xf32> -> vector<14x16xf32>
    %296 = arith.addf %289, %295 : vector<14x16xf32>
    %c0_305 = arith.constant 0 : index
    %c8_306 = arith.constant 8 : index
    %c1_307 = arith.constant 1 : index
    %c0_308 = arith.constant 0 : index
    %297 = vector.load %arg1[%c0_305, %c8_306, %c1_307, %c0_308] : memref<1x15x15x4xf32, #tpu.memory_space<vmem>>, vector<1x1x14x4xf32>
    %298 = vector.shape_cast %297 : vector<1x1x14x4xf32> to vector<14x4xf32>
    %299 = arith.truncf %298 : vector<14x4xf32> to vector<14x4xbf16>
    %c1_309 = arith.constant 1 : index
    %c0_310 = arith.constant 0 : index
    %c0_311 = arith.constant 0 : index
    %300 = vector.load %arg2[%c1_309, %c0_310, %c0_311] : memref<4x4x16xbf16, #tpu.memory_space<vmem>>, vector<1x4x16xbf16>
    %301 = vector.shape_cast %300 : vector<1x4x16xbf16> to vector<4x16xbf16>
    %cst_312 = arith.constant dense<0.000000e+00> : vector<14x16xf32>
    %302 = tpu.matmul %299, %301, %cst_312 {dimension_numbers = #tpu.dot_dimension_numbers<[1], [0], [0], [1], [0, 0, 1, 1], [], []>} : vector<14x4xbf16>, vector<4x16xbf16>, vector<14x16xf32> -> vector<14x16xf32>
    %303 = arith.addf %296, %302 : vector<14x16xf32>
    %c0_313 = arith.constant 0 : index
    %c9 = arith.constant 9 : index
    %c0_314 = arith.constant 0 : index
    %c0_315 = arith.constant 0 : index
    %304 = vector.load %arg1[%c0_313, %c9, %c0_314, %c0_315] : memref<1x15x15x4xf32, #tpu.memory_space<vmem>>, vector<1x1x14x4xf32>
    %305 = vector.shape_cast %304 : vector<1x1x14x4xf32> to vector<14x4xf32>
    %306 = arith.truncf %305 : vector<14x4xf32> to vector<14x4xbf16>
    %c2_316 = arith.constant 2 : index
    %c0_317 = arith.constant 0 : index
    %c0_318 = arith.constant 0 : index
    %307 = vector.load %arg2[%c2_316, %c0_317, %c0_318] : memref<4x4x16xbf16, #tpu.memory_space<vmem>>, vector<1x4x16xbf16>
    %308 = vector.shape_cast %307 : vector<1x4x16xbf16> to vector<4x16xbf16>
    %cst_319 = arith.constant dense<0.000000e+00> : vector<14x16xf32>
    %309 = tpu.matmul %306, %308, %cst_319 {dimension_numbers = #tpu.dot_dimension_numbers<[1], [0], [0], [1], [0, 0, 1, 1], [], []>} : vector<14x4xbf16>, vector<4x16xbf16>, vector<14x16xf32> -> vector<14x16xf32>
    %310 = arith.addf %303, %309 : vector<14x16xf32>
    %c0_320 = arith.constant 0 : index
    %c9_321 = arith.constant 9 : index
    %c1_322 = arith.constant 1 : index
    %c0_323 = arith.constant 0 : index
    %311 = vector.load %arg1[%c0_320, %c9_321, %c1_322, %c0_323] : memref<1x15x15x4xf32, #tpu.memory_space<vmem>>, vector<1x1x14x4xf32>
    %312 = vector.shape_cast %311 : vector<1x1x14x4xf32> to vector<14x4xf32>
    %313 = arith.truncf %312 : vector<14x4xf32> to vector<14x4xbf16>
    %c3_324 = arith.constant 3 : index
    %c0_325 = arith.constant 0 : index
    %c0_326 = arith.constant 0 : index
    %314 = vector.load %arg2[%c3_324, %c0_325, %c0_326] : memref<4x4x16xbf16, #tpu.memory_space<vmem>>, vector<1x4x16xbf16>
    %315 = vector.shape_cast %314 : vector<1x4x16xbf16> to vector<4x16xbf16>
    %cst_327 = arith.constant dense<0.000000e+00> : vector<14x16xf32>
    %316 = tpu.matmul %313, %315, %cst_327 {dimension_numbers = #tpu.dot_dimension_numbers<[1], [0], [0], [1], [0, 0, 1, 1], [], []>} : vector<14x4xbf16>, vector<4x16xbf16>, vector<14x16xf32> -> vector<14x16xf32>
    %317 = arith.addf %310, %316 : vector<14x16xf32>
    %318 = vector.broadcast %0 : vector<1x16xf32> to vector<14x16xf32>
    %319 = arith.addf %317, %318 : vector<14x16xf32>
    %cst_328 = arith.constant 0.000000e+00 : f32
    %320 = vector.broadcast %cst_328 : f32 to vector<14x16xf32>
    %321 = arith.maximumf %319, %320 : vector<14x16xf32>
    %c0_329 = arith.constant 0 : index
    %c8_330 = arith.constant 8 : index
    %c0_331 = arith.constant 0 : index
    %c0_332 = arith.constant 0 : index
    %322 = vector.load %arg4[%c0_329, %c8_330, %c0_331, %c0_332] : memref<1x14x14x16xf32, #tpu.memory_space<vmem>>, vector<1x1x14x16xf32>
    %323 = vector.shape_cast %322 : vector<1x1x14x16xf32> to vector<14x16xf32>
    %324 = vector.shape_cast %321 : vector<14x16xf32> to vector<1x1x14x16xf32>
    tpu.vector_store %arg4[%c0_329, %c8_330, %c0_331, %c0_332], %324 {strides = array<i32>} : memref<1x14x14x16xf32, #tpu.memory_space<vmem>>, vector<1x1x14x16xf32>,
    %cst_333 = arith.constant 0.000000e+00 : f32
    %325 = vector.broadcast %cst_333 : f32 to vector<14x16xf32>
    %c0_334 = arith.constant 0 : index
    %c9_335 = arith.constant 9 : index
    %c0_336 = arith.constant 0 : index
    %c0_337 = arith.constant 0 : index
    %326 = vector.load %arg1[%c0_334, %c9_335, %c0_336, %c0_337] : memref<1x15x15x4xf32, #tpu.memory_space<vmem>>, vector<1x1x14x4xf32>
    %327 = vector.shape_cast %326 : vector<1x1x14x4xf32> to vector<14x4xf32>
    %328 = arith.truncf %327 : vector<14x4xf32> to vector<14x4xbf16>
    %c0_338 = arith.constant 0 : index
    %c0_339 = arith.constant 0 : index
    %c0_340 = arith.constant 0 : index
    %329 = vector.load %arg2[%c0_338, %c0_339, %c0_340] : memref<4x4x16xbf16, #tpu.memory_space<vmem>>, vector<1x4x16xbf16>
    %330 = vector.shape_cast %329 : vector<1x4x16xbf16> to vector<4x16xbf16>
    %cst_341 = arith.constant dense<0.000000e+00> : vector<14x16xf32>
    %331 = tpu.matmul %328, %330, %cst_341 {dimension_numbers = #tpu.dot_dimension_numbers<[1], [0], [0], [1], [0, 0, 1, 1], [], []>} : vector<14x4xbf16>, vector<4x16xbf16>, vector<14x16xf32> -> vector<14x16xf32>
    %332 = arith.addf %325, %331 : vector<14x16xf32>
    %c0_342 = arith.constant 0 : index
    %c9_343 = arith.constant 9 : index
    %c1_344 = arith.constant 1 : index
    %c0_345 = arith.constant 0 : index
    %333 = vector.load %arg1[%c0_342, %c9_343, %c1_344, %c0_345] : memref<1x15x15x4xf32, #tpu.memory_space<vmem>>, vector<1x1x14x4xf32>
    %334 = vector.shape_cast %333 : vector<1x1x14x4xf32> to vector<14x4xf32>
    %335 = arith.truncf %334 : vector<14x4xf32> to vector<14x4xbf16>
    %c1_346 = arith.constant 1 : index
    %c0_347 = arith.constant 0 : index
    %c0_348 = arith.constant 0 : index
    %336 = vector.load %arg2[%c1_346, %c0_347, %c0_348] : memref<4x4x16xbf16, #tpu.memory_space<vmem>>, vector<1x4x16xbf16>
    %337 = vector.shape_cast %336 : vector<1x4x16xbf16> to vector<4x16xbf16>
    %cst_349 = arith.constant dense<0.000000e+00> : vector<14x16xf32>
    %338 = tpu.matmul %335, %337, %cst_349 {dimension_numbers = #tpu.dot_dimension_numbers<[1], [0], [0], [1], [0, 0, 1, 1], [], []>} : vector<14x4xbf16>, vector<4x16xbf16>, vector<14x16xf32> -> vector<14x16xf32>
    %339 = arith.addf %332, %338 : vector<14x16xf32>
    %c0_350 = arith.constant 0 : index
    %c10 = arith.constant 10 : index
    %c0_351 = arith.constant 0 : index
    %c0_352 = arith.constant 0 : index
    %340 = vector.load %arg1[%c0_350, %c10, %c0_351, %c0_352] : memref<1x15x15x4xf32, #tpu.memory_space<vmem>>, vector<1x1x14x4xf32>
    %341 = vector.shape_cast %340 : vector<1x1x14x4xf32> to vector<14x4xf32>
    %342 = arith.truncf %341 : vector<14x4xf32> to vector<14x4xbf16>
    %c2_353 = arith.constant 2 : index
    %c0_354 = arith.constant 0 : index
    %c0_355 = arith.constant 0 : index
    %343 = vector.load %arg2[%c2_353, %c0_354, %c0_355] : memref<4x4x16xbf16, #tpu.memory_space<vmem>>, vector<1x4x16xbf16>
    %344 = vector.shape_cast %343 : vector<1x4x16xbf16> to vector<4x16xbf16>
    %cst_356 = arith.constant dense<0.000000e+00> : vector<14x16xf32>
    %345 = tpu.matmul %342, %344, %cst_356 {dimension_numbers = #tpu.dot_dimension_numbers<[1], [0], [0], [1], [0, 0, 1, 1], [], []>} : vector<14x4xbf16>, vector<4x16xbf16>, vector<14x16xf32> -> vector<14x16xf32>
    %346 = arith.addf %339, %345 : vector<14x16xf32>
    %c0_357 = arith.constant 0 : index
    %c10_358 = arith.constant 10 : index
    %c1_359 = arith.constant 1 : index
    %c0_360 = arith.constant 0 : index
    %347 = vector.load %arg1[%c0_357, %c10_358, %c1_359, %c0_360] : memref<1x15x15x4xf32, #tpu.memory_space<vmem>>, vector<1x1x14x4xf32>
    %348 = vector.shape_cast %347 : vector<1x1x14x4xf32> to vector<14x4xf32>
    %349 = arith.truncf %348 : vector<14x4xf32> to vector<14x4xbf16>
    %c3_361 = arith.constant 3 : index
    %c0_362 = arith.constant 0 : index
    %c0_363 = arith.constant 0 : index
    %350 = vector.load %arg2[%c3_361, %c0_362, %c0_363] : memref<4x4x16xbf16, #tpu.memory_space<vmem>>, vector<1x4x16xbf16>
    %351 = vector.shape_cast %350 : vector<1x4x16xbf16> to vector<4x16xbf16>
    %cst_364 = arith.constant dense<0.000000e+00> : vector<14x16xf32>
    %352 = tpu.matmul %349, %351, %cst_364 {dimension_numbers = #tpu.dot_dimension_numbers<[1], [0], [0], [1], [0, 0, 1, 1], [], []>} : vector<14x4xbf16>, vector<4x16xbf16>, vector<14x16xf32> -> vector<14x16xf32>
    %353 = arith.addf %346, %352 : vector<14x16xf32>
    %354 = vector.broadcast %0 : vector<1x16xf32> to vector<14x16xf32>
    %355 = arith.addf %353, %354 : vector<14x16xf32>
    %cst_365 = arith.constant 0.000000e+00 : f32
    %356 = vector.broadcast %cst_365 : f32 to vector<14x16xf32>
    %357 = arith.maximumf %355, %356 : vector<14x16xf32>
    %c0_366 = arith.constant 0 : index
    %c9_367 = arith.constant 9 : index
    %c0_368 = arith.constant 0 : index
    %c0_369 = arith.constant 0 : index
    %358 = vector.load %arg4[%c0_366, %c9_367, %c0_368, %c0_369] : memref<1x14x14x16xf32, #tpu.memory_space<vmem>>, vector<1x1x14x16xf32>
    %359 = vector.shape_cast %358 : vector<1x1x14x16xf32> to vector<14x16xf32>
    %360 = vector.shape_cast %357 : vector<14x16xf32> to vector<1x1x14x16xf32>
    tpu.vector_store %arg4[%c0_366, %c9_367, %c0_368, %c0_369], %360 {strides = array<i32>} : memref<1x14x14x16xf32, #tpu.memory_space<vmem>>, vector<1x1x14x16xf32>,
    %cst_370 = arith.constant 0.000000e+00 : f32
    %361 = vector.broadcast %cst_370 : f32 to vector<14x16xf32>
    %c0_371 = arith.constant 0 : index
    %c10_372 = arith.constant 10 : index
    %c0_373 = arith.constant 0 : index
    %c0_374 = arith.constant 0 : index
    %362 = vector.load %arg1[%c0_371, %c10_372, %c0_373, %c0_374] : memref<1x15x15x4xf32, #tpu.memory_space<vmem>>, vector<1x1x14x4xf32>
    %363 = vector.shape_cast %362 : vector<1x1x14x4xf32> to vector<14x4xf32>
    %364 = arith.truncf %363 : vector<14x4xf32> to vector<14x4xbf16>
    %c0_375 = arith.constant 0 : index
    %c0_376 = arith.constant 0 : index
    %c0_377 = arith.constant 0 : index
    %365 = vector.load %arg2[%c0_375, %c0_376, %c0_377] : memref<4x4x16xbf16, #tpu.memory_space<vmem>>, vector<1x4x16xbf16>
    %366 = vector.shape_cast %365 : vector<1x4x16xbf16> to vector<4x16xbf16>
    %cst_378 = arith.constant dense<0.000000e+00> : vector<14x16xf32>
    %367 = tpu.matmul %364, %366, %cst_378 {dimension_numbers = #tpu.dot_dimension_numbers<[1], [0], [0], [1], [0, 0, 1, 1], [], []>} : vector<14x4xbf16>, vector<4x16xbf16>, vector<14x16xf32> -> vector<14x16xf32>
    %368 = arith.addf %361, %367 : vector<14x16xf32>
    %c0_379 = arith.constant 0 : index
    %c10_380 = arith.constant 10 : index
    %c1_381 = arith.constant 1 : index
    %c0_382 = arith.constant 0 : index
    %369 = vector.load %arg1[%c0_379, %c10_380, %c1_381, %c0_382] : memref<1x15x15x4xf32, #tpu.memory_space<vmem>>, vector<1x1x14x4xf32>
    %370 = vector.shape_cast %369 : vector<1x1x14x4xf32> to vector<14x4xf32>
    %371 = arith.truncf %370 : vector<14x4xf32> to vector<14x4xbf16>
    %c1_383 = arith.constant 1 : index
    %c0_384 = arith.constant 0 : index
    %c0_385 = arith.constant 0 : index
    %372 = vector.load %arg2[%c1_383, %c0_384, %c0_385] : memref<4x4x16xbf16, #tpu.memory_space<vmem>>, vector<1x4x16xbf16>
    %373 = vector.shape_cast %372 : vector<1x4x16xbf16> to vector<4x16xbf16>
    %cst_386 = arith.constant dense<0.000000e+00> : vector<14x16xf32>
    %374 = tpu.matmul %371, %373, %cst_386 {dimension_numbers = #tpu.dot_dimension_numbers<[1], [0], [0], [1], [0, 0, 1, 1], [], []>} : vector<14x4xbf16>, vector<4x16xbf16>, vector<14x16xf32> -> vector<14x16xf32>
    %375 = arith.addf %368, %374 : vector<14x16xf32>
    %c0_387 = arith.constant 0 : index
    %c11 = arith.constant 11 : index
    %c0_388 = arith.constant 0 : index
    %c0_389 = arith.constant 0 : index
    %376 = vector.load %arg1[%c0_387, %c11, %c0_388, %c0_389] : memref<1x15x15x4xf32, #tpu.memory_space<vmem>>, vector<1x1x14x4xf32>
    %377 = vector.shape_cast %376 : vector<1x1x14x4xf32> to vector<14x4xf32>
    %378 = arith.truncf %377 : vector<14x4xf32> to vector<14x4xbf16>
    %c2_390 = arith.constant 2 : index
    %c0_391 = arith.constant 0 : index
    %c0_392 = arith.constant 0 : index
    %379 = vector.load %arg2[%c2_390, %c0_391, %c0_392] : memref<4x4x16xbf16, #tpu.memory_space<vmem>>, vector<1x4x16xbf16>
    %380 = vector.shape_cast %379 : vector<1x4x16xbf16> to vector<4x16xbf16>
    %cst_393 = arith.constant dense<0.000000e+00> : vector<14x16xf32>
    %381 = tpu.matmul %378, %380, %cst_393 {dimension_numbers = #tpu.dot_dimension_numbers<[1], [0], [0], [1], [0, 0, 1, 1], [], []>} : vector<14x4xbf16>, vector<4x16xbf16>, vector<14x16xf32> -> vector<14x16xf32>
    %382 = arith.addf %375, %381 : vector<14x16xf32>
    %c0_394 = arith.constant 0 : index
    %c11_395 = arith.constant 11 : index
    %c1_396 = arith.constant 1 : index
    %c0_397 = arith.constant 0 : index
    %383 = vector.load %arg1[%c0_394, %c11_395, %c1_396, %c0_397] : memref<1x15x15x4xf32, #tpu.memory_space<vmem>>, vector<1x1x14x4xf32>
    %384 = vector.shape_cast %383 : vector<1x1x14x4xf32> to vector<14x4xf32>
    %385 = arith.truncf %384 : vector<14x4xf32> to vector<14x4xbf16>
    %c3_398 = arith.constant 3 : index
    %c0_399 = arith.constant 0 : index
    %c0_400 = arith.constant 0 : index
    %386 = vector.load %arg2[%c3_398, %c0_399, %c0_400] : memref<4x4x16xbf16, #tpu.memory_space<vmem>>, vector<1x4x16xbf16>
    %387 = vector.shape_cast %386 : vector<1x4x16xbf16> to vector<4x16xbf16>
    %cst_401 = arith.constant dense<0.000000e+00> : vector<14x16xf32>
    %388 = tpu.matmul %385, %387, %cst_401 {dimension_numbers = #tpu.dot_dimension_numbers<[1], [0], [0], [1], [0, 0, 1, 1], [], []>} : vector<14x4xbf16>, vector<4x16xbf16>, vector<14x16xf32> -> vector<14x16xf32>
    %389 = arith.addf %382, %388 : vector<14x16xf32>
    %390 = vector.broadcast %0 : vector<1x16xf32> to vector<14x16xf32>
    %391 = arith.addf %389, %390 : vector<14x16xf32>
    %cst_402 = arith.constant 0.000000e+00 : f32
    %392 = vector.broadcast %cst_402 : f32 to vector<14x16xf32>
    %393 = arith.maximumf %391, %392 : vector<14x16xf32>
    %c0_403 = arith.constant 0 : index
    %c10_404 = arith.constant 10 : index
    %c0_405 = arith.constant 0 : index
    %c0_406 = arith.constant 0 : index
    %394 = vector.load %arg4[%c0_403, %c10_404, %c0_405, %c0_406] : memref<1x14x14x16xf32, #tpu.memory_space<vmem>>, vector<1x1x14x16xf32>
    %395 = vector.shape_cast %394 : vector<1x1x14x16xf32> to vector<14x16xf32>
    %396 = vector.shape_cast %393 : vector<14x16xf32> to vector<1x1x14x16xf32>
    tpu.vector_store %arg4[%c0_403, %c10_404, %c0_405, %c0_406], %396 {strides = array<i32>} : memref<1x14x14x16xf32, #tpu.memory_space<vmem>>, vector<1x1x14x16xf32>,
    %cst_407 = arith.constant 0.000000e+00 : f32
    %397 = vector.broadcast %cst_407 : f32 to vector<14x16xf32>
    %c0_408 = arith.constant 0 : index
    %c11_409 = arith.constant 11 : index
    %c0_410 = arith.constant 0 : index
    %c0_411 = arith.constant 0 : index
    %398 = vector.load %arg1[%c0_408, %c11_409, %c0_410, %c0_411] : memref<1x15x15x4xf32, #tpu.memory_space<vmem>>, vector<1x1x14x4xf32>
    %399 = vector.shape_cast %398 : vector<1x1x14x4xf32> to vector<14x4xf32>
    %400 = arith.truncf %399 : vector<14x4xf32> to vector<14x4xbf16>
    %c0_412 = arith.constant 0 : index
    %c0_413 = arith.constant 0 : index
    %c0_414 = arith.constant 0 : index
    %401 = vector.load %arg2[%c0_412, %c0_413, %c0_414] : memref<4x4x16xbf16, #tpu.memory_space<vmem>>, vector<1x4x16xbf16>
    %402 = vector.shape_cast %401 : vector<1x4x16xbf16> to vector<4x16xbf16>
    %cst_415 = arith.constant dense<0.000000e+00> : vector<14x16xf32>
    %403 = tpu.matmul %400, %402, %cst_415 {dimension_numbers = #tpu.dot_dimension_numbers<[1], [0], [0], [1], [0, 0, 1, 1], [], []>} : vector<14x4xbf16>, vector<4x16xbf16>, vector<14x16xf32> -> vector<14x16xf32>
    %404 = arith.addf %397, %403 : vector<14x16xf32>
    %c0_416 = arith.constant 0 : index
    %c11_417 = arith.constant 11 : index
    %c1_418 = arith.constant 1 : index
    %c0_419 = arith.constant 0 : index
    %405 = vector.load %arg1[%c0_416, %c11_417, %c1_418, %c0_419] : memref<1x15x15x4xf32, #tpu.memory_space<vmem>>, vector<1x1x14x4xf32>
    %406 = vector.shape_cast %405 : vector<1x1x14x4xf32> to vector<14x4xf32>
    %407 = arith.truncf %406 : vector<14x4xf32> to vector<14x4xbf16>
    %c1_420 = arith.constant 1 : index
    %c0_421 = arith.constant 0 : index
    %c0_422 = arith.constant 0 : index
    %408 = vector.load %arg2[%c1_420, %c0_421, %c0_422] : memref<4x4x16xbf16, #tpu.memory_space<vmem>>, vector<1x4x16xbf16>
    %409 = vector.shape_cast %408 : vector<1x4x16xbf16> to vector<4x16xbf16>
    %cst_423 = arith.constant dense<0.000000e+00> : vector<14x16xf32>
    %410 = tpu.matmul %407, %409, %cst_423 {dimension_numbers = #tpu.dot_dimension_numbers<[1], [0], [0], [1], [0, 0, 1, 1], [], []>} : vector<14x4xbf16>, vector<4x16xbf16>, vector<14x16xf32> -> vector<14x16xf32>
    %411 = arith.addf %404, %410 : vector<14x16xf32>
    %c0_424 = arith.constant 0 : index
    %c12 = arith.constant 12 : index
    %c0_425 = arith.constant 0 : index
    %c0_426 = arith.constant 0 : index
    %412 = vector.load %arg1[%c0_424, %c12, %c0_425, %c0_426] : memref<1x15x15x4xf32, #tpu.memory_space<vmem>>, vector<1x1x14x4xf32>
    %413 = vector.shape_cast %412 : vector<1x1x14x4xf32> to vector<14x4xf32>
    %414 = arith.truncf %413 : vector<14x4xf32> to vector<14x4xbf16>
    %c2_427 = arith.constant 2 : index
    %c0_428 = arith.constant 0 : index
    %c0_429 = arith.constant 0 : index
    %415 = vector.load %arg2[%c2_427, %c0_428, %c0_429] : memref<4x4x16xbf16, #tpu.memory_space<vmem>>, vector<1x4x16xbf16>
    %416 = vector.shape_cast %415 : vector<1x4x16xbf16> to vector<4x16xbf16>
    %cst_430 = arith.constant dense<0.000000e+00> : vector<14x16xf32>
    %417 = tpu.matmul %414, %416, %cst_430 {dimension_numbers = #tpu.dot_dimension_numbers<[1], [0], [0], [1], [0, 0, 1, 1], [], []>} : vector<14x4xbf16>, vector<4x16xbf16>, vector<14x16xf32> -> vector<14x16xf32>
    %418 = arith.addf %411, %417 : vector<14x16xf32>
    %c0_431 = arith.constant 0 : index
    %c12_432 = arith.constant 12 : index
    %c1_433 = arith.constant 1 : index
    %c0_434 = arith.constant 0 : index
    %419 = vector.load %arg1[%c0_431, %c12_432, %c1_433, %c0_434] : memref<1x15x15x4xf32, #tpu.memory_space<vmem>>, vector<1x1x14x4xf32>
    %420 = vector.shape_cast %419 : vector<1x1x14x4xf32> to vector<14x4xf32>
    %421 = arith.truncf %420 : vector<14x4xf32> to vector<14x4xbf16>
    %c3_435 = arith.constant 3 : index
    %c0_436 = arith.constant 0 : index
    %c0_437 = arith.constant 0 : index
    %422 = vector.load %arg2[%c3_435, %c0_436, %c0_437] : memref<4x4x16xbf16, #tpu.memory_space<vmem>>, vector<1x4x16xbf16>
    %423 = vector.shape_cast %422 : vector<1x4x16xbf16> to vector<4x16xbf16>
    %cst_438 = arith.constant dense<0.000000e+00> : vector<14x16xf32>
    %424 = tpu.matmul %421, %423, %cst_438 {dimension_numbers = #tpu.dot_dimension_numbers<[1], [0], [0], [1], [0, 0, 1, 1], [], []>} : vector<14x4xbf16>, vector<4x16xbf16>, vector<14x16xf32> -> vector<14x16xf32>
    %425 = arith.addf %418, %424 : vector<14x16xf32>
    %426 = vector.broadcast %0 : vector<1x16xf32> to vector<14x16xf32>
    %427 = arith.addf %425, %426 : vector<14x16xf32>
    %cst_439 = arith.constant 0.000000e+00 : f32
    %428 = vector.broadcast %cst_439 : f32 to vector<14x16xf32>
    %429 = arith.maximumf %427, %428 : vector<14x16xf32>
    %c0_440 = arith.constant 0 : index
    %c11_441 = arith.constant 11 : index
    %c0_442 = arith.constant 0 : index
    %c0_443 = arith.constant 0 : index
    %430 = vector.load %arg4[%c0_440, %c11_441, %c0_442, %c0_443] : memref<1x14x14x16xf32, #tpu.memory_space<vmem>>, vector<1x1x14x16xf32>
    %431 = vector.shape_cast %430 : vector<1x1x14x16xf32> to vector<14x16xf32>
    %432 = vector.shape_cast %429 : vector<14x16xf32> to vector<1x1x14x16xf32>
    tpu.vector_store %arg4[%c0_440, %c11_441, %c0_442, %c0_443], %432 {strides = array<i32>} : memref<1x14x14x16xf32, #tpu.memory_space<vmem>>, vector<1x1x14x16xf32>,
    %cst_444 = arith.constant 0.000000e+00 : f32
    %433 = vector.broadcast %cst_444 : f32 to vector<14x16xf32>
    %c0_445 = arith.constant 0 : index
    %c12_446 = arith.constant 12 : index
    %c0_447 = arith.constant 0 : index
    %c0_448 = arith.constant 0 : index
    %434 = vector.load %arg1[%c0_445, %c12_446, %c0_447, %c0_448] : memref<1x15x15x4xf32, #tpu.memory_space<vmem>>, vector<1x1x14x4xf32>
    %435 = vector.shape_cast %434 : vector<1x1x14x4xf32> to vector<14x4xf32>
    %436 = arith.truncf %435 : vector<14x4xf32> to vector<14x4xbf16>
    %c0_449 = arith.constant 0 : index
    %c0_450 = arith.constant 0 : index
    %c0_451 = arith.constant 0 : index
    %437 = vector.load %arg2[%c0_449, %c0_450, %c0_451] : memref<4x4x16xbf16, #tpu.memory_space<vmem>>, vector<1x4x16xbf16>
    %438 = vector.shape_cast %437 : vector<1x4x16xbf16> to vector<4x16xbf16>
    %cst_452 = arith.constant dense<0.000000e+00> : vector<14x16xf32>
    %439 = tpu.matmul %436, %438, %cst_452 {dimension_numbers = #tpu.dot_dimension_numbers<[1], [0], [0], [1], [0, 0, 1, 1], [], []>} : vector<14x4xbf16>, vector<4x16xbf16>, vector<14x16xf32> -> vector<14x16xf32>
    %440 = arith.addf %433, %439 : vector<14x16xf32>
    %c0_453 = arith.constant 0 : index
    %c12_454 = arith.constant 12 : index
    %c1_455 = arith.constant 1 : index
    %c0_456 = arith.constant 0 : index
    %441 = vector.load %arg1[%c0_453, %c12_454, %c1_455, %c0_456] : memref<1x15x15x4xf32, #tpu.memory_space<vmem>>, vector<1x1x14x4xf32>
    %442 = vector.shape_cast %441 : vector<1x1x14x4xf32> to vector<14x4xf32>
    %443 = arith.truncf %442 : vector<14x4xf32> to vector<14x4xbf16>
    %c1_457 = arith.constant 1 : index
    %c0_458 = arith.constant 0 : index
    %c0_459 = arith.constant 0 : index
    %444 = vector.load %arg2[%c1_457, %c0_458, %c0_459] : memref<4x4x16xbf16, #tpu.memory_space<vmem>>, vector<1x4x16xbf16>
    %445 = vector.shape_cast %444 : vector<1x4x16xbf16> to vector<4x16xbf16>
    %cst_460 = arith.constant dense<0.000000e+00> : vector<14x16xf32>
    %446 = tpu.matmul %443, %445, %cst_460 {dimension_numbers = #tpu.dot_dimension_numbers<[1], [0], [0], [1], [0, 0, 1, 1], [], []>} : vector<14x4xbf16>, vector<4x16xbf16>, vector<14x16xf32> -> vector<14x16xf32>
    %447 = arith.addf %440, %446 : vector<14x16xf32>
    %c0_461 = arith.constant 0 : index
    %c13 = arith.constant 13 : index
    %c0_462 = arith.constant 0 : index
    %c0_463 = arith.constant 0 : index
    %448 = vector.load %arg1[%c0_461, %c13, %c0_462, %c0_463] : memref<1x15x15x4xf32, #tpu.memory_space<vmem>>, vector<1x1x14x4xf32>
    %449 = vector.shape_cast %448 : vector<1x1x14x4xf32> to vector<14x4xf32>
    %450 = arith.truncf %449 : vector<14x4xf32> to vector<14x4xbf16>
    %c2_464 = arith.constant 2 : index
    %c0_465 = arith.constant 0 : index
    %c0_466 = arith.constant 0 : index
    %451 = vector.load %arg2[%c2_464, %c0_465, %c0_466] : memref<4x4x16xbf16, #tpu.memory_space<vmem>>, vector<1x4x16xbf16>
    %452 = vector.shape_cast %451 : vector<1x4x16xbf16> to vector<4x16xbf16>
    %cst_467 = arith.constant dense<0.000000e+00> : vector<14x16xf32>
    %453 = tpu.matmul %450, %452, %cst_467 {dimension_numbers = #tpu.dot_dimension_numbers<[1], [0], [0], [1], [0, 0, 1, 1], [], []>} : vector<14x4xbf16>, vector<4x16xbf16>, vector<14x16xf32> -> vector<14x16xf32>
    %454 = arith.addf %447, %453 : vector<14x16xf32>
    %c0_468 = arith.constant 0 : index
    %c13_469 = arith.constant 13 : index
    %c1_470 = arith.constant 1 : index
    %c0_471 = arith.constant 0 : index
    %455 = vector.load %arg1[%c0_468, %c13_469, %c1_470, %c0_471] : memref<1x15x15x4xf32, #tpu.memory_space<vmem>>, vector<1x1x14x4xf32>
    %456 = vector.shape_cast %455 : vector<1x1x14x4xf32> to vector<14x4xf32>
    %457 = arith.truncf %456 : vector<14x4xf32> to vector<14x4xbf16>
    %c3_472 = arith.constant 3 : index
    %c0_473 = arith.constant 0 : index
    %c0_474 = arith.constant 0 : index
    %458 = vector.load %arg2[%c3_472, %c0_473, %c0_474] : memref<4x4x16xbf16, #tpu.memory_space<vmem>>, vector<1x4x16xbf16>
    %459 = vector.shape_cast %458 : vector<1x4x16xbf16> to vector<4x16xbf16>
    %cst_475 = arith.constant dense<0.000000e+00> : vector<14x16xf32>
    %460 = tpu.matmul %457, %459, %cst_475 {dimension_numbers = #tpu.dot_dimension_numbers<[1], [0], [0], [1], [0, 0, 1, 1], [], []>} : vector<14x4xbf16>, vector<4x16xbf16>, vector<14x16xf32> -> vector<14x16xf32>
    %461 = arith.addf %454, %460 : vector<14x16xf32>
    %462 = vector.broadcast %0 : vector<1x16xf32> to vector<14x16xf32>
    %463 = arith.addf %461, %462 : vector<14x16xf32>
    %cst_476 = arith.constant 0.000000e+00 : f32
    %464 = vector.broadcast %cst_476 : f32 to vector<14x16xf32>
    %465 = arith.maximumf %463, %464 : vector<14x16xf32>
    %c0_477 = arith.constant 0 : index
    %c12_478 = arith.constant 12 : index
    %c0_479 = arith.constant 0 : index
    %c0_480 = arith.constant 0 : index
    %466 = vector.load %arg4[%c0_477, %c12_478, %c0_479, %c0_480] : memref<1x14x14x16xf32, #tpu.memory_space<vmem>>, vector<1x1x14x16xf32>
    %467 = vector.shape_cast %466 : vector<1x1x14x16xf32> to vector<14x16xf32>
    %468 = vector.shape_cast %465 : vector<14x16xf32> to vector<1x1x14x16xf32>
    tpu.vector_store %arg4[%c0_477, %c12_478, %c0_479, %c0_480], %468 {strides = array<i32>} : memref<1x14x14x16xf32, #tpu.memory_space<vmem>>, vector<1x1x14x16xf32>,
    %cst_481 = arith.constant 0.000000e+00 : f32
    %469 = vector.broadcast %cst_481 : f32 to vector<14x16xf32>
    %c0_482 = arith.constant 0 : index
    %c13_483 = arith.constant 13 : index
    %c0_484 = arith.constant 0 : index
    %c0_485 = arith.constant 0 : index
    %470 = vector.load %arg1[%c0_482, %c13_483, %c0_484, %c0_485] : memref<1x15x15x4xf32, #tpu.memory_space<vmem>>, vector<1x1x14x4xf32>
    %471 = vector.shape_cast %470 : vector<1x1x14x4xf32> to vector<14x4xf32>
    %472 = arith.truncf %471 : vector<14x4xf32> to vector<14x4xbf16>
    %c0_486 = arith.constant 0 : index
    %c0_487 = arith.constant 0 : index
    %c0_488 = arith.constant 0 : index
    %473 = vector.load %arg2[%c0_486, %c0_487, %c0_488] : memref<4x4x16xbf16, #tpu.memory_space<vmem>>, vector<1x4x16xbf16>
    %474 = vector.shape_cast %473 : vector<1x4x16xbf16> to vector<4x16xbf16>
    %cst_489 = arith.constant dense<0.000000e+00> : vector<14x16xf32>
    %475 = tpu.matmul %472, %474, %cst_489 {dimension_numbers = #tpu.dot_dimension_numbers<[1], [0], [0], [1], [0, 0, 1, 1], [], []>} : vector<14x4xbf16>, vector<4x16xbf16>, vector<14x16xf32> -> vector<14x16xf32>
    %476 = arith.addf %469, %475 : vector<14x16xf32>
    %c0_490 = arith.constant 0 : index
    %c13_491 = arith.constant 13 : index
    %c1_492 = arith.constant 1 : index
    %c0_493 = arith.constant 0 : index
    %477 = vector.load %arg1[%c0_490, %c13_491, %c1_492, %c0_493] : memref<1x15x15x4xf32, #tpu.memory_space<vmem>>, vector<1x1x14x4xf32>
    %478 = vector.shape_cast %477 : vector<1x1x14x4xf32> to vector<14x4xf32>
    %479 = arith.truncf %478 : vector<14x4xf32> to vector<14x4xbf16>
    %c1_494 = arith.constant 1 : index
    %c0_495 = arith.constant 0 : index
    %c0_496 = arith.constant 0 : index
    %480 = vector.load %arg2[%c1_494, %c0_495, %c0_496] : memref<4x4x16xbf16, #tpu.memory_space<vmem>>, vector<1x4x16xbf16>
    %481 = vector.shape_cast %480 : vector<1x4x16xbf16> to vector<4x16xbf16>
    %cst_497 = arith.constant dense<0.000000e+00> : vector<14x16xf32>
    %482 = tpu.matmul %479, %481, %cst_497 {dimension_numbers = #tpu.dot_dimension_numbers<[1], [0], [0], [1], [0, 0, 1, 1], [], []>} : vector<14x4xbf16>, vector<4x16xbf16>, vector<14x16xf32> -> vector<14x16xf32>
    %483 = arith.addf %476, %482 : vector<14x16xf32>
    %c0_498 = arith.constant 0 : index
    %c14 = arith.constant 14 : index
    %c0_499 = arith.constant 0 : index
    %c0_500 = arith.constant 0 : index
    %484 = vector.load %arg1[%c0_498, %c14, %c0_499, %c0_500] : memref<1x15x15x4xf32, #tpu.memory_space<vmem>>, vector<1x1x14x4xf32>
    %485 = vector.shape_cast %484 : vector<1x1x14x4xf32> to vector<14x4xf32>
    %486 = arith.truncf %485 : vector<14x4xf32> to vector<14x4xbf16>
    %c2_501 = arith.constant 2 : index
    %c0_502 = arith.constant 0 : index
    %c0_503 = arith.constant 0 : index
    %487 = vector.load %arg2[%c2_501, %c0_502, %c0_503] : memref<4x4x16xbf16, #tpu.memory_space<vmem>>, vector<1x4x16xbf16>
    %488 = vector.shape_cast %487 : vector<1x4x16xbf16> to vector<4x16xbf16>
    %cst_504 = arith.constant dense<0.000000e+00> : vector<14x16xf32>
    %489 = tpu.matmul %486, %488, %cst_504 {dimension_numbers = #tpu.dot_dimension_numbers<[1], [0], [0], [1], [0, 0, 1, 1], [], []>} : vector<14x4xbf16>, vector<4x16xbf16>, vector<14x16xf32> -> vector<14x16xf32>
    %490 = arith.addf %483, %489 : vector<14x16xf32>
    %c0_505 = arith.constant 0 : index
    %c14_506 = arith.constant 14 : index
    %c1_507 = arith.constant 1 : index
    %c0_508 = arith.constant 0 : index
    %491 = vector.load %arg1[%c0_505, %c14_506, %c1_507, %c0_508] : memref<1x15x15x4xf32, #tpu.memory_space<vmem>>, vector<1x1x14x4xf32>
    %492 = vector.shape_cast %491 : vector<1x1x14x4xf32> to vector<14x4xf32>
    %493 = arith.truncf %492 : vector<14x4xf32> to vector<14x4xbf16>
    %c3_509 = arith.constant 3 : index
    %c0_510 = arith.constant 0 : index
    %c0_511 = arith.constant 0 : index
    %494 = vector.load %arg2[%c3_509, %c0_510, %c0_511] : memref<4x4x16xbf16, #tpu.memory_space<vmem>>, vector<1x4x16xbf16>
    %495 = vector.shape_cast %494 : vector<1x4x16xbf16> to vector<4x16xbf16>
    %cst_512 = arith.constant dense<0.000000e+00> : vector<14x16xf32>
    %496 = tpu.matmul %493, %495, %cst_512 {dimension_numbers = #tpu.dot_dimension_numbers<[1], [0], [0], [1], [0, 0, 1, 1], [], []>} : vector<14x4xbf16>, vector<4x16xbf16>, vector<14x16xf32> -> vector<14x16xf32>
    %497 = arith.addf %490, %496 : vector<14x16xf32>
    %498 = vector.broadcast %0 : vector<1x16xf32> to vector<14x16xf32>
    %499 = arith.addf %497, %498 : vector<14x16xf32>
    %cst_513 = arith.constant 0.000000e+00 : f32
    %500 = vector.broadcast %cst_513 : f32 to vector<14x16xf32>
    %501 = arith.maximumf %499, %500 : vector<14x16xf32>
    %c0_514 = arith.constant 0 : index
    %c13_515 = arith.constant 13 : index
    %c0_516 = arith.constant 0 : index
    %c0_517 = arith.constant 0 : index
    %502 = vector.load %arg4[%c0_514, %c13_515, %c0_516, %c0_517] : memref<1x14x14x16xf32, #tpu.memory_space<vmem>>, vector<1x1x14x16xf32>
    %503 = vector.shape_cast %502 : vector<1x1x14x16xf32> to vector<14x16xf32>
    %504 = vector.shape_cast %501 : vector<14x16xf32> to vector<1x1x14x16xf32>
    tpu.vector_store %arg4[%c0_514, %c13_515, %c0_516, %c0_517], %504 {strides = array<i32>} : memref<1x14x14x16xf32, #tpu.memory_space<vmem>>, vector<1x1x14x16xf32>,
    return
  }
  func.func @transform_0(%arg0: i32) -> (i32, i32, i32, i32) {
    %c0_i32 = arith.constant 0 : i32
    %c0_i32_0 = arith.constant 0 : i32
    %c0_i32_1 = arith.constant 0 : i32
    %c0_i32_2 = arith.constant 0 : i32
    return %arg0, %c0_i32, %c0_i32_0, %c0_i32_1 : i32, i32, i32, i32
  }
  func.func @transform_1(%arg0: i32) -> (i32, i32, i32) {
    %c0_i32 = arith.constant 0 : i32
    %c0_i32_0 = arith.constant 0 : i32
    %c0_i32_1 = arith.constant 0 : i32
    %c0_i32_2 = arith.constant 0 : i32
    return %c0_i32, %c0_i32_0, %c0_i32_1 : i32, i32, i32
  }
  func.func @transform_2(%arg0: i32) -> (i32, i32) {
    %c0_i32 = arith.constant 0 : i32
    %c0_i32_0 = arith.constant 0 : i32
    %c0_i32_1 = arith.constant 0 : i32
    return %c0_i32, %c0_i32_0 : i32, i32
  }
  func.func @transform_3(%arg0: i32) -> (i32, i32, i32, i32) {
    %c0_i32 = arith.constant 0 : i32
    %c0_i32_0 = arith.constant 0 : i32
    %c0_i32_1 = arith.constant 0 : i32
    %c0_i32_2 = arith.constant 0 : i32
    return %arg0, %c0_i32, %c0_i32_0, %c0_i32_1 : i32, i32, i32, i32
  }
}

module attributes {stable_mosaic.version = 11 : i64} {
  func.func @_conv_bias_act_kernel(%arg0: i32, %arg1: memref<1x8x8x64xf32, #tpu.memory_space<vmem>>, %arg2: memref<4x64x32xbf16, #tpu.memory_space<vmem>>, %arg3: memref<1x32xf32, #tpu.memory_space<vmem>>, %arg4: memref<1x7x7x32xf32, #tpu.memory_space<vmem>>) attributes {dimension_semantics = [#tpu.dimension_semantics<parallel>], iteration_bounds = array<i64: 2>, scalar_prefetch = 0 : i64, scratch_operands = 0 : i64, tpu.core_type = #tpu.core_type<tc>, window_params = [{transform_indices = @transform_0, window_bounds = array<i64: 1, 8, 8, 64>}, {pipeline_mode = #tpu.pipeline_mode<synchronous>, transform_indices = @transform_1, window_bounds = array<i64: 4, 64, 32>}, {pipeline_mode = #tpu.pipeline_mode<synchronous>, transform_indices = @transform_2, window_bounds = array<i64: 1, 32>}, {transform_indices = @transform_3, window_bounds = array<i64: 1, 7, 7, 32>}]} {
    %c0 = arith.constant 0 : index
    %c0_0 = arith.constant 0 : index
    %0 = vector.load %arg3[%c0, %c0_0] : memref<1x32xf32, #tpu.memory_space<vmem>>, vector<1x32xf32>
    %cst = arith.constant 0.000000e+00 : f32
    %1 = vector.broadcast %cst : f32 to vector<7x32xf32>
    %c0_1 = arith.constant 0 : index
    %c0_2 = arith.constant 0 : index
    %c0_3 = arith.constant 0 : index
    %c0_4 = arith.constant 0 : index
    %2 = vector.load %arg1[%c0_1, %c0_2, %c0_3, %c0_4] : memref<1x8x8x64xf32, #tpu.memory_space<vmem>>, vector<1x1x7x64xf32>
    %3 = vector.shape_cast %2 : vector<1x1x7x64xf32> to vector<7x64xf32>
    %4 = arith.truncf %3 : vector<7x64xf32> to vector<7x64xbf16>
    %c0_5 = arith.constant 0 : index
    %c0_6 = arith.constant 0 : index
    %c0_7 = arith.constant 0 : index
    %5 = vector.load %arg2[%c0_5, %c0_6, %c0_7] : memref<4x64x32xbf16, #tpu.memory_space<vmem>>, vector<1x64x32xbf16>
    %6 = vector.shape_cast %5 : vector<1x64x32xbf16> to vector<64x32xbf16>
    %cst_8 = arith.constant dense<0.000000e+00> : vector<7x32xf32>
    %7 = tpu.matmul %4, %6, %cst_8 {dimension_numbers = #tpu.dot_dimension_numbers<[1], [0], [0], [1], [0, 0, 1, 1], [], []>} : vector<7x64xbf16>, vector<64x32xbf16>, vector<7x32xf32> -> vector<7x32xf32>
    %8 = arith.addf %1, %7 : vector<7x32xf32>
    %c0_9 = arith.constant 0 : index
    %c0_10 = arith.constant 0 : index
    %c1 = arith.constant 1 : index
    %c0_11 = arith.constant 0 : index
    %9 = vector.load %arg1[%c0_9, %c0_10, %c1, %c0_11] : memref<1x8x8x64xf32, #tpu.memory_space<vmem>>, vector<1x1x7x64xf32>
    %10 = vector.shape_cast %9 : vector<1x1x7x64xf32> to vector<7x64xf32>
    %11 = arith.truncf %10 : vector<7x64xf32> to vector<7x64xbf16>
    %c1_12 = arith.constant 1 : index
    %c0_13 = arith.constant 0 : index
    %c0_14 = arith.constant 0 : index
    %12 = vector.load %arg2[%c1_12, %c0_13, %c0_14] : memref<4x64x32xbf16, #tpu.memory_space<vmem>>, vector<1x64x32xbf16>
    %13 = vector.shape_cast %12 : vector<1x64x32xbf16> to vector<64x32xbf16>
    %cst_15 = arith.constant dense<0.000000e+00> : vector<7x32xf32>
    %14 = tpu.matmul %11, %13, %cst_15 {dimension_numbers = #tpu.dot_dimension_numbers<[1], [0], [0], [1], [0, 0, 1, 1], [], []>} : vector<7x64xbf16>, vector<64x32xbf16>, vector<7x32xf32> -> vector<7x32xf32>
    %15 = arith.addf %8, %14 : vector<7x32xf32>
    %c0_16 = arith.constant 0 : index
    %c1_17 = arith.constant 1 : index
    %c0_18 = arith.constant 0 : index
    %c0_19 = arith.constant 0 : index
    %16 = vector.load %arg1[%c0_16, %c1_17, %c0_18, %c0_19] : memref<1x8x8x64xf32, #tpu.memory_space<vmem>>, vector<1x1x7x64xf32>
    %17 = vector.shape_cast %16 : vector<1x1x7x64xf32> to vector<7x64xf32>
    %18 = arith.truncf %17 : vector<7x64xf32> to vector<7x64xbf16>
    %c2 = arith.constant 2 : index
    %c0_20 = arith.constant 0 : index
    %c0_21 = arith.constant 0 : index
    %19 = vector.load %arg2[%c2, %c0_20, %c0_21] : memref<4x64x32xbf16, #tpu.memory_space<vmem>>, vector<1x64x32xbf16>
    %20 = vector.shape_cast %19 : vector<1x64x32xbf16> to vector<64x32xbf16>
    %cst_22 = arith.constant dense<0.000000e+00> : vector<7x32xf32>
    %21 = tpu.matmul %18, %20, %cst_22 {dimension_numbers = #tpu.dot_dimension_numbers<[1], [0], [0], [1], [0, 0, 1, 1], [], []>} : vector<7x64xbf16>, vector<64x32xbf16>, vector<7x32xf32> -> vector<7x32xf32>
    %22 = arith.addf %15, %21 : vector<7x32xf32>
    %c0_23 = arith.constant 0 : index
    %c1_24 = arith.constant 1 : index
    %c1_25 = arith.constant 1 : index
    %c0_26 = arith.constant 0 : index
    %23 = vector.load %arg1[%c0_23, %c1_24, %c1_25, %c0_26] : memref<1x8x8x64xf32, #tpu.memory_space<vmem>>, vector<1x1x7x64xf32>
    %24 = vector.shape_cast %23 : vector<1x1x7x64xf32> to vector<7x64xf32>
    %25 = arith.truncf %24 : vector<7x64xf32> to vector<7x64xbf16>
    %c3 = arith.constant 3 : index
    %c0_27 = arith.constant 0 : index
    %c0_28 = arith.constant 0 : index
    %26 = vector.load %arg2[%c3, %c0_27, %c0_28] : memref<4x64x32xbf16, #tpu.memory_space<vmem>>, vector<1x64x32xbf16>
    %27 = vector.shape_cast %26 : vector<1x64x32xbf16> to vector<64x32xbf16>
    %cst_29 = arith.constant dense<0.000000e+00> : vector<7x32xf32>
    %28 = tpu.matmul %25, %27, %cst_29 {dimension_numbers = #tpu.dot_dimension_numbers<[1], [0], [0], [1], [0, 0, 1, 1], [], []>} : vector<7x64xbf16>, vector<64x32xbf16>, vector<7x32xf32> -> vector<7x32xf32>
    %29 = arith.addf %22, %28 : vector<7x32xf32>
    %30 = vector.broadcast %0 : vector<1x32xf32> to vector<7x32xf32>
    %31 = arith.addf %29, %30 : vector<7x32xf32>
    %cst_30 = arith.constant 0.000000e+00 : f32
    %32 = vector.broadcast %cst_30 : f32 to vector<7x32xf32>
    %33 = arith.maximumf %31, %32 : vector<7x32xf32>
    %c0_31 = arith.constant 0 : index
    %c0_32 = arith.constant 0 : index
    %c0_33 = arith.constant 0 : index
    %c0_34 = arith.constant 0 : index
    %34 = vector.load %arg4[%c0_31, %c0_32, %c0_33, %c0_34] : memref<1x7x7x32xf32, #tpu.memory_space<vmem>>, vector<1x1x7x32xf32>
    %35 = vector.shape_cast %34 : vector<1x1x7x32xf32> to vector<7x32xf32>
    %36 = vector.shape_cast %33 : vector<7x32xf32> to vector<1x1x7x32xf32>
    tpu.vector_store %arg4[%c0_31, %c0_32, %c0_33, %c0_34], %36 {strides = array<i32>} : memref<1x7x7x32xf32, #tpu.memory_space<vmem>>, vector<1x1x7x32xf32>,
    %cst_35 = arith.constant 0.000000e+00 : f32
    %37 = vector.broadcast %cst_35 : f32 to vector<7x32xf32>
    %c0_36 = arith.constant 0 : index
    %c1_37 = arith.constant 1 : index
    %c0_38 = arith.constant 0 : index
    %c0_39 = arith.constant 0 : index
    %38 = vector.load %arg1[%c0_36, %c1_37, %c0_38, %c0_39] : memref<1x8x8x64xf32, #tpu.memory_space<vmem>>, vector<1x1x7x64xf32>
    %39 = vector.shape_cast %38 : vector<1x1x7x64xf32> to vector<7x64xf32>
    %40 = arith.truncf %39 : vector<7x64xf32> to vector<7x64xbf16>
    %c0_40 = arith.constant 0 : index
    %c0_41 = arith.constant 0 : index
    %c0_42 = arith.constant 0 : index
    %41 = vector.load %arg2[%c0_40, %c0_41, %c0_42] : memref<4x64x32xbf16, #tpu.memory_space<vmem>>, vector<1x64x32xbf16>
    %42 = vector.shape_cast %41 : vector<1x64x32xbf16> to vector<64x32xbf16>
    %cst_43 = arith.constant dense<0.000000e+00> : vector<7x32xf32>
    %43 = tpu.matmul %40, %42, %cst_43 {dimension_numbers = #tpu.dot_dimension_numbers<[1], [0], [0], [1], [0, 0, 1, 1], [], []>} : vector<7x64xbf16>, vector<64x32xbf16>, vector<7x32xf32> -> vector<7x32xf32>
    %44 = arith.addf %37, %43 : vector<7x32xf32>
    %c0_44 = arith.constant 0 : index
    %c1_45 = arith.constant 1 : index
    %c1_46 = arith.constant 1 : index
    %c0_47 = arith.constant 0 : index
    %45 = vector.load %arg1[%c0_44, %c1_45, %c1_46, %c0_47] : memref<1x8x8x64xf32, #tpu.memory_space<vmem>>, vector<1x1x7x64xf32>
    %46 = vector.shape_cast %45 : vector<1x1x7x64xf32> to vector<7x64xf32>
    %47 = arith.truncf %46 : vector<7x64xf32> to vector<7x64xbf16>
    %c1_48 = arith.constant 1 : index
    %c0_49 = arith.constant 0 : index
    %c0_50 = arith.constant 0 : index
    %48 = vector.load %arg2[%c1_48, %c0_49, %c0_50] : memref<4x64x32xbf16, #tpu.memory_space<vmem>>, vector<1x64x32xbf16>
    %49 = vector.shape_cast %48 : vector<1x64x32xbf16> to vector<64x32xbf16>
    %cst_51 = arith.constant dense<0.000000e+00> : vector<7x32xf32>
    %50 = tpu.matmul %47, %49, %cst_51 {dimension_numbers = #tpu.dot_dimension_numbers<[1], [0], [0], [1], [0, 0, 1, 1], [], []>} : vector<7x64xbf16>, vector<64x32xbf16>, vector<7x32xf32> -> vector<7x32xf32>
    %51 = arith.addf %44, %50 : vector<7x32xf32>
    %c0_52 = arith.constant 0 : index
    %c2_53 = arith.constant 2 : index
    %c0_54 = arith.constant 0 : index
    %c0_55 = arith.constant 0 : index
    %52 = vector.load %arg1[%c0_52, %c2_53, %c0_54, %c0_55] : memref<1x8x8x64xf32, #tpu.memory_space<vmem>>, vector<1x1x7x64xf32>
    %53 = vector.shape_cast %52 : vector<1x1x7x64xf32> to vector<7x64xf32>
    %54 = arith.truncf %53 : vector<7x64xf32> to vector<7x64xbf16>
    %c2_56 = arith.constant 2 : index
    %c0_57 = arith.constant 0 : index
    %c0_58 = arith.constant 0 : index
    %55 = vector.load %arg2[%c2_56, %c0_57, %c0_58] : memref<4x64x32xbf16, #tpu.memory_space<vmem>>, vector<1x64x32xbf16>
    %56 = vector.shape_cast %55 : vector<1x64x32xbf16> to vector<64x32xbf16>
    %cst_59 = arith.constant dense<0.000000e+00> : vector<7x32xf32>
    %57 = tpu.matmul %54, %56, %cst_59 {dimension_numbers = #tpu.dot_dimension_numbers<[1], [0], [0], [1], [0, 0, 1, 1], [], []>} : vector<7x64xbf16>, vector<64x32xbf16>, vector<7x32xf32> -> vector<7x32xf32>
    %58 = arith.addf %51, %57 : vector<7x32xf32>
    %c0_60 = arith.constant 0 : index
    %c2_61 = arith.constant 2 : index
    %c1_62 = arith.constant 1 : index
    %c0_63 = arith.constant 0 : index
    %59 = vector.load %arg1[%c0_60, %c2_61, %c1_62, %c0_63] : memref<1x8x8x64xf32, #tpu.memory_space<vmem>>, vector<1x1x7x64xf32>
    %60 = vector.shape_cast %59 : vector<1x1x7x64xf32> to vector<7x64xf32>
    %61 = arith.truncf %60 : vector<7x64xf32> to vector<7x64xbf16>
    %c3_64 = arith.constant 3 : index
    %c0_65 = arith.constant 0 : index
    %c0_66 = arith.constant 0 : index
    %62 = vector.load %arg2[%c3_64, %c0_65, %c0_66] : memref<4x64x32xbf16, #tpu.memory_space<vmem>>, vector<1x64x32xbf16>
    %63 = vector.shape_cast %62 : vector<1x64x32xbf16> to vector<64x32xbf16>
    %cst_67 = arith.constant dense<0.000000e+00> : vector<7x32xf32>
    %64 = tpu.matmul %61, %63, %cst_67 {dimension_numbers = #tpu.dot_dimension_numbers<[1], [0], [0], [1], [0, 0, 1, 1], [], []>} : vector<7x64xbf16>, vector<64x32xbf16>, vector<7x32xf32> -> vector<7x32xf32>
    %65 = arith.addf %58, %64 : vector<7x32xf32>
    %66 = vector.broadcast %0 : vector<1x32xf32> to vector<7x32xf32>
    %67 = arith.addf %65, %66 : vector<7x32xf32>
    %cst_68 = arith.constant 0.000000e+00 : f32
    %68 = vector.broadcast %cst_68 : f32 to vector<7x32xf32>
    %69 = arith.maximumf %67, %68 : vector<7x32xf32>
    %c0_69 = arith.constant 0 : index
    %c1_70 = arith.constant 1 : index
    %c0_71 = arith.constant 0 : index
    %c0_72 = arith.constant 0 : index
    %70 = vector.load %arg4[%c0_69, %c1_70, %c0_71, %c0_72] : memref<1x7x7x32xf32, #tpu.memory_space<vmem>>, vector<1x1x7x32xf32>
    %71 = vector.shape_cast %70 : vector<1x1x7x32xf32> to vector<7x32xf32>
    %72 = vector.shape_cast %69 : vector<7x32xf32> to vector<1x1x7x32xf32>
    tpu.vector_store %arg4[%c0_69, %c1_70, %c0_71, %c0_72], %72 {strides = array<i32>} : memref<1x7x7x32xf32, #tpu.memory_space<vmem>>, vector<1x1x7x32xf32>,
    %cst_73 = arith.constant 0.000000e+00 : f32
    %73 = vector.broadcast %cst_73 : f32 to vector<7x32xf32>
    %c0_74 = arith.constant 0 : index
    %c2_75 = arith.constant 2 : index
    %c0_76 = arith.constant 0 : index
    %c0_77 = arith.constant 0 : index
    %74 = vector.load %arg1[%c0_74, %c2_75, %c0_76, %c0_77] : memref<1x8x8x64xf32, #tpu.memory_space<vmem>>, vector<1x1x7x64xf32>
    %75 = vector.shape_cast %74 : vector<1x1x7x64xf32> to vector<7x64xf32>
    %76 = arith.truncf %75 : vector<7x64xf32> to vector<7x64xbf16>
    %c0_78 = arith.constant 0 : index
    %c0_79 = arith.constant 0 : index
    %c0_80 = arith.constant 0 : index
    %77 = vector.load %arg2[%c0_78, %c0_79, %c0_80] : memref<4x64x32xbf16, #tpu.memory_space<vmem>>, vector<1x64x32xbf16>
    %78 = vector.shape_cast %77 : vector<1x64x32xbf16> to vector<64x32xbf16>
    %cst_81 = arith.constant dense<0.000000e+00> : vector<7x32xf32>
    %79 = tpu.matmul %76, %78, %cst_81 {dimension_numbers = #tpu.dot_dimension_numbers<[1], [0], [0], [1], [0, 0, 1, 1], [], []>} : vector<7x64xbf16>, vector<64x32xbf16>, vector<7x32xf32> -> vector<7x32xf32>
    %80 = arith.addf %73, %79 : vector<7x32xf32>
    %c0_82 = arith.constant 0 : index
    %c2_83 = arith.constant 2 : index
    %c1_84 = arith.constant 1 : index
    %c0_85 = arith.constant 0 : index
    %81 = vector.load %arg1[%c0_82, %c2_83, %c1_84, %c0_85] : memref<1x8x8x64xf32, #tpu.memory_space<vmem>>, vector<1x1x7x64xf32>
    %82 = vector.shape_cast %81 : vector<1x1x7x64xf32> to vector<7x64xf32>
    %83 = arith.truncf %82 : vector<7x64xf32> to vector<7x64xbf16>
    %c1_86 = arith.constant 1 : index
    %c0_87 = arith.constant 0 : index
    %c0_88 = arith.constant 0 : index
    %84 = vector.load %arg2[%c1_86, %c0_87, %c0_88] : memref<4x64x32xbf16, #tpu.memory_space<vmem>>, vector<1x64x32xbf16>
    %85 = vector.shape_cast %84 : vector<1x64x32xbf16> to vector<64x32xbf16>
    %cst_89 = arith.constant dense<0.000000e+00> : vector<7x32xf32>
    %86 = tpu.matmul %83, %85, %cst_89 {dimension_numbers = #tpu.dot_dimension_numbers<[1], [0], [0], [1], [0, 0, 1, 1], [], []>} : vector<7x64xbf16>, vector<64x32xbf16>, vector<7x32xf32> -> vector<7x32xf32>
    %87 = arith.addf %80, %86 : vector<7x32xf32>
    %c0_90 = arith.constant 0 : index
    %c3_91 = arith.constant 3 : index
    %c0_92 = arith.constant 0 : index
    %c0_93 = arith.constant 0 : index
    %88 = vector.load %arg1[%c0_90, %c3_91, %c0_92, %c0_93] : memref<1x8x8x64xf32, #tpu.memory_space<vmem>>, vector<1x1x7x64xf32>
    %89 = vector.shape_cast %88 : vector<1x1x7x64xf32> to vector<7x64xf32>
    %90 = arith.truncf %89 : vector<7x64xf32> to vector<7x64xbf16>
    %c2_94 = arith.constant 2 : index
    %c0_95 = arith.constant 0 : index
    %c0_96 = arith.constant 0 : index
    %91 = vector.load %arg2[%c2_94, %c0_95, %c0_96] : memref<4x64x32xbf16, #tpu.memory_space<vmem>>, vector<1x64x32xbf16>
    %92 = vector.shape_cast %91 : vector<1x64x32xbf16> to vector<64x32xbf16>
    %cst_97 = arith.constant dense<0.000000e+00> : vector<7x32xf32>
    %93 = tpu.matmul %90, %92, %cst_97 {dimension_numbers = #tpu.dot_dimension_numbers<[1], [0], [0], [1], [0, 0, 1, 1], [], []>} : vector<7x64xbf16>, vector<64x32xbf16>, vector<7x32xf32> -> vector<7x32xf32>
    %94 = arith.addf %87, %93 : vector<7x32xf32>
    %c0_98 = arith.constant 0 : index
    %c3_99 = arith.constant 3 : index
    %c1_100 = arith.constant 1 : index
    %c0_101 = arith.constant 0 : index
    %95 = vector.load %arg1[%c0_98, %c3_99, %c1_100, %c0_101] : memref<1x8x8x64xf32, #tpu.memory_space<vmem>>, vector<1x1x7x64xf32>
    %96 = vector.shape_cast %95 : vector<1x1x7x64xf32> to vector<7x64xf32>
    %97 = arith.truncf %96 : vector<7x64xf32> to vector<7x64xbf16>
    %c3_102 = arith.constant 3 : index
    %c0_103 = arith.constant 0 : index
    %c0_104 = arith.constant 0 : index
    %98 = vector.load %arg2[%c3_102, %c0_103, %c0_104] : memref<4x64x32xbf16, #tpu.memory_space<vmem>>, vector<1x64x32xbf16>
    %99 = vector.shape_cast %98 : vector<1x64x32xbf16> to vector<64x32xbf16>
    %cst_105 = arith.constant dense<0.000000e+00> : vector<7x32xf32>
    %100 = tpu.matmul %97, %99, %cst_105 {dimension_numbers = #tpu.dot_dimension_numbers<[1], [0], [0], [1], [0, 0, 1, 1], [], []>} : vector<7x64xbf16>, vector<64x32xbf16>, vector<7x32xf32> -> vector<7x32xf32>
    %101 = arith.addf %94, %100 : vector<7x32xf32>
    %102 = vector.broadcast %0 : vector<1x32xf32> to vector<7x32xf32>
    %103 = arith.addf %101, %102 : vector<7x32xf32>
    %cst_106 = arith.constant 0.000000e+00 : f32
    %104 = vector.broadcast %cst_106 : f32 to vector<7x32xf32>
    %105 = arith.maximumf %103, %104 : vector<7x32xf32>
    %c0_107 = arith.constant 0 : index
    %c2_108 = arith.constant 2 : index
    %c0_109 = arith.constant 0 : index
    %c0_110 = arith.constant 0 : index
    %106 = vector.load %arg4[%c0_107, %c2_108, %c0_109, %c0_110] : memref<1x7x7x32xf32, #tpu.memory_space<vmem>>, vector<1x1x7x32xf32>
    %107 = vector.shape_cast %106 : vector<1x1x7x32xf32> to vector<7x32xf32>
    %108 = vector.shape_cast %105 : vector<7x32xf32> to vector<1x1x7x32xf32>
    tpu.vector_store %arg4[%c0_107, %c2_108, %c0_109, %c0_110], %108 {strides = array<i32>} : memref<1x7x7x32xf32, #tpu.memory_space<vmem>>, vector<1x1x7x32xf32>,
    %cst_111 = arith.constant 0.000000e+00 : f32
    %109 = vector.broadcast %cst_111 : f32 to vector<7x32xf32>
    %c0_112 = arith.constant 0 : index
    %c3_113 = arith.constant 3 : index
    %c0_114 = arith.constant 0 : index
    %c0_115 = arith.constant 0 : index
    %110 = vector.load %arg1[%c0_112, %c3_113, %c0_114, %c0_115] : memref<1x8x8x64xf32, #tpu.memory_space<vmem>>, vector<1x1x7x64xf32>
    %111 = vector.shape_cast %110 : vector<1x1x7x64xf32> to vector<7x64xf32>
    %112 = arith.truncf %111 : vector<7x64xf32> to vector<7x64xbf16>
    %c0_116 = arith.constant 0 : index
    %c0_117 = arith.constant 0 : index
    %c0_118 = arith.constant 0 : index
    %113 = vector.load %arg2[%c0_116, %c0_117, %c0_118] : memref<4x64x32xbf16, #tpu.memory_space<vmem>>, vector<1x64x32xbf16>
    %114 = vector.shape_cast %113 : vector<1x64x32xbf16> to vector<64x32xbf16>
    %cst_119 = arith.constant dense<0.000000e+00> : vector<7x32xf32>
    %115 = tpu.matmul %112, %114, %cst_119 {dimension_numbers = #tpu.dot_dimension_numbers<[1], [0], [0], [1], [0, 0, 1, 1], [], []>} : vector<7x64xbf16>, vector<64x32xbf16>, vector<7x32xf32> -> vector<7x32xf32>
    %116 = arith.addf %109, %115 : vector<7x32xf32>
    %c0_120 = arith.constant 0 : index
    %c3_121 = arith.constant 3 : index
    %c1_122 = arith.constant 1 : index
    %c0_123 = arith.constant 0 : index
    %117 = vector.load %arg1[%c0_120, %c3_121, %c1_122, %c0_123] : memref<1x8x8x64xf32, #tpu.memory_space<vmem>>, vector<1x1x7x64xf32>
    %118 = vector.shape_cast %117 : vector<1x1x7x64xf32> to vector<7x64xf32>
    %119 = arith.truncf %118 : vector<7x64xf32> to vector<7x64xbf16>
    %c1_124 = arith.constant 1 : index
    %c0_125 = arith.constant 0 : index
    %c0_126 = arith.constant 0 : index
    %120 = vector.load %arg2[%c1_124, %c0_125, %c0_126] : memref<4x64x32xbf16, #tpu.memory_space<vmem>>, vector<1x64x32xbf16>
    %121 = vector.shape_cast %120 : vector<1x64x32xbf16> to vector<64x32xbf16>
    %cst_127 = arith.constant dense<0.000000e+00> : vector<7x32xf32>
    %122 = tpu.matmul %119, %121, %cst_127 {dimension_numbers = #tpu.dot_dimension_numbers<[1], [0], [0], [1], [0, 0, 1, 1], [], []>} : vector<7x64xbf16>, vector<64x32xbf16>, vector<7x32xf32> -> vector<7x32xf32>
    %123 = arith.addf %116, %122 : vector<7x32xf32>
    %c0_128 = arith.constant 0 : index
    %c4 = arith.constant 4 : index
    %c0_129 = arith.constant 0 : index
    %c0_130 = arith.constant 0 : index
    %124 = vector.load %arg1[%c0_128, %c4, %c0_129, %c0_130] : memref<1x8x8x64xf32, #tpu.memory_space<vmem>>, vector<1x1x7x64xf32>
    %125 = vector.shape_cast %124 : vector<1x1x7x64xf32> to vector<7x64xf32>
    %126 = arith.truncf %125 : vector<7x64xf32> to vector<7x64xbf16>
    %c2_131 = arith.constant 2 : index
    %c0_132 = arith.constant 0 : index
    %c0_133 = arith.constant 0 : index
    %127 = vector.load %arg2[%c2_131, %c0_132, %c0_133] : memref<4x64x32xbf16, #tpu.memory_space<vmem>>, vector<1x64x32xbf16>
    %128 = vector.shape_cast %127 : vector<1x64x32xbf16> to vector<64x32xbf16>
    %cst_134 = arith.constant dense<0.000000e+00> : vector<7x32xf32>
    %129 = tpu.matmul %126, %128, %cst_134 {dimension_numbers = #tpu.dot_dimension_numbers<[1], [0], [0], [1], [0, 0, 1, 1], [], []>} : vector<7x64xbf16>, vector<64x32xbf16>, vector<7x32xf32> -> vector<7x32xf32>
    %130 = arith.addf %123, %129 : vector<7x32xf32>
    %c0_135 = arith.constant 0 : index
    %c4_136 = arith.constant 4 : index
    %c1_137 = arith.constant 1 : index
    %c0_138 = arith.constant 0 : index
    %131 = vector.load %arg1[%c0_135, %c4_136, %c1_137, %c0_138] : memref<1x8x8x64xf32, #tpu.memory_space<vmem>>, vector<1x1x7x64xf32>
    %132 = vector.shape_cast %131 : vector<1x1x7x64xf32> to vector<7x64xf32>
    %133 = arith.truncf %132 : vector<7x64xf32> to vector<7x64xbf16>
    %c3_139 = arith.constant 3 : index
    %c0_140 = arith.constant 0 : index
    %c0_141 = arith.constant 0 : index
    %134 = vector.load %arg2[%c3_139, %c0_140, %c0_141] : memref<4x64x32xbf16, #tpu.memory_space<vmem>>, vector<1x64x32xbf16>
    %135 = vector.shape_cast %134 : vector<1x64x32xbf16> to vector<64x32xbf16>
    %cst_142 = arith.constant dense<0.000000e+00> : vector<7x32xf32>
    %136 = tpu.matmul %133, %135, %cst_142 {dimension_numbers = #tpu.dot_dimension_numbers<[1], [0], [0], [1], [0, 0, 1, 1], [], []>} : vector<7x64xbf16>, vector<64x32xbf16>, vector<7x32xf32> -> vector<7x32xf32>
    %137 = arith.addf %130, %136 : vector<7x32xf32>
    %138 = vector.broadcast %0 : vector<1x32xf32> to vector<7x32xf32>
    %139 = arith.addf %137, %138 : vector<7x32xf32>
    %cst_143 = arith.constant 0.000000e+00 : f32
    %140 = vector.broadcast %cst_143 : f32 to vector<7x32xf32>
    %141 = arith.maximumf %139, %140 : vector<7x32xf32>
    %c0_144 = arith.constant 0 : index
    %c3_145 = arith.constant 3 : index
    %c0_146 = arith.constant 0 : index
    %c0_147 = arith.constant 0 : index
    %142 = vector.load %arg4[%c0_144, %c3_145, %c0_146, %c0_147] : memref<1x7x7x32xf32, #tpu.memory_space<vmem>>, vector<1x1x7x32xf32>
    %143 = vector.shape_cast %142 : vector<1x1x7x32xf32> to vector<7x32xf32>
    %144 = vector.shape_cast %141 : vector<7x32xf32> to vector<1x1x7x32xf32>
    tpu.vector_store %arg4[%c0_144, %c3_145, %c0_146, %c0_147], %144 {strides = array<i32>} : memref<1x7x7x32xf32, #tpu.memory_space<vmem>>, vector<1x1x7x32xf32>,
    %cst_148 = arith.constant 0.000000e+00 : f32
    %145 = vector.broadcast %cst_148 : f32 to vector<7x32xf32>
    %c0_149 = arith.constant 0 : index
    %c4_150 = arith.constant 4 : index
    %c0_151 = arith.constant 0 : index
    %c0_152 = arith.constant 0 : index
    %146 = vector.load %arg1[%c0_149, %c4_150, %c0_151, %c0_152] : memref<1x8x8x64xf32, #tpu.memory_space<vmem>>, vector<1x1x7x64xf32>
    %147 = vector.shape_cast %146 : vector<1x1x7x64xf32> to vector<7x64xf32>
    %148 = arith.truncf %147 : vector<7x64xf32> to vector<7x64xbf16>
    %c0_153 = arith.constant 0 : index
    %c0_154 = arith.constant 0 : index
    %c0_155 = arith.constant 0 : index
    %149 = vector.load %arg2[%c0_153, %c0_154, %c0_155] : memref<4x64x32xbf16, #tpu.memory_space<vmem>>, vector<1x64x32xbf16>
    %150 = vector.shape_cast %149 : vector<1x64x32xbf16> to vector<64x32xbf16>
    %cst_156 = arith.constant dense<0.000000e+00> : vector<7x32xf32>
    %151 = tpu.matmul %148, %150, %cst_156 {dimension_numbers = #tpu.dot_dimension_numbers<[1], [0], [0], [1], [0, 0, 1, 1], [], []>} : vector<7x64xbf16>, vector<64x32xbf16>, vector<7x32xf32> -> vector<7x32xf32>
    %152 = arith.addf %145, %151 : vector<7x32xf32>
    %c0_157 = arith.constant 0 : index
    %c4_158 = arith.constant 4 : index
    %c1_159 = arith.constant 1 : index
    %c0_160 = arith.constant 0 : index
    %153 = vector.load %arg1[%c0_157, %c4_158, %c1_159, %c0_160] : memref<1x8x8x64xf32, #tpu.memory_space<vmem>>, vector<1x1x7x64xf32>
    %154 = vector.shape_cast %153 : vector<1x1x7x64xf32> to vector<7x64xf32>
    %155 = arith.truncf %154 : vector<7x64xf32> to vector<7x64xbf16>
    %c1_161 = arith.constant 1 : index
    %c0_162 = arith.constant 0 : index
    %c0_163 = arith.constant 0 : index
    %156 = vector.load %arg2[%c1_161, %c0_162, %c0_163] : memref<4x64x32xbf16, #tpu.memory_space<vmem>>, vector<1x64x32xbf16>
    %157 = vector.shape_cast %156 : vector<1x64x32xbf16> to vector<64x32xbf16>
    %cst_164 = arith.constant dense<0.000000e+00> : vector<7x32xf32>
    %158 = tpu.matmul %155, %157, %cst_164 {dimension_numbers = #tpu.dot_dimension_numbers<[1], [0], [0], [1], [0, 0, 1, 1], [], []>} : vector<7x64xbf16>, vector<64x32xbf16>, vector<7x32xf32> -> vector<7x32xf32>
    %159 = arith.addf %152, %158 : vector<7x32xf32>
    %c0_165 = arith.constant 0 : index
    %c5 = arith.constant 5 : index
    %c0_166 = arith.constant 0 : index
    %c0_167 = arith.constant 0 : index
    %160 = vector.load %arg1[%c0_165, %c5, %c0_166, %c0_167] : memref<1x8x8x64xf32, #tpu.memory_space<vmem>>, vector<1x1x7x64xf32>
    %161 = vector.shape_cast %160 : vector<1x1x7x64xf32> to vector<7x64xf32>
    %162 = arith.truncf %161 : vector<7x64xf32> to vector<7x64xbf16>
    %c2_168 = arith.constant 2 : index
    %c0_169 = arith.constant 0 : index
    %c0_170 = arith.constant 0 : index
    %163 = vector.load %arg2[%c2_168, %c0_169, %c0_170] : memref<4x64x32xbf16, #tpu.memory_space<vmem>>, vector<1x64x32xbf16>
    %164 = vector.shape_cast %163 : vector<1x64x32xbf16> to vector<64x32xbf16>
    %cst_171 = arith.constant dense<0.000000e+00> : vector<7x32xf32>
    %165 = tpu.matmul %162, %164, %cst_171 {dimension_numbers = #tpu.dot_dimension_numbers<[1], [0], [0], [1], [0, 0, 1, 1], [], []>} : vector<7x64xbf16>, vector<64x32xbf16>, vector<7x32xf32> -> vector<7x32xf32>
    %166 = arith.addf %159, %165 : vector<7x32xf32>
    %c0_172 = arith.constant 0 : index
    %c5_173 = arith.constant 5 : index
    %c1_174 = arith.constant 1 : index
    %c0_175 = arith.constant 0 : index
    %167 = vector.load %arg1[%c0_172, %c5_173, %c1_174, %c0_175] : memref<1x8x8x64xf32, #tpu.memory_space<vmem>>, vector<1x1x7x64xf32>
    %168 = vector.shape_cast %167 : vector<1x1x7x64xf32> to vector<7x64xf32>
    %169 = arith.truncf %168 : vector<7x64xf32> to vector<7x64xbf16>
    %c3_176 = arith.constant 3 : index
    %c0_177 = arith.constant 0 : index
    %c0_178 = arith.constant 0 : index
    %170 = vector.load %arg2[%c3_176, %c0_177, %c0_178] : memref<4x64x32xbf16, #tpu.memory_space<vmem>>, vector<1x64x32xbf16>
    %171 = vector.shape_cast %170 : vector<1x64x32xbf16> to vector<64x32xbf16>
    %cst_179 = arith.constant dense<0.000000e+00> : vector<7x32xf32>
    %172 = tpu.matmul %169, %171, %cst_179 {dimension_numbers = #tpu.dot_dimension_numbers<[1], [0], [0], [1], [0, 0, 1, 1], [], []>} : vector<7x64xbf16>, vector<64x32xbf16>, vector<7x32xf32> -> vector<7x32xf32>
    %173 = arith.addf %166, %172 : vector<7x32xf32>
    %174 = vector.broadcast %0 : vector<1x32xf32> to vector<7x32xf32>
    %175 = arith.addf %173, %174 : vector<7x32xf32>
    %cst_180 = arith.constant 0.000000e+00 : f32
    %176 = vector.broadcast %cst_180 : f32 to vector<7x32xf32>
    %177 = arith.maximumf %175, %176 : vector<7x32xf32>
    %c0_181 = arith.constant 0 : index
    %c4_182 = arith.constant 4 : index
    %c0_183 = arith.constant 0 : index
    %c0_184 = arith.constant 0 : index
    %178 = vector.load %arg4[%c0_181, %c4_182, %c0_183, %c0_184] : memref<1x7x7x32xf32, #tpu.memory_space<vmem>>, vector<1x1x7x32xf32>
    %179 = vector.shape_cast %178 : vector<1x1x7x32xf32> to vector<7x32xf32>
    %180 = vector.shape_cast %177 : vector<7x32xf32> to vector<1x1x7x32xf32>
    tpu.vector_store %arg4[%c0_181, %c4_182, %c0_183, %c0_184], %180 {strides = array<i32>} : memref<1x7x7x32xf32, #tpu.memory_space<vmem>>, vector<1x1x7x32xf32>,
    %cst_185 = arith.constant 0.000000e+00 : f32
    %181 = vector.broadcast %cst_185 : f32 to vector<7x32xf32>
    %c0_186 = arith.constant 0 : index
    %c5_187 = arith.constant 5 : index
    %c0_188 = arith.constant 0 : index
    %c0_189 = arith.constant 0 : index
    %182 = vector.load %arg1[%c0_186, %c5_187, %c0_188, %c0_189] : memref<1x8x8x64xf32, #tpu.memory_space<vmem>>, vector<1x1x7x64xf32>
    %183 = vector.shape_cast %182 : vector<1x1x7x64xf32> to vector<7x64xf32>
    %184 = arith.truncf %183 : vector<7x64xf32> to vector<7x64xbf16>
    %c0_190 = arith.constant 0 : index
    %c0_191 = arith.constant 0 : index
    %c0_192 = arith.constant 0 : index
    %185 = vector.load %arg2[%c0_190, %c0_191, %c0_192] : memref<4x64x32xbf16, #tpu.memory_space<vmem>>, vector<1x64x32xbf16>
    %186 = vector.shape_cast %185 : vector<1x64x32xbf16> to vector<64x32xbf16>
    %cst_193 = arith.constant dense<0.000000e+00> : vector<7x32xf32>
    %187 = tpu.matmul %184, %186, %cst_193 {dimension_numbers = #tpu.dot_dimension_numbers<[1], [0], [0], [1], [0, 0, 1, 1], [], []>} : vector<7x64xbf16>, vector<64x32xbf16>, vector<7x32xf32> -> vector<7x32xf32>
    %188 = arith.addf %181, %187 : vector<7x32xf32>
    %c0_194 = arith.constant 0 : index
    %c5_195 = arith.constant 5 : index
    %c1_196 = arith.constant 1 : index
    %c0_197 = arith.constant 0 : index
    %189 = vector.load %arg1[%c0_194, %c5_195, %c1_196, %c0_197] : memref<1x8x8x64xf32, #tpu.memory_space<vmem>>, vector<1x1x7x64xf32>
    %190 = vector.shape_cast %189 : vector<1x1x7x64xf32> to vector<7x64xf32>
    %191 = arith.truncf %190 : vector<7x64xf32> to vector<7x64xbf16>
    %c1_198 = arith.constant 1 : index
    %c0_199 = arith.constant 0 : index
    %c0_200 = arith.constant 0 : index
    %192 = vector.load %arg2[%c1_198, %c0_199, %c0_200] : memref<4x64x32xbf16, #tpu.memory_space<vmem>>, vector<1x64x32xbf16>
    %193 = vector.shape_cast %192 : vector<1x64x32xbf16> to vector<64x32xbf16>
    %cst_201 = arith.constant dense<0.000000e+00> : vector<7x32xf32>
    %194 = tpu.matmul %191, %193, %cst_201 {dimension_numbers = #tpu.dot_dimension_numbers<[1], [0], [0], [1], [0, 0, 1, 1], [], []>} : vector<7x64xbf16>, vector<64x32xbf16>, vector<7x32xf32> -> vector<7x32xf32>
    %195 = arith.addf %188, %194 : vector<7x32xf32>
    %c0_202 = arith.constant 0 : index
    %c6 = arith.constant 6 : index
    %c0_203 = arith.constant 0 : index
    %c0_204 = arith.constant 0 : index
    %196 = vector.load %arg1[%c0_202, %c6, %c0_203, %c0_204] : memref<1x8x8x64xf32, #tpu.memory_space<vmem>>, vector<1x1x7x64xf32>
    %197 = vector.shape_cast %196 : vector<1x1x7x64xf32> to vector<7x64xf32>
    %198 = arith.truncf %197 : vector<7x64xf32> to vector<7x64xbf16>
    %c2_205 = arith.constant 2 : index
    %c0_206 = arith.constant 0 : index
    %c0_207 = arith.constant 0 : index
    %199 = vector.load %arg2[%c2_205, %c0_206, %c0_207] : memref<4x64x32xbf16, #tpu.memory_space<vmem>>, vector<1x64x32xbf16>
    %200 = vector.shape_cast %199 : vector<1x64x32xbf16> to vector<64x32xbf16>
    %cst_208 = arith.constant dense<0.000000e+00> : vector<7x32xf32>
    %201 = tpu.matmul %198, %200, %cst_208 {dimension_numbers = #tpu.dot_dimension_numbers<[1], [0], [0], [1], [0, 0, 1, 1], [], []>} : vector<7x64xbf16>, vector<64x32xbf16>, vector<7x32xf32> -> vector<7x32xf32>
    %202 = arith.addf %195, %201 : vector<7x32xf32>
    %c0_209 = arith.constant 0 : index
    %c6_210 = arith.constant 6 : index
    %c1_211 = arith.constant 1 : index
    %c0_212 = arith.constant 0 : index
    %203 = vector.load %arg1[%c0_209, %c6_210, %c1_211, %c0_212] : memref<1x8x8x64xf32, #tpu.memory_space<vmem>>, vector<1x1x7x64xf32>
    %204 = vector.shape_cast %203 : vector<1x1x7x64xf32> to vector<7x64xf32>
    %205 = arith.truncf %204 : vector<7x64xf32> to vector<7x64xbf16>
    %c3_213 = arith.constant 3 : index
    %c0_214 = arith.constant 0 : index
    %c0_215 = arith.constant 0 : index
    %206 = vector.load %arg2[%c3_213, %c0_214, %c0_215] : memref<4x64x32xbf16, #tpu.memory_space<vmem>>, vector<1x64x32xbf16>
    %207 = vector.shape_cast %206 : vector<1x64x32xbf16> to vector<64x32xbf16>
    %cst_216 = arith.constant dense<0.000000e+00> : vector<7x32xf32>
    %208 = tpu.matmul %205, %207, %cst_216 {dimension_numbers = #tpu.dot_dimension_numbers<[1], [0], [0], [1], [0, 0, 1, 1], [], []>} : vector<7x64xbf16>, vector<64x32xbf16>, vector<7x32xf32> -> vector<7x32xf32>
    %209 = arith.addf %202, %208 : vector<7x32xf32>
    %210 = vector.broadcast %0 : vector<1x32xf32> to vector<7x32xf32>
    %211 = arith.addf %209, %210 : vector<7x32xf32>
    %cst_217 = arith.constant 0.000000e+00 : f32
    %212 = vector.broadcast %cst_217 : f32 to vector<7x32xf32>
    %213 = arith.maximumf %211, %212 : vector<7x32xf32>
    %c0_218 = arith.constant 0 : index
    %c5_219 = arith.constant 5 : index
    %c0_220 = arith.constant 0 : index
    %c0_221 = arith.constant 0 : index
    %214 = vector.load %arg4[%c0_218, %c5_219, %c0_220, %c0_221] : memref<1x7x7x32xf32, #tpu.memory_space<vmem>>, vector<1x1x7x32xf32>
    %215 = vector.shape_cast %214 : vector<1x1x7x32xf32> to vector<7x32xf32>
    %216 = vector.shape_cast %213 : vector<7x32xf32> to vector<1x1x7x32xf32>
    tpu.vector_store %arg4[%c0_218, %c5_219, %c0_220, %c0_221], %216 {strides = array<i32>} : memref<1x7x7x32xf32, #tpu.memory_space<vmem>>, vector<1x1x7x32xf32>,
    %cst_222 = arith.constant 0.000000e+00 : f32
    %217 = vector.broadcast %cst_222 : f32 to vector<7x32xf32>
    %c0_223 = arith.constant 0 : index
    %c6_224 = arith.constant 6 : index
    %c0_225 = arith.constant 0 : index
    %c0_226 = arith.constant 0 : index
    %218 = vector.load %arg1[%c0_223, %c6_224, %c0_225, %c0_226] : memref<1x8x8x64xf32, #tpu.memory_space<vmem>>, vector<1x1x7x64xf32>
    %219 = vector.shape_cast %218 : vector<1x1x7x64xf32> to vector<7x64xf32>
    %220 = arith.truncf %219 : vector<7x64xf32> to vector<7x64xbf16>
    %c0_227 = arith.constant 0 : index
    %c0_228 = arith.constant 0 : index
    %c0_229 = arith.constant 0 : index
    %221 = vector.load %arg2[%c0_227, %c0_228, %c0_229] : memref<4x64x32xbf16, #tpu.memory_space<vmem>>, vector<1x64x32xbf16>
    %222 = vector.shape_cast %221 : vector<1x64x32xbf16> to vector<64x32xbf16>
    %cst_230 = arith.constant dense<0.000000e+00> : vector<7x32xf32>
    %223 = tpu.matmul %220, %222, %cst_230 {dimension_numbers = #tpu.dot_dimension_numbers<[1], [0], [0], [1], [0, 0, 1, 1], [], []>} : vector<7x64xbf16>, vector<64x32xbf16>, vector<7x32xf32> -> vector<7x32xf32>
    %224 = arith.addf %217, %223 : vector<7x32xf32>
    %c0_231 = arith.constant 0 : index
    %c6_232 = arith.constant 6 : index
    %c1_233 = arith.constant 1 : index
    %c0_234 = arith.constant 0 : index
    %225 = vector.load %arg1[%c0_231, %c6_232, %c1_233, %c0_234] : memref<1x8x8x64xf32, #tpu.memory_space<vmem>>, vector<1x1x7x64xf32>
    %226 = vector.shape_cast %225 : vector<1x1x7x64xf32> to vector<7x64xf32>
    %227 = arith.truncf %226 : vector<7x64xf32> to vector<7x64xbf16>
    %c1_235 = arith.constant 1 : index
    %c0_236 = arith.constant 0 : index
    %c0_237 = arith.constant 0 : index
    %228 = vector.load %arg2[%c1_235, %c0_236, %c0_237] : memref<4x64x32xbf16, #tpu.memory_space<vmem>>, vector<1x64x32xbf16>
    %229 = vector.shape_cast %228 : vector<1x64x32xbf16> to vector<64x32xbf16>
    %cst_238 = arith.constant dense<0.000000e+00> : vector<7x32xf32>
    %230 = tpu.matmul %227, %229, %cst_238 {dimension_numbers = #tpu.dot_dimension_numbers<[1], [0], [0], [1], [0, 0, 1, 1], [], []>} : vector<7x64xbf16>, vector<64x32xbf16>, vector<7x32xf32> -> vector<7x32xf32>
    %231 = arith.addf %224, %230 : vector<7x32xf32>
    %c0_239 = arith.constant 0 : index
    %c7 = arith.constant 7 : index
    %c0_240 = arith.constant 0 : index
    %c0_241 = arith.constant 0 : index
    %232 = vector.load %arg1[%c0_239, %c7, %c0_240, %c0_241] : memref<1x8x8x64xf32, #tpu.memory_space<vmem>>, vector<1x1x7x64xf32>
    %233 = vector.shape_cast %232 : vector<1x1x7x64xf32> to vector<7x64xf32>
    %234 = arith.truncf %233 : vector<7x64xf32> to vector<7x64xbf16>
    %c2_242 = arith.constant 2 : index
    %c0_243 = arith.constant 0 : index
    %c0_244 = arith.constant 0 : index
    %235 = vector.load %arg2[%c2_242, %c0_243, %c0_244] : memref<4x64x32xbf16, #tpu.memory_space<vmem>>, vector<1x64x32xbf16>
    %236 = vector.shape_cast %235 : vector<1x64x32xbf16> to vector<64x32xbf16>
    %cst_245 = arith.constant dense<0.000000e+00> : vector<7x32xf32>
    %237 = tpu.matmul %234, %236, %cst_245 {dimension_numbers = #tpu.dot_dimension_numbers<[1], [0], [0], [1], [0, 0, 1, 1], [], []>} : vector<7x64xbf16>, vector<64x32xbf16>, vector<7x32xf32> -> vector<7x32xf32>
    %238 = arith.addf %231, %237 : vector<7x32xf32>
    %c0_246 = arith.constant 0 : index
    %c7_247 = arith.constant 7 : index
    %c1_248 = arith.constant 1 : index
    %c0_249 = arith.constant 0 : index
    %239 = vector.load %arg1[%c0_246, %c7_247, %c1_248, %c0_249] : memref<1x8x8x64xf32, #tpu.memory_space<vmem>>, vector<1x1x7x64xf32>
    %240 = vector.shape_cast %239 : vector<1x1x7x64xf32> to vector<7x64xf32>
    %241 = arith.truncf %240 : vector<7x64xf32> to vector<7x64xbf16>
    %c3_250 = arith.constant 3 : index
    %c0_251 = arith.constant 0 : index
    %c0_252 = arith.constant 0 : index
    %242 = vector.load %arg2[%c3_250, %c0_251, %c0_252] : memref<4x64x32xbf16, #tpu.memory_space<vmem>>, vector<1x64x32xbf16>
    %243 = vector.shape_cast %242 : vector<1x64x32xbf16> to vector<64x32xbf16>
    %cst_253 = arith.constant dense<0.000000e+00> : vector<7x32xf32>
    %244 = tpu.matmul %241, %243, %cst_253 {dimension_numbers = #tpu.dot_dimension_numbers<[1], [0], [0], [1], [0, 0, 1, 1], [], []>} : vector<7x64xbf16>, vector<64x32xbf16>, vector<7x32xf32> -> vector<7x32xf32>
    %245 = arith.addf %238, %244 : vector<7x32xf32>
    %246 = vector.broadcast %0 : vector<1x32xf32> to vector<7x32xf32>
    %247 = arith.addf %245, %246 : vector<7x32xf32>
    %cst_254 = arith.constant 0.000000e+00 : f32
    %248 = vector.broadcast %cst_254 : f32 to vector<7x32xf32>
    %249 = arith.maximumf %247, %248 : vector<7x32xf32>
    %c0_255 = arith.constant 0 : index
    %c6_256 = arith.constant 6 : index
    %c0_257 = arith.constant 0 : index
    %c0_258 = arith.constant 0 : index
    %250 = vector.load %arg4[%c0_255, %c6_256, %c0_257, %c0_258] : memref<1x7x7x32xf32, #tpu.memory_space<vmem>>, vector<1x1x7x32xf32>
    %251 = vector.shape_cast %250 : vector<1x1x7x32xf32> to vector<7x32xf32>
    %252 = vector.shape_cast %249 : vector<7x32xf32> to vector<1x1x7x32xf32>
    tpu.vector_store %arg4[%c0_255, %c6_256, %c0_257, %c0_258], %252 {strides = array<i32>} : memref<1x7x7x32xf32, #tpu.memory_space<vmem>>, vector<1x1x7x32xf32>,
    return
  }
  func.func @transform_0(%arg0: i32) -> (i32, i32, i32, i32) {
    %c0_i32 = arith.constant 0 : i32
    %c0_i32_0 = arith.constant 0 : i32
    %c0_i32_1 = arith.constant 0 : i32
    %c0_i32_2 = arith.constant 0 : i32
    return %arg0, %c0_i32, %c0_i32_0, %c0_i32_1 : i32, i32, i32, i32
  }
  func.func @transform_1(%arg0: i32) -> (i32, i32, i32) {
    %c0_i32 = arith.constant 0 : i32
    %c0_i32_0 = arith.constant 0 : i32
    %c0_i32_1 = arith.constant 0 : i32
    %c0_i32_2 = arith.constant 0 : i32
    return %c0_i32, %c0_i32_0, %c0_i32_1 : i32, i32, i32
  }
  func.func @transform_2(%arg0: i32) -> (i32, i32) {
    %c0_i32 = arith.constant 0 : i32
    %c0_i32_0 = arith.constant 0 : i32
    %c0_i32_1 = arith.constant 0 : i32
    return %c0_i32, %c0_i32_0 : i32, i32
  }
  func.func @transform_3(%arg0: i32) -> (i32, i32, i32, i32) {
    %c0_i32 = arith.constant 0 : i32
    %c0_i32_0 = arith.constant 0 : i32
    %c0_i32_1 = arith.constant 0 : i32
    %c0_i32_2 = arith.constant 0 : i32
    return %arg0, %c0_i32, %c0_i32_0, %c0_i32_1 : i32, i32, i32, i32
  }
}

module attributes {stable_mosaic.version = 11 : i64} {
  func.func @_bottleneck_kernel(%arg0: i32, %arg1: memref<1x1x1568xf32, #tpu.memory_space<vmem>>, %arg2: memref<1568x64xbf16, #tpu.memory_space<vmem>>, %arg3: memref<1x64xf32, #tpu.memory_space<vmem>>, %arg4: memref<64x1568xbf16, #tpu.memory_space<vmem>>, %arg5: memref<1x1568xf32, #tpu.memory_space<vmem>>, %arg6: memref<1x1x1568xf32, #tpu.memory_space<vmem>>) attributes {dimension_semantics = [#tpu.dimension_semantics<parallel>], iteration_bounds = array<i64: 2>, scalar_prefetch = 0 : i64, scratch_operands = 0 : i64, tpu.core_type = #tpu.core_type<tc>, window_params = [{transform_indices = @transform_0, window_bounds = array<i64: 1, 1, 1568>}, {pipeline_mode = #tpu.pipeline_mode<synchronous>, transform_indices = @transform_1, window_bounds = array<i64: 1568, 64>}, {pipeline_mode = #tpu.pipeline_mode<synchronous>, transform_indices = @transform_2, window_bounds = array<i64: 1, 64>}, {pipeline_mode = #tpu.pipeline_mode<synchronous>, transform_indices = @transform_3, window_bounds = array<i64: 64, 1568>}, {pipeline_mode = #tpu.pipeline_mode<synchronous>, transform_indices = @transform_4, window_bounds = array<i64: 1, 1568>}, {transform_indices = @transform_5, window_bounds = array<i64: 1, 1, 1568>}]} {
    %c0 = arith.constant 0 : index
    %c0_0 = arith.constant 0 : index
    %c0_1 = arith.constant 0 : index
    %0 = vector.load %arg1[%c0, %c0_0, %c0_1] : memref<1x1x1568xf32, #tpu.memory_space<vmem>>, vector<1x1x1568xf32>
    %1 = vector.shape_cast %0 : vector<1x1x1568xf32> to vector<1x1568xf32>
    %2 = arith.truncf %1 : vector<1x1568xf32> to vector<1x1568xbf16>
    %c0_2 = arith.constant 0 : index
    %c0_3 = arith.constant 0 : index
    %3 = vector.load %arg2[%c0_2, %c0_3] : memref<1568x64xbf16, #tpu.memory_space<vmem>>, vector<1568x64xbf16>
    %cst = arith.constant dense<0.000000e+00> : vector<1x64xf32>
    %4 = tpu.matmul %2, %3, %cst {dimension_numbers = #tpu.dot_dimension_numbers<[1], [0], [0], [1], [0, 0, 1, 1], [], []>} : vector<1x1568xbf16>, vector<1568x64xbf16>, vector<1x64xf32> -> vector<1x64xf32>
    %c0_4 = arith.constant 0 : index
    %c0_5 = arith.constant 0 : index
    %5 = vector.load %arg3[%c0_4, %c0_5] : memref<1x64xf32, #tpu.memory_space<vmem>>, vector<1x64xf32>
    %6 = arith.addf %4, %5 : vector<1x64xf32>
    %7 = arith.truncf %6 : vector<1x64xf32> to vector<1x64xbf16>
    %c0_6 = arith.constant 0 : index
    %c0_7 = arith.constant 0 : index
    %8 = vector.load %arg4[%c0_6, %c0_7] : memref<64x1568xbf16, #tpu.memory_space<vmem>>, vector<64x1568xbf16>
    %cst_8 = arith.constant dense<0.000000e+00> : vector<1x1568xf32>
    %9 = tpu.matmul %7, %8, %cst_8 {dimension_numbers = #tpu.dot_dimension_numbers<[1], [0], [0], [1], [0, 0, 1, 1], [], []>} : vector<1x64xbf16>, vector<64x1568xbf16>, vector<1x1568xf32> -> vector<1x1568xf32>
    %c0_9 = arith.constant 0 : index
    %c0_10 = arith.constant 0 : index
    %10 = vector.load %arg5[%c0_9, %c0_10] : memref<1x1568xf32, #tpu.memory_space<vmem>>, vector<1x1568xf32>
    %11 = arith.addf %9, %10 : vector<1x1568xf32>
    %cst_11 = arith.constant 0.000000e+00 : f32
    %12 = vector.broadcast %cst_11 : f32 to vector<1x1568xf32>
    %13 = arith.maximumf %11, %12 : vector<1x1568xf32>
    %c0_12 = arith.constant 0 : index
    %c0_13 = arith.constant 0 : index
    %c0_14 = arith.constant 0 : index
    %14 = vector.load %arg6[%c0_12, %c0_13, %c0_14] : memref<1x1x1568xf32, #tpu.memory_space<vmem>>, vector<1x1x1568xf32>
    %15 = vector.shape_cast %14 : vector<1x1x1568xf32> to vector<1x1568xf32>
    %16 = vector.shape_cast %13 : vector<1x1568xf32> to vector<1x1x1568xf32>
    tpu.vector_store %arg6[%c0_12, %c0_13, %c0_14], %16 {strides = array<i32>} : memref<1x1x1568xf32, #tpu.memory_space<vmem>>, vector<1x1x1568xf32>,
    return
  }
  func.func @transform_0(%arg0: i32) -> (i32, i32, i32) {
    %c0_i32 = arith.constant 0 : i32
    %c0_i32_0 = arith.constant 0 : i32
    %c0_i32_1 = arith.constant 0 : i32
    return %arg0, %c0_i32, %c0_i32_0 : i32, i32, i32
  }
  func.func @transform_1(%arg0: i32) -> (i32, i32) {
    %c0_i32 = arith.constant 0 : i32
    %c0_i32_0 = arith.constant 0 : i32
    %c0_i32_1 = arith.constant 0 : i32
    return %c0_i32, %c0_i32_0 : i32, i32
  }
  func.func @transform_2(%arg0: i32) -> (i32, i32) {
    %c0_i32 = arith.constant 0 : i32
    %c0_i32_0 = arith.constant 0 : i32
    %c0_i32_1 = arith.constant 0 : i32
    return %c0_i32, %c0_i32_0 : i32, i32
  }
  func.func @transform_3(%arg0: i32) -> (i32, i32) {
    %c0_i32 = arith.constant 0 : i32
    %c0_i32_0 = arith.constant 0 : i32
    %c0_i32_1 = arith.constant 0 : i32
    return %c0_i32, %c0_i32_0 : i32, i32
  }
  func.func @transform_4(%arg0: i32) -> (i32, i32) {
    %c0_i32 = arith.constant 0 : i32
    %c0_i32_0 = arith.constant 0 : i32
    %c0_i32_1 = arith.constant 0 : i32
    return %c0_i32, %c0_i32_0 : i32, i32
  }
  func.func @transform_5(%arg0: i32) -> (i32, i32, i32) {
    %c0_i32 = arith.constant 0 : i32
    %c0_i32_0 = arith.constant 0 : i32
    %c0_i32_1 = arith.constant 0 : i32
    return %arg0, %c0_i32, %c0_i32_0 : i32, i32, i32
  }
}

module attributes {stable_mosaic.version = 11 : i64} {
  func.func @_conv_bias_act_kernel(%arg0: i32, %arg1: memref<1x8x8x32xf32, #tpu.memory_space<vmem>>, %arg2: memref<4x32x64xbf16, #tpu.memory_space<vmem>>, %arg3: memref<1x64xf32, #tpu.memory_space<vmem>>, %arg4: memref<1x7x7x64xf32, #tpu.memory_space<vmem>>) attributes {dimension_semantics = [#tpu.dimension_semantics<parallel>], iteration_bounds = array<i64: 2>, scalar_prefetch = 0 : i64, scratch_operands = 0 : i64, tpu.core_type = #tpu.core_type<tc>, window_params = [{transform_indices = @transform_0, window_bounds = array<i64: 1, 8, 8, 32>}, {pipeline_mode = #tpu.pipeline_mode<synchronous>, transform_indices = @transform_1, window_bounds = array<i64: 4, 32, 64>}, {pipeline_mode = #tpu.pipeline_mode<synchronous>, transform_indices = @transform_2, window_bounds = array<i64: 1, 64>}, {transform_indices = @transform_3, window_bounds = array<i64: 1, 7, 7, 64>}]} {
    %c0 = arith.constant 0 : index
    %c0_0 = arith.constant 0 : index
    %0 = vector.load %arg3[%c0, %c0_0] : memref<1x64xf32, #tpu.memory_space<vmem>>, vector<1x64xf32>
    %cst = arith.constant 0.000000e+00 : f32
    %1 = vector.broadcast %cst : f32 to vector<7x64xf32>
    %c0_1 = arith.constant 0 : index
    %c0_2 = arith.constant 0 : index
    %c0_3 = arith.constant 0 : index
    %c0_4 = arith.constant 0 : index
    %2 = vector.load %arg1[%c0_1, %c0_2, %c0_3, %c0_4] : memref<1x8x8x32xf32, #tpu.memory_space<vmem>>, vector<1x1x7x32xf32>
    %3 = vector.shape_cast %2 : vector<1x1x7x32xf32> to vector<7x32xf32>
    %4 = arith.truncf %3 : vector<7x32xf32> to vector<7x32xbf16>
    %c0_5 = arith.constant 0 : index
    %c0_6 = arith.constant 0 : index
    %c0_7 = arith.constant 0 : index
    %5 = vector.load %arg2[%c0_5, %c0_6, %c0_7] : memref<4x32x64xbf16, #tpu.memory_space<vmem>>, vector<1x32x64xbf16>
    %6 = vector.shape_cast %5 : vector<1x32x64xbf16> to vector<32x64xbf16>
    %cst_8 = arith.constant dense<0.000000e+00> : vector<7x64xf32>
    %7 = tpu.matmul %4, %6, %cst_8 {dimension_numbers = #tpu.dot_dimension_numbers<[1], [0], [0], [1], [0, 0, 1, 1], [], []>} : vector<7x32xbf16>, vector<32x64xbf16>, vector<7x64xf32> -> vector<7x64xf32>
    %8 = arith.addf %1, %7 : vector<7x64xf32>
    %c0_9 = arith.constant 0 : index
    %c0_10 = arith.constant 0 : index
    %c1 = arith.constant 1 : index
    %c0_11 = arith.constant 0 : index
    %9 = vector.load %arg1[%c0_9, %c0_10, %c1, %c0_11] : memref<1x8x8x32xf32, #tpu.memory_space<vmem>>, vector<1x1x7x32xf32>
    %10 = vector.shape_cast %9 : vector<1x1x7x32xf32> to vector<7x32xf32>
    %11 = arith.truncf %10 : vector<7x32xf32> to vector<7x32xbf16>
    %c1_12 = arith.constant 1 : index
    %c0_13 = arith.constant 0 : index
    %c0_14 = arith.constant 0 : index
    %12 = vector.load %arg2[%c1_12, %c0_13, %c0_14] : memref<4x32x64xbf16, #tpu.memory_space<vmem>>, vector<1x32x64xbf16>
    %13 = vector.shape_cast %12 : vector<1x32x64xbf16> to vector<32x64xbf16>
    %cst_15 = arith.constant dense<0.000000e+00> : vector<7x64xf32>
    %14 = tpu.matmul %11, %13, %cst_15 {dimension_numbers = #tpu.dot_dimension_numbers<[1], [0], [0], [1], [0, 0, 1, 1], [], []>} : vector<7x32xbf16>, vector<32x64xbf16>, vector<7x64xf32> -> vector<7x64xf32>
    %15 = arith.addf %8, %14 : vector<7x64xf32>
    %c0_16 = arith.constant 0 : index
    %c1_17 = arith.constant 1 : index
    %c0_18 = arith.constant 0 : index
    %c0_19 = arith.constant 0 : index
    %16 = vector.load %arg1[%c0_16, %c1_17, %c0_18, %c0_19] : memref<1x8x8x32xf32, #tpu.memory_space<vmem>>, vector<1x1x7x32xf32>
    %17 = vector.shape_cast %16 : vector<1x1x7x32xf32> to vector<7x32xf32>
    %18 = arith.truncf %17 : vector<7x32xf32> to vector<7x32xbf16>
    %c2 = arith.constant 2 : index
    %c0_20 = arith.constant 0 : index
    %c0_21 = arith.constant 0 : index
    %19 = vector.load %arg2[%c2, %c0_20, %c0_21] : memref<4x32x64xbf16, #tpu.memory_space<vmem>>, vector<1x32x64xbf16>
    %20 = vector.shape_cast %19 : vector<1x32x64xbf16> to vector<32x64xbf16>
    %cst_22 = arith.constant dense<0.000000e+00> : vector<7x64xf32>
    %21 = tpu.matmul %18, %20, %cst_22 {dimension_numbers = #tpu.dot_dimension_numbers<[1], [0], [0], [1], [0, 0, 1, 1], [], []>} : vector<7x32xbf16>, vector<32x64xbf16>, vector<7x64xf32> -> vector<7x64xf32>
    %22 = arith.addf %15, %21 : vector<7x64xf32>
    %c0_23 = arith.constant 0 : index
    %c1_24 = arith.constant 1 : index
    %c1_25 = arith.constant 1 : index
    %c0_26 = arith.constant 0 : index
    %23 = vector.load %arg1[%c0_23, %c1_24, %c1_25, %c0_26] : memref<1x8x8x32xf32, #tpu.memory_space<vmem>>, vector<1x1x7x32xf32>
    %24 = vector.shape_cast %23 : vector<1x1x7x32xf32> to vector<7x32xf32>
    %25 = arith.truncf %24 : vector<7x32xf32> to vector<7x32xbf16>
    %c3 = arith.constant 3 : index
    %c0_27 = arith.constant 0 : index
    %c0_28 = arith.constant 0 : index
    %26 = vector.load %arg2[%c3, %c0_27, %c0_28] : memref<4x32x64xbf16, #tpu.memory_space<vmem>>, vector<1x32x64xbf16>
    %27 = vector.shape_cast %26 : vector<1x32x64xbf16> to vector<32x64xbf16>
    %cst_29 = arith.constant dense<0.000000e+00> : vector<7x64xf32>
    %28 = tpu.matmul %25, %27, %cst_29 {dimension_numbers = #tpu.dot_dimension_numbers<[1], [0], [0], [1], [0, 0, 1, 1], [], []>} : vector<7x32xbf16>, vector<32x64xbf16>, vector<7x64xf32> -> vector<7x64xf32>
    %29 = arith.addf %22, %28 : vector<7x64xf32>
    %30 = vector.broadcast %0 : vector<1x64xf32> to vector<7x64xf32>
    %31 = arith.addf %29, %30 : vector<7x64xf32>
    %cst_30 = arith.constant 0.000000e+00 : f32
    %32 = vector.broadcast %cst_30 : f32 to vector<7x64xf32>
    %33 = arith.maximumf %31, %32 : vector<7x64xf32>
    %c0_31 = arith.constant 0 : index
    %c0_32 = arith.constant 0 : index
    %c0_33 = arith.constant 0 : index
    %c0_34 = arith.constant 0 : index
    %34 = vector.load %arg4[%c0_31, %c0_32, %c0_33, %c0_34] : memref<1x7x7x64xf32, #tpu.memory_space<vmem>>, vector<1x1x7x64xf32>
    %35 = vector.shape_cast %34 : vector<1x1x7x64xf32> to vector<7x64xf32>
    %36 = vector.shape_cast %33 : vector<7x64xf32> to vector<1x1x7x64xf32>
    tpu.vector_store %arg4[%c0_31, %c0_32, %c0_33, %c0_34], %36 {strides = array<i32>} : memref<1x7x7x64xf32, #tpu.memory_space<vmem>>, vector<1x1x7x64xf32>,
    %cst_35 = arith.constant 0.000000e+00 : f32
    %37 = vector.broadcast %cst_35 : f32 to vector<7x64xf32>
    %c0_36 = arith.constant 0 : index
    %c1_37 = arith.constant 1 : index
    %c0_38 = arith.constant 0 : index
    %c0_39 = arith.constant 0 : index
    %38 = vector.load %arg1[%c0_36, %c1_37, %c0_38, %c0_39] : memref<1x8x8x32xf32, #tpu.memory_space<vmem>>, vector<1x1x7x32xf32>
    %39 = vector.shape_cast %38 : vector<1x1x7x32xf32> to vector<7x32xf32>
    %40 = arith.truncf %39 : vector<7x32xf32> to vector<7x32xbf16>
    %c0_40 = arith.constant 0 : index
    %c0_41 = arith.constant 0 : index
    %c0_42 = arith.constant 0 : index
    %41 = vector.load %arg2[%c0_40, %c0_41, %c0_42] : memref<4x32x64xbf16, #tpu.memory_space<vmem>>, vector<1x32x64xbf16>
    %42 = vector.shape_cast %41 : vector<1x32x64xbf16> to vector<32x64xbf16>
    %cst_43 = arith.constant dense<0.000000e+00> : vector<7x64xf32>
    %43 = tpu.matmul %40, %42, %cst_43 {dimension_numbers = #tpu.dot_dimension_numbers<[1], [0], [0], [1], [0, 0, 1, 1], [], []>} : vector<7x32xbf16>, vector<32x64xbf16>, vector<7x64xf32> -> vector<7x64xf32>
    %44 = arith.addf %37, %43 : vector<7x64xf32>
    %c0_44 = arith.constant 0 : index
    %c1_45 = arith.constant 1 : index
    %c1_46 = arith.constant 1 : index
    %c0_47 = arith.constant 0 : index
    %45 = vector.load %arg1[%c0_44, %c1_45, %c1_46, %c0_47] : memref<1x8x8x32xf32, #tpu.memory_space<vmem>>, vector<1x1x7x32xf32>
    %46 = vector.shape_cast %45 : vector<1x1x7x32xf32> to vector<7x32xf32>
    %47 = arith.truncf %46 : vector<7x32xf32> to vector<7x32xbf16>
    %c1_48 = arith.constant 1 : index
    %c0_49 = arith.constant 0 : index
    %c0_50 = arith.constant 0 : index
    %48 = vector.load %arg2[%c1_48, %c0_49, %c0_50] : memref<4x32x64xbf16, #tpu.memory_space<vmem>>, vector<1x32x64xbf16>
    %49 = vector.shape_cast %48 : vector<1x32x64xbf16> to vector<32x64xbf16>
    %cst_51 = arith.constant dense<0.000000e+00> : vector<7x64xf32>
    %50 = tpu.matmul %47, %49, %cst_51 {dimension_numbers = #tpu.dot_dimension_numbers<[1], [0], [0], [1], [0, 0, 1, 1], [], []>} : vector<7x32xbf16>, vector<32x64xbf16>, vector<7x64xf32> -> vector<7x64xf32>
    %51 = arith.addf %44, %50 : vector<7x64xf32>
    %c0_52 = arith.constant 0 : index
    %c2_53 = arith.constant 2 : index
    %c0_54 = arith.constant 0 : index
    %c0_55 = arith.constant 0 : index
    %52 = vector.load %arg1[%c0_52, %c2_53, %c0_54, %c0_55] : memref<1x8x8x32xf32, #tpu.memory_space<vmem>>, vector<1x1x7x32xf32>
    %53 = vector.shape_cast %52 : vector<1x1x7x32xf32> to vector<7x32xf32>
    %54 = arith.truncf %53 : vector<7x32xf32> to vector<7x32xbf16>
    %c2_56 = arith.constant 2 : index
    %c0_57 = arith.constant 0 : index
    %c0_58 = arith.constant 0 : index
    %55 = vector.load %arg2[%c2_56, %c0_57, %c0_58] : memref<4x32x64xbf16, #tpu.memory_space<vmem>>, vector<1x32x64xbf16>
    %56 = vector.shape_cast %55 : vector<1x32x64xbf16> to vector<32x64xbf16>
    %cst_59 = arith.constant dense<0.000000e+00> : vector<7x64xf32>
    %57 = tpu.matmul %54, %56, %cst_59 {dimension_numbers = #tpu.dot_dimension_numbers<[1], [0], [0], [1], [0, 0, 1, 1], [], []>} : vector<7x32xbf16>, vector<32x64xbf16>, vector<7x64xf32> -> vector<7x64xf32>
    %58 = arith.addf %51, %57 : vector<7x64xf32>
    %c0_60 = arith.constant 0 : index
    %c2_61 = arith.constant 2 : index
    %c1_62 = arith.constant 1 : index
    %c0_63 = arith.constant 0 : index
    %59 = vector.load %arg1[%c0_60, %c2_61, %c1_62, %c0_63] : memref<1x8x8x32xf32, #tpu.memory_space<vmem>>, vector<1x1x7x32xf32>
    %60 = vector.shape_cast %59 : vector<1x1x7x32xf32> to vector<7x32xf32>
    %61 = arith.truncf %60 : vector<7x32xf32> to vector<7x32xbf16>
    %c3_64 = arith.constant 3 : index
    %c0_65 = arith.constant 0 : index
    %c0_66 = arith.constant 0 : index
    %62 = vector.load %arg2[%c3_64, %c0_65, %c0_66] : memref<4x32x64xbf16, #tpu.memory_space<vmem>>, vector<1x32x64xbf16>
    %63 = vector.shape_cast %62 : vector<1x32x64xbf16> to vector<32x64xbf16>
    %cst_67 = arith.constant dense<0.000000e+00> : vector<7x64xf32>
    %64 = tpu.matmul %61, %63, %cst_67 {dimension_numbers = #tpu.dot_dimension_numbers<[1], [0], [0], [1], [0, 0, 1, 1], [], []>} : vector<7x32xbf16>, vector<32x64xbf16>, vector<7x64xf32> -> vector<7x64xf32>
    %65 = arith.addf %58, %64 : vector<7x64xf32>
    %66 = vector.broadcast %0 : vector<1x64xf32> to vector<7x64xf32>
    %67 = arith.addf %65, %66 : vector<7x64xf32>
    %cst_68 = arith.constant 0.000000e+00 : f32
    %68 = vector.broadcast %cst_68 : f32 to vector<7x64xf32>
    %69 = arith.maximumf %67, %68 : vector<7x64xf32>
    %c0_69 = arith.constant 0 : index
    %c1_70 = arith.constant 1 : index
    %c0_71 = arith.constant 0 : index
    %c0_72 = arith.constant 0 : index
    %70 = vector.load %arg4[%c0_69, %c1_70, %c0_71, %c0_72] : memref<1x7x7x64xf32, #tpu.memory_space<vmem>>, vector<1x1x7x64xf32>
    %71 = vector.shape_cast %70 : vector<1x1x7x64xf32> to vector<7x64xf32>
    %72 = vector.shape_cast %69 : vector<7x64xf32> to vector<1x1x7x64xf32>
    tpu.vector_store %arg4[%c0_69, %c1_70, %c0_71, %c0_72], %72 {strides = array<i32>} : memref<1x7x7x64xf32, #tpu.memory_space<vmem>>, vector<1x1x7x64xf32>,
    %cst_73 = arith.constant 0.000000e+00 : f32
    %73 = vector.broadcast %cst_73 : f32 to vector<7x64xf32>
    %c0_74 = arith.constant 0 : index
    %c2_75 = arith.constant 2 : index
    %c0_76 = arith.constant 0 : index
    %c0_77 = arith.constant 0 : index
    %74 = vector.load %arg1[%c0_74, %c2_75, %c0_76, %c0_77] : memref<1x8x8x32xf32, #tpu.memory_space<vmem>>, vector<1x1x7x32xf32>
    %75 = vector.shape_cast %74 : vector<1x1x7x32xf32> to vector<7x32xf32>
    %76 = arith.truncf %75 : vector<7x32xf32> to vector<7x32xbf16>
    %c0_78 = arith.constant 0 : index
    %c0_79 = arith.constant 0 : index
    %c0_80 = arith.constant 0 : index
    %77 = vector.load %arg2[%c0_78, %c0_79, %c0_80] : memref<4x32x64xbf16, #tpu.memory_space<vmem>>, vector<1x32x64xbf16>
    %78 = vector.shape_cast %77 : vector<1x32x64xbf16> to vector<32x64xbf16>
    %cst_81 = arith.constant dense<0.000000e+00> : vector<7x64xf32>
    %79 = tpu.matmul %76, %78, %cst_81 {dimension_numbers = #tpu.dot_dimension_numbers<[1], [0], [0], [1], [0, 0, 1, 1], [], []>} : vector<7x32xbf16>, vector<32x64xbf16>, vector<7x64xf32> -> vector<7x64xf32>
    %80 = arith.addf %73, %79 : vector<7x64xf32>
    %c0_82 = arith.constant 0 : index
    %c2_83 = arith.constant 2 : index
    %c1_84 = arith.constant 1 : index
    %c0_85 = arith.constant 0 : index
    %81 = vector.load %arg1[%c0_82, %c2_83, %c1_84, %c0_85] : memref<1x8x8x32xf32, #tpu.memory_space<vmem>>, vector<1x1x7x32xf32>
    %82 = vector.shape_cast %81 : vector<1x1x7x32xf32> to vector<7x32xf32>
    %83 = arith.truncf %82 : vector<7x32xf32> to vector<7x32xbf16>
    %c1_86 = arith.constant 1 : index
    %c0_87 = arith.constant 0 : index
    %c0_88 = arith.constant 0 : index
    %84 = vector.load %arg2[%c1_86, %c0_87, %c0_88] : memref<4x32x64xbf16, #tpu.memory_space<vmem>>, vector<1x32x64xbf16>
    %85 = vector.shape_cast %84 : vector<1x32x64xbf16> to vector<32x64xbf16>
    %cst_89 = arith.constant dense<0.000000e+00> : vector<7x64xf32>
    %86 = tpu.matmul %83, %85, %cst_89 {dimension_numbers = #tpu.dot_dimension_numbers<[1], [0], [0], [1], [0, 0, 1, 1], [], []>} : vector<7x32xbf16>, vector<32x64xbf16>, vector<7x64xf32> -> vector<7x64xf32>
    %87 = arith.addf %80, %86 : vector<7x64xf32>
    %c0_90 = arith.constant 0 : index
    %c3_91 = arith.constant 3 : index
    %c0_92 = arith.constant 0 : index
    %c0_93 = arith.constant 0 : index
    %88 = vector.load %arg1[%c0_90, %c3_91, %c0_92, %c0_93] : memref<1x8x8x32xf32, #tpu.memory_space<vmem>>, vector<1x1x7x32xf32>
    %89 = vector.shape_cast %88 : vector<1x1x7x32xf32> to vector<7x32xf32>
    %90 = arith.truncf %89 : vector<7x32xf32> to vector<7x32xbf16>
    %c2_94 = arith.constant 2 : index
    %c0_95 = arith.constant 0 : index
    %c0_96 = arith.constant 0 : index
    %91 = vector.load %arg2[%c2_94, %c0_95, %c0_96] : memref<4x32x64xbf16, #tpu.memory_space<vmem>>, vector<1x32x64xbf16>
    %92 = vector.shape_cast %91 : vector<1x32x64xbf16> to vector<32x64xbf16>
    %cst_97 = arith.constant dense<0.000000e+00> : vector<7x64xf32>
    %93 = tpu.matmul %90, %92, %cst_97 {dimension_numbers = #tpu.dot_dimension_numbers<[1], [0], [0], [1], [0, 0, 1, 1], [], []>} : vector<7x32xbf16>, vector<32x64xbf16>, vector<7x64xf32> -> vector<7x64xf32>
    %94 = arith.addf %87, %93 : vector<7x64xf32>
    %c0_98 = arith.constant 0 : index
    %c3_99 = arith.constant 3 : index
    %c1_100 = arith.constant 1 : index
    %c0_101 = arith.constant 0 : index
    %95 = vector.load %arg1[%c0_98, %c3_99, %c1_100, %c0_101] : memref<1x8x8x32xf32, #tpu.memory_space<vmem>>, vector<1x1x7x32xf32>
    %96 = vector.shape_cast %95 : vector<1x1x7x32xf32> to vector<7x32xf32>
    %97 = arith.truncf %96 : vector<7x32xf32> to vector<7x32xbf16>
    %c3_102 = arith.constant 3 : index
    %c0_103 = arith.constant 0 : index
    %c0_104 = arith.constant 0 : index
    %98 = vector.load %arg2[%c3_102, %c0_103, %c0_104] : memref<4x32x64xbf16, #tpu.memory_space<vmem>>, vector<1x32x64xbf16>
    %99 = vector.shape_cast %98 : vector<1x32x64xbf16> to vector<32x64xbf16>
    %cst_105 = arith.constant dense<0.000000e+00> : vector<7x64xf32>
    %100 = tpu.matmul %97, %99, %cst_105 {dimension_numbers = #tpu.dot_dimension_numbers<[1], [0], [0], [1], [0, 0, 1, 1], [], []>} : vector<7x32xbf16>, vector<32x64xbf16>, vector<7x64xf32> -> vector<7x64xf32>
    %101 = arith.addf %94, %100 : vector<7x64xf32>
    %102 = vector.broadcast %0 : vector<1x64xf32> to vector<7x64xf32>
    %103 = arith.addf %101, %102 : vector<7x64xf32>
    %cst_106 = arith.constant 0.000000e+00 : f32
    %104 = vector.broadcast %cst_106 : f32 to vector<7x64xf32>
    %105 = arith.maximumf %103, %104 : vector<7x64xf32>
    %c0_107 = arith.constant 0 : index
    %c2_108 = arith.constant 2 : index
    %c0_109 = arith.constant 0 : index
    %c0_110 = arith.constant 0 : index
    %106 = vector.load %arg4[%c0_107, %c2_108, %c0_109, %c0_110] : memref<1x7x7x64xf32, #tpu.memory_space<vmem>>, vector<1x1x7x64xf32>
    %107 = vector.shape_cast %106 : vector<1x1x7x64xf32> to vector<7x64xf32>
    %108 = vector.shape_cast %105 : vector<7x64xf32> to vector<1x1x7x64xf32>
    tpu.vector_store %arg4[%c0_107, %c2_108, %c0_109, %c0_110], %108 {strides = array<i32>} : memref<1x7x7x64xf32, #tpu.memory_space<vmem>>, vector<1x1x7x64xf32>,
    %cst_111 = arith.constant 0.000000e+00 : f32
    %109 = vector.broadcast %cst_111 : f32 to vector<7x64xf32>
    %c0_112 = arith.constant 0 : index
    %c3_113 = arith.constant 3 : index
    %c0_114 = arith.constant 0 : index
    %c0_115 = arith.constant 0 : index
    %110 = vector.load %arg1[%c0_112, %c3_113, %c0_114, %c0_115] : memref<1x8x8x32xf32, #tpu.memory_space<vmem>>, vector<1x1x7x32xf32>
    %111 = vector.shape_cast %110 : vector<1x1x7x32xf32> to vector<7x32xf32>
    %112 = arith.truncf %111 : vector<7x32xf32> to vector<7x32xbf16>
    %c0_116 = arith.constant 0 : index
    %c0_117 = arith.constant 0 : index
    %c0_118 = arith.constant 0 : index
    %113 = vector.load %arg2[%c0_116, %c0_117, %c0_118] : memref<4x32x64xbf16, #tpu.memory_space<vmem>>, vector<1x32x64xbf16>
    %114 = vector.shape_cast %113 : vector<1x32x64xbf16> to vector<32x64xbf16>
    %cst_119 = arith.constant dense<0.000000e+00> : vector<7x64xf32>
    %115 = tpu.matmul %112, %114, %cst_119 {dimension_numbers = #tpu.dot_dimension_numbers<[1], [0], [0], [1], [0, 0, 1, 1], [], []>} : vector<7x32xbf16>, vector<32x64xbf16>, vector<7x64xf32> -> vector<7x64xf32>
    %116 = arith.addf %109, %115 : vector<7x64xf32>
    %c0_120 = arith.constant 0 : index
    %c3_121 = arith.constant 3 : index
    %c1_122 = arith.constant 1 : index
    %c0_123 = arith.constant 0 : index
    %117 = vector.load %arg1[%c0_120, %c3_121, %c1_122, %c0_123] : memref<1x8x8x32xf32, #tpu.memory_space<vmem>>, vector<1x1x7x32xf32>
    %118 = vector.shape_cast %117 : vector<1x1x7x32xf32> to vector<7x32xf32>
    %119 = arith.truncf %118 : vector<7x32xf32> to vector<7x32xbf16>
    %c1_124 = arith.constant 1 : index
    %c0_125 = arith.constant 0 : index
    %c0_126 = arith.constant 0 : index
    %120 = vector.load %arg2[%c1_124, %c0_125, %c0_126] : memref<4x32x64xbf16, #tpu.memory_space<vmem>>, vector<1x32x64xbf16>
    %121 = vector.shape_cast %120 : vector<1x32x64xbf16> to vector<32x64xbf16>
    %cst_127 = arith.constant dense<0.000000e+00> : vector<7x64xf32>
    %122 = tpu.matmul %119, %121, %cst_127 {dimension_numbers = #tpu.dot_dimension_numbers<[1], [0], [0], [1], [0, 0, 1, 1], [], []>} : vector<7x32xbf16>, vector<32x64xbf16>, vector<7x64xf32> -> vector<7x64xf32>
    %123 = arith.addf %116, %122 : vector<7x64xf32>
    %c0_128 = arith.constant 0 : index
    %c4 = arith.constant 4 : index
    %c0_129 = arith.constant 0 : index
    %c0_130 = arith.constant 0 : index
    %124 = vector.load %arg1[%c0_128, %c4, %c0_129, %c0_130] : memref<1x8x8x32xf32, #tpu.memory_space<vmem>>, vector<1x1x7x32xf32>
    %125 = vector.shape_cast %124 : vector<1x1x7x32xf32> to vector<7x32xf32>
    %126 = arith.truncf %125 : vector<7x32xf32> to vector<7x32xbf16>
    %c2_131 = arith.constant 2 : index
    %c0_132 = arith.constant 0 : index
    %c0_133 = arith.constant 0 : index
    %127 = vector.load %arg2[%c2_131, %c0_132, %c0_133] : memref<4x32x64xbf16, #tpu.memory_space<vmem>>, vector<1x32x64xbf16>
    %128 = vector.shape_cast %127 : vector<1x32x64xbf16> to vector<32x64xbf16>
    %cst_134 = arith.constant dense<0.000000e+00> : vector<7x64xf32>
    %129 = tpu.matmul %126, %128, %cst_134 {dimension_numbers = #tpu.dot_dimension_numbers<[1], [0], [0], [1], [0, 0, 1, 1], [], []>} : vector<7x32xbf16>, vector<32x64xbf16>, vector<7x64xf32> -> vector<7x64xf32>
    %130 = arith.addf %123, %129 : vector<7x64xf32>
    %c0_135 = arith.constant 0 : index
    %c4_136 = arith.constant 4 : index
    %c1_137 = arith.constant 1 : index
    %c0_138 = arith.constant 0 : index
    %131 = vector.load %arg1[%c0_135, %c4_136, %c1_137, %c0_138] : memref<1x8x8x32xf32, #tpu.memory_space<vmem>>, vector<1x1x7x32xf32>
    %132 = vector.shape_cast %131 : vector<1x1x7x32xf32> to vector<7x32xf32>
    %133 = arith.truncf %132 : vector<7x32xf32> to vector<7x32xbf16>
    %c3_139 = arith.constant 3 : index
    %c0_140 = arith.constant 0 : index
    %c0_141 = arith.constant 0 : index
    %134 = vector.load %arg2[%c3_139, %c0_140, %c0_141] : memref<4x32x64xbf16, #tpu.memory_space<vmem>>, vector<1x32x64xbf16>
    %135 = vector.shape_cast %134 : vector<1x32x64xbf16> to vector<32x64xbf16>
    %cst_142 = arith.constant dense<0.000000e+00> : vector<7x64xf32>
    %136 = tpu.matmul %133, %135, %cst_142 {dimension_numbers = #tpu.dot_dimension_numbers<[1], [0], [0], [1], [0, 0, 1, 1], [], []>} : vector<7x32xbf16>, vector<32x64xbf16>, vector<7x64xf32> -> vector<7x64xf32>
    %137 = arith.addf %130, %136 : vector<7x64xf32>
    %138 = vector.broadcast %0 : vector<1x64xf32> to vector<7x64xf32>
    %139 = arith.addf %137, %138 : vector<7x64xf32>
    %cst_143 = arith.constant 0.000000e+00 : f32
    %140 = vector.broadcast %cst_143 : f32 to vector<7x64xf32>
    %141 = arith.maximumf %139, %140 : vector<7x64xf32>
    %c0_144 = arith.constant 0 : index
    %c3_145 = arith.constant 3 : index
    %c0_146 = arith.constant 0 : index
    %c0_147 = arith.constant 0 : index
    %142 = vector.load %arg4[%c0_144, %c3_145, %c0_146, %c0_147] : memref<1x7x7x64xf32, #tpu.memory_space<vmem>>, vector<1x1x7x64xf32>
    %143 = vector.shape_cast %142 : vector<1x1x7x64xf32> to vector<7x64xf32>
    %144 = vector.shape_cast %141 : vector<7x64xf32> to vector<1x1x7x64xf32>
    tpu.vector_store %arg4[%c0_144, %c3_145, %c0_146, %c0_147], %144 {strides = array<i32>} : memref<1x7x7x64xf32, #tpu.memory_space<vmem>>, vector<1x1x7x64xf32>,
    %cst_148 = arith.constant 0.000000e+00 : f32
    %145 = vector.broadcast %cst_148 : f32 to vector<7x64xf32>
    %c0_149 = arith.constant 0 : index
    %c4_150 = arith.constant 4 : index
    %c0_151 = arith.constant 0 : index
    %c0_152 = arith.constant 0 : index
    %146 = vector.load %arg1[%c0_149, %c4_150, %c0_151, %c0_152] : memref<1x8x8x32xf32, #tpu.memory_space<vmem>>, vector<1x1x7x32xf32>
    %147 = vector.shape_cast %146 : vector<1x1x7x32xf32> to vector<7x32xf32>
    %148 = arith.truncf %147 : vector<7x32xf32> to vector<7x32xbf16>
    %c0_153 = arith.constant 0 : index
    %c0_154 = arith.constant 0 : index
    %c0_155 = arith.constant 0 : index
    %149 = vector.load %arg2[%c0_153, %c0_154, %c0_155] : memref<4x32x64xbf16, #tpu.memory_space<vmem>>, vector<1x32x64xbf16>
    %150 = vector.shape_cast %149 : vector<1x32x64xbf16> to vector<32x64xbf16>
    %cst_156 = arith.constant dense<0.000000e+00> : vector<7x64xf32>
    %151 = tpu.matmul %148, %150, %cst_156 {dimension_numbers = #tpu.dot_dimension_numbers<[1], [0], [0], [1], [0, 0, 1, 1], [], []>} : vector<7x32xbf16>, vector<32x64xbf16>, vector<7x64xf32> -> vector<7x64xf32>
    %152 = arith.addf %145, %151 : vector<7x64xf32>
    %c0_157 = arith.constant 0 : index
    %c4_158 = arith.constant 4 : index
    %c1_159 = arith.constant 1 : index
    %c0_160 = arith.constant 0 : index
    %153 = vector.load %arg1[%c0_157, %c4_158, %c1_159, %c0_160] : memref<1x8x8x32xf32, #tpu.memory_space<vmem>>, vector<1x1x7x32xf32>
    %154 = vector.shape_cast %153 : vector<1x1x7x32xf32> to vector<7x32xf32>
    %155 = arith.truncf %154 : vector<7x32xf32> to vector<7x32xbf16>
    %c1_161 = arith.constant 1 : index
    %c0_162 = arith.constant 0 : index
    %c0_163 = arith.constant 0 : index
    %156 = vector.load %arg2[%c1_161, %c0_162, %c0_163] : memref<4x32x64xbf16, #tpu.memory_space<vmem>>, vector<1x32x64xbf16>
    %157 = vector.shape_cast %156 : vector<1x32x64xbf16> to vector<32x64xbf16>
    %cst_164 = arith.constant dense<0.000000e+00> : vector<7x64xf32>
    %158 = tpu.matmul %155, %157, %cst_164 {dimension_numbers = #tpu.dot_dimension_numbers<[1], [0], [0], [1], [0, 0, 1, 1], [], []>} : vector<7x32xbf16>, vector<32x64xbf16>, vector<7x64xf32> -> vector<7x64xf32>
    %159 = arith.addf %152, %158 : vector<7x64xf32>
    %c0_165 = arith.constant 0 : index
    %c5 = arith.constant 5 : index
    %c0_166 = arith.constant 0 : index
    %c0_167 = arith.constant 0 : index
    %160 = vector.load %arg1[%c0_165, %c5, %c0_166, %c0_167] : memref<1x8x8x32xf32, #tpu.memory_space<vmem>>, vector<1x1x7x32xf32>
    %161 = vector.shape_cast %160 : vector<1x1x7x32xf32> to vector<7x32xf32>
    %162 = arith.truncf %161 : vector<7x32xf32> to vector<7x32xbf16>
    %c2_168 = arith.constant 2 : index
    %c0_169 = arith.constant 0 : index
    %c0_170 = arith.constant 0 : index
    %163 = vector.load %arg2[%c2_168, %c0_169, %c0_170] : memref<4x32x64xbf16, #tpu.memory_space<vmem>>, vector<1x32x64xbf16>
    %164 = vector.shape_cast %163 : vector<1x32x64xbf16> to vector<32x64xbf16>
    %cst_171 = arith.constant dense<0.000000e+00> : vector<7x64xf32>
    %165 = tpu.matmul %162, %164, %cst_171 {dimension_numbers = #tpu.dot_dimension_numbers<[1], [0], [0], [1], [0, 0, 1, 1], [], []>} : vector<7x32xbf16>, vector<32x64xbf16>, vector<7x64xf32> -> vector<7x64xf32>
    %166 = arith.addf %159, %165 : vector<7x64xf32>
    %c0_172 = arith.constant 0 : index
    %c5_173 = arith.constant 5 : index
    %c1_174 = arith.constant 1 : index
    %c0_175 = arith.constant 0 : index
    %167 = vector.load %arg1[%c0_172, %c5_173, %c1_174, %c0_175] : memref<1x8x8x32xf32, #tpu.memory_space<vmem>>, vector<1x1x7x32xf32>
    %168 = vector.shape_cast %167 : vector<1x1x7x32xf32> to vector<7x32xf32>
    %169 = arith.truncf %168 : vector<7x32xf32> to vector<7x32xbf16>
    %c3_176 = arith.constant 3 : index
    %c0_177 = arith.constant 0 : index
    %c0_178 = arith.constant 0 : index
    %170 = vector.load %arg2[%c3_176, %c0_177, %c0_178] : memref<4x32x64xbf16, #tpu.memory_space<vmem>>, vector<1x32x64xbf16>
    %171 = vector.shape_cast %170 : vector<1x32x64xbf16> to vector<32x64xbf16>
    %cst_179 = arith.constant dense<0.000000e+00> : vector<7x64xf32>
    %172 = tpu.matmul %169, %171, %cst_179 {dimension_numbers = #tpu.dot_dimension_numbers<[1], [0], [0], [1], [0, 0, 1, 1], [], []>} : vector<7x32xbf16>, vector<32x64xbf16>, vector<7x64xf32> -> vector<7x64xf32>
    %173 = arith.addf %166, %172 : vector<7x64xf32>
    %174 = vector.broadcast %0 : vector<1x64xf32> to vector<7x64xf32>
    %175 = arith.addf %173, %174 : vector<7x64xf32>
    %cst_180 = arith.constant 0.000000e+00 : f32
    %176 = vector.broadcast %cst_180 : f32 to vector<7x64xf32>
    %177 = arith.maximumf %175, %176 : vector<7x64xf32>
    %c0_181 = arith.constant 0 : index
    %c4_182 = arith.constant 4 : index
    %c0_183 = arith.constant 0 : index
    %c0_184 = arith.constant 0 : index
    %178 = vector.load %arg4[%c0_181, %c4_182, %c0_183, %c0_184] : memref<1x7x7x64xf32, #tpu.memory_space<vmem>>, vector<1x1x7x64xf32>
    %179 = vector.shape_cast %178 : vector<1x1x7x64xf32> to vector<7x64xf32>
    %180 = vector.shape_cast %177 : vector<7x64xf32> to vector<1x1x7x64xf32>
    tpu.vector_store %arg4[%c0_181, %c4_182, %c0_183, %c0_184], %180 {strides = array<i32>} : memref<1x7x7x64xf32, #tpu.memory_space<vmem>>, vector<1x1x7x64xf32>,
    %cst_185 = arith.constant 0.000000e+00 : f32
    %181 = vector.broadcast %cst_185 : f32 to vector<7x64xf32>
    %c0_186 = arith.constant 0 : index
    %c5_187 = arith.constant 5 : index
    %c0_188 = arith.constant 0 : index
    %c0_189 = arith.constant 0 : index
    %182 = vector.load %arg1[%c0_186, %c5_187, %c0_188, %c0_189] : memref<1x8x8x32xf32, #tpu.memory_space<vmem>>, vector<1x1x7x32xf32>
    %183 = vector.shape_cast %182 : vector<1x1x7x32xf32> to vector<7x32xf32>
    %184 = arith.truncf %183 : vector<7x32xf32> to vector<7x32xbf16>
    %c0_190 = arith.constant 0 : index
    %c0_191 = arith.constant 0 : index
    %c0_192 = arith.constant 0 : index
    %185 = vector.load %arg2[%c0_190, %c0_191, %c0_192] : memref<4x32x64xbf16, #tpu.memory_space<vmem>>, vector<1x32x64xbf16>
    %186 = vector.shape_cast %185 : vector<1x32x64xbf16> to vector<32x64xbf16>
    %cst_193 = arith.constant dense<0.000000e+00> : vector<7x64xf32>
    %187 = tpu.matmul %184, %186, %cst_193 {dimension_numbers = #tpu.dot_dimension_numbers<[1], [0], [0], [1], [0, 0, 1, 1], [], []>} : vector<7x32xbf16>, vector<32x64xbf16>, vector<7x64xf32> -> vector<7x64xf32>
    %188 = arith.addf %181, %187 : vector<7x64xf32>
    %c0_194 = arith.constant 0 : index
    %c5_195 = arith.constant 5 : index
    %c1_196 = arith.constant 1 : index
    %c0_197 = arith.constant 0 : index
    %189 = vector.load %arg1[%c0_194, %c5_195, %c1_196, %c0_197] : memref<1x8x8x32xf32, #tpu.memory_space<vmem>>, vector<1x1x7x32xf32>
    %190 = vector.shape_cast %189 : vector<1x1x7x32xf32> to vector<7x32xf32>
    %191 = arith.truncf %190 : vector<7x32xf32> to vector<7x32xbf16>
    %c1_198 = arith.constant 1 : index
    %c0_199 = arith.constant 0 : index
    %c0_200 = arith.constant 0 : index
    %192 = vector.load %arg2[%c1_198, %c0_199, %c0_200] : memref<4x32x64xbf16, #tpu.memory_space<vmem>>, vector<1x32x64xbf16>
    %193 = vector.shape_cast %192 : vector<1x32x64xbf16> to vector<32x64xbf16>
    %cst_201 = arith.constant dense<0.000000e+00> : vector<7x64xf32>
    %194 = tpu.matmul %191, %193, %cst_201 {dimension_numbers = #tpu.dot_dimension_numbers<[1], [0], [0], [1], [0, 0, 1, 1], [], []>} : vector<7x32xbf16>, vector<32x64xbf16>, vector<7x64xf32> -> vector<7x64xf32>
    %195 = arith.addf %188, %194 : vector<7x64xf32>
    %c0_202 = arith.constant 0 : index
    %c6 = arith.constant 6 : index
    %c0_203 = arith.constant 0 : index
    %c0_204 = arith.constant 0 : index
    %196 = vector.load %arg1[%c0_202, %c6, %c0_203, %c0_204] : memref<1x8x8x32xf32, #tpu.memory_space<vmem>>, vector<1x1x7x32xf32>
    %197 = vector.shape_cast %196 : vector<1x1x7x32xf32> to vector<7x32xf32>
    %198 = arith.truncf %197 : vector<7x32xf32> to vector<7x32xbf16>
    %c2_205 = arith.constant 2 : index
    %c0_206 = arith.constant 0 : index
    %c0_207 = arith.constant 0 : index
    %199 = vector.load %arg2[%c2_205, %c0_206, %c0_207] : memref<4x32x64xbf16, #tpu.memory_space<vmem>>, vector<1x32x64xbf16>
    %200 = vector.shape_cast %199 : vector<1x32x64xbf16> to vector<32x64xbf16>
    %cst_208 = arith.constant dense<0.000000e+00> : vector<7x64xf32>
    %201 = tpu.matmul %198, %200, %cst_208 {dimension_numbers = #tpu.dot_dimension_numbers<[1], [0], [0], [1], [0, 0, 1, 1], [], []>} : vector<7x32xbf16>, vector<32x64xbf16>, vector<7x64xf32> -> vector<7x64xf32>
    %202 = arith.addf %195, %201 : vector<7x64xf32>
    %c0_209 = arith.constant 0 : index
    %c6_210 = arith.constant 6 : index
    %c1_211 = arith.constant 1 : index
    %c0_212 = arith.constant 0 : index
    %203 = vector.load %arg1[%c0_209, %c6_210, %c1_211, %c0_212] : memref<1x8x8x32xf32, #tpu.memory_space<vmem>>, vector<1x1x7x32xf32>
    %204 = vector.shape_cast %203 : vector<1x1x7x32xf32> to vector<7x32xf32>
    %205 = arith.truncf %204 : vector<7x32xf32> to vector<7x32xbf16>
    %c3_213 = arith.constant 3 : index
    %c0_214 = arith.constant 0 : index
    %c0_215 = arith.constant 0 : index
    %206 = vector.load %arg2[%c3_213, %c0_214, %c0_215] : memref<4x32x64xbf16, #tpu.memory_space<vmem>>, vector<1x32x64xbf16>
    %207 = vector.shape_cast %206 : vector<1x32x64xbf16> to vector<32x64xbf16>
    %cst_216 = arith.constant dense<0.000000e+00> : vector<7x64xf32>
    %208 = tpu.matmul %205, %207, %cst_216 {dimension_numbers = #tpu.dot_dimension_numbers<[1], [0], [0], [1], [0, 0, 1, 1], [], []>} : vector<7x32xbf16>, vector<32x64xbf16>, vector<7x64xf32> -> vector<7x64xf32>
    %209 = arith.addf %202, %208 : vector<7x64xf32>
    %210 = vector.broadcast %0 : vector<1x64xf32> to vector<7x64xf32>
    %211 = arith.addf %209, %210 : vector<7x64xf32>
    %cst_217 = arith.constant 0.000000e+00 : f32
    %212 = vector.broadcast %cst_217 : f32 to vector<7x64xf32>
    %213 = arith.maximumf %211, %212 : vector<7x64xf32>
    %c0_218 = arith.constant 0 : index
    %c5_219 = arith.constant 5 : index
    %c0_220 = arith.constant 0 : index
    %c0_221 = arith.constant 0 : index
    %214 = vector.load %arg4[%c0_218, %c5_219, %c0_220, %c0_221] : memref<1x7x7x64xf32, #tpu.memory_space<vmem>>, vector<1x1x7x64xf32>
    %215 = vector.shape_cast %214 : vector<1x1x7x64xf32> to vector<7x64xf32>
    %216 = vector.shape_cast %213 : vector<7x64xf32> to vector<1x1x7x64xf32>
    tpu.vector_store %arg4[%c0_218, %c5_219, %c0_220, %c0_221], %216 {strides = array<i32>} : memref<1x7x7x64xf32, #tpu.memory_space<vmem>>, vector<1x1x7x64xf32>,
    %cst_222 = arith.constant 0.000000e+00 : f32
    %217 = vector.broadcast %cst_222 : f32 to vector<7x64xf32>
    %c0_223 = arith.constant 0 : index
    %c6_224 = arith.constant 6 : index
    %c0_225 = arith.constant 0 : index
    %c0_226 = arith.constant 0 : index
    %218 = vector.load %arg1[%c0_223, %c6_224, %c0_225, %c0_226] : memref<1x8x8x32xf32, #tpu.memory_space<vmem>>, vector<1x1x7x32xf32>
    %219 = vector.shape_cast %218 : vector<1x1x7x32xf32> to vector<7x32xf32>
    %220 = arith.truncf %219 : vector<7x32xf32> to vector<7x32xbf16>
    %c0_227 = arith.constant 0 : index
    %c0_228 = arith.constant 0 : index
    %c0_229 = arith.constant 0 : index
    %221 = vector.load %arg2[%c0_227, %c0_228, %c0_229] : memref<4x32x64xbf16, #tpu.memory_space<vmem>>, vector<1x32x64xbf16>
    %222 = vector.shape_cast %221 : vector<1x32x64xbf16> to vector<32x64xbf16>
    %cst_230 = arith.constant dense<0.000000e+00> : vector<7x64xf32>
    %223 = tpu.matmul %220, %222, %cst_230 {dimension_numbers = #tpu.dot_dimension_numbers<[1], [0], [0], [1], [0, 0, 1, 1], [], []>} : vector<7x32xbf16>, vector<32x64xbf16>, vector<7x64xf32> -> vector<7x64xf32>
    %224 = arith.addf %217, %223 : vector<7x64xf32>
    %c0_231 = arith.constant 0 : index
    %c6_232 = arith.constant 6 : index
    %c1_233 = arith.constant 1 : index
    %c0_234 = arith.constant 0 : index
    %225 = vector.load %arg1[%c0_231, %c6_232, %c1_233, %c0_234] : memref<1x8x8x32xf32, #tpu.memory_space<vmem>>, vector<1x1x7x32xf32>
    %226 = vector.shape_cast %225 : vector<1x1x7x32xf32> to vector<7x32xf32>
    %227 = arith.truncf %226 : vector<7x32xf32> to vector<7x32xbf16>
    %c1_235 = arith.constant 1 : index
    %c0_236 = arith.constant 0 : index
    %c0_237 = arith.constant 0 : index
    %228 = vector.load %arg2[%c1_235, %c0_236, %c0_237] : memref<4x32x64xbf16, #tpu.memory_space<vmem>>, vector<1x32x64xbf16>
    %229 = vector.shape_cast %228 : vector<1x32x64xbf16> to vector<32x64xbf16>
    %cst_238 = arith.constant dense<0.000000e+00> : vector<7x64xf32>
    %230 = tpu.matmul %227, %229, %cst_238 {dimension_numbers = #tpu.dot_dimension_numbers<[1], [0], [0], [1], [0, 0, 1, 1], [], []>} : vector<7x32xbf16>, vector<32x64xbf16>, vector<7x64xf32> -> vector<7x64xf32>
    %231 = arith.addf %224, %230 : vector<7x64xf32>
    %c0_239 = arith.constant 0 : index
    %c7 = arith.constant 7 : index
    %c0_240 = arith.constant 0 : index
    %c0_241 = arith.constant 0 : index
    %232 = vector.load %arg1[%c0_239, %c7, %c0_240, %c0_241] : memref<1x8x8x32xf32, #tpu.memory_space<vmem>>, vector<1x1x7x32xf32>
    %233 = vector.shape_cast %232 : vector<1x1x7x32xf32> to vector<7x32xf32>
    %234 = arith.truncf %233 : vector<7x32xf32> to vector<7x32xbf16>
    %c2_242 = arith.constant 2 : index
    %c0_243 = arith.constant 0 : index
    %c0_244 = arith.constant 0 : index
    %235 = vector.load %arg2[%c2_242, %c0_243, %c0_244] : memref<4x32x64xbf16, #tpu.memory_space<vmem>>, vector<1x32x64xbf16>
    %236 = vector.shape_cast %235 : vector<1x32x64xbf16> to vector<32x64xbf16>
    %cst_245 = arith.constant dense<0.000000e+00> : vector<7x64xf32>
    %237 = tpu.matmul %234, %236, %cst_245 {dimension_numbers = #tpu.dot_dimension_numbers<[1], [0], [0], [1], [0, 0, 1, 1], [], []>} : vector<7x32xbf16>, vector<32x64xbf16>, vector<7x64xf32> -> vector<7x64xf32>
    %238 = arith.addf %231, %237 : vector<7x64xf32>
    %c0_246 = arith.constant 0 : index
    %c7_247 = arith.constant 7 : index
    %c1_248 = arith.constant 1 : index
    %c0_249 = arith.constant 0 : index
    %239 = vector.load %arg1[%c0_246, %c7_247, %c1_248, %c0_249] : memref<1x8x8x32xf32, #tpu.memory_space<vmem>>, vector<1x1x7x32xf32>
    %240 = vector.shape_cast %239 : vector<1x1x7x32xf32> to vector<7x32xf32>
    %241 = arith.truncf %240 : vector<7x32xf32> to vector<7x32xbf16>
    %c3_250 = arith.constant 3 : index
    %c0_251 = arith.constant 0 : index
    %c0_252 = arith.constant 0 : index
    %242 = vector.load %arg2[%c3_250, %c0_251, %c0_252] : memref<4x32x64xbf16, #tpu.memory_space<vmem>>, vector<1x32x64xbf16>
    %243 = vector.shape_cast %242 : vector<1x32x64xbf16> to vector<32x64xbf16>
    %cst_253 = arith.constant dense<0.000000e+00> : vector<7x64xf32>
    %244 = tpu.matmul %241, %243, %cst_253 {dimension_numbers = #tpu.dot_dimension_numbers<[1], [0], [0], [1], [0, 0, 1, 1], [], []>} : vector<7x32xbf16>, vector<32x64xbf16>, vector<7x64xf32> -> vector<7x64xf32>
    %245 = arith.addf %238, %244 : vector<7x64xf32>
    %246 = vector.broadcast %0 : vector<1x64xf32> to vector<7x64xf32>
    %247 = arith.addf %245, %246 : vector<7x64xf32>
    %cst_254 = arith.constant 0.000000e+00 : f32
    %248 = vector.broadcast %cst_254 : f32 to vector<7x64xf32>
    %249 = arith.maximumf %247, %248 : vector<7x64xf32>
    %c0_255 = arith.constant 0 : index
    %c6_256 = arith.constant 6 : index
    %c0_257 = arith.constant 0 : index
    %c0_258 = arith.constant 0 : index
    %250 = vector.load %arg4[%c0_255, %c6_256, %c0_257, %c0_258] : memref<1x7x7x64xf32, #tpu.memory_space<vmem>>, vector<1x1x7x64xf32>
    %251 = vector.shape_cast %250 : vector<1x1x7x64xf32> to vector<7x64xf32>
    %252 = vector.shape_cast %249 : vector<7x64xf32> to vector<1x1x7x64xf32>
    tpu.vector_store %arg4[%c0_255, %c6_256, %c0_257, %c0_258], %252 {strides = array<i32>} : memref<1x7x7x64xf32, #tpu.memory_space<vmem>>, vector<1x1x7x64xf32>,
    return
  }
  func.func @transform_0(%arg0: i32) -> (i32, i32, i32, i32) {
    %c0_i32 = arith.constant 0 : i32
    %c0_i32_0 = arith.constant 0 : i32
    %c0_i32_1 = arith.constant 0 : i32
    %c0_i32_2 = arith.constant 0 : i32
    return %arg0, %c0_i32, %c0_i32_0, %c0_i32_1 : i32, i32, i32, i32
  }
  func.func @transform_1(%arg0: i32) -> (i32, i32, i32) {
    %c0_i32 = arith.constant 0 : i32
    %c0_i32_0 = arith.constant 0 : i32
    %c0_i32_1 = arith.constant 0 : i32
    %c0_i32_2 = arith.constant 0 : i32
    return %c0_i32, %c0_i32_0, %c0_i32_1 : i32, i32, i32
  }
  func.func @transform_2(%arg0: i32) -> (i32, i32) {
    %c0_i32 = arith.constant 0 : i32
    %c0_i32_0 = arith.constant 0 : i32
    %c0_i32_1 = arith.constant 0 : i32
    return %c0_i32, %c0_i32_0 : i32, i32
  }
  func.func @transform_3(%arg0: i32) -> (i32, i32, i32, i32) {
    %c0_i32 = arith.constant 0 : i32
    %c0_i32_0 = arith.constant 0 : i32
    %c0_i32_1 = arith.constant 0 : i32
    %c0_i32_2 = arith.constant 0 : i32
    return %arg0, %c0_i32, %c0_i32_0, %c0_i32_1 : i32, i32, i32, i32
  }
}

module attributes {stable_mosaic.version = 11 : i64} {
  func.func @_conv_bias_act_kernel(%arg0: i32, %arg1: memref<1x15x15x16xf32, #tpu.memory_space<vmem>>, %arg2: memref<4x16x4xbf16, #tpu.memory_space<vmem>>, %arg3: memref<1x4xf32, #tpu.memory_space<vmem>>, %arg4: memref<1x14x14x4xf32, #tpu.memory_space<vmem>>) attributes {dimension_semantics = [#tpu.dimension_semantics<parallel>], iteration_bounds = array<i64: 2>, scalar_prefetch = 0 : i64, scratch_operands = 0 : i64, tpu.core_type = #tpu.core_type<tc>, window_params = [{transform_indices = @transform_0, window_bounds = array<i64: 1, 15, 15, 16>}, {pipeline_mode = #tpu.pipeline_mode<synchronous>, transform_indices = @transform_1, window_bounds = array<i64: 4, 16, 4>}, {pipeline_mode = #tpu.pipeline_mode<synchronous>, transform_indices = @transform_2, window_bounds = array<i64: 1, 4>}, {transform_indices = @transform_3, window_bounds = array<i64: 1, 14, 14, 4>}]} {
    %c0 = arith.constant 0 : index
    %c0_0 = arith.constant 0 : index
    %0 = vector.load %arg3[%c0, %c0_0] : memref<1x4xf32, #tpu.memory_space<vmem>>, vector<1x4xf32>
    %cst = arith.constant 0.000000e+00 : f32
    %1 = vector.broadcast %cst : f32 to vector<14x4xf32>
    %c0_1 = arith.constant 0 : index
    %c0_2 = arith.constant 0 : index
    %c0_3 = arith.constant 0 : index
    %c0_4 = arith.constant 0 : index
    %2 = vector.load %arg1[%c0_1, %c0_2, %c0_3, %c0_4] : memref<1x15x15x16xf32, #tpu.memory_space<vmem>>, vector<1x1x14x16xf32>
    %3 = vector.shape_cast %2 : vector<1x1x14x16xf32> to vector<14x16xf32>
    %4 = arith.truncf %3 : vector<14x16xf32> to vector<14x16xbf16>
    %c0_5 = arith.constant 0 : index
    %c0_6 = arith.constant 0 : index
    %c0_7 = arith.constant 0 : index
    %5 = vector.load %arg2[%c0_5, %c0_6, %c0_7] : memref<4x16x4xbf16, #tpu.memory_space<vmem>>, vector<1x16x4xbf16>
    %6 = vector.shape_cast %5 : vector<1x16x4xbf16> to vector<16x4xbf16>
    %cst_8 = arith.constant dense<0.000000e+00> : vector<14x4xf32>
    %7 = tpu.matmul %4, %6, %cst_8 {dimension_numbers = #tpu.dot_dimension_numbers<[1], [0], [0], [1], [0, 0, 1, 1], [], []>} : vector<14x16xbf16>, vector<16x4xbf16>, vector<14x4xf32> -> vector<14x4xf32>
    %8 = arith.addf %1, %7 : vector<14x4xf32>
    %c0_9 = arith.constant 0 : index
    %c0_10 = arith.constant 0 : index
    %c1 = arith.constant 1 : index
    %c0_11 = arith.constant 0 : index
    %9 = vector.load %arg1[%c0_9, %c0_10, %c1, %c0_11] : memref<1x15x15x16xf32, #tpu.memory_space<vmem>>, vector<1x1x14x16xf32>
    %10 = vector.shape_cast %9 : vector<1x1x14x16xf32> to vector<14x16xf32>
    %11 = arith.truncf %10 : vector<14x16xf32> to vector<14x16xbf16>
    %c1_12 = arith.constant 1 : index
    %c0_13 = arith.constant 0 : index
    %c0_14 = arith.constant 0 : index
    %12 = vector.load %arg2[%c1_12, %c0_13, %c0_14] : memref<4x16x4xbf16, #tpu.memory_space<vmem>>, vector<1x16x4xbf16>
    %13 = vector.shape_cast %12 : vector<1x16x4xbf16> to vector<16x4xbf16>
    %cst_15 = arith.constant dense<0.000000e+00> : vector<14x4xf32>
    %14 = tpu.matmul %11, %13, %cst_15 {dimension_numbers = #tpu.dot_dimension_numbers<[1], [0], [0], [1], [0, 0, 1, 1], [], []>} : vector<14x16xbf16>, vector<16x4xbf16>, vector<14x4xf32> -> vector<14x4xf32>
    %15 = arith.addf %8, %14 : vector<14x4xf32>
    %c0_16 = arith.constant 0 : index
    %c1_17 = arith.constant 1 : index
    %c0_18 = arith.constant 0 : index
    %c0_19 = arith.constant 0 : index
    %16 = vector.load %arg1[%c0_16, %c1_17, %c0_18, %c0_19] : memref<1x15x15x16xf32, #tpu.memory_space<vmem>>, vector<1x1x14x16xf32>
    %17 = vector.shape_cast %16 : vector<1x1x14x16xf32> to vector<14x16xf32>
    %18 = arith.truncf %17 : vector<14x16xf32> to vector<14x16xbf16>
    %c2 = arith.constant 2 : index
    %c0_20 = arith.constant 0 : index
    %c0_21 = arith.constant 0 : index
    %19 = vector.load %arg2[%c2, %c0_20, %c0_21] : memref<4x16x4xbf16, #tpu.memory_space<vmem>>, vector<1x16x4xbf16>
    %20 = vector.shape_cast %19 : vector<1x16x4xbf16> to vector<16x4xbf16>
    %cst_22 = arith.constant dense<0.000000e+00> : vector<14x4xf32>
    %21 = tpu.matmul %18, %20, %cst_22 {dimension_numbers = #tpu.dot_dimension_numbers<[1], [0], [0], [1], [0, 0, 1, 1], [], []>} : vector<14x16xbf16>, vector<16x4xbf16>, vector<14x4xf32> -> vector<14x4xf32>
    %22 = arith.addf %15, %21 : vector<14x4xf32>
    %c0_23 = arith.constant 0 : index
    %c1_24 = arith.constant 1 : index
    %c1_25 = arith.constant 1 : index
    %c0_26 = arith.constant 0 : index
    %23 = vector.load %arg1[%c0_23, %c1_24, %c1_25, %c0_26] : memref<1x15x15x16xf32, #tpu.memory_space<vmem>>, vector<1x1x14x16xf32>
    %24 = vector.shape_cast %23 : vector<1x1x14x16xf32> to vector<14x16xf32>
    %25 = arith.truncf %24 : vector<14x16xf32> to vector<14x16xbf16>
    %c3 = arith.constant 3 : index
    %c0_27 = arith.constant 0 : index
    %c0_28 = arith.constant 0 : index
    %26 = vector.load %arg2[%c3, %c0_27, %c0_28] : memref<4x16x4xbf16, #tpu.memory_space<vmem>>, vector<1x16x4xbf16>
    %27 = vector.shape_cast %26 : vector<1x16x4xbf16> to vector<16x4xbf16>
    %cst_29 = arith.constant dense<0.000000e+00> : vector<14x4xf32>
    %28 = tpu.matmul %25, %27, %cst_29 {dimension_numbers = #tpu.dot_dimension_numbers<[1], [0], [0], [1], [0, 0, 1, 1], [], []>} : vector<14x16xbf16>, vector<16x4xbf16>, vector<14x4xf32> -> vector<14x4xf32>
    %29 = arith.addf %22, %28 : vector<14x4xf32>
    %30 = vector.broadcast %0 : vector<1x4xf32> to vector<14x4xf32>
    %31 = arith.addf %29, %30 : vector<14x4xf32>
    %cst_30 = arith.constant 0.000000e+00 : f32
    %32 = vector.broadcast %cst_30 : f32 to vector<14x4xf32>
    %33 = arith.subf %32, %31 : vector<14x4xf32>
    %34 = math.exp %33 : vector<14x4xf32>
    %cst_31 = arith.constant 1.000000e+00 : f32
    %35 = vector.broadcast %cst_31 : f32 to vector<14x4xf32>
    %36 = arith.addf %35, %34 : vector<14x4xf32>
    %37 = tpu.reciprocal %36 {approx = true} : vector<14x4xf32> -> vector<14x4xf32>
    %cst_32 = arith.constant 0.000000e+00 : f32
    %cst_33 = arith.constant 1.000000e+00 : f32
    %38 = vector.broadcast %cst_32 : f32 to vector<14x4xf32>
    %39 = arith.maximumf %38, %37 : vector<14x4xf32>
    %40 = vector.broadcast %cst_33 : f32 to vector<14x4xf32>
    %41 = arith.minimumf %40, %39 : vector<14x4xf32>
    %c0_34 = arith.constant 0 : index
    %c0_35 = arith.constant 0 : index
    %c0_36 = arith.constant 0 : index
    %c0_37 = arith.constant 0 : index
    %42 = vector.load %arg4[%c0_34, %c0_35, %c0_36, %c0_37] : memref<1x14x14x4xf32, #tpu.memory_space<vmem>>, vector<1x1x14x4xf32>
    %43 = vector.shape_cast %42 : vector<1x1x14x4xf32> to vector<14x4xf32>
    %44 = vector.shape_cast %41 : vector<14x4xf32> to vector<1x1x14x4xf32>
    tpu.vector_store %arg4[%c0_34, %c0_35, %c0_36, %c0_37], %44 {strides = array<i32>} : memref<1x14x14x4xf32, #tpu.memory_space<vmem>>, vector<1x1x14x4xf32>,
    %cst_38 = arith.constant 0.000000e+00 : f32
    %45 = vector.broadcast %cst_38 : f32 to vector<14x4xf32>
    %c0_39 = arith.constant 0 : index
    %c1_40 = arith.constant 1 : index
    %c0_41 = arith.constant 0 : index
    %c0_42 = arith.constant 0 : index
    %46 = vector.load %arg1[%c0_39, %c1_40, %c0_41, %c0_42] : memref<1x15x15x16xf32, #tpu.memory_space<vmem>>, vector<1x1x14x16xf32>
    %47 = vector.shape_cast %46 : vector<1x1x14x16xf32> to vector<14x16xf32>
    %48 = arith.truncf %47 : vector<14x16xf32> to vector<14x16xbf16>
    %c0_43 = arith.constant 0 : index
    %c0_44 = arith.constant 0 : index
    %c0_45 = arith.constant 0 : index
    %49 = vector.load %arg2[%c0_43, %c0_44, %c0_45] : memref<4x16x4xbf16, #tpu.memory_space<vmem>>, vector<1x16x4xbf16>
    %50 = vector.shape_cast %49 : vector<1x16x4xbf16> to vector<16x4xbf16>
    %cst_46 = arith.constant dense<0.000000e+00> : vector<14x4xf32>
    %51 = tpu.matmul %48, %50, %cst_46 {dimension_numbers = #tpu.dot_dimension_numbers<[1], [0], [0], [1], [0, 0, 1, 1], [], []>} : vector<14x16xbf16>, vector<16x4xbf16>, vector<14x4xf32> -> vector<14x4xf32>
    %52 = arith.addf %45, %51 : vector<14x4xf32>
    %c0_47 = arith.constant 0 : index
    %c1_48 = arith.constant 1 : index
    %c1_49 = arith.constant 1 : index
    %c0_50 = arith.constant 0 : index
    %53 = vector.load %arg1[%c0_47, %c1_48, %c1_49, %c0_50] : memref<1x15x15x16xf32, #tpu.memory_space<vmem>>, vector<1x1x14x16xf32>
    %54 = vector.shape_cast %53 : vector<1x1x14x16xf32> to vector<14x16xf32>
    %55 = arith.truncf %54 : vector<14x16xf32> to vector<14x16xbf16>
    %c1_51 = arith.constant 1 : index
    %c0_52 = arith.constant 0 : index
    %c0_53 = arith.constant 0 : index
    %56 = vector.load %arg2[%c1_51, %c0_52, %c0_53] : memref<4x16x4xbf16, #tpu.memory_space<vmem>>, vector<1x16x4xbf16>
    %57 = vector.shape_cast %56 : vector<1x16x4xbf16> to vector<16x4xbf16>
    %cst_54 = arith.constant dense<0.000000e+00> : vector<14x4xf32>
    %58 = tpu.matmul %55, %57, %cst_54 {dimension_numbers = #tpu.dot_dimension_numbers<[1], [0], [0], [1], [0, 0, 1, 1], [], []>} : vector<14x16xbf16>, vector<16x4xbf16>, vector<14x4xf32> -> vector<14x4xf32>
    %59 = arith.addf %52, %58 : vector<14x4xf32>
    %c0_55 = arith.constant 0 : index
    %c2_56 = arith.constant 2 : index
    %c0_57 = arith.constant 0 : index
    %c0_58 = arith.constant 0 : index
    %60 = vector.load %arg1[%c0_55, %c2_56, %c0_57, %c0_58] : memref<1x15x15x16xf32, #tpu.memory_space<vmem>>, vector<1x1x14x16xf32>
    %61 = vector.shape_cast %60 : vector<1x1x14x16xf32> to vector<14x16xf32>
    %62 = arith.truncf %61 : vector<14x16xf32> to vector<14x16xbf16>
    %c2_59 = arith.constant 2 : index
    %c0_60 = arith.constant 0 : index
    %c0_61 = arith.constant 0 : index
    %63 = vector.load %arg2[%c2_59, %c0_60, %c0_61] : memref<4x16x4xbf16, #tpu.memory_space<vmem>>, vector<1x16x4xbf16>
    %64 = vector.shape_cast %63 : vector<1x16x4xbf16> to vector<16x4xbf16>
    %cst_62 = arith.constant dense<0.000000e+00> : vector<14x4xf32>
    %65 = tpu.matmul %62, %64, %cst_62 {dimension_numbers = #tpu.dot_dimension_numbers<[1], [0], [0], [1], [0, 0, 1, 1], [], []>} : vector<14x16xbf16>, vector<16x4xbf16>, vector<14x4xf32> -> vector<14x4xf32>
    %66 = arith.addf %59, %65 : vector<14x4xf32>
    %c0_63 = arith.constant 0 : index
    %c2_64 = arith.constant 2 : index
    %c1_65 = arith.constant 1 : index
    %c0_66 = arith.constant 0 : index
    %67 = vector.load %arg1[%c0_63, %c2_64, %c1_65, %c0_66] : memref<1x15x15x16xf32, #tpu.memory_space<vmem>>, vector<1x1x14x16xf32>
    %68 = vector.shape_cast %67 : vector<1x1x14x16xf32> to vector<14x16xf32>
    %69 = arith.truncf %68 : vector<14x16xf32> to vector<14x16xbf16>
    %c3_67 = arith.constant 3 : index
    %c0_68 = arith.constant 0 : index
    %c0_69 = arith.constant 0 : index
    %70 = vector.load %arg2[%c3_67, %c0_68, %c0_69] : memref<4x16x4xbf16, #tpu.memory_space<vmem>>, vector<1x16x4xbf16>
    %71 = vector.shape_cast %70 : vector<1x16x4xbf16> to vector<16x4xbf16>
    %cst_70 = arith.constant dense<0.000000e+00> : vector<14x4xf32>
    %72 = tpu.matmul %69, %71, %cst_70 {dimension_numbers = #tpu.dot_dimension_numbers<[1], [0], [0], [1], [0, 0, 1, 1], [], []>} : vector<14x16xbf16>, vector<16x4xbf16>, vector<14x4xf32> -> vector<14x4xf32>
    %73 = arith.addf %66, %72 : vector<14x4xf32>
    %74 = vector.broadcast %0 : vector<1x4xf32> to vector<14x4xf32>
    %75 = arith.addf %73, %74 : vector<14x4xf32>
    %cst_71 = arith.constant 0.000000e+00 : f32
    %76 = vector.broadcast %cst_71 : f32 to vector<14x4xf32>
    %77 = arith.subf %76, %75 : vector<14x4xf32>
    %78 = math.exp %77 : vector<14x4xf32>
    %cst_72 = arith.constant 1.000000e+00 : f32
    %79 = vector.broadcast %cst_72 : f32 to vector<14x4xf32>
    %80 = arith.addf %79, %78 : vector<14x4xf32>
    %81 = tpu.reciprocal %80 {approx = true} : vector<14x4xf32> -> vector<14x4xf32>
    %cst_73 = arith.constant 0.000000e+00 : f32
    %cst_74 = arith.constant 1.000000e+00 : f32
    %82 = vector.broadcast %cst_73 : f32 to vector<14x4xf32>
    %83 = arith.maximumf %82, %81 : vector<14x4xf32>
    %84 = vector.broadcast %cst_74 : f32 to vector<14x4xf32>
    %85 = arith.minimumf %84, %83 : vector<14x4xf32>
    %c0_75 = arith.constant 0 : index
    %c1_76 = arith.constant 1 : index
    %c0_77 = arith.constant 0 : index
    %c0_78 = arith.constant 0 : index
    %86 = vector.load %arg4[%c0_75, %c1_76, %c0_77, %c0_78] : memref<1x14x14x4xf32, #tpu.memory_space<vmem>>, vector<1x1x14x4xf32>
    %87 = vector.shape_cast %86 : vector<1x1x14x4xf32> to vector<14x4xf32>
    %88 = vector.shape_cast %85 : vector<14x4xf32> to vector<1x1x14x4xf32>
    tpu.vector_store %arg4[%c0_75, %c1_76, %c0_77, %c0_78], %88 {strides = array<i32>} : memref<1x14x14x4xf32, #tpu.memory_space<vmem>>, vector<1x1x14x4xf32>,
    %cst_79 = arith.constant 0.000000e+00 : f32
    %89 = vector.broadcast %cst_79 : f32 to vector<14x4xf32>
    %c0_80 = arith.constant 0 : index
    %c2_81 = arith.constant 2 : index
    %c0_82 = arith.constant 0 : index
    %c0_83 = arith.constant 0 : index
    %90 = vector.load %arg1[%c0_80, %c2_81, %c0_82, %c0_83] : memref<1x15x15x16xf32, #tpu.memory_space<vmem>>, vector<1x1x14x16xf32>
    %91 = vector.shape_cast %90 : vector<1x1x14x16xf32> to vector<14x16xf32>
    %92 = arith.truncf %91 : vector<14x16xf32> to vector<14x16xbf16>
    %c0_84 = arith.constant 0 : index
    %c0_85 = arith.constant 0 : index
    %c0_86 = arith.constant 0 : index
    %93 = vector.load %arg2[%c0_84, %c0_85, %c0_86] : memref<4x16x4xbf16, #tpu.memory_space<vmem>>, vector<1x16x4xbf16>
    %94 = vector.shape_cast %93 : vector<1x16x4xbf16> to vector<16x4xbf16>
    %cst_87 = arith.constant dense<0.000000e+00> : vector<14x4xf32>
    %95 = tpu.matmul %92, %94, %cst_87 {dimension_numbers = #tpu.dot_dimension_numbers<[1], [0], [0], [1], [0, 0, 1, 1], [], []>} : vector<14x16xbf16>, vector<16x4xbf16>, vector<14x4xf32> -> vector<14x4xf32>
    %96 = arith.addf %89, %95 : vector<14x4xf32>
    %c0_88 = arith.constant 0 : index
    %c2_89 = arith.constant 2 : index
    %c1_90 = arith.constant 1 : index
    %c0_91 = arith.constant 0 : index
    %97 = vector.load %arg1[%c0_88, %c2_89, %c1_90, %c0_91] : memref<1x15x15x16xf32, #tpu.memory_space<vmem>>, vector<1x1x14x16xf32>
    %98 = vector.shape_cast %97 : vector<1x1x14x16xf32> to vector<14x16xf32>
    %99 = arith.truncf %98 : vector<14x16xf32> to vector<14x16xbf16>
    %c1_92 = arith.constant 1 : index
    %c0_93 = arith.constant 0 : index
    %c0_94 = arith.constant 0 : index
    %100 = vector.load %arg2[%c1_92, %c0_93, %c0_94] : memref<4x16x4xbf16, #tpu.memory_space<vmem>>, vector<1x16x4xbf16>
    %101 = vector.shape_cast %100 : vector<1x16x4xbf16> to vector<16x4xbf16>
    %cst_95 = arith.constant dense<0.000000e+00> : vector<14x4xf32>
    %102 = tpu.matmul %99, %101, %cst_95 {dimension_numbers = #tpu.dot_dimension_numbers<[1], [0], [0], [1], [0, 0, 1, 1], [], []>} : vector<14x16xbf16>, vector<16x4xbf16>, vector<14x4xf32> -> vector<14x4xf32>
    %103 = arith.addf %96, %102 : vector<14x4xf32>
    %c0_96 = arith.constant 0 : index
    %c3_97 = arith.constant 3 : index
    %c0_98 = arith.constant 0 : index
    %c0_99 = arith.constant 0 : index
    %104 = vector.load %arg1[%c0_96, %c3_97, %c0_98, %c0_99] : memref<1x15x15x16xf32, #tpu.memory_space<vmem>>, vector<1x1x14x16xf32>
    %105 = vector.shape_cast %104 : vector<1x1x14x16xf32> to vector<14x16xf32>
    %106 = arith.truncf %105 : vector<14x16xf32> to vector<14x16xbf16>
    %c2_100 = arith.constant 2 : index
    %c0_101 = arith.constant 0 : index
    %c0_102 = arith.constant 0 : index
    %107 = vector.load %arg2[%c2_100, %c0_101, %c0_102] : memref<4x16x4xbf16, #tpu.memory_space<vmem>>, vector<1x16x4xbf16>
    %108 = vector.shape_cast %107 : vector<1x16x4xbf16> to vector<16x4xbf16>
    %cst_103 = arith.constant dense<0.000000e+00> : vector<14x4xf32>
    %109 = tpu.matmul %106, %108, %cst_103 {dimension_numbers = #tpu.dot_dimension_numbers<[1], [0], [0], [1], [0, 0, 1, 1], [], []>} : vector<14x16xbf16>, vector<16x4xbf16>, vector<14x4xf32> -> vector<14x4xf32>
    %110 = arith.addf %103, %109 : vector<14x4xf32>
    %c0_104 = arith.constant 0 : index
    %c3_105 = arith.constant 3 : index
    %c1_106 = arith.constant 1 : index
    %c0_107 = arith.constant 0 : index
    %111 = vector.load %arg1[%c0_104, %c3_105, %c1_106, %c0_107] : memref<1x15x15x16xf32, #tpu.memory_space<vmem>>, vector<1x1x14x16xf32>
    %112 = vector.shape_cast %111 : vector<1x1x14x16xf32> to vector<14x16xf32>
    %113 = arith.truncf %112 : vector<14x16xf32> to vector<14x16xbf16>
    %c3_108 = arith.constant 3 : index
    %c0_109 = arith.constant 0 : index
    %c0_110 = arith.constant 0 : index
    %114 = vector.load %arg2[%c3_108, %c0_109, %c0_110] : memref<4x16x4xbf16, #tpu.memory_space<vmem>>, vector<1x16x4xbf16>
    %115 = vector.shape_cast %114 : vector<1x16x4xbf16> to vector<16x4xbf16>
    %cst_111 = arith.constant dense<0.000000e+00> : vector<14x4xf32>
    %116 = tpu.matmul %113, %115, %cst_111 {dimension_numbers = #tpu.dot_dimension_numbers<[1], [0], [0], [1], [0, 0, 1, 1], [], []>} : vector<14x16xbf16>, vector<16x4xbf16>, vector<14x4xf32> -> vector<14x4xf32>
    %117 = arith.addf %110, %116 : vector<14x4xf32>
    %118 = vector.broadcast %0 : vector<1x4xf32> to vector<14x4xf32>
    %119 = arith.addf %117, %118 : vector<14x4xf32>
    %cst_112 = arith.constant 0.000000e+00 : f32
    %120 = vector.broadcast %cst_112 : f32 to vector<14x4xf32>
    %121 = arith.subf %120, %119 : vector<14x4xf32>
    %122 = math.exp %121 : vector<14x4xf32>
    %cst_113 = arith.constant 1.000000e+00 : f32
    %123 = vector.broadcast %cst_113 : f32 to vector<14x4xf32>
    %124 = arith.addf %123, %122 : vector<14x4xf32>
    %125 = tpu.reciprocal %124 {approx = true} : vector<14x4xf32> -> vector<14x4xf32>
    %cst_114 = arith.constant 0.000000e+00 : f32
    %cst_115 = arith.constant 1.000000e+00 : f32
    %126 = vector.broadcast %cst_114 : f32 to vector<14x4xf32>
    %127 = arith.maximumf %126, %125 : vector<14x4xf32>
    %128 = vector.broadcast %cst_115 : f32 to vector<14x4xf32>
    %129 = arith.minimumf %128, %127 : vector<14x4xf32>
    %c0_116 = arith.constant 0 : index
    %c2_117 = arith.constant 2 : index
    %c0_118 = arith.constant 0 : index
    %c0_119 = arith.constant 0 : index
    %130 = vector.load %arg4[%c0_116, %c2_117, %c0_118, %c0_119] : memref<1x14x14x4xf32, #tpu.memory_space<vmem>>, vector<1x1x14x4xf32>
    %131 = vector.shape_cast %130 : vector<1x1x14x4xf32> to vector<14x4xf32>
    %132 = vector.shape_cast %129 : vector<14x4xf32> to vector<1x1x14x4xf32>
    tpu.vector_store %arg4[%c0_116, %c2_117, %c0_118, %c0_119], %132 {strides = array<i32>} : memref<1x14x14x4xf32, #tpu.memory_space<vmem>>, vector<1x1x14x4xf32>,
    %cst_120 = arith.constant 0.000000e+00 : f32
    %133 = vector.broadcast %cst_120 : f32 to vector<14x4xf32>
    %c0_121 = arith.constant 0 : index
    %c3_122 = arith.constant 3 : index
    %c0_123 = arith.constant 0 : index
    %c0_124 = arith.constant 0 : index
    %134 = vector.load %arg1[%c0_121, %c3_122, %c0_123, %c0_124] : memref<1x15x15x16xf32, #tpu.memory_space<vmem>>, vector<1x1x14x16xf32>
    %135 = vector.shape_cast %134 : vector<1x1x14x16xf32> to vector<14x16xf32>
    %136 = arith.truncf %135 : vector<14x16xf32> to vector<14x16xbf16>
    %c0_125 = arith.constant 0 : index
    %c0_126 = arith.constant 0 : index
    %c0_127 = arith.constant 0 : index
    %137 = vector.load %arg2[%c0_125, %c0_126, %c0_127] : memref<4x16x4xbf16, #tpu.memory_space<vmem>>, vector<1x16x4xbf16>
    %138 = vector.shape_cast %137 : vector<1x16x4xbf16> to vector<16x4xbf16>
    %cst_128 = arith.constant dense<0.000000e+00> : vector<14x4xf32>
    %139 = tpu.matmul %136, %138, %cst_128 {dimension_numbers = #tpu.dot_dimension_numbers<[1], [0], [0], [1], [0, 0, 1, 1], [], []>} : vector<14x16xbf16>, vector<16x4xbf16>, vector<14x4xf32> -> vector<14x4xf32>
    %140 = arith.addf %133, %139 : vector<14x4xf32>
    %c0_129 = arith.constant 0 : index
    %c3_130 = arith.constant 3 : index
    %c1_131 = arith.constant 1 : index
    %c0_132 = arith.constant 0 : index
    %141 = vector.load %arg1[%c0_129, %c3_130, %c1_131, %c0_132] : memref<1x15x15x16xf32, #tpu.memory_space<vmem>>, vector<1x1x14x16xf32>
    %142 = vector.shape_cast %141 : vector<1x1x14x16xf32> to vector<14x16xf32>
    %143 = arith.truncf %142 : vector<14x16xf32> to vector<14x16xbf16>
    %c1_133 = arith.constant 1 : index
    %c0_134 = arith.constant 0 : index
    %c0_135 = arith.constant 0 : index
    %144 = vector.load %arg2[%c1_133, %c0_134, %c0_135] : memref<4x16x4xbf16, #tpu.memory_space<vmem>>, vector<1x16x4xbf16>
    %145 = vector.shape_cast %144 : vector<1x16x4xbf16> to vector<16x4xbf16>
    %cst_136 = arith.constant dense<0.000000e+00> : vector<14x4xf32>
    %146 = tpu.matmul %143, %145, %cst_136 {dimension_numbers = #tpu.dot_dimension_numbers<[1], [0], [0], [1], [0, 0, 1, 1], [], []>} : vector<14x16xbf16>, vector<16x4xbf16>, vector<14x4xf32> -> vector<14x4xf32>
    %147 = arith.addf %140, %146 : vector<14x4xf32>
    %c0_137 = arith.constant 0 : index
    %c4 = arith.constant 4 : index
    %c0_138 = arith.constant 0 : index
    %c0_139 = arith.constant 0 : index
    %148 = vector.load %arg1[%c0_137, %c4, %c0_138, %c0_139] : memref<1x15x15x16xf32, #tpu.memory_space<vmem>>, vector<1x1x14x16xf32>
    %149 = vector.shape_cast %148 : vector<1x1x14x16xf32> to vector<14x16xf32>
    %150 = arith.truncf %149 : vector<14x16xf32> to vector<14x16xbf16>
    %c2_140 = arith.constant 2 : index
    %c0_141 = arith.constant 0 : index
    %c0_142 = arith.constant 0 : index
    %151 = vector.load %arg2[%c2_140, %c0_141, %c0_142] : memref<4x16x4xbf16, #tpu.memory_space<vmem>>, vector<1x16x4xbf16>
    %152 = vector.shape_cast %151 : vector<1x16x4xbf16> to vector<16x4xbf16>
    %cst_143 = arith.constant dense<0.000000e+00> : vector<14x4xf32>
    %153 = tpu.matmul %150, %152, %cst_143 {dimension_numbers = #tpu.dot_dimension_numbers<[1], [0], [0], [1], [0, 0, 1, 1], [], []>} : vector<14x16xbf16>, vector<16x4xbf16>, vector<14x4xf32> -> vector<14x4xf32>
    %154 = arith.addf %147, %153 : vector<14x4xf32>
    %c0_144 = arith.constant 0 : index
    %c4_145 = arith.constant 4 : index
    %c1_146 = arith.constant 1 : index
    %c0_147 = arith.constant 0 : index
    %155 = vector.load %arg1[%c0_144, %c4_145, %c1_146, %c0_147] : memref<1x15x15x16xf32, #tpu.memory_space<vmem>>, vector<1x1x14x16xf32>
    %156 = vector.shape_cast %155 : vector<1x1x14x16xf32> to vector<14x16xf32>
    %157 = arith.truncf %156 : vector<14x16xf32> to vector<14x16xbf16>
    %c3_148 = arith.constant 3 : index
    %c0_149 = arith.constant 0 : index
    %c0_150 = arith.constant 0 : index
    %158 = vector.load %arg2[%c3_148, %c0_149, %c0_150] : memref<4x16x4xbf16, #tpu.memory_space<vmem>>, vector<1x16x4xbf16>
    %159 = vector.shape_cast %158 : vector<1x16x4xbf16> to vector<16x4xbf16>
    %cst_151 = arith.constant dense<0.000000e+00> : vector<14x4xf32>
    %160 = tpu.matmul %157, %159, %cst_151 {dimension_numbers = #tpu.dot_dimension_numbers<[1], [0], [0], [1], [0, 0, 1, 1], [], []>} : vector<14x16xbf16>, vector<16x4xbf16>, vector<14x4xf32> -> vector<14x4xf32>
    %161 = arith.addf %154, %160 : vector<14x4xf32>
    %162 = vector.broadcast %0 : vector<1x4xf32> to vector<14x4xf32>
    %163 = arith.addf %161, %162 : vector<14x4xf32>
    %cst_152 = arith.constant 0.000000e+00 : f32
    %164 = vector.broadcast %cst_152 : f32 to vector<14x4xf32>
    %165 = arith.subf %164, %163 : vector<14x4xf32>
    %166 = math.exp %165 : vector<14x4xf32>
    %cst_153 = arith.constant 1.000000e+00 : f32
    %167 = vector.broadcast %cst_153 : f32 to vector<14x4xf32>
    %168 = arith.addf %167, %166 : vector<14x4xf32>
    %169 = tpu.reciprocal %168 {approx = true} : vector<14x4xf32> -> vector<14x4xf32>
    %cst_154 = arith.constant 0.000000e+00 : f32
    %cst_155 = arith.constant 1.000000e+00 : f32
    %170 = vector.broadcast %cst_154 : f32 to vector<14x4xf32>
    %171 = arith.maximumf %170, %169 : vector<14x4xf32>
    %172 = vector.broadcast %cst_155 : f32 to vector<14x4xf32>
    %173 = arith.minimumf %172, %171 : vector<14x4xf32>
    %c0_156 = arith.constant 0 : index
    %c3_157 = arith.constant 3 : index
    %c0_158 = arith.constant 0 : index
    %c0_159 = arith.constant 0 : index
    %174 = vector.load %arg4[%c0_156, %c3_157, %c0_158, %c0_159] : memref<1x14x14x4xf32, #tpu.memory_space<vmem>>, vector<1x1x14x4xf32>
    %175 = vector.shape_cast %174 : vector<1x1x14x4xf32> to vector<14x4xf32>
    %176 = vector.shape_cast %173 : vector<14x4xf32> to vector<1x1x14x4xf32>
    tpu.vector_store %arg4[%c0_156, %c3_157, %c0_158, %c0_159], %176 {strides = array<i32>} : memref<1x14x14x4xf32, #tpu.memory_space<vmem>>, vector<1x1x14x4xf32>,
    %cst_160 = arith.constant 0.000000e+00 : f32
    %177 = vector.broadcast %cst_160 : f32 to vector<14x4xf32>
    %c0_161 = arith.constant 0 : index
    %c4_162 = arith.constant 4 : index
    %c0_163 = arith.constant 0 : index
    %c0_164 = arith.constant 0 : index
    %178 = vector.load %arg1[%c0_161, %c4_162, %c0_163, %c0_164] : memref<1x15x15x16xf32, #tpu.memory_space<vmem>>, vector<1x1x14x16xf32>
    %179 = vector.shape_cast %178 : vector<1x1x14x16xf32> to vector<14x16xf32>
    %180 = arith.truncf %179 : vector<14x16xf32> to vector<14x16xbf16>
    %c0_165 = arith.constant 0 : index
    %c0_166 = arith.constant 0 : index
    %c0_167 = arith.constant 0 : index
    %181 = vector.load %arg2[%c0_165, %c0_166, %c0_167] : memref<4x16x4xbf16, #tpu.memory_space<vmem>>, vector<1x16x4xbf16>
    %182 = vector.shape_cast %181 : vector<1x16x4xbf16> to vector<16x4xbf16>
    %cst_168 = arith.constant dense<0.000000e+00> : vector<14x4xf32>
    %183 = tpu.matmul %180, %182, %cst_168 {dimension_numbers = #tpu.dot_dimension_numbers<[1], [0], [0], [1], [0, 0, 1, 1], [], []>} : vector<14x16xbf16>, vector<16x4xbf16>, vector<14x4xf32> -> vector<14x4xf32>
    %184 = arith.addf %177, %183 : vector<14x4xf32>
    %c0_169 = arith.constant 0 : index
    %c4_170 = arith.constant 4 : index
    %c1_171 = arith.constant 1 : index
    %c0_172 = arith.constant 0 : index
    %185 = vector.load %arg1[%c0_169, %c4_170, %c1_171, %c0_172] : memref<1x15x15x16xf32, #tpu.memory_space<vmem>>, vector<1x1x14x16xf32>
    %186 = vector.shape_cast %185 : vector<1x1x14x16xf32> to vector<14x16xf32>
    %187 = arith.truncf %186 : vector<14x16xf32> to vector<14x16xbf16>
    %c1_173 = arith.constant 1 : index
    %c0_174 = arith.constant 0 : index
    %c0_175 = arith.constant 0 : index
    %188 = vector.load %arg2[%c1_173, %c0_174, %c0_175] : memref<4x16x4xbf16, #tpu.memory_space<vmem>>, vector<1x16x4xbf16>
    %189 = vector.shape_cast %188 : vector<1x16x4xbf16> to vector<16x4xbf16>
    %cst_176 = arith.constant dense<0.000000e+00> : vector<14x4xf32>
    %190 = tpu.matmul %187, %189, %cst_176 {dimension_numbers = #tpu.dot_dimension_numbers<[1], [0], [0], [1], [0, 0, 1, 1], [], []>} : vector<14x16xbf16>, vector<16x4xbf16>, vector<14x4xf32> -> vector<14x4xf32>
    %191 = arith.addf %184, %190 : vector<14x4xf32>
    %c0_177 = arith.constant 0 : index
    %c5 = arith.constant 5 : index
    %c0_178 = arith.constant 0 : index
    %c0_179 = arith.constant 0 : index
    %192 = vector.load %arg1[%c0_177, %c5, %c0_178, %c0_179] : memref<1x15x15x16xf32, #tpu.memory_space<vmem>>, vector<1x1x14x16xf32>
    %193 = vector.shape_cast %192 : vector<1x1x14x16xf32> to vector<14x16xf32>
    %194 = arith.truncf %193 : vector<14x16xf32> to vector<14x16xbf16>
    %c2_180 = arith.constant 2 : index
    %c0_181 = arith.constant 0 : index
    %c0_182 = arith.constant 0 : index
    %195 = vector.load %arg2[%c2_180, %c0_181, %c0_182] : memref<4x16x4xbf16, #tpu.memory_space<vmem>>, vector<1x16x4xbf16>
    %196 = vector.shape_cast %195 : vector<1x16x4xbf16> to vector<16x4xbf16>
    %cst_183 = arith.constant dense<0.000000e+00> : vector<14x4xf32>
    %197 = tpu.matmul %194, %196, %cst_183 {dimension_numbers = #tpu.dot_dimension_numbers<[1], [0], [0], [1], [0, 0, 1, 1], [], []>} : vector<14x16xbf16>, vector<16x4xbf16>, vector<14x4xf32> -> vector<14x4xf32>
    %198 = arith.addf %191, %197 : vector<14x4xf32>
    %c0_184 = arith.constant 0 : index
    %c5_185 = arith.constant 5 : index
    %c1_186 = arith.constant 1 : index
    %c0_187 = arith.constant 0 : index
    %199 = vector.load %arg1[%c0_184, %c5_185, %c1_186, %c0_187] : memref<1x15x15x16xf32, #tpu.memory_space<vmem>>, vector<1x1x14x16xf32>
    %200 = vector.shape_cast %199 : vector<1x1x14x16xf32> to vector<14x16xf32>
    %201 = arith.truncf %200 : vector<14x16xf32> to vector<14x16xbf16>
    %c3_188 = arith.constant 3 : index
    %c0_189 = arith.constant 0 : index
    %c0_190 = arith.constant 0 : index
    %202 = vector.load %arg2[%c3_188, %c0_189, %c0_190] : memref<4x16x4xbf16, #tpu.memory_space<vmem>>, vector<1x16x4xbf16>
    %203 = vector.shape_cast %202 : vector<1x16x4xbf16> to vector<16x4xbf16>
    %cst_191 = arith.constant dense<0.000000e+00> : vector<14x4xf32>
    %204 = tpu.matmul %201, %203, %cst_191 {dimension_numbers = #tpu.dot_dimension_numbers<[1], [0], [0], [1], [0, 0, 1, 1], [], []>} : vector<14x16xbf16>, vector<16x4xbf16>, vector<14x4xf32> -> vector<14x4xf32>
    %205 = arith.addf %198, %204 : vector<14x4xf32>
    %206 = vector.broadcast %0 : vector<1x4xf32> to vector<14x4xf32>
    %207 = arith.addf %205, %206 : vector<14x4xf32>
    %cst_192 = arith.constant 0.000000e+00 : f32
    %208 = vector.broadcast %cst_192 : f32 to vector<14x4xf32>
    %209 = arith.subf %208, %207 : vector<14x4xf32>
    %210 = math.exp %209 : vector<14x4xf32>
    %cst_193 = arith.constant 1.000000e+00 : f32
    %211 = vector.broadcast %cst_193 : f32 to vector<14x4xf32>
    %212 = arith.addf %211, %210 : vector<14x4xf32>
    %213 = tpu.reciprocal %212 {approx = true} : vector<14x4xf32> -> vector<14x4xf32>
    %cst_194 = arith.constant 0.000000e+00 : f32
    %cst_195 = arith.constant 1.000000e+00 : f32
    %214 = vector.broadcast %cst_194 : f32 to vector<14x4xf32>
    %215 = arith.maximumf %214, %213 : vector<14x4xf32>
    %216 = vector.broadcast %cst_195 : f32 to vector<14x4xf32>
    %217 = arith.minimumf %216, %215 : vector<14x4xf32>
    %c0_196 = arith.constant 0 : index
    %c4_197 = arith.constant 4 : index
    %c0_198 = arith.constant 0 : index
    %c0_199 = arith.constant 0 : index
    %218 = vector.load %arg4[%c0_196, %c4_197, %c0_198, %c0_199] : memref<1x14x14x4xf32, #tpu.memory_space<vmem>>, vector<1x1x14x4xf32>
    %219 = vector.shape_cast %218 : vector<1x1x14x4xf32> to vector<14x4xf32>
    %220 = vector.shape_cast %217 : vector<14x4xf32> to vector<1x1x14x4xf32>
    tpu.vector_store %arg4[%c0_196, %c4_197, %c0_198, %c0_199], %220 {strides = array<i32>} : memref<1x14x14x4xf32, #tpu.memory_space<vmem>>, vector<1x1x14x4xf32>,
    %cst_200 = arith.constant 0.000000e+00 : f32
    %221 = vector.broadcast %cst_200 : f32 to vector<14x4xf32>
    %c0_201 = arith.constant 0 : index
    %c5_202 = arith.constant 5 : index
    %c0_203 = arith.constant 0 : index
    %c0_204 = arith.constant 0 : index
    %222 = vector.load %arg1[%c0_201, %c5_202, %c0_203, %c0_204] : memref<1x15x15x16xf32, #tpu.memory_space<vmem>>, vector<1x1x14x16xf32>
    %223 = vector.shape_cast %222 : vector<1x1x14x16xf32> to vector<14x16xf32>
    %224 = arith.truncf %223 : vector<14x16xf32> to vector<14x16xbf16>
    %c0_205 = arith.constant 0 : index
    %c0_206 = arith.constant 0 : index
    %c0_207 = arith.constant 0 : index
    %225 = vector.load %arg2[%c0_205, %c0_206, %c0_207] : memref<4x16x4xbf16, #tpu.memory_space<vmem>>, vector<1x16x4xbf16>
    %226 = vector.shape_cast %225 : vector<1x16x4xbf16> to vector<16x4xbf16>
    %cst_208 = arith.constant dense<0.000000e+00> : vector<14x4xf32>
    %227 = tpu.matmul %224, %226, %cst_208 {dimension_numbers = #tpu.dot_dimension_numbers<[1], [0], [0], [1], [0, 0, 1, 1], [], []>} : vector<14x16xbf16>, vector<16x4xbf16>, vector<14x4xf32> -> vector<14x4xf32>
    %228 = arith.addf %221, %227 : vector<14x4xf32>
    %c0_209 = arith.constant 0 : index
    %c5_210 = arith.constant 5 : index
    %c1_211 = arith.constant 1 : index
    %c0_212 = arith.constant 0 : index
    %229 = vector.load %arg1[%c0_209, %c5_210, %c1_211, %c0_212] : memref<1x15x15x16xf32, #tpu.memory_space<vmem>>, vector<1x1x14x16xf32>
    %230 = vector.shape_cast %229 : vector<1x1x14x16xf32> to vector<14x16xf32>
    %231 = arith.truncf %230 : vector<14x16xf32> to vector<14x16xbf16>
    %c1_213 = arith.constant 1 : index
    %c0_214 = arith.constant 0 : index
    %c0_215 = arith.constant 0 : index
    %232 = vector.load %arg2[%c1_213, %c0_214, %c0_215] : memref<4x16x4xbf16, #tpu.memory_space<vmem>>, vector<1x16x4xbf16>
    %233 = vector.shape_cast %232 : vector<1x16x4xbf16> to vector<16x4xbf16>
    %cst_216 = arith.constant dense<0.000000e+00> : vector<14x4xf32>
    %234 = tpu.matmul %231, %233, %cst_216 {dimension_numbers = #tpu.dot_dimension_numbers<[1], [0], [0], [1], [0, 0, 1, 1], [], []>} : vector<14x16xbf16>, vector<16x4xbf16>, vector<14x4xf32> -> vector<14x4xf32>
    %235 = arith.addf %228, %234 : vector<14x4xf32>
    %c0_217 = arith.constant 0 : index
    %c6 = arith.constant 6 : index
    %c0_218 = arith.constant 0 : index
    %c0_219 = arith.constant 0 : index
    %236 = vector.load %arg1[%c0_217, %c6, %c0_218, %c0_219] : memref<1x15x15x16xf32, #tpu.memory_space<vmem>>, vector<1x1x14x16xf32>
    %237 = vector.shape_cast %236 : vector<1x1x14x16xf32> to vector<14x16xf32>
    %238 = arith.truncf %237 : vector<14x16xf32> to vector<14x16xbf16>
    %c2_220 = arith.constant 2 : index
    %c0_221 = arith.constant 0 : index
    %c0_222 = arith.constant 0 : index
    %239 = vector.load %arg2[%c2_220, %c0_221, %c0_222] : memref<4x16x4xbf16, #tpu.memory_space<vmem>>, vector<1x16x4xbf16>
    %240 = vector.shape_cast %239 : vector<1x16x4xbf16> to vector<16x4xbf16>
    %cst_223 = arith.constant dense<0.000000e+00> : vector<14x4xf32>
    %241 = tpu.matmul %238, %240, %cst_223 {dimension_numbers = #tpu.dot_dimension_numbers<[1], [0], [0], [1], [0, 0, 1, 1], [], []>} : vector<14x16xbf16>, vector<16x4xbf16>, vector<14x4xf32> -> vector<14x4xf32>
    %242 = arith.addf %235, %241 : vector<14x4xf32>
    %c0_224 = arith.constant 0 : index
    %c6_225 = arith.constant 6 : index
    %c1_226 = arith.constant 1 : index
    %c0_227 = arith.constant 0 : index
    %243 = vector.load %arg1[%c0_224, %c6_225, %c1_226, %c0_227] : memref<1x15x15x16xf32, #tpu.memory_space<vmem>>, vector<1x1x14x16xf32>
    %244 = vector.shape_cast %243 : vector<1x1x14x16xf32> to vector<14x16xf32>
    %245 = arith.truncf %244 : vector<14x16xf32> to vector<14x16xbf16>
    %c3_228 = arith.constant 3 : index
    %c0_229 = arith.constant 0 : index
    %c0_230 = arith.constant 0 : index
    %246 = vector.load %arg2[%c3_228, %c0_229, %c0_230] : memref<4x16x4xbf16, #tpu.memory_space<vmem>>, vector<1x16x4xbf16>
    %247 = vector.shape_cast %246 : vector<1x16x4xbf16> to vector<16x4xbf16>
    %cst_231 = arith.constant dense<0.000000e+00> : vector<14x4xf32>
    %248 = tpu.matmul %245, %247, %cst_231 {dimension_numbers = #tpu.dot_dimension_numbers<[1], [0], [0], [1], [0, 0, 1, 1], [], []>} : vector<14x16xbf16>, vector<16x4xbf16>, vector<14x4xf32> -> vector<14x4xf32>
    %249 = arith.addf %242, %248 : vector<14x4xf32>
    %250 = vector.broadcast %0 : vector<1x4xf32> to vector<14x4xf32>
    %251 = arith.addf %249, %250 : vector<14x4xf32>
    %cst_232 = arith.constant 0.000000e+00 : f32
    %252 = vector.broadcast %cst_232 : f32 to vector<14x4xf32>
    %253 = arith.subf %252, %251 : vector<14x4xf32>
    %254 = math.exp %253 : vector<14x4xf32>
    %cst_233 = arith.constant 1.000000e+00 : f32
    %255 = vector.broadcast %cst_233 : f32 to vector<14x4xf32>
    %256 = arith.addf %255, %254 : vector<14x4xf32>
    %257 = tpu.reciprocal %256 {approx = true} : vector<14x4xf32> -> vector<14x4xf32>
    %cst_234 = arith.constant 0.000000e+00 : f32
    %cst_235 = arith.constant 1.000000e+00 : f32
    %258 = vector.broadcast %cst_234 : f32 to vector<14x4xf32>
    %259 = arith.maximumf %258, %257 : vector<14x4xf32>
    %260 = vector.broadcast %cst_235 : f32 to vector<14x4xf32>
    %261 = arith.minimumf %260, %259 : vector<14x4xf32>
    %c0_236 = arith.constant 0 : index
    %c5_237 = arith.constant 5 : index
    %c0_238 = arith.constant 0 : index
    %c0_239 = arith.constant 0 : index
    %262 = vector.load %arg4[%c0_236, %c5_237, %c0_238, %c0_239] : memref<1x14x14x4xf32, #tpu.memory_space<vmem>>, vector<1x1x14x4xf32>
    %263 = vector.shape_cast %262 : vector<1x1x14x4xf32> to vector<14x4xf32>
    %264 = vector.shape_cast %261 : vector<14x4xf32> to vector<1x1x14x4xf32>
    tpu.vector_store %arg4[%c0_236, %c5_237, %c0_238, %c0_239], %264 {strides = array<i32>} : memref<1x14x14x4xf32, #tpu.memory_space<vmem>>, vector<1x1x14x4xf32>,
    %cst_240 = arith.constant 0.000000e+00 : f32
    %265 = vector.broadcast %cst_240 : f32 to vector<14x4xf32>
    %c0_241 = arith.constant 0 : index
    %c6_242 = arith.constant 6 : index
    %c0_243 = arith.constant 0 : index
    %c0_244 = arith.constant 0 : index
    %266 = vector.load %arg1[%c0_241, %c6_242, %c0_243, %c0_244] : memref<1x15x15x16xf32, #tpu.memory_space<vmem>>, vector<1x1x14x16xf32>
    %267 = vector.shape_cast %266 : vector<1x1x14x16xf32> to vector<14x16xf32>
    %268 = arith.truncf %267 : vector<14x16xf32> to vector<14x16xbf16>
    %c0_245 = arith.constant 0 : index
    %c0_246 = arith.constant 0 : index
    %c0_247 = arith.constant 0 : index
    %269 = vector.load %arg2[%c0_245, %c0_246, %c0_247] : memref<4x16x4xbf16, #tpu.memory_space<vmem>>, vector<1x16x4xbf16>
    %270 = vector.shape_cast %269 : vector<1x16x4xbf16> to vector<16x4xbf16>
    %cst_248 = arith.constant dense<0.000000e+00> : vector<14x4xf32>
    %271 = tpu.matmul %268, %270, %cst_248 {dimension_numbers = #tpu.dot_dimension_numbers<[1], [0], [0], [1], [0, 0, 1, 1], [], []>} : vector<14x16xbf16>, vector<16x4xbf16>, vector<14x4xf32> -> vector<14x4xf32>
    %272 = arith.addf %265, %271 : vector<14x4xf32>
    %c0_249 = arith.constant 0 : index
    %c6_250 = arith.constant 6 : index
    %c1_251 = arith.constant 1 : index
    %c0_252 = arith.constant 0 : index
    %273 = vector.load %arg1[%c0_249, %c6_250, %c1_251, %c0_252] : memref<1x15x15x16xf32, #tpu.memory_space<vmem>>, vector<1x1x14x16xf32>
    %274 = vector.shape_cast %273 : vector<1x1x14x16xf32> to vector<14x16xf32>
    %275 = arith.truncf %274 : vector<14x16xf32> to vector<14x16xbf16>
    %c1_253 = arith.constant 1 : index
    %c0_254 = arith.constant 0 : index
    %c0_255 = arith.constant 0 : index
    %276 = vector.load %arg2[%c1_253, %c0_254, %c0_255] : memref<4x16x4xbf16, #tpu.memory_space<vmem>>, vector<1x16x4xbf16>
    %277 = vector.shape_cast %276 : vector<1x16x4xbf16> to vector<16x4xbf16>
    %cst_256 = arith.constant dense<0.000000e+00> : vector<14x4xf32>
    %278 = tpu.matmul %275, %277, %cst_256 {dimension_numbers = #tpu.dot_dimension_numbers<[1], [0], [0], [1], [0, 0, 1, 1], [], []>} : vector<14x16xbf16>, vector<16x4xbf16>, vector<14x4xf32> -> vector<14x4xf32>
    %279 = arith.addf %272, %278 : vector<14x4xf32>
    %c0_257 = arith.constant 0 : index
    %c7 = arith.constant 7 : index
    %c0_258 = arith.constant 0 : index
    %c0_259 = arith.constant 0 : index
    %280 = vector.load %arg1[%c0_257, %c7, %c0_258, %c0_259] : memref<1x15x15x16xf32, #tpu.memory_space<vmem>>, vector<1x1x14x16xf32>
    %281 = vector.shape_cast %280 : vector<1x1x14x16xf32> to vector<14x16xf32>
    %282 = arith.truncf %281 : vector<14x16xf32> to vector<14x16xbf16>
    %c2_260 = arith.constant 2 : index
    %c0_261 = arith.constant 0 : index
    %c0_262 = arith.constant 0 : index
    %283 = vector.load %arg2[%c2_260, %c0_261, %c0_262] : memref<4x16x4xbf16, #tpu.memory_space<vmem>>, vector<1x16x4xbf16>
    %284 = vector.shape_cast %283 : vector<1x16x4xbf16> to vector<16x4xbf16>
    %cst_263 = arith.constant dense<0.000000e+00> : vector<14x4xf32>
    %285 = tpu.matmul %282, %284, %cst_263 {dimension_numbers = #tpu.dot_dimension_numbers<[1], [0], [0], [1], [0, 0, 1, 1], [], []>} : vector<14x16xbf16>, vector<16x4xbf16>, vector<14x4xf32> -> vector<14x4xf32>
    %286 = arith.addf %279, %285 : vector<14x4xf32>
    %c0_264 = arith.constant 0 : index
    %c7_265 = arith.constant 7 : index
    %c1_266 = arith.constant 1 : index
    %c0_267 = arith.constant 0 : index
    %287 = vector.load %arg1[%c0_264, %c7_265, %c1_266, %c0_267] : memref<1x15x15x16xf32, #tpu.memory_space<vmem>>, vector<1x1x14x16xf32>
    %288 = vector.shape_cast %287 : vector<1x1x14x16xf32> to vector<14x16xf32>
    %289 = arith.truncf %288 : vector<14x16xf32> to vector<14x16xbf16>
    %c3_268 = arith.constant 3 : index
    %c0_269 = arith.constant 0 : index
    %c0_270 = arith.constant 0 : index
    %290 = vector.load %arg2[%c3_268, %c0_269, %c0_270] : memref<4x16x4xbf16, #tpu.memory_space<vmem>>, vector<1x16x4xbf16>
    %291 = vector.shape_cast %290 : vector<1x16x4xbf16> to vector<16x4xbf16>
    %cst_271 = arith.constant dense<0.000000e+00> : vector<14x4xf32>
    %292 = tpu.matmul %289, %291, %cst_271 {dimension_numbers = #tpu.dot_dimension_numbers<[1], [0], [0], [1], [0, 0, 1, 1], [], []>} : vector<14x16xbf16>, vector<16x4xbf16>, vector<14x4xf32> -> vector<14x4xf32>
    %293 = arith.addf %286, %292 : vector<14x4xf32>
    %294 = vector.broadcast %0 : vector<1x4xf32> to vector<14x4xf32>
    %295 = arith.addf %293, %294 : vector<14x4xf32>
    %cst_272 = arith.constant 0.000000e+00 : f32
    %296 = vector.broadcast %cst_272 : f32 to vector<14x4xf32>
    %297 = arith.subf %296, %295 : vector<14x4xf32>
    %298 = math.exp %297 : vector<14x4xf32>
    %cst_273 = arith.constant 1.000000e+00 : f32
    %299 = vector.broadcast %cst_273 : f32 to vector<14x4xf32>
    %300 = arith.addf %299, %298 : vector<14x4xf32>
    %301 = tpu.reciprocal %300 {approx = true} : vector<14x4xf32> -> vector<14x4xf32>
    %cst_274 = arith.constant 0.000000e+00 : f32
    %cst_275 = arith.constant 1.000000e+00 : f32
    %302 = vector.broadcast %cst_274 : f32 to vector<14x4xf32>
    %303 = arith.maximumf %302, %301 : vector<14x4xf32>
    %304 = vector.broadcast %cst_275 : f32 to vector<14x4xf32>
    %305 = arith.minimumf %304, %303 : vector<14x4xf32>
    %c0_276 = arith.constant 0 : index
    %c6_277 = arith.constant 6 : index
    %c0_278 = arith.constant 0 : index
    %c0_279 = arith.constant 0 : index
    %306 = vector.load %arg4[%c0_276, %c6_277, %c0_278, %c0_279] : memref<1x14x14x4xf32, #tpu.memory_space<vmem>>, vector<1x1x14x4xf32>
    %307 = vector.shape_cast %306 : vector<1x1x14x4xf32> to vector<14x4xf32>
    %308 = vector.shape_cast %305 : vector<14x4xf32> to vector<1x1x14x4xf32>
    tpu.vector_store %arg4[%c0_276, %c6_277, %c0_278, %c0_279], %308 {strides = array<i32>} : memref<1x14x14x4xf32, #tpu.memory_space<vmem>>, vector<1x1x14x4xf32>,
    %cst_280 = arith.constant 0.000000e+00 : f32
    %309 = vector.broadcast %cst_280 : f32 to vector<14x4xf32>
    %c0_281 = arith.constant 0 : index
    %c7_282 = arith.constant 7 : index
    %c0_283 = arith.constant 0 : index
    %c0_284 = arith.constant 0 : index
    %310 = vector.load %arg1[%c0_281, %c7_282, %c0_283, %c0_284] : memref<1x15x15x16xf32, #tpu.memory_space<vmem>>, vector<1x1x14x16xf32>
    %311 = vector.shape_cast %310 : vector<1x1x14x16xf32> to vector<14x16xf32>
    %312 = arith.truncf %311 : vector<14x16xf32> to vector<14x16xbf16>
    %c0_285 = arith.constant 0 : index
    %c0_286 = arith.constant 0 : index
    %c0_287 = arith.constant 0 : index
    %313 = vector.load %arg2[%c0_285, %c0_286, %c0_287] : memref<4x16x4xbf16, #tpu.memory_space<vmem>>, vector<1x16x4xbf16>
    %314 = vector.shape_cast %313 : vector<1x16x4xbf16> to vector<16x4xbf16>
    %cst_288 = arith.constant dense<0.000000e+00> : vector<14x4xf32>
    %315 = tpu.matmul %312, %314, %cst_288 {dimension_numbers = #tpu.dot_dimension_numbers<[1], [0], [0], [1], [0, 0, 1, 1], [], []>} : vector<14x16xbf16>, vector<16x4xbf16>, vector<14x4xf32> -> vector<14x4xf32>
    %316 = arith.addf %309, %315 : vector<14x4xf32>
    %c0_289 = arith.constant 0 : index
    %c7_290 = arith.constant 7 : index
    %c1_291 = arith.constant 1 : index
    %c0_292 = arith.constant 0 : index
    %317 = vector.load %arg1[%c0_289, %c7_290, %c1_291, %c0_292] : memref<1x15x15x16xf32, #tpu.memory_space<vmem>>, vector<1x1x14x16xf32>
    %318 = vector.shape_cast %317 : vector<1x1x14x16xf32> to vector<14x16xf32>
    %319 = arith.truncf %318 : vector<14x16xf32> to vector<14x16xbf16>
    %c1_293 = arith.constant 1 : index
    %c0_294 = arith.constant 0 : index
    %c0_295 = arith.constant 0 : index
    %320 = vector.load %arg2[%c1_293, %c0_294, %c0_295] : memref<4x16x4xbf16, #tpu.memory_space<vmem>>, vector<1x16x4xbf16>
    %321 = vector.shape_cast %320 : vector<1x16x4xbf16> to vector<16x4xbf16>
    %cst_296 = arith.constant dense<0.000000e+00> : vector<14x4xf32>
    %322 = tpu.matmul %319, %321, %cst_296 {dimension_numbers = #tpu.dot_dimension_numbers<[1], [0], [0], [1], [0, 0, 1, 1], [], []>} : vector<14x16xbf16>, vector<16x4xbf16>, vector<14x4xf32> -> vector<14x4xf32>
    %323 = arith.addf %316, %322 : vector<14x4xf32>
    %c0_297 = arith.constant 0 : index
    %c8 = arith.constant 8 : index
    %c0_298 = arith.constant 0 : index
    %c0_299 = arith.constant 0 : index
    %324 = vector.load %arg1[%c0_297, %c8, %c0_298, %c0_299] : memref<1x15x15x16xf32, #tpu.memory_space<vmem>>, vector<1x1x14x16xf32>
    %325 = vector.shape_cast %324 : vector<1x1x14x16xf32> to vector<14x16xf32>
    %326 = arith.truncf %325 : vector<14x16xf32> to vector<14x16xbf16>
    %c2_300 = arith.constant 2 : index
    %c0_301 = arith.constant 0 : index
    %c0_302 = arith.constant 0 : index
    %327 = vector.load %arg2[%c2_300, %c0_301, %c0_302] : memref<4x16x4xbf16, #tpu.memory_space<vmem>>, vector<1x16x4xbf16>
    %328 = vector.shape_cast %327 : vector<1x16x4xbf16> to vector<16x4xbf16>
    %cst_303 = arith.constant dense<0.000000e+00> : vector<14x4xf32>
    %329 = tpu.matmul %326, %328, %cst_303 {dimension_numbers = #tpu.dot_dimension_numbers<[1], [0], [0], [1], [0, 0, 1, 1], [], []>} : vector<14x16xbf16>, vector<16x4xbf16>, vector<14x4xf32> -> vector<14x4xf32>
    %330 = arith.addf %323, %329 : vector<14x4xf32>
    %c0_304 = arith.constant 0 : index
    %c8_305 = arith.constant 8 : index
    %c1_306 = arith.constant 1 : index
    %c0_307 = arith.constant 0 : index
    %331 = vector.load %arg1[%c0_304, %c8_305, %c1_306, %c0_307] : memref<1x15x15x16xf32, #tpu.memory_space<vmem>>, vector<1x1x14x16xf32>
    %332 = vector.shape_cast %331 : vector<1x1x14x16xf32> to vector<14x16xf32>
    %333 = arith.truncf %332 : vector<14x16xf32> to vector<14x16xbf16>
    %c3_308 = arith.constant 3 : index
    %c0_309 = arith.constant 0 : index
    %c0_310 = arith.constant 0 : index
    %334 = vector.load %arg2[%c3_308, %c0_309, %c0_310] : memref<4x16x4xbf16, #tpu.memory_space<vmem>>, vector<1x16x4xbf16>
    %335 = vector.shape_cast %334 : vector<1x16x4xbf16> to vector<16x4xbf16>
    %cst_311 = arith.constant dense<0.000000e+00> : vector<14x4xf32>
    %336 = tpu.matmul %333, %335, %cst_311 {dimension_numbers = #tpu.dot_dimension_numbers<[1], [0], [0], [1], [0, 0, 1, 1], [], []>} : vector<14x16xbf16>, vector<16x4xbf16>, vector<14x4xf32> -> vector<14x4xf32>
    %337 = arith.addf %330, %336 : vector<14x4xf32>
    %338 = vector.broadcast %0 : vector<1x4xf32> to vector<14x4xf32>
    %339 = arith.addf %337, %338 : vector<14x4xf32>
    %cst_312 = arith.constant 0.000000e+00 : f32
    %340 = vector.broadcast %cst_312 : f32 to vector<14x4xf32>
    %341 = arith.subf %340, %339 : vector<14x4xf32>
    %342 = math.exp %341 : vector<14x4xf32>
    %cst_313 = arith.constant 1.000000e+00 : f32
    %343 = vector.broadcast %cst_313 : f32 to vector<14x4xf32>
    %344 = arith.addf %343, %342 : vector<14x4xf32>
    %345 = tpu.reciprocal %344 {approx = true} : vector<14x4xf32> -> vector<14x4xf32>
    %cst_314 = arith.constant 0.000000e+00 : f32
    %cst_315 = arith.constant 1.000000e+00 : f32
    %346 = vector.broadcast %cst_314 : f32 to vector<14x4xf32>
    %347 = arith.maximumf %346, %345 : vector<14x4xf32>
    %348 = vector.broadcast %cst_315 : f32 to vector<14x4xf32>
    %349 = arith.minimumf %348, %347 : vector<14x4xf32>
    %c0_316 = arith.constant 0 : index
    %c7_317 = arith.constant 7 : index
    %c0_318 = arith.constant 0 : index
    %c0_319 = arith.constant 0 : index
    %350 = vector.load %arg4[%c0_316, %c7_317, %c0_318, %c0_319] : memref<1x14x14x4xf32, #tpu.memory_space<vmem>>, vector<1x1x14x4xf32>
    %351 = vector.shape_cast %350 : vector<1x1x14x4xf32> to vector<14x4xf32>
    %352 = vector.shape_cast %349 : vector<14x4xf32> to vector<1x1x14x4xf32>
    tpu.vector_store %arg4[%c0_316, %c7_317, %c0_318, %c0_319], %352 {strides = array<i32>} : memref<1x14x14x4xf32, #tpu.memory_space<vmem>>, vector<1x1x14x4xf32>,
    %cst_320 = arith.constant 0.000000e+00 : f32
    %353 = vector.broadcast %cst_320 : f32 to vector<14x4xf32>
    %c0_321 = arith.constant 0 : index
    %c8_322 = arith.constant 8 : index
    %c0_323 = arith.constant 0 : index
    %c0_324 = arith.constant 0 : index
    %354 = vector.load %arg1[%c0_321, %c8_322, %c0_323, %c0_324] : memref<1x15x15x16xf32, #tpu.memory_space<vmem>>, vector<1x1x14x16xf32>
    %355 = vector.shape_cast %354 : vector<1x1x14x16xf32> to vector<14x16xf32>
    %356 = arith.truncf %355 : vector<14x16xf32> to vector<14x16xbf16>
    %c0_325 = arith.constant 0 : index
    %c0_326 = arith.constant 0 : index
    %c0_327 = arith.constant 0 : index
    %357 = vector.load %arg2[%c0_325, %c0_326, %c0_327] : memref<4x16x4xbf16, #tpu.memory_space<vmem>>, vector<1x16x4xbf16>
    %358 = vector.shape_cast %357 : vector<1x16x4xbf16> to vector<16x4xbf16>
    %cst_328 = arith.constant dense<0.000000e+00> : vector<14x4xf32>
    %359 = tpu.matmul %356, %358, %cst_328 {dimension_numbers = #tpu.dot_dimension_numbers<[1], [0], [0], [1], [0, 0, 1, 1], [], []>} : vector<14x16xbf16>, vector<16x4xbf16>, vector<14x4xf32> -> vector<14x4xf32>
    %360 = arith.addf %353, %359 : vector<14x4xf32>
    %c0_329 = arith.constant 0 : index
    %c8_330 = arith.constant 8 : index
    %c1_331 = arith.constant 1 : index
    %c0_332 = arith.constant 0 : index
    %361 = vector.load %arg1[%c0_329, %c8_330, %c1_331, %c0_332] : memref<1x15x15x16xf32, #tpu.memory_space<vmem>>, vector<1x1x14x16xf32>
    %362 = vector.shape_cast %361 : vector<1x1x14x16xf32> to vector<14x16xf32>
    %363 = arith.truncf %362 : vector<14x16xf32> to vector<14x16xbf16>
    %c1_333 = arith.constant 1 : index
    %c0_334 = arith.constant 0 : index
    %c0_335 = arith.constant 0 : index
    %364 = vector.load %arg2[%c1_333, %c0_334, %c0_335] : memref<4x16x4xbf16, #tpu.memory_space<vmem>>, vector<1x16x4xbf16>
    %365 = vector.shape_cast %364 : vector<1x16x4xbf16> to vector<16x4xbf16>
    %cst_336 = arith.constant dense<0.000000e+00> : vector<14x4xf32>
    %366 = tpu.matmul %363, %365, %cst_336 {dimension_numbers = #tpu.dot_dimension_numbers<[1], [0], [0], [1], [0, 0, 1, 1], [], []>} : vector<14x16xbf16>, vector<16x4xbf16>, vector<14x4xf32> -> vector<14x4xf32>
    %367 = arith.addf %360, %366 : vector<14x4xf32>
    %c0_337 = arith.constant 0 : index
    %c9 = arith.constant 9 : index
    %c0_338 = arith.constant 0 : index
    %c0_339 = arith.constant 0 : index
    %368 = vector.load %arg1[%c0_337, %c9, %c0_338, %c0_339] : memref<1x15x15x16xf32, #tpu.memory_space<vmem>>, vector<1x1x14x16xf32>
    %369 = vector.shape_cast %368 : vector<1x1x14x16xf32> to vector<14x16xf32>
    %370 = arith.truncf %369 : vector<14x16xf32> to vector<14x16xbf16>
    %c2_340 = arith.constant 2 : index
    %c0_341 = arith.constant 0 : index
    %c0_342 = arith.constant 0 : index
    %371 = vector.load %arg2[%c2_340, %c0_341, %c0_342] : memref<4x16x4xbf16, #tpu.memory_space<vmem>>, vector<1x16x4xbf16>
    %372 = vector.shape_cast %371 : vector<1x16x4xbf16> to vector<16x4xbf16>
    %cst_343 = arith.constant dense<0.000000e+00> : vector<14x4xf32>
    %373 = tpu.matmul %370, %372, %cst_343 {dimension_numbers = #tpu.dot_dimension_numbers<[1], [0], [0], [1], [0, 0, 1, 1], [], []>} : vector<14x16xbf16>, vector<16x4xbf16>, vector<14x4xf32> -> vector<14x4xf32>
    %374 = arith.addf %367, %373 : vector<14x4xf32>
    %c0_344 = arith.constant 0 : index
    %c9_345 = arith.constant 9 : index
    %c1_346 = arith.constant 1 : index
    %c0_347 = arith.constant 0 : index
    %375 = vector.load %arg1[%c0_344, %c9_345, %c1_346, %c0_347] : memref<1x15x15x16xf32, #tpu.memory_space<vmem>>, vector<1x1x14x16xf32>
    %376 = vector.shape_cast %375 : vector<1x1x14x16xf32> to vector<14x16xf32>
    %377 = arith.truncf %376 : vector<14x16xf32> to vector<14x16xbf16>
    %c3_348 = arith.constant 3 : index
    %c0_349 = arith.constant 0 : index
    %c0_350 = arith.constant 0 : index
    %378 = vector.load %arg2[%c3_348, %c0_349, %c0_350] : memref<4x16x4xbf16, #tpu.memory_space<vmem>>, vector<1x16x4xbf16>
    %379 = vector.shape_cast %378 : vector<1x16x4xbf16> to vector<16x4xbf16>
    %cst_351 = arith.constant dense<0.000000e+00> : vector<14x4xf32>
    %380 = tpu.matmul %377, %379, %cst_351 {dimension_numbers = #tpu.dot_dimension_numbers<[1], [0], [0], [1], [0, 0, 1, 1], [], []>} : vector<14x16xbf16>, vector<16x4xbf16>, vector<14x4xf32> -> vector<14x4xf32>
    %381 = arith.addf %374, %380 : vector<14x4xf32>
    %382 = vector.broadcast %0 : vector<1x4xf32> to vector<14x4xf32>
    %383 = arith.addf %381, %382 : vector<14x4xf32>
    %cst_352 = arith.constant 0.000000e+00 : f32
    %384 = vector.broadcast %cst_352 : f32 to vector<14x4xf32>
    %385 = arith.subf %384, %383 : vector<14x4xf32>
    %386 = math.exp %385 : vector<14x4xf32>
    %cst_353 = arith.constant 1.000000e+00 : f32
    %387 = vector.broadcast %cst_353 : f32 to vector<14x4xf32>
    %388 = arith.addf %387, %386 : vector<14x4xf32>
    %389 = tpu.reciprocal %388 {approx = true} : vector<14x4xf32> -> vector<14x4xf32>
    %cst_354 = arith.constant 0.000000e+00 : f32
    %cst_355 = arith.constant 1.000000e+00 : f32
    %390 = vector.broadcast %cst_354 : f32 to vector<14x4xf32>
    %391 = arith.maximumf %390, %389 : vector<14x4xf32>
    %392 = vector.broadcast %cst_355 : f32 to vector<14x4xf32>
    %393 = arith.minimumf %392, %391 : vector<14x4xf32>
    %c0_356 = arith.constant 0 : index
    %c8_357 = arith.constant 8 : index
    %c0_358 = arith.constant 0 : index
    %c0_359 = arith.constant 0 : index
    %394 = vector.load %arg4[%c0_356, %c8_357, %c0_358, %c0_359] : memref<1x14x14x4xf32, #tpu.memory_space<vmem>>, vector<1x1x14x4xf32>
    %395 = vector.shape_cast %394 : vector<1x1x14x4xf32> to vector<14x4xf32>
    %396 = vector.shape_cast %393 : vector<14x4xf32> to vector<1x1x14x4xf32>
    tpu.vector_store %arg4[%c0_356, %c8_357, %c0_358, %c0_359], %396 {strides = array<i32>} : memref<1x14x14x4xf32, #tpu.memory_space<vmem>>, vector<1x1x14x4xf32>,
    %cst_360 = arith.constant 0.000000e+00 : f32
    %397 = vector.broadcast %cst_360 : f32 to vector<14x4xf32>
    %c0_361 = arith.constant 0 : index
    %c9_362 = arith.constant 9 : index
    %c0_363 = arith.constant 0 : index
    %c0_364 = arith.constant 0 : index
    %398 = vector.load %arg1[%c0_361, %c9_362, %c0_363, %c0_364] : memref<1x15x15x16xf32, #tpu.memory_space<vmem>>, vector<1x1x14x16xf32>
    %399 = vector.shape_cast %398 : vector<1x1x14x16xf32> to vector<14x16xf32>
    %400 = arith.truncf %399 : vector<14x16xf32> to vector<14x16xbf16>
    %c0_365 = arith.constant 0 : index
    %c0_366 = arith.constant 0 : index
    %c0_367 = arith.constant 0 : index
    %401 = vector.load %arg2[%c0_365, %c0_366, %c0_367] : memref<4x16x4xbf16, #tpu.memory_space<vmem>>, vector<1x16x4xbf16>
    %402 = vector.shape_cast %401 : vector<1x16x4xbf16> to vector<16x4xbf16>
    %cst_368 = arith.constant dense<0.000000e+00> : vector<14x4xf32>
    %403 = tpu.matmul %400, %402, %cst_368 {dimension_numbers = #tpu.dot_dimension_numbers<[1], [0], [0], [1], [0, 0, 1, 1], [], []>} : vector<14x16xbf16>, vector<16x4xbf16>, vector<14x4xf32> -> vector<14x4xf32>
    %404 = arith.addf %397, %403 : vector<14x4xf32>
    %c0_369 = arith.constant 0 : index
    %c9_370 = arith.constant 9 : index
    %c1_371 = arith.constant 1 : index
    %c0_372 = arith.constant 0 : index
    %405 = vector.load %arg1[%c0_369, %c9_370, %c1_371, %c0_372] : memref<1x15x15x16xf32, #tpu.memory_space<vmem>>, vector<1x1x14x16xf32>
    %406 = vector.shape_cast %405 : vector<1x1x14x16xf32> to vector<14x16xf32>
    %407 = arith.truncf %406 : vector<14x16xf32> to vector<14x16xbf16>
    %c1_373 = arith.constant 1 : index
    %c0_374 = arith.constant 0 : index
    %c0_375 = arith.constant 0 : index
    %408 = vector.load %arg2[%c1_373, %c0_374, %c0_375] : memref<4x16x4xbf16, #tpu.memory_space<vmem>>, vector<1x16x4xbf16>
    %409 = vector.shape_cast %408 : vector<1x16x4xbf16> to vector<16x4xbf16>
    %cst_376 = arith.constant dense<0.000000e+00> : vector<14x4xf32>
    %410 = tpu.matmul %407, %409, %cst_376 {dimension_numbers = #tpu.dot_dimension_numbers<[1], [0], [0], [1], [0, 0, 1, 1], [], []>} : vector<14x16xbf16>, vector<16x4xbf16>, vector<14x4xf32> -> vector<14x4xf32>
    %411 = arith.addf %404, %410 : vector<14x4xf32>
    %c0_377 = arith.constant 0 : index
    %c10 = arith.constant 10 : index
    %c0_378 = arith.constant 0 : index
    %c0_379 = arith.constant 0 : index
    %412 = vector.load %arg1[%c0_377, %c10, %c0_378, %c0_379] : memref<1x15x15x16xf32, #tpu.memory_space<vmem>>, vector<1x1x14x16xf32>
    %413 = vector.shape_cast %412 : vector<1x1x14x16xf32> to vector<14x16xf32>
    %414 = arith.truncf %413 : vector<14x16xf32> to vector<14x16xbf16>
    %c2_380 = arith.constant 2 : index
    %c0_381 = arith.constant 0 : index
    %c0_382 = arith.constant 0 : index
    %415 = vector.load %arg2[%c2_380, %c0_381, %c0_382] : memref<4x16x4xbf16, #tpu.memory_space<vmem>>, vector<1x16x4xbf16>
    %416 = vector.shape_cast %415 : vector<1x16x4xbf16> to vector<16x4xbf16>
    %cst_383 = arith.constant dense<0.000000e+00> : vector<14x4xf32>
    %417 = tpu.matmul %414, %416, %cst_383 {dimension_numbers = #tpu.dot_dimension_numbers<[1], [0], [0], [1], [0, 0, 1, 1], [], []>} : vector<14x16xbf16>, vector<16x4xbf16>, vector<14x4xf32> -> vector<14x4xf32>
    %418 = arith.addf %411, %417 : vector<14x4xf32>
    %c0_384 = arith.constant 0 : index
    %c10_385 = arith.constant 10 : index
    %c1_386 = arith.constant 1 : index
    %c0_387 = arith.constant 0 : index
    %419 = vector.load %arg1[%c0_384, %c10_385, %c1_386, %c0_387] : memref<1x15x15x16xf32, #tpu.memory_space<vmem>>, vector<1x1x14x16xf32>
    %420 = vector.shape_cast %419 : vector<1x1x14x16xf32> to vector<14x16xf32>
    %421 = arith.truncf %420 : vector<14x16xf32> to vector<14x16xbf16>
    %c3_388 = arith.constant 3 : index
    %c0_389 = arith.constant 0 : index
    %c0_390 = arith.constant 0 : index
    %422 = vector.load %arg2[%c3_388, %c0_389, %c0_390] : memref<4x16x4xbf16, #tpu.memory_space<vmem>>, vector<1x16x4xbf16>
    %423 = vector.shape_cast %422 : vector<1x16x4xbf16> to vector<16x4xbf16>
    %cst_391 = arith.constant dense<0.000000e+00> : vector<14x4xf32>
    %424 = tpu.matmul %421, %423, %cst_391 {dimension_numbers = #tpu.dot_dimension_numbers<[1], [0], [0], [1], [0, 0, 1, 1], [], []>} : vector<14x16xbf16>, vector<16x4xbf16>, vector<14x4xf32> -> vector<14x4xf32>
    %425 = arith.addf %418, %424 : vector<14x4xf32>
    %426 = vector.broadcast %0 : vector<1x4xf32> to vector<14x4xf32>
    %427 = arith.addf %425, %426 : vector<14x4xf32>
    %cst_392 = arith.constant 0.000000e+00 : f32
    %428 = vector.broadcast %cst_392 : f32 to vector<14x4xf32>
    %429 = arith.subf %428, %427 : vector<14x4xf32>
    %430 = math.exp %429 : vector<14x4xf32>
    %cst_393 = arith.constant 1.000000e+00 : f32
    %431 = vector.broadcast %cst_393 : f32 to vector<14x4xf32>
    %432 = arith.addf %431, %430 : vector<14x4xf32>
    %433 = tpu.reciprocal %432 {approx = true} : vector<14x4xf32> -> vector<14x4xf32>
    %cst_394 = arith.constant 0.000000e+00 : f32
    %cst_395 = arith.constant 1.000000e+00 : f32
    %434 = vector.broadcast %cst_394 : f32 to vector<14x4xf32>
    %435 = arith.maximumf %434, %433 : vector<14x4xf32>
    %436 = vector.broadcast %cst_395 : f32 to vector<14x4xf32>
    %437 = arith.minimumf %436, %435 : vector<14x4xf32>
    %c0_396 = arith.constant 0 : index
    %c9_397 = arith.constant 9 : index
    %c0_398 = arith.constant 0 : index
    %c0_399 = arith.constant 0 : index
    %438 = vector.load %arg4[%c0_396, %c9_397, %c0_398, %c0_399] : memref<1x14x14x4xf32, #tpu.memory_space<vmem>>, vector<1x1x14x4xf32>
    %439 = vector.shape_cast %438 : vector<1x1x14x4xf32> to vector<14x4xf32>
    %440 = vector.shape_cast %437 : vector<14x4xf32> to vector<1x1x14x4xf32>
    tpu.vector_store %arg4[%c0_396, %c9_397, %c0_398, %c0_399], %440 {strides = array<i32>} : memref<1x14x14x4xf32, #tpu.memory_space<vmem>>, vector<1x1x14x4xf32>,
    %cst_400 = arith.constant 0.000000e+00 : f32
    %441 = vector.broadcast %cst_400 : f32 to vector<14x4xf32>
    %c0_401 = arith.constant 0 : index
    %c10_402 = arith.constant 10 : index
    %c0_403 = arith.constant 0 : index
    %c0_404 = arith.constant 0 : index
    %442 = vector.load %arg1[%c0_401, %c10_402, %c0_403, %c0_404] : memref<1x15x15x16xf32, #tpu.memory_space<vmem>>, vector<1x1x14x16xf32>
    %443 = vector.shape_cast %442 : vector<1x1x14x16xf32> to vector<14x16xf32>
    %444 = arith.truncf %443 : vector<14x16xf32> to vector<14x16xbf16>
    %c0_405 = arith.constant 0 : index
    %c0_406 = arith.constant 0 : index
    %c0_407 = arith.constant 0 : index
    %445 = vector.load %arg2[%c0_405, %c0_406, %c0_407] : memref<4x16x4xbf16, #tpu.memory_space<vmem>>, vector<1x16x4xbf16>
    %446 = vector.shape_cast %445 : vector<1x16x4xbf16> to vector<16x4xbf16>
    %cst_408 = arith.constant dense<0.000000e+00> : vector<14x4xf32>
    %447 = tpu.matmul %444, %446, %cst_408 {dimension_numbers = #tpu.dot_dimension_numbers<[1], [0], [0], [1], [0, 0, 1, 1], [], []>} : vector<14x16xbf16>, vector<16x4xbf16>, vector<14x4xf32> -> vector<14x4xf32>
    %448 = arith.addf %441, %447 : vector<14x4xf32>
    %c0_409 = arith.constant 0 : index
    %c10_410 = arith.constant 10 : index
    %c1_411 = arith.constant 1 : index
    %c0_412 = arith.constant 0 : index
    %449 = vector.load %arg1[%c0_409, %c10_410, %c1_411, %c0_412] : memref<1x15x15x16xf32, #tpu.memory_space<vmem>>, vector<1x1x14x16xf32>
    %450 = vector.shape_cast %449 : vector<1x1x14x16xf32> to vector<14x16xf32>
    %451 = arith.truncf %450 : vector<14x16xf32> to vector<14x16xbf16>
    %c1_413 = arith.constant 1 : index
    %c0_414 = arith.constant 0 : index
    %c0_415 = arith.constant 0 : index
    %452 = vector.load %arg2[%c1_413, %c0_414, %c0_415] : memref<4x16x4xbf16, #tpu.memory_space<vmem>>, vector<1x16x4xbf16>
    %453 = vector.shape_cast %452 : vector<1x16x4xbf16> to vector<16x4xbf16>
    %cst_416 = arith.constant dense<0.000000e+00> : vector<14x4xf32>
    %454 = tpu.matmul %451, %453, %cst_416 {dimension_numbers = #tpu.dot_dimension_numbers<[1], [0], [0], [1], [0, 0, 1, 1], [], []>} : vector<14x16xbf16>, vector<16x4xbf16>, vector<14x4xf32> -> vector<14x4xf32>
    %455 = arith.addf %448, %454 : vector<14x4xf32>
    %c0_417 = arith.constant 0 : index
    %c11 = arith.constant 11 : index
    %c0_418 = arith.constant 0 : index
    %c0_419 = arith.constant 0 : index
    %456 = vector.load %arg1[%c0_417, %c11, %c0_418, %c0_419] : memref<1x15x15x16xf32, #tpu.memory_space<vmem>>, vector<1x1x14x16xf32>
    %457 = vector.shape_cast %456 : vector<1x1x14x16xf32> to vector<14x16xf32>
    %458 = arith.truncf %457 : vector<14x16xf32> to vector<14x16xbf16>
    %c2_420 = arith.constant 2 : index
    %c0_421 = arith.constant 0 : index
    %c0_422 = arith.constant 0 : index
    %459 = vector.load %arg2[%c2_420, %c0_421, %c0_422] : memref<4x16x4xbf16, #tpu.memory_space<vmem>>, vector<1x16x4xbf16>
    %460 = vector.shape_cast %459 : vector<1x16x4xbf16> to vector<16x4xbf16>
    %cst_423 = arith.constant dense<0.000000e+00> : vector<14x4xf32>
    %461 = tpu.matmul %458, %460, %cst_423 {dimension_numbers = #tpu.dot_dimension_numbers<[1], [0], [0], [1], [0, 0, 1, 1], [], []>} : vector<14x16xbf16>, vector<16x4xbf16>, vector<14x4xf32> -> vector<14x4xf32>
    %462 = arith.addf %455, %461 : vector<14x4xf32>
    %c0_424 = arith.constant 0 : index
    %c11_425 = arith.constant 11 : index
    %c1_426 = arith.constant 1 : index
    %c0_427 = arith.constant 0 : index
    %463 = vector.load %arg1[%c0_424, %c11_425, %c1_426, %c0_427] : memref<1x15x15x16xf32, #tpu.memory_space<vmem>>, vector<1x1x14x16xf32>
    %464 = vector.shape_cast %463 : vector<1x1x14x16xf32> to vector<14x16xf32>
    %465 = arith.truncf %464 : vector<14x16xf32> to vector<14x16xbf16>
    %c3_428 = arith.constant 3 : index
    %c0_429 = arith.constant 0 : index
    %c0_430 = arith.constant 0 : index
    %466 = vector.load %arg2[%c3_428, %c0_429, %c0_430] : memref<4x16x4xbf16, #tpu.memory_space<vmem>>, vector<1x16x4xbf16>
    %467 = vector.shape_cast %466 : vector<1x16x4xbf16> to vector<16x4xbf16>
    %cst_431 = arith.constant dense<0.000000e+00> : vector<14x4xf32>
    %468 = tpu.matmul %465, %467, %cst_431 {dimension_numbers = #tpu.dot_dimension_numbers<[1], [0], [0], [1], [0, 0, 1, 1], [], []>} : vector<14x16xbf16>, vector<16x4xbf16>, vector<14x4xf32> -> vector<14x4xf32>
    %469 = arith.addf %462, %468 : vector<14x4xf32>
    %470 = vector.broadcast %0 : vector<1x4xf32> to vector<14x4xf32>
    %471 = arith.addf %469, %470 : vector<14x4xf32>
    %cst_432 = arith.constant 0.000000e+00 : f32
    %472 = vector.broadcast %cst_432 : f32 to vector<14x4xf32>
    %473 = arith.subf %472, %471 : vector<14x4xf32>
    %474 = math.exp %473 : vector<14x4xf32>
    %cst_433 = arith.constant 1.000000e+00 : f32
    %475 = vector.broadcast %cst_433 : f32 to vector<14x4xf32>
    %476 = arith.addf %475, %474 : vector<14x4xf32>
    %477 = tpu.reciprocal %476 {approx = true} : vector<14x4xf32> -> vector<14x4xf32>
    %cst_434 = arith.constant 0.000000e+00 : f32
    %cst_435 = arith.constant 1.000000e+00 : f32
    %478 = vector.broadcast %cst_434 : f32 to vector<14x4xf32>
    %479 = arith.maximumf %478, %477 : vector<14x4xf32>
    %480 = vector.broadcast %cst_435 : f32 to vector<14x4xf32>
    %481 = arith.minimumf %480, %479 : vector<14x4xf32>
    %c0_436 = arith.constant 0 : index
    %c10_437 = arith.constant 10 : index
    %c0_438 = arith.constant 0 : index
    %c0_439 = arith.constant 0 : index
    %482 = vector.load %arg4[%c0_436, %c10_437, %c0_438, %c0_439] : memref<1x14x14x4xf32, #tpu.memory_space<vmem>>, vector<1x1x14x4xf32>
    %483 = vector.shape_cast %482 : vector<1x1x14x4xf32> to vector<14x4xf32>
    %484 = vector.shape_cast %481 : vector<14x4xf32> to vector<1x1x14x4xf32>
    tpu.vector_store %arg4[%c0_436, %c10_437, %c0_438, %c0_439], %484 {strides = array<i32>} : memref<1x14x14x4xf32, #tpu.memory_space<vmem>>, vector<1x1x14x4xf32>,
    %cst_440 = arith.constant 0.000000e+00 : f32
    %485 = vector.broadcast %cst_440 : f32 to vector<14x4xf32>
    %c0_441 = arith.constant 0 : index
    %c11_442 = arith.constant 11 : index
    %c0_443 = arith.constant 0 : index
    %c0_444 = arith.constant 0 : index
    %486 = vector.load %arg1[%c0_441, %c11_442, %c0_443, %c0_444] : memref<1x15x15x16xf32, #tpu.memory_space<vmem>>, vector<1x1x14x16xf32>
    %487 = vector.shape_cast %486 : vector<1x1x14x16xf32> to vector<14x16xf32>
    %488 = arith.truncf %487 : vector<14x16xf32> to vector<14x16xbf16>
    %c0_445 = arith.constant 0 : index
    %c0_446 = arith.constant 0 : index
    %c0_447 = arith.constant 0 : index
    %489 = vector.load %arg2[%c0_445, %c0_446, %c0_447] : memref<4x16x4xbf16, #tpu.memory_space<vmem>>, vector<1x16x4xbf16>
    %490 = vector.shape_cast %489 : vector<1x16x4xbf16> to vector<16x4xbf16>
    %cst_448 = arith.constant dense<0.000000e+00> : vector<14x4xf32>
    %491 = tpu.matmul %488, %490, %cst_448 {dimension_numbers = #tpu.dot_dimension_numbers<[1], [0], [0], [1], [0, 0, 1, 1], [], []>} : vector<14x16xbf16>, vector<16x4xbf16>, vector<14x4xf32> -> vector<14x4xf32>
    %492 = arith.addf %485, %491 : vector<14x4xf32>
    %c0_449 = arith.constant 0 : index
    %c11_450 = arith.constant 11 : index
    %c1_451 = arith.constant 1 : index
    %c0_452 = arith.constant 0 : index
    %493 = vector.load %arg1[%c0_449, %c11_450, %c1_451, %c0_452] : memref<1x15x15x16xf32, #tpu.memory_space<vmem>>, vector<1x1x14x16xf32>
    %494 = vector.shape_cast %493 : vector<1x1x14x16xf32> to vector<14x16xf32>
    %495 = arith.truncf %494 : vector<14x16xf32> to vector<14x16xbf16>
    %c1_453 = arith.constant 1 : index
    %c0_454 = arith.constant 0 : index
    %c0_455 = arith.constant 0 : index
    %496 = vector.load %arg2[%c1_453, %c0_454, %c0_455] : memref<4x16x4xbf16, #tpu.memory_space<vmem>>, vector<1x16x4xbf16>
    %497 = vector.shape_cast %496 : vector<1x16x4xbf16> to vector<16x4xbf16>
    %cst_456 = arith.constant dense<0.000000e+00> : vector<14x4xf32>
    %498 = tpu.matmul %495, %497, %cst_456 {dimension_numbers = #tpu.dot_dimension_numbers<[1], [0], [0], [1], [0, 0, 1, 1], [], []>} : vector<14x16xbf16>, vector<16x4xbf16>, vector<14x4xf32> -> vector<14x4xf32>
    %499 = arith.addf %492, %498 : vector<14x4xf32>
    %c0_457 = arith.constant 0 : index
    %c12 = arith.constant 12 : index
    %c0_458 = arith.constant 0 : index
    %c0_459 = arith.constant 0 : index
    %500 = vector.load %arg1[%c0_457, %c12, %c0_458, %c0_459] : memref<1x15x15x16xf32, #tpu.memory_space<vmem>>, vector<1x1x14x16xf32>
    %501 = vector.shape_cast %500 : vector<1x1x14x16xf32> to vector<14x16xf32>
    %502 = arith.truncf %501 : vector<14x16xf32> to vector<14x16xbf16>
    %c2_460 = arith.constant 2 : index
    %c0_461 = arith.constant 0 : index
    %c0_462 = arith.constant 0 : index
    %503 = vector.load %arg2[%c2_460, %c0_461, %c0_462] : memref<4x16x4xbf16, #tpu.memory_space<vmem>>, vector<1x16x4xbf16>
    %504 = vector.shape_cast %503 : vector<1x16x4xbf16> to vector<16x4xbf16>
    %cst_463 = arith.constant dense<0.000000e+00> : vector<14x4xf32>
    %505 = tpu.matmul %502, %504, %cst_463 {dimension_numbers = #tpu.dot_dimension_numbers<[1], [0], [0], [1], [0, 0, 1, 1], [], []>} : vector<14x16xbf16>, vector<16x4xbf16>, vector<14x4xf32> -> vector<14x4xf32>
    %506 = arith.addf %499, %505 : vector<14x4xf32>
    %c0_464 = arith.constant 0 : index
    %c12_465 = arith.constant 12 : index
    %c1_466 = arith.constant 1 : index
    %c0_467 = arith.constant 0 : index
    %507 = vector.load %arg1[%c0_464, %c12_465, %c1_466, %c0_467] : memref<1x15x15x16xf32, #tpu.memory_space<vmem>>, vector<1x1x14x16xf32>
    %508 = vector.shape_cast %507 : vector<1x1x14x16xf32> to vector<14x16xf32>
    %509 = arith.truncf %508 : vector<14x16xf32> to vector<14x16xbf16>
    %c3_468 = arith.constant 3 : index
    %c0_469 = arith.constant 0 : index
    %c0_470 = arith.constant 0 : index
    %510 = vector.load %arg2[%c3_468, %c0_469, %c0_470] : memref<4x16x4xbf16, #tpu.memory_space<vmem>>, vector<1x16x4xbf16>
    %511 = vector.shape_cast %510 : vector<1x16x4xbf16> to vector<16x4xbf16>
    %cst_471 = arith.constant dense<0.000000e+00> : vector<14x4xf32>
    %512 = tpu.matmul %509, %511, %cst_471 {dimension_numbers = #tpu.dot_dimension_numbers<[1], [0], [0], [1], [0, 0, 1, 1], [], []>} : vector<14x16xbf16>, vector<16x4xbf16>, vector<14x4xf32> -> vector<14x4xf32>
    %513 = arith.addf %506, %512 : vector<14x4xf32>
    %514 = vector.broadcast %0 : vector<1x4xf32> to vector<14x4xf32>
    %515 = arith.addf %513, %514 : vector<14x4xf32>
    %cst_472 = arith.constant 0.000000e+00 : f32
    %516 = vector.broadcast %cst_472 : f32 to vector<14x4xf32>
    %517 = arith.subf %516, %515 : vector<14x4xf32>
    %518 = math.exp %517 : vector<14x4xf32>
    %cst_473 = arith.constant 1.000000e+00 : f32
    %519 = vector.broadcast %cst_473 : f32 to vector<14x4xf32>
    %520 = arith.addf %519, %518 : vector<14x4xf32>
    %521 = tpu.reciprocal %520 {approx = true} : vector<14x4xf32> -> vector<14x4xf32>
    %cst_474 = arith.constant 0.000000e+00 : f32
    %cst_475 = arith.constant 1.000000e+00 : f32
    %522 = vector.broadcast %cst_474 : f32 to vector<14x4xf32>
    %523 = arith.maximumf %522, %521 : vector<14x4xf32>
    %524 = vector.broadcast %cst_475 : f32 to vector<14x4xf32>
    %525 = arith.minimumf %524, %523 : vector<14x4xf32>
    %c0_476 = arith.constant 0 : index
    %c11_477 = arith.constant 11 : index
    %c0_478 = arith.constant 0 : index
    %c0_479 = arith.constant 0 : index
    %526 = vector.load %arg4[%c0_476, %c11_477, %c0_478, %c0_479] : memref<1x14x14x4xf32, #tpu.memory_space<vmem>>, vector<1x1x14x4xf32>
    %527 = vector.shape_cast %526 : vector<1x1x14x4xf32> to vector<14x4xf32>
    %528 = vector.shape_cast %525 : vector<14x4xf32> to vector<1x1x14x4xf32>
    tpu.vector_store %arg4[%c0_476, %c11_477, %c0_478, %c0_479], %528 {strides = array<i32>} : memref<1x14x14x4xf32, #tpu.memory_space<vmem>>, vector<1x1x14x4xf32>,
    %cst_480 = arith.constant 0.000000e+00 : f32
    %529 = vector.broadcast %cst_480 : f32 to vector<14x4xf32>
    %c0_481 = arith.constant 0 : index
    %c12_482 = arith.constant 12 : index
    %c0_483 = arith.constant 0 : index
    %c0_484 = arith.constant 0 : index
    %530 = vector.load %arg1[%c0_481, %c12_482, %c0_483, %c0_484] : memref<1x15x15x16xf32, #tpu.memory_space<vmem>>, vector<1x1x14x16xf32>
    %531 = vector.shape_cast %530 : vector<1x1x14x16xf32> to vector<14x16xf32>
    %532 = arith.truncf %531 : vector<14x16xf32> to vector<14x16xbf16>
    %c0_485 = arith.constant 0 : index
    %c0_486 = arith.constant 0 : index
    %c0_487 = arith.constant 0 : index
    %533 = vector.load %arg2[%c0_485, %c0_486, %c0_487] : memref<4x16x4xbf16, #tpu.memory_space<vmem>>, vector<1x16x4xbf16>
    %534 = vector.shape_cast %533 : vector<1x16x4xbf16> to vector<16x4xbf16>
    %cst_488 = arith.constant dense<0.000000e+00> : vector<14x4xf32>
    %535 = tpu.matmul %532, %534, %cst_488 {dimension_numbers = #tpu.dot_dimension_numbers<[1], [0], [0], [1], [0, 0, 1, 1], [], []>} : vector<14x16xbf16>, vector<16x4xbf16>, vector<14x4xf32> -> vector<14x4xf32>
    %536 = arith.addf %529, %535 : vector<14x4xf32>
    %c0_489 = arith.constant 0 : index
    %c12_490 = arith.constant 12 : index
    %c1_491 = arith.constant 1 : index
    %c0_492 = arith.constant 0 : index
    %537 = vector.load %arg1[%c0_489, %c12_490, %c1_491, %c0_492] : memref<1x15x15x16xf32, #tpu.memory_space<vmem>>, vector<1x1x14x16xf32>
    %538 = vector.shape_cast %537 : vector<1x1x14x16xf32> to vector<14x16xf32>
    %539 = arith.truncf %538 : vector<14x16xf32> to vector<14x16xbf16>
    %c1_493 = arith.constant 1 : index
    %c0_494 = arith.constant 0 : index
    %c0_495 = arith.constant 0 : index
    %540 = vector.load %arg2[%c1_493, %c0_494, %c0_495] : memref<4x16x4xbf16, #tpu.memory_space<vmem>>, vector<1x16x4xbf16>
    %541 = vector.shape_cast %540 : vector<1x16x4xbf16> to vector<16x4xbf16>
    %cst_496 = arith.constant dense<0.000000e+00> : vector<14x4xf32>
    %542 = tpu.matmul %539, %541, %cst_496 {dimension_numbers = #tpu.dot_dimension_numbers<[1], [0], [0], [1], [0, 0, 1, 1], [], []>} : vector<14x16xbf16>, vector<16x4xbf16>, vector<14x4xf32> -> vector<14x4xf32>
    %543 = arith.addf %536, %542 : vector<14x4xf32>
    %c0_497 = arith.constant 0 : index
    %c13 = arith.constant 13 : index
    %c0_498 = arith.constant 0 : index
    %c0_499 = arith.constant 0 : index
    %544 = vector.load %arg1[%c0_497, %c13, %c0_498, %c0_499] : memref<1x15x15x16xf32, #tpu.memory_space<vmem>>, vector<1x1x14x16xf32>
    %545 = vector.shape_cast %544 : vector<1x1x14x16xf32> to vector<14x16xf32>
    %546 = arith.truncf %545 : vector<14x16xf32> to vector<14x16xbf16>
    %c2_500 = arith.constant 2 : index
    %c0_501 = arith.constant 0 : index
    %c0_502 = arith.constant 0 : index
    %547 = vector.load %arg2[%c2_500, %c0_501, %c0_502] : memref<4x16x4xbf16, #tpu.memory_space<vmem>>, vector<1x16x4xbf16>
    %548 = vector.shape_cast %547 : vector<1x16x4xbf16> to vector<16x4xbf16>
    %cst_503 = arith.constant dense<0.000000e+00> : vector<14x4xf32>
    %549 = tpu.matmul %546, %548, %cst_503 {dimension_numbers = #tpu.dot_dimension_numbers<[1], [0], [0], [1], [0, 0, 1, 1], [], []>} : vector<14x16xbf16>, vector<16x4xbf16>, vector<14x4xf32> -> vector<14x4xf32>
    %550 = arith.addf %543, %549 : vector<14x4xf32>
    %c0_504 = arith.constant 0 : index
    %c13_505 = arith.constant 13 : index
    %c1_506 = arith.constant 1 : index
    %c0_507 = arith.constant 0 : index
    %551 = vector.load %arg1[%c0_504, %c13_505, %c1_506, %c0_507] : memref<1x15x15x16xf32, #tpu.memory_space<vmem>>, vector<1x1x14x16xf32>
    %552 = vector.shape_cast %551 : vector<1x1x14x16xf32> to vector<14x16xf32>
    %553 = arith.truncf %552 : vector<14x16xf32> to vector<14x16xbf16>
    %c3_508 = arith.constant 3 : index
    %c0_509 = arith.constant 0 : index
    %c0_510 = arith.constant 0 : index
    %554 = vector.load %arg2[%c3_508, %c0_509, %c0_510] : memref<4x16x4xbf16, #tpu.memory_space<vmem>>, vector<1x16x4xbf16>
    %555 = vector.shape_cast %554 : vector<1x16x4xbf16> to vector<16x4xbf16>
    %cst_511 = arith.constant dense<0.000000e+00> : vector<14x4xf32>
    %556 = tpu.matmul %553, %555, %cst_511 {dimension_numbers = #tpu.dot_dimension_numbers<[1], [0], [0], [1], [0, 0, 1, 1], [], []>} : vector<14x16xbf16>, vector<16x4xbf16>, vector<14x4xf32> -> vector<14x4xf32>
    %557 = arith.addf %550, %556 : vector<14x4xf32>
    %558 = vector.broadcast %0 : vector<1x4xf32> to vector<14x4xf32>
    %559 = arith.addf %557, %558 : vector<14x4xf32>
    %cst_512 = arith.constant 0.000000e+00 : f32
    %560 = vector.broadcast %cst_512 : f32 to vector<14x4xf32>
    %561 = arith.subf %560, %559 : vector<14x4xf32>
    %562 = math.exp %561 : vector<14x4xf32>
    %cst_513 = arith.constant 1.000000e+00 : f32
    %563 = vector.broadcast %cst_513 : f32 to vector<14x4xf32>
    %564 = arith.addf %563, %562 : vector<14x4xf32>
    %565 = tpu.reciprocal %564 {approx = true} : vector<14x4xf32> -> vector<14x4xf32>
    %cst_514 = arith.constant 0.000000e+00 : f32
    %cst_515 = arith.constant 1.000000e+00 : f32
    %566 = vector.broadcast %cst_514 : f32 to vector<14x4xf32>
    %567 = arith.maximumf %566, %565 : vector<14x4xf32>
    %568 = vector.broadcast %cst_515 : f32 to vector<14x4xf32>
    %569 = arith.minimumf %568, %567 : vector<14x4xf32>
    %c0_516 = arith.constant 0 : index
    %c12_517 = arith.constant 12 : index
    %c0_518 = arith.constant 0 : index
    %c0_519 = arith.constant 0 : index
    %570 = vector.load %arg4[%c0_516, %c12_517, %c0_518, %c0_519] : memref<1x14x14x4xf32, #tpu.memory_space<vmem>>, vector<1x1x14x4xf32>
    %571 = vector.shape_cast %570 : vector<1x1x14x4xf32> to vector<14x4xf32>
    %572 = vector.shape_cast %569 : vector<14x4xf32> to vector<1x1x14x4xf32>
    tpu.vector_store %arg4[%c0_516, %c12_517, %c0_518, %c0_519], %572 {strides = array<i32>} : memref<1x14x14x4xf32, #tpu.memory_space<vmem>>, vector<1x1x14x4xf32>,
    %cst_520 = arith.constant 0.000000e+00 : f32
    %573 = vector.broadcast %cst_520 : f32 to vector<14x4xf32>
    %c0_521 = arith.constant 0 : index
    %c13_522 = arith.constant 13 : index
    %c0_523 = arith.constant 0 : index
    %c0_524 = arith.constant 0 : index
    %574 = vector.load %arg1[%c0_521, %c13_522, %c0_523, %c0_524] : memref<1x15x15x16xf32, #tpu.memory_space<vmem>>, vector<1x1x14x16xf32>
    %575 = vector.shape_cast %574 : vector<1x1x14x16xf32> to vector<14x16xf32>
    %576 = arith.truncf %575 : vector<14x16xf32> to vector<14x16xbf16>
    %c0_525 = arith.constant 0 : index
    %c0_526 = arith.constant 0 : index
    %c0_527 = arith.constant 0 : index
    %577 = vector.load %arg2[%c0_525, %c0_526, %c0_527] : memref<4x16x4xbf16, #tpu.memory_space<vmem>>, vector<1x16x4xbf16>
    %578 = vector.shape_cast %577 : vector<1x16x4xbf16> to vector<16x4xbf16>
    %cst_528 = arith.constant dense<0.000000e+00> : vector<14x4xf32>
    %579 = tpu.matmul %576, %578, %cst_528 {dimension_numbers = #tpu.dot_dimension_numbers<[1], [0], [0], [1], [0, 0, 1, 1], [], []>} : vector<14x16xbf16>, vector<16x4xbf16>, vector<14x4xf32> -> vector<14x4xf32>
    %580 = arith.addf %573, %579 : vector<14x4xf32>
    %c0_529 = arith.constant 0 : index
    %c13_530 = arith.constant 13 : index
    %c1_531 = arith.constant 1 : index
    %c0_532 = arith.constant 0 : index
    %581 = vector.load %arg1[%c0_529, %c13_530, %c1_531, %c0_532] : memref<1x15x15x16xf32, #tpu.memory_space<vmem>>, vector<1x1x14x16xf32>
    %582 = vector.shape_cast %581 : vector<1x1x14x16xf32> to vector<14x16xf32>
    %583 = arith.truncf %582 : vector<14x16xf32> to vector<14x16xbf16>
    %c1_533 = arith.constant 1 : index
    %c0_534 = arith.constant 0 : index
    %c0_535 = arith.constant 0 : index
    %584 = vector.load %arg2[%c1_533, %c0_534, %c0_535] : memref<4x16x4xbf16, #tpu.memory_space<vmem>>, vector<1x16x4xbf16>
    %585 = vector.shape_cast %584 : vector<1x16x4xbf16> to vector<16x4xbf16>
    %cst_536 = arith.constant dense<0.000000e+00> : vector<14x4xf32>
    %586 = tpu.matmul %583, %585, %cst_536 {dimension_numbers = #tpu.dot_dimension_numbers<[1], [0], [0], [1], [0, 0, 1, 1], [], []>} : vector<14x16xbf16>, vector<16x4xbf16>, vector<14x4xf32> -> vector<14x4xf32>
    %587 = arith.addf %580, %586 : vector<14x4xf32>
    %c0_537 = arith.constant 0 : index
    %c14 = arith.constant 14 : index
    %c0_538 = arith.constant 0 : index
    %c0_539 = arith.constant 0 : index
    %588 = vector.load %arg1[%c0_537, %c14, %c0_538, %c0_539] : memref<1x15x15x16xf32, #tpu.memory_space<vmem>>, vector<1x1x14x16xf32>
    %589 = vector.shape_cast %588 : vector<1x1x14x16xf32> to vector<14x16xf32>
    %590 = arith.truncf %589 : vector<14x16xf32> to vector<14x16xbf16>
    %c2_540 = arith.constant 2 : index
    %c0_541 = arith.constant 0 : index
    %c0_542 = arith.constant 0 : index
    %591 = vector.load %arg2[%c2_540, %c0_541, %c0_542] : memref<4x16x4xbf16, #tpu.memory_space<vmem>>, vector<1x16x4xbf16>
    %592 = vector.shape_cast %591 : vector<1x16x4xbf16> to vector<16x4xbf16>
    %cst_543 = arith.constant dense<0.000000e+00> : vector<14x4xf32>
    %593 = tpu.matmul %590, %592, %cst_543 {dimension_numbers = #tpu.dot_dimension_numbers<[1], [0], [0], [1], [0, 0, 1, 1], [], []>} : vector<14x16xbf16>, vector<16x4xbf16>, vector<14x4xf32> -> vector<14x4xf32>
    %594 = arith.addf %587, %593 : vector<14x4xf32>
    %c0_544 = arith.constant 0 : index
    %c14_545 = arith.constant 14 : index
    %c1_546 = arith.constant 1 : index
    %c0_547 = arith.constant 0 : index
    %595 = vector.load %arg1[%c0_544, %c14_545, %c1_546, %c0_547] : memref<1x15x15x16xf32, #tpu.memory_space<vmem>>, vector<1x1x14x16xf32>
    %596 = vector.shape_cast %595 : vector<1x1x14x16xf32> to vector<14x16xf32>
    %597 = arith.truncf %596 : vector<14x16xf32> to vector<14x16xbf16>
    %c3_548 = arith.constant 3 : index
    %c0_549 = arith.constant 0 : index
    %c0_550 = arith.constant 0 : index
    %598 = vector.load %arg2[%c3_548, %c0_549, %c0_550] : memref<4x16x4xbf16, #tpu.memory_space<vmem>>, vector<1x16x4xbf16>
    %599 = vector.shape_cast %598 : vector<1x16x4xbf16> to vector<16x4xbf16>
    %cst_551 = arith.constant dense<0.000000e+00> : vector<14x4xf32>
    %600 = tpu.matmul %597, %599, %cst_551 {dimension_numbers = #tpu.dot_dimension_numbers<[1], [0], [0], [1], [0, 0, 1, 1], [], []>} : vector<14x16xbf16>, vector<16x4xbf16>, vector<14x4xf32> -> vector<14x4xf32>
    %601 = arith.addf %594, %600 : vector<14x4xf32>
    %602 = vector.broadcast %0 : vector<1x4xf32> to vector<14x4xf32>
    %603 = arith.addf %601, %602 : vector<14x4xf32>
    %cst_552 = arith.constant 0.000000e+00 : f32
    %604 = vector.broadcast %cst_552 : f32 to vector<14x4xf32>
    %605 = arith.subf %604, %603 : vector<14x4xf32>
    %606 = math.exp %605 : vector<14x4xf32>
    %cst_553 = arith.constant 1.000000e+00 : f32
    %607 = vector.broadcast %cst_553 : f32 to vector<14x4xf32>
    %608 = arith.addf %607, %606 : vector<14x4xf32>
    %609 = tpu.reciprocal %608 {approx = true} : vector<14x4xf32> -> vector<14x4xf32>
    %cst_554 = arith.constant 0.000000e+00 : f32
    %cst_555 = arith.constant 1.000000e+00 : f32
    %610 = vector.broadcast %cst_554 : f32 to vector<14x4xf32>
    %611 = arith.maximumf %610, %609 : vector<14x4xf32>
    %612 = vector.broadcast %cst_555 : f32 to vector<14x4xf32>
    %613 = arith.minimumf %612, %611 : vector<14x4xf32>
    %c0_556 = arith.constant 0 : index
    %c13_557 = arith.constant 13 : index
    %c0_558 = arith.constant 0 : index
    %c0_559 = arith.constant 0 : index
    %614 = vector.load %arg4[%c0_556, %c13_557, %c0_558, %c0_559] : memref<1x14x14x4xf32, #tpu.memory_space<vmem>>, vector<1x1x14x4xf32>
    %615 = vector.shape_cast %614 : vector<1x1x14x4xf32> to vector<14x4xf32>
    %616 = vector.shape_cast %613 : vector<14x4xf32> to vector<1x1x14x4xf32>
    tpu.vector_store %arg4[%c0_556, %c13_557, %c0_558, %c0_559], %616 {strides = array<i32>} : memref<1x14x14x4xf32, #tpu.memory_space<vmem>>, vector<1x1x14x4xf32>,
    return
  }
  func.func @transform_0(%arg0: i32) -> (i32, i32, i32, i32) {
    %c0_i32 = arith.constant 0 : i32
    %c0_i32_0 = arith.constant 0 : i32
    %c0_i32_1 = arith.constant 0 : i32
    %c0_i32_2 = arith.constant 0 : i32
    return %arg0, %c0_i32, %c0_i32_0, %c0_i32_1 : i32, i32, i32, i32
  }
  func.func @transform_1(%arg0: i32) -> (i32, i32, i32) {
    %c0_i32 = arith.constant 0 : i32
    %c0_i32_0 = arith.constant 0 : i32
    %c0_i32_1 = arith.constant 0 : i32
    %c0_i32_2 = arith.constant 0 : i32
    return %c0_i32, %c0_i32_0, %c0_i32_1 : i32, i32, i32
  }
  func.func @transform_2(%arg0: i32) -> (i32, i32) {
    %c0_i32 = arith.constant 0 : i32
    %c0_i32_0 = arith.constant 0 : i32
    %c0_i32_1 = arith.constant 0 : i32
    return %c0_i32, %c0_i32_0 : i32, i32
  }
  func.func @transform_3(%arg0: i32) -> (i32, i32, i32, i32) {
    %c0_i32 = arith.constant 0 : i32
    %c0_i32_0 = arith.constant 0 : i32
    %c0_i32_1 = arith.constant 0 : i32
    %c0_i32_2 = arith.constant 0 : i32
    return %arg0, %c0_i32, %c0_i32_0, %c0_i32_1 : i32, i32, i32, i32
  }
}

</mosaic_0001>

<bundles_post_ra>
// kernel: autoencoder_forward.6
= control target key start
LH: loop header
LB: loop body
LE: loop exit
PB: predicated region body
PF: predicated region fallthrough
CT: control target
= control target key end

     0   :  { %s2521_s12 = smov 0   ;;  %s2964_s0 = inlined_call_operand.vmem [shape: f32[2,8,8,64], index: 0, kind: input, shape index: {}]   ;;  %s2965_s1 = inlined_call_operand.vmem [shape: bf16[4,64,32], index: 1, kind: input, shape index: {}]   ;;  %s2966_s2 = inlined_call_operand.vmem [shape: f32[1,32], index: 2, kind: input, shape index: {}]   ;;  %s2967_s3 = inlined_call_operand.vmem [shape: f32[2,7,7,32], index: 3, kind: output, shape index: {}]  }
   0x1 LB: > { %s1684_s13 = sadd.s32 4294967295, %s2499_s12   ;;  %p1688_p0 = scmp.ge.s32.totalorder %s2499_s12, 1  ;;  %s2499_s12 = sphi %s2521_s12, %s13_s12  }
   0x2   : > { %p137_p1 = scmp.lt.s32.totalorder %s2499_s12, 3 }
   0x4   : > { %p138_p2 = pnand %p1688_p0, %p137_p1 }
   0x5   : > { %p161_p3 = scmp.lt.s32.totalorder (!%p138_p2), %s1684_s13, 1 }
   0x6   : > { %141 = sbr.rel (%p138_p2) target bundleno = 266 (0x10a), region = 32 }
   0xb   : > { %v2378_v0 = vld [vmem:[%s2965_s1 + $0x38] sm:$0xff]  ;;  %v2377_v4 = vld [vmem:[%s2965_s1 + $0x30] sm:$0xff]  ;;  %s2969_s13 = smov (!%p161_p3, %s1684_s13), 1  ;;  %v2376_v8 = vld [vmem:[%s2965_s1 + $0x28] sm:$0xff]  ;;  %vm218_vm0 = vcmask 523264   ;;  %vm385_vm1 = vcmask 260096  }
   0xc   : > { %v2374_v1 = vld [vmem:[%s2965_s1 + $0x18] sm:$0xff]  ;;  %226 = vmatpush.bf16.msra.mxu0 %v2378_v0  ;;  %v2373_v5 = vld [vmem:[%s2965_s1 + $0x10] sm:$0xff]  ;;  %s2370_s30 = sshll.u32 %s2969_s13, 6  ;;  %v2372_v9 = vld [vmem:[%s2965_s1 + $0x8] sm:$0xff]  ;;  %s2483_s26 = smul.u32 56, %s2969_s13 }
   0xd   : > { %v2382_v2 = vld [vmem:[%s2965_s1 + $0x58] sm:$0xff]  ;;  %266 = vmatpush.bf16.msra.mxu1 %v2374_v1  ;;  %v2381_v6 = vld [vmem:[%s2965_s1 + $0x50] sm:$0xff]  ;;  %v2380_v10 = vld [vmem:[%s2965_s1 + $0x48] sm:$0xff]  ;;  %s2571_s16 = scalar_lea.vmem %s2964_s0, %s2370_s30 }
   0xe   : > { %v2386_v3 = vld [vmem:[%s2965_s1 + $0x78] sm:$0xff]  ;;  %318 = vmatpush.bf16.msra.mxu2 %v2382_v2  ;;  %v2385_v7 = vld [vmem:[%s2965_s1 + $0x70] sm:$0xff]  ;;  %v2384_v11 = vld [vmem:[%s2965_s1 + $0x68] sm:$0xff]  ;;  %s2939_s29 = scalar_lea.vmem %s2967_s3, %s2483_s26 }
   0xf   : > { %370 = vmatpush.bf16.msra.mxu3 %v2386_v3  ;;  %v2375_v12 = vld [vmem:[%s2965_s1 + $0x20] sm:$0xff]  ;;  %v1734_v18 = vld [vmem:[%s2571_s16 + $0x8] sm:$0x7f]  ;;  %v2398_v20 = vld [vmem:[%s2965_s1 + $0x58] sm:$0xff] }
  0x10   : > { %227 = vmatpush.bf16.msra.mxu0 %v2377_v4  ;;  %v2371_v13 = vld [vmem:[%s2965_s1] sm:$0xff]  ;;  %v1760_v19 = vld [vmem:[%s2571_s16 + $0x9] sm:$0x7f]  ;;  %v2394_v21 = vld [vmem:[%s2965_s1 + $0x38] sm:$0xff]  ;;  %v277_v24 = vpack.c.bf16 %v1734_v18, %v1734_v18 }
  0x11   : > { %267 = vmatpush.bf16.msra.mxu1 %v2373_v5  ;;  %v2379_v14 = vld [vmem:[%s2965_s1 + $0x40] sm:$0xff]  ;;  %v329_v25 = vpack.c.bf16 %v1760_v19, %v1760_v19  ;;  %v2390_v26 = vld [vmem:[%s2965_s1 + $0x18] sm:$0xff]  ;;  %v2397_v28 = vld [vmem:[%s2965_s1 + $0x50] sm:$0xff] }
  0x12   : > { %319 = vmatpush.bf16.msra.mxu2 %v2381_v6  ;;  %v183_v15 = vld [vmem:[%s2571_s16 + $0x1] sm:$0x7f]  ;;  %v2402_v27 = vld [vmem:[%s2965_s1 + $0x78] sm:$0xff]  ;;  %v2393_v29 = vld [vmem:[%s2965_s1 + $0x30] sm:$0xff] }
  0x13   : > { %371 = vmatpush.bf16.msra.mxu3 %v2385_v7  ;;  %v173_v16 = vld [vmem:[%s2571_s16] sm:$0x7f]  ;;  %v184_v22 = vpack.c.bf16 %v183_v15, %v183_v15  ;;  %v2389_v30 = vld [vmem:[%s2965_s1 + $0x10] sm:$0xff]  ;;  %v2396_v32 = vld [vmem:[%s2965_s1 + $0x48] sm:$0xff] }
  0x14   : > { %228 = vmatpush.bf16.msra.mxu0 %v2376_v8  ;;  %v2383_v17 = vld [vmem:[%s2965_s1 + $0x60] sm:$0xff]  ;;  %v174_v23 = vpack.c.bf16 %v173_v16, %v173_v16  ;;  %v2401_v31 = vld [vmem:[%s2965_s1 + $0x70] sm:$0xff]  ;;  %v2392_v33 = vld [vmem:[%s2965_s1 + $0x28] sm:$0xff] }
  0x15   : > { %268 = vmatpush.bf16.msra.mxu1 %v2372_v9  ;;  %v2388_v34 = vld [vmem:[%s2965_s1 + $0x8] sm:$0xff]  ;;  %v2395_v36 = vld [vmem:[%s2965_s1 + $0x40] sm:$0xff]  ;;  %v2414_v38 = vld [vmem:[%s2965_s1 + $0x58] sm:$0xff] }
  0x16   : > { %320 = vmatpush.bf16.msra.mxu2 %v2380_v10  ;;  %v2400_v35 = vld [vmem:[%s2965_s1 + $0x68] sm:$0xff]  ;;  %v2391_v37 = vld [vmem:[%s2965_s1 + $0x20] sm:$0xff]  ;;  %v2410_v39 = vld [vmem:[%s2965_s1 + $0x38] sm:$0xff] }
  0x17   : > { %372 = vmatpush.bf16.msra.mxu3 %v2384_v11  ;;  %v2387_v40 = vld [vmem:[%s2965_s1] sm:$0xff]  ;;  %v1787_v41 = vld [vmem:[%s2571_s16 + $0x9] sm:$0x7f]  ;;  %v1830_v44 = vld [vmem:[%s2571_s16 + $0x10] sm:$0x7f] }
  0x18   : > { %229 = vmatpush.bf16.msra.mxu0 %v2375_v12  ;;  %v2399_v42 = vld [vmem:[%s2965_s1 + $0x60] sm:$0xff]  ;;  %v1786_v43 = vld [vmem:[%s2571_s16 + $0x8] sm:$0x7f]  ;;  %v1856_v45 = vld [vmem:[%s2571_s16 + $0x11] sm:$0x7f]  ;;  %v398_v48 = vpack.c.bf16 %v1787_v41, %v1787_v41  ;;  %v489_v51 = vpack.c.bf16 %v1830_v44, %v1830_v44 }
  0x19   : > { %269 = vmatpush.bf16.msra.mxu1 %v2371_v13  ;;  %v2406_v46 = vld [vmem:[%s2965_s1 + $0x18] sm:$0xff]  ;;  %v2413_v49 = vld [vmem:[%s2965_s1 + $0x50] sm:$0xff]  ;;  %v388_v50 = vpack.c.bf16 %v1786_v43, %v1786_v43  ;;  %v540_v52 = vpack.c.bf16 %v1856_v45, %v1856_v45  ;;  %v2412_v56 = vld [vmem:[%s2965_s1 + $0x48] sm:$0xff] }
  0x1a   : > { %321 = vmatpush.bf16.msra.mxu2 %v2379_v14  ;;  %v2418_v47 = vld [vmem:[%s2965_s1 + $0x78] sm:$0xff]  ;;  %v2409_v53 = vld [vmem:[%s2965_s1 + $0x30] sm:$0xff]  ;;  %v2408_v57 = vld [vmem:[%s2965_s1 + $0x28] sm:$0xff] }
  0x1b   : > { %373 = vmatpush.bf16.msra.mxu3 %v2383_v17  ;;  %1716 = vmatmul.msk.bf16.vlgmr.msra.gmra.mxu0 %vm218_vm0, %v184_v22  ;;  %v2405_v54 = vld [vmem:[%s2965_s1 + $0x10] sm:$0xff]  ;;  %v2404_v58 = vld [vmem:[%s2965_s1 + $0x8] sm:$0xff]  ;;  %v2411_v60 = vld [vmem:[%s2965_s1 + $0x40] sm:$0xff] }
  0x1c   : > { %438 = vmatpush.bf16.msrb.mxu0 %v2394_v21  ;;  %1733 = vmatmul.msk.bf16.vlgmr.msra.gmra.mxu1 %vm218_vm0, %v174_v23  ;;  %v2417_v55 = vld [vmem:[%s2965_s1 + $0x70] sm:$0xff]  ;;  %v2416_v59 = vld [vmem:[%s2965_s1 + $0x68] sm:$0xff]  ;;  %v2430_v61 = vld [vmem:[%s2965_s1 + $0x58] sm:$0xff] }
  0x1d   : > { %1759 = vmatmul.msk.bf16.vlgmr.msra.gmra.mxu2 %vm218_vm0, %v277_v24  ;;  %478 = vmatpush.bf16.msrb.mxu1 %v2390_v26  ;;  %v2407_v62 = vld [vmem:[%s2965_s1 + $0x20] sm:$0xff]  ;;  %v2426_v1 = vld [vmem:[%s2965_s1 + $0x38] sm:$0xff]  ;;  %v1884_v3 = vld [vmem:[%s2571_s16 + $0x11] sm:$0x7f] }
  0x1e   : > { %529 = vmatpush.bf16.msrb.mxu2 %v2398_v20  ;;  %1785 = vmatmul.msk.bf16.vlgmr.msra.gmra.mxu3 %vm218_vm0, %v329_v25  ;;  %v2403_v63 = vld [vmem:[%s2965_s1] sm:$0xff]  ;;  %v2422_v2 = vld [vmem:[%s2965_s1 + $0x18] sm:$0xff]  ;;  %v2429_v5 = vld [vmem:[%s2965_s1 + $0x50] sm:$0xff]  ;;  %v605_v9 = vpack.c.bf16 %v1884_v3, %v1884_v3 }
  0x1f   : > { %580 = vmatpush.bf16.msrb.mxu3 %v2402_v27  ;;  %v2415_v0 = vld [vmem:[%s2965_s1 + $0x60] sm:$0xff]  ;;  %v2434_v4 = vld [vmem:[%s2965_s1 + $0x78] sm:$0xff]  ;;  %v1883_v6 = vld [vmem:[%s2571_s16 + $0x10] sm:$0x7f] }
  0x20   : > { %439 = vmatpush.bf16.msrb.mxu0 %v2393_v29  ;;  %v1927_v7 = vld [vmem:[%s2571_s16 + $0x18] sm:$0x7f]  ;;  %v2421_v10 = vld [vmem:[%s2965_s1 + $0x10] sm:$0xff]  ;;  %v595_v11 = vpack.c.bf16 %v1883_v6, %v1883_v6  ;;  %v2428_v16 = vld [vmem:[%s2965_s1 + $0x48] sm:$0xff] }
  0x21   : > { %479 = vmatpush.bf16.msrb.mxu1 %v2389_v30  ;;  %v1953_v8 = vld [vmem:[%s2571_s16 + $0x19] sm:$0x7f]  ;;  %v696_v12 = vpack.c.bf16 %v1927_v7, %v1927_v7  ;;  %v2425_v14 = vld [vmem:[%s2965_s1 + $0x30] sm:$0xff]  ;;  %v2420_v17 = vld [vmem:[%s2965_s1 + $0x8] sm:$0xff] }
  0x22   : > { %530 = vmatpush.bf16.msrb.mxu2 %v2397_v28  ;;  %v747_v13 = vpack.c.bf16 %v1953_v8, %v1953_v8  ;;  %v2433_v15 = vld [vmem:[%s2965_s1 + $0x70] sm:$0xff]  ;;  %v2424_v18 = vld [vmem:[%s2965_s1 + $0x28] sm:$0xff]  ;;  %v2427_v20 = vld [vmem:[%s2965_s1 + $0x40] sm:$0xff] }
  0x23   : > { %581 = vmatpush.bf16.msrb.mxu3 %v2401_v31  ;;  %v2432_v19 = vld [vmem:[%s2965_s1 + $0x68] sm:$0xff]  ;;  %v2419_v21 = vld [vmem:[%s2965_s1] sm:$0xff]  ;;  %v2446_v22 = vld [vmem:[%s2965_s1 + $0x58] sm:$0xff] }
  0x24   : > { %440 = vmatpush.bf16.msrb.mxu0 %v2392_v33  ;;  %v2438_v23 = vld [vmem:[%s2965_s1 + $0x18] sm:$0xff]  ;;  %v2423_v24 = vld [vmem:[%s2965_s1 + $0x20] sm:$0xff]  ;;  %v2445_v28 = vld [vmem:[%s2965_s1 + $0x50] sm:$0xff] }
  0x25   : > { %480 = vmatpush.bf16.msrb.mxu1 %v2388_v34  ;;  %v2431_v25 = vld [vmem:[%s2965_s1 + $0x60] sm:$0xff]  ;;  %v2442_v26 = vld [vmem:[%s2965_s1 + $0x38] sm:$0xff]  ;;  %v2437_v30 = vld [vmem:[%s2965_s1 + $0x10] sm:$0xff] }
  0x26   : > { %531 = vmatpush.bf16.msrb.mxu2 %v2396_v32  ;;  %v2450_v27 = vld [vmem:[%s2965_s1 + $0x78] sm:$0xff]  ;;  %v2024_v32 = vld [vmem:[%s2571_s16 + $0x20] sm:$0x7f]  ;;  %v2441_v34 = vld [vmem:[%s2965_s1 + $0x30] sm:$0xff] }
  0x27   : > { %582 = vmatpush.bf16.msrb.mxu3 %v2400_v35  ;;  %v1981_v29 = vld [vmem:[%s2571_s16 + $0x19] sm:$0x7f]  ;;  %v2050_v33 = vld [vmem:[%s2571_s16 + $0x21] sm:$0x7f]  ;;  %v2440_v41 = vld [vmem:[%s2965_s1 + $0x28] sm:$0xff] }
  0x28   : > { %441 = vmatpush.bf16.msrb.mxu0 %v2391_v37  ;;  %v1980_v31 = vld [vmem:[%s2571_s16 + $0x18] sm:$0x7f]  ;;  %v812_v35 = vpack.c.bf16 %v1981_v29, %v1981_v29  ;;  %v2448_v43 = vld [vmem:[%s2965_s1 + $0x68] sm:$0xff]  ;;  %v2443_v44 = vld [vmem:[%s2965_s1 + $0x40] sm:$0xff] }
  0x29   : > { %481 = vmatpush.bf16.msrb.mxu1 %v2387_v40  ;;  %v802_v37 = vpack.c.bf16 %v1980_v31, %v1980_v31  ;;  %v2444_v40 = vld [vmem:[%s2965_s1 + $0x48] sm:$0xff]  ;;  %v2439_v45 = vld [vmem:[%s2965_s1 + $0x20] sm:$0xff] }
  0x2a   : > { %532 = vmatpush.bf16.msrb.mxu2 %v2395_v36  ;;  %v2449_v36 = vld [vmem:[%s2965_s1 + $0x70] sm:$0xff]  ;;  %v2464_v3 = vld [vmem:[%s2965_s1 + $0x68] sm:$0xff]  ;;  %v2455_v6 = vld [vmem:[%s2965_s1 + $0x20] sm:$0xff] }
  0x2b   : > { %583 = vmatpush.bf16.msrb.mxu3 %v2399_v42  ;;  %1812 = vmatmul.msk.bf16.vlgmr.msrb.gmra.mxu0 %vm218_vm0, %v398_v48  ;;  %v2436_v42 = vld [vmem:[%s2965_s1 + $0x8] sm:$0xff]  ;;  %v2462_v48 = vld [vmem:[%s2965_s1 + $0x58] sm:$0xff]  ;;  %v2451_v7 = vld [vmem:[%s2965_s1] sm:$0xff] }
  0x2c   : > { %645 = vmatpush.bf16.msra.mxu0 %v2410_v39  ;;  %1829 = vmatmul.msk.bf16.vlgmr.msrb.gmra.mxu1 %vm218_vm0, %v388_v50  ;;  %v954_v39 = vpack.c.bf16 %v2050_v33, %v2050_v33  ;;  %v2454_v50 = vld [vmem:[%s2965_s1 + $0x18] sm:$0xff]  ;;  %v2463_v8 = vld [vmem:[%s2965_s1 + $0x60] sm:$0xff]  ;;  %v2271_v33 = vld [vmem:[%s2571_s16 + $0x30] sm:$0x7f] }
  0x2d   : > { %685 = vmatpush.bf16.msra.mxu1 %v2406_v46  ;;  %1855 = vmatmul.msk.bf16.vlgmr.msrb.gmra.mxu2 %vm218_vm0, %v489_v51  ;;  %v2435_v46 = vld [vmem:[%s2965_s1] sm:$0xff]  ;;  %v2466_v51 = vld [vmem:[%s2965_s1 + $0x78] sm:$0xff] }
  0x2e   : > { %736 = vmatpush.bf16.msra.mxu2 %v2414_v38  ;;  %1881 = vmatmul.msk.bf16.vlgmr.msrb.gmra.mxu3 %vm218_vm0, %v540_v52  ;;  %v903_v38 = vpack.c.bf16 %v2024_v32, %v2024_v32  ;;  %v2461_v52 = vld [vmem:[%s2965_s1 + $0x50] sm:$0xff]  ;;  %v2467_v29 = vld [vmem:[%s2965_s1] sm:$0xff] }
  0x2f   : > { %787 = vmatpush.bf16.msra.mxu3 %v2418_v47  ;;  %v2447_v47 = vld [vmem:[%s2965_s1 + $0x60] sm:$0xff]  ;;  %v2272_v32 = vld [vmem:[%s2571_s16 + $0x31] sm:$0x7f] }
  0x30   : > { %646 = vmatpush.bf16.msra.mxu0 %v2409_v53  ;;  %v2078_v53 = vld [vmem:[%s2571_s16 + $0x21] sm:$0x7f] }
  0x31   : > { %686 = vmatpush.bf16.msra.mxu1 %v2405_v54  ;;  %v2457_v54 = vld [vmem:[%s2965_s1 + $0x30] sm:$0xff]  ;;  %v2479_v31 = vld [vmem:[%s2965_s1 + $0x60] sm:$0xff] }
  0x32   : > { %737 = vmatpush.bf16.msra.mxu2 %v2413_v49  ;;  %v2458_v49 = vld [vmem:[%s2965_s1 + $0x38] sm:$0xff] }
  0x33   : > { %788 = vmatpush.bf16.msra.mxu3 %v2417_v55  ;;  %v2453_v55 = vld [vmem:[%s2965_s1 + $0x10] sm:$0xff] }
  0x34   : > { %647 = vmatpush.bf16.msra.mxu0 %v2408_v57  ;;  %v2121_v57 = vld [vmem:[%s2571_s16 + $0x28] sm:$0x7f] }
  0x35   : > { %687 = vmatpush.bf16.msra.mxu1 %v2404_v58  ;;  %v2465_v58 = vld [vmem:[%s2965_s1 + $0x70] sm:$0xff] }
  0x36   : > { %738 = vmatpush.bf16.msra.mxu2 %v2412_v56  ;;  %v2077_v56 = vld [vmem:[%s2571_s16 + $0x20] sm:$0x7f] }
  0x37   : > { %789 = vmatpush.bf16.msra.mxu3 %v2416_v59  ;;  %v2147_v59 = vld [vmem:[%s2571_s16 + $0x29] sm:$0x7f] }
  0x38   : > { %648 = vmatpush.bf16.msra.mxu0 %v2407_v62  ;;  %v1009_v62 = vpack.c.bf16 %v2077_v56, %v2077_v56 }
  0x39   : > { %688 = vmatpush.bf16.msra.mxu1 %v2403_v63  ;;  %v1110_v63 = vpack.c.bf16 %v2121_v57, %v2121_v57 }
  0x3a   : > { %739 = vmatpush.bf16.msra.mxu2 %v2411_v60  ;;  %v1019_v60 = vpack.c.bf16 %v2078_v53, %v2078_v53 }
  0x3b   : > { %790 = vmatpush.bf16.msra.mxu3 %v2415_v0  ;;  %1909 = vmatmul.msk.bf16.vlgmr.msra.gmra.mxu0 %vm218_vm0, %v605_v9  ;;  %v1161_v0 = vpack.c.bf16 %v2147_v59, %v2147_v59  ;;  %v2474_v9 = vld [vmem:[%s2965_s1 + $0x38] sm:$0xff] }
  0x3c   : > { %852 = vmatpush.bf16.msrb.mxu0 %v2426_v1  ;;  %1926 = vmatmul.msk.bf16.vlgmr.msra.gmra.mxu1 %vm218_vm0, %v595_v11  ;;  %v2456_v1 = vld [vmem:[%s2965_s1 + $0x28] sm:$0xff]  ;;  %v2482_v11 = vld [vmem:[%s2965_s1 + $0x78] sm:$0xff] }
  0x3d   : > { %892 = vmatpush.bf16.msrb.mxu1 %v2422_v2  ;;  %1952 = vmatmul.msk.bf16.vlgmr.msra.gmra.mxu2 %vm218_vm0, %v696_v12  ;;  %v2452_v2 = vld [vmem:[%s2965_s1 + $0x8] sm:$0xff]  ;;  %v2477_v12 = vld [vmem:[%s2965_s1 + $0x50] sm:$0xff] }
  0x3e   : > { %943 = vmatpush.bf16.msrb.mxu2 %v2430_v61  ;;  %1978 = vmatmul.msk.bf16.vlgmr.msra.gmra.mxu3 %vm218_vm0, %v747_v13  ;;  %v2460_v61 = vld [vmem:[%s2965_s1 + $0x48] sm:$0xff]  ;;  %v2473_v13 = vld [vmem:[%s2965_s1 + $0x30] sm:$0xff] }
  0x3f   : > { %994 = vmatpush.bf16.msrb.mxu3 %v2434_v4  ;;  %v2459_v4 = vld [vmem:[%s2965_s1 + $0x40] sm:$0xff] }
  0x40   : > { %853 = vmatpush.bf16.msrb.mxu0 %v2425_v14  ;;  %v2469_v14 = vld [vmem:[%s2965_s1 + $0x10] sm:$0xff] }
  0x41   : > { %893 = vmatpush.bf16.msrb.mxu1 %v2421_v10  ;;  %v2470_v10 = vld [vmem:[%s2965_s1 + $0x18] sm:$0xff] }
  0x42   : > { %944 = vmatpush.bf16.msrb.mxu2 %v2429_v5  ;;  %v2478_v5 = vld [vmem:[%s2965_s1 + $0x58] sm:$0xff] }
  0x43   : > { %995 = vmatpush.bf16.msrb.mxu3 %v2433_v15  ;;  %v2175_v15 = vld [vmem:[%s2571_s16 + $0x29] sm:$0x7f] }
  0x44   : > { %854 = vmatpush.bf16.msrb.mxu0 %v2424_v18  ;;  %v2174_v18 = vld [vmem:[%s2571_s16 + $0x28] sm:$0x7f] }
  0x45   : > { %894 = vmatpush.bf16.msrb.mxu1 %v2420_v17  ;;  %v2476_v17 = vld [vmem:[%s2965_s1 + $0x48] sm:$0xff] }
  0x46   : > { %945 = vmatpush.bf16.msrb.mxu2 %v2428_v16  ;;  %v2481_v16 = vld [vmem:[%s2965_s1 + $0x70] sm:$0xff] }
  0x47   : > { %996 = vmatpush.bf16.msrb.mxu3 %v2432_v19  ;;  %v2218_v19 = vld [vmem:[%s2571_s16 + $0x30] sm:$0x7f] }
  0x48   : > { %855 = vmatpush.bf16.msrb.mxu0 %v2423_v24  ;;  %v1317_v24 = vpack.c.bf16 %v2218_v19, %v2218_v19 }
  0x49   : > { %895 = vmatpush.bf16.msrb.mxu1 %v2419_v21  ;;  %v1226_v21 = vpack.c.bf16 %v2175_v15, %v2175_v15 }
  0x4a   : > { %946 = vmatpush.bf16.msrb.mxu2 %v2427_v20  ;;  %v2244_v20 = vld [vmem:[%s2571_s16 + $0x31] sm:$0x7f] }
  0x4b   : > { %997 = vmatpush.bf16.msrb.mxu3 %v2431_v25  ;;  %2006 = vmatmul.msk.bf16.vlgmr.msrb.gmra.mxu0 %vm218_vm0, %v812_v35  ;;  %v1368_v25 = vpack.c.bf16 %v2244_v20, %v2244_v20  ;;  %v2341_v35 = vld [vmem:[%s2571_s16 + $0x39] sm:$0x7f] }
  0x4c   : > { %1059 = vmatpush.bf16.msra.mxu0 %v2442_v26  ;;  %2023 = vmatmul.msk.bf16.vlgmr.msrb.gmra.mxu1 %vm218_vm0, %v802_v37  ;;  %v2472_v26 = vld [vmem:[%s2965_s1 + $0x28] sm:$0xff]  ;;  %v1423_v37 = vpack.c.bf16 %v2271_v33, %v2271_v33 }
  0x4d   : > { %1099 = vmatpush.bf16.msra.mxu1 %v2438_v23  ;;  %2049 = vmatmul.msk.bf16.vlgmr.msrb.gmra.mxu2 %vm218_vm0, %v903_v38  ;;  %v1216_v23 = vpack.c.bf16 %v2174_v18, %v2174_v18 }
  0x4e   : > { %1150 = vmatpush.bf16.msra.mxu2 %v2446_v22  ;;  %2075 = vmatmul.msk.bf16.vlgmr.msrb.gmra.mxu3 %vm218_vm0, %v954_v39  ;;  %v2468_v22 = vld [vmem:[%s2965_s1 + $0x8] sm:$0xff]  ;;  %v1575_v39 = vpack.c.bf16 %v2341_v35, %v2341_v35 }
  0x4f   : > { %1201 = vmatpush.bf16.msra.mxu3 %v2450_v27  ;;  %v2480_v27 = vld [vmem:[%s2965_s1 + $0x68] sm:$0xff] }
  0x50   : > { %1060 = vmatpush.bf16.msra.mxu0 %v2441_v34  ;;  %v2315_v34 = vld [vmem:[%s2571_s16 + $0x38] sm:$0x7f] }
  0x51   : > { %1100 = vmatpush.bf16.msra.mxu1 %v2437_v30  ;;  %v2471_v30 = vld [vmem:[%s2965_s1 + $0x20] sm:$0xff]  ;;  %v1524_v38 = vpack.c.bf16 %v2315_v34, %v2315_v34 }
  0x52   : > { %1151 = vmatpush.bf16.msra.mxu2 %v2445_v28  ;;  %v2475_v28 = vld [vmem:[%s2965_s1 + $0x40] sm:$0xff] }
  0x53   : > { %1202 = vmatpush.bf16.msra.mxu3 %v2449_v36  ;;  %v1433_v36 = vpack.c.bf16 %v2272_v32, %v2272_v32 }
  0x54   : > { %1061 = vmatpush.bf16.msra.mxu0 %v2440_v41 }
  0x55   : > { %1101 = vmatpush.bf16.msra.mxu1 %v2436_v42 }
  0x56   : > { %1152 = vmatpush.bf16.msra.mxu2 %v2444_v40 }
  0x57   : > { %1203 = vmatpush.bf16.msra.mxu3 %v2448_v43 }
  0x58   : > { %1062 = vmatpush.bf16.msra.mxu0 %v2439_v45 }
  0x59   : > { %1102 = vmatpush.bf16.msra.mxu1 %v2435_v46  ;;  %v2932_v46 = vld [vmem:[%s2966_s2] ss:$0 sm:$0xff] }
  0x5a   : > { %1153 = vmatpush.bf16.msra.mxu2 %v2443_v44 }
  0x5b   : > { %1204 = vmatpush.bf16.msra.mxu3 %v2447_v47  ;;  %2103 = vmatmul.msk.bf16.vlgmr.msra.gmra.mxu0 %vm218_vm0, %v1019_v60 }
  0x5c   : > { %1266 = vmatpush.bf16.msrb.mxu0 %v2458_v49  ;;  %2120 = vmatmul.msk.bf16.vlgmr.msra.gmra.mxu1 %vm218_vm0, %v1009_v62 }
  0x5d   : > { %1306 = vmatpush.bf16.msrb.mxu1 %v2454_v50  ;;  %2146 = vmatmul.msk.bf16.vlgmr.msra.gmra.mxu2 %vm218_vm0, %v1110_v63 }
  0x5e   : > { %1357 = vmatpush.bf16.msrb.mxu2 %v2462_v48  ;;  %2172 = vmatmul.msk.bf16.vlgmr.msra.gmra.mxu3 %vm218_vm0, %v1161_v0 }
  0x5f   : > { %1408 = vmatpush.bf16.msrb.mxu3 %v2466_v51 }
  0x60   : > { %1267 = vmatpush.bf16.msrb.mxu0 %v2457_v54 }
  0x61   : > { %1307 = vmatpush.bf16.msrb.mxu1 %v2453_v55 }
  0x62   : > { %1358 = vmatpush.bf16.msrb.mxu2 %v2461_v52 }
  0x63   : > { %1409 = vmatpush.bf16.msrb.mxu3 %v2465_v58 }
  0x64   : > { %1268 = vmatpush.bf16.msrb.mxu0 %v2456_v1 }
  0x65   : > { %1308 = vmatpush.bf16.msrb.mxu1 %v2452_v2 }
  0x66   : > { %1359 = vmatpush.bf16.msrb.mxu2 %v2460_v61 }
  0x67   : > { %1410 = vmatpush.bf16.msrb.mxu3 %v2464_v3 }
  0x68   : > { %1269 = vmatpush.bf16.msrb.mxu0 %v2455_v6 }
  0x69   : > { %1309 = vmatpush.bf16.msrb.mxu1 %v2451_v7 }
  0x6a   : > { %1360 = vmatpush.bf16.msrb.mxu2 %v2459_v4 }
  0x6b   : > { %1411 = vmatpush.bf16.msrb.mxu3 %v2463_v8  ;;  %2200 = vmatmul.msk.bf16.vlgmr.msrb.gmra.mxu0 %vm218_vm0, %v1226_v21 }
  0x6c   : > { %1473 = vmatpush.bf16.msra.mxu0 %v2474_v9  ;;  %2217 = vmatmul.msk.bf16.vlgmr.msrb.gmra.mxu1 %vm218_vm0, %v1216_v23 }
  0x6d   : > { %1513 = vmatpush.bf16.msra.mxu1 %v2470_v10  ;;  %2243 = vmatmul.msk.bf16.vlgmr.msrb.gmra.mxu2 %vm218_vm0, %v1317_v24 }
  0x6e   : > { %1564 = vmatpush.bf16.msra.mxu2 %v2478_v5  ;;  %2269 = vmatmul.msk.bf16.vlgmr.msrb.gmra.mxu3 %vm218_vm0, %v1368_v25 }
  0x6f   : > { %1615 = vmatpush.bf16.msra.mxu3 %v2482_v11 }
  0x70   : > { %1474 = vmatpush.bf16.msra.mxu0 %v2473_v13 }
  0x71   : > { %1514 = vmatpush.bf16.msra.mxu1 %v2469_v14 }
  0x72   : > { %1565 = vmatpush.bf16.msra.mxu2 %v2477_v12 }
  0x73   : > { %1616 = vmatpush.bf16.msra.mxu3 %v2481_v16 }
  0x74   : > { %1475 = vmatpush.bf16.msra.mxu0 %v2472_v26 }
  0x75   : > { %1515 = vmatpush.bf16.msra.mxu1 %v2468_v22 }
  0x76   : > { %1566 = vmatpush.bf16.msra.mxu2 %v2476_v17 }
  0x77   : > { %1617 = vmatpush.bf16.msra.mxu3 %v2480_v27 }
  0x78   : > { %1476 = vmatpush.bf16.msra.mxu0 %v2471_v30 }
  0x79   : > { %1516 = vmatpush.bf16.msra.mxu1 %v2467_v29 }
  0x7a   : > { %1567 = vmatpush.bf16.msra.mxu2 %v2475_v28 }
  0x7b   : > { %1618 = vmatpush.bf16.msra.mxu3 %v2479_v31  ;;  %2297 = vmatmul.msk.bf16.vlgmr.msra.gmra.mxu0 %vm218_vm0, %v1433_v36 }
  0x7c   : > { %2314 = vmatmul.msk.bf16.vlgmr.msra.gmra.mxu1 %vm218_vm0, %v1423_v37 }
  0x7d   : > { %2340 = vmatmul.msk.bf16.vlgmr.msra.gmra.mxu2 %vm218_vm0, %v1524_v38 }
  0x7e   : > { %2366 = vmatmul.msk.bf16.vlgmr.msra.gmra.mxu3 %vm218_vm0, %v1575_v39 }
  0x98   : > { %v231_v40 = vpop.f32.mrf.mxu0 }
  0x99   : > { %v271_v41 = vpop.f32.mrf.mxu1 }
  0x9a   : > { %v272_v42 = vadd.f32 %v271_v41, %v231_v40 }
  0xa0   : > { %v323_v43 = vpop.f32.mrf.mxu2  ;;  %v233_v47 = vpop.f32.mrf.mxu0 }
  0xa1   : > { %v375_v44 = vpop.f32.mrf.mxu3  ;;  %v327_v45 = vadd.f32 %v323_v43, %v272_v42  ;;  %v273_v48 = vpop.f32.mrf.mxu1 }
  0xa3   : > { %v379_v49 = vadd.f32 %v375_v44, %v327_v45 }
  0xa5   : > { %v383_v50 = vadd.f32 %v2932_v46, %v379_v49 }
  0xa7   : > { %v384_v51 = vmax.f32 %v383_v50, 0.0 }
  0xa8   : > { %v325_v52 = vpop.f32.mrf.mxu2  ;;  %v443_v54 = vpop.f32.mrf.mxu0 }
  0xa9   : > { %v377_v53 = vpop.f32.mrf.mxu3  ;;  %386 = vst.msk [vmem:[%s2939_s29] sm:$0x7f] %vm385_vm1, %v384_v51  ;;  %v483_v55 = vpop.f32.mrf.mxu1 }
  0xaa   : > { %v484_v56 = vadd.f32 %v483_v55, %v443_v54 }
  0xb0   : > { %v534_v57 = vpop.f32.mrf.mxu2  ;;  %v445_v60 = vpop.f32.mrf.mxu0 }
  0xb1   : > { %v538_v58 = vadd.f32 %v534_v57, %v484_v56  ;;  %v585_v59 = vpop.f32.mrf.mxu3  ;;  %v485_v61 = vpop.f32.mrf.mxu1 }
  0xb3   : > { %v589_v62 = vadd.f32 %v585_v59, %v538_v58 }
  0xb5   : > { %v590_v63 = vadd.f32 %v2932_v46, %v589_v62 }
  0xb7   : > { %v591_v0 = vmax.f32 %v590_v63, 0.0 }
  0xb8   : > { %v536_v1 = vpop.f32.mrf.mxu2  ;;  %v650_v3 = vpop.f32.mrf.mxu0 }
  0xb9   : > { %1882 = vst.msk [vmem:[%s2939_s29 + $0x8] sm:$0x7f] %vm385_vm1, %v591_v0  ;;  %v587_v2 = vpop.f32.mrf.mxu3  ;;  %v690_v4 = vpop.f32.mrf.mxu1 }
  0xba   : > { %v691_v5 = vadd.f32 %v690_v4, %v650_v3 }
  0xc0   : > { %v741_v6 = vpop.f32.mrf.mxu2  ;;  %v652_v9 = vpop.f32.mrf.mxu0 }
  0xc1   : > { %v745_v7 = vadd.f32 %v741_v6, %v691_v5  ;;  %v792_v8 = vpop.f32.mrf.mxu3  ;;  %v692_v10 = vpop.f32.mrf.mxu1 }
  0xc3   : > { %v796_v11 = vadd.f32 %v792_v8, %v745_v7 }
  0xc5   : > { %v797_v12 = vadd.f32 %v2932_v46, %v796_v11 }
  0xc7   : > { %v798_v13 = vmax.f32 %v797_v12, 0.0 }
  0xc8   : > { %v743_v14 = vpop.f32.mrf.mxu2  ;;  %v857_v16 = vpop.f32.mrf.mxu0 }
  0xc9   : > { %1979 = vst.msk [vmem:[%s2939_s29 + $0x10] sm:$0x7f] %vm385_vm1, %v798_v13  ;;  %v794_v15 = vpop.f32.mrf.mxu3  ;;  %v897_v17 = vpop.f32.mrf.mxu1 }
  0xca   : > { %v898_v18 = vadd.f32 %v897_v17, %v857_v16 }
  0xd0   : > { %v948_v19 = vpop.f32.mrf.mxu2  ;;  %v859_v22 = vpop.f32.mrf.mxu0 }
  0xd1   : > { %v952_v20 = vadd.f32 %v948_v19, %v898_v18  ;;  %v999_v21 = vpop.f32.mrf.mxu3  ;;  %v899_v23 = vpop.f32.mrf.mxu1 }
  0xd3   : > { %v1003_v24 = vadd.f32 %v999_v21, %v952_v20 }
  0xd5   : > { %v1004_v25 = vadd.f32 %v2932_v46, %v1003_v24 }
  0xd7   : > { %v1005_v26 = vmax.f32 %v1004_v25, 0.0 }
  0xd8   : > { %v950_v27 = vpop.f32.mrf.mxu2  ;;  %v1064_v29 = vpop.f32.mrf.mxu0 }
  0xd9   : > { %2076 = vst.msk [vmem:[%s2939_s29 + $0x18] sm:$0x7f] %vm385_vm1, %v1005_v26  ;;  %v1001_v28 = vpop.f32.mrf.mxu3  ;;  %v1104_v30 = vpop.f32.mrf.mxu1 }
  0xda   : > { %v1105_v31 = vadd.f32 %v1104_v30, %v1064_v29 }
  0xe0   : > { %v1155_v32 = vpop.f32.mrf.mxu2  ;;  %v1066_v35 = vpop.f32.mrf.mxu0 }
  0xe1   : > { %v1159_v33 = vadd.f32 %v1155_v32, %v1105_v31  ;;  %v1206_v34 = vpop.f32.mrf.mxu3  ;;  %v1106_v36 = vpop.f32.mrf.mxu1 }
  0xe3   : > { %v1210_v37 = vadd.f32 %v1206_v34, %v1159_v33 }
  0xe5   : > { %v1211_v38 = vadd.f32 %v2932_v46, %v1210_v37 }
  0xe7   : > { %v1212_v39 = vmax.f32 %v1211_v38, 0.0 }
  0xe8   : > { %v1157_v40 = vpop.f32.mrf.mxu2  ;;  %v1271_v42 = vpop.f32.mrf.mxu0 }
  0xe9   : > { %2173 = vst.msk [vmem:[%s2939_s29 + $0x20] sm:$0x7f] %vm385_vm1, %v1212_v39  ;;  %v1208_v41 = vpop.f32.mrf.mxu3  ;;  %v1311_v43 = vpop.f32.mrf.mxu1 }
  0xea   : > { %v1312_v44 = vadd.f32 %v1311_v43, %v1271_v42 }
  0xf0   : > { %v1362_v45 = vpop.f32.mrf.mxu2  ;;  %v1273_v49 = vpop.f32.mrf.mxu0 }
  0xf1   : > { %v1366_v47 = vadd.f32 %v1362_v45, %v1312_v44  ;;  %v1413_v48 = vpop.f32.mrf.mxu3  ;;  %v1313_v50 = vpop.f32.mrf.mxu1 }
  0xf3   : > { %v1417_v51 = vadd.f32 %v1413_v48, %v1366_v47 }
  0xf5   : > { %v1418_v52 = vadd.f32 %v2932_v46, %v1417_v51 }
  0xf7   : > { %v1419_v53 = vmax.f32 %v1418_v52, 0.0 }
  0xf8   : > { %v1364_v54 = vpop.f32.mrf.mxu2  ;;  %v1478_v56 = vpop.f32.mrf.mxu0 }
  0xf9   : > { %2270 = vst.msk [vmem:[%s2939_s29 + $0x28] sm:$0x7f] %vm385_vm1, %v1419_v53  ;;  %v1415_v55 = vpop.f32.mrf.mxu3  ;;  %v1518_v57 = vpop.f32.mrf.mxu1 }
  0xfa   : > { %v1519_v58 = vadd.f32 %v1518_v57, %v1478_v56 }
 0x100   : > { %v1569_v59 = vpop.f32.mrf.mxu2  ;;  %v1480_v62 = vpop.f32.mrf.mxu0 }
 0x101   : > { %v1573_v60 = vadd.f32 %v1569_v59, %v1519_v58  ;;  %v1620_v61 = vpop.f32.mrf.mxu3  ;;  %v1520_v63 = vpop.f32.mrf.mxu1 }
 0x103   : > { %v1624_v0 = vadd.f32 %v1620_v61, %v1573_v60 }
 0x105   : > { %v1625_v1 = vadd.f32 %v2932_v46, %v1624_v0 }
 0x107   : > { %v1626_v2 = vmax.f32 %v1625_v1, 0.0 }
 0x108   : > { %v1571_v3 = vpop.f32.mrf.mxu2 }
 0x109   : > { %2367 = vst.msk [vmem:[%s2939_s29 + $0x30] sm:$0x7f] %vm385_vm1, %v1626_v2  ;;  %v1622_v4 = vpop.f32.mrf.mxu3 }
 0x10a PF: > { %s13_s12 = sadd.s32 1, %s2499_s12  }
 0x10b   : > { %p10_p4 = scmp.ge.s32.totalorder %s13_s12, 4  }
 0x10d   :  { %12 = sbr.rel (!%p10_p4) target bundleno = 1 (0x1), region = 78 }

// kernel: autoencoder_forward.5
= control target key start
LH: loop header
LB: loop body
LE: loop exit
PB: predicated region body
PF: predicated region fallthrough
CT: control target
= control target key end

     0   :  { %s2029_s12 = smov 0   ;;  %s2533_s0 = inlined_call_operand.vmem [shape: f32[2,15,15,4], index: 0, kind: input, shape index: {}]   ;;  %s2534_s1 = inlined_call_operand.vmem [shape: bf16[4,4,16], index: 1, kind: input, shape index: {}]   ;;  %s2535_s2 = inlined_call_operand.vmem [shape: f32[1,16], index: 2, kind: input, shape index: {}]   ;;  %s2536_s3 = inlined_call_operand.vmem [shape: f32[2,14,14,16], index: 3, kind: output, shape index: {}]  }
   0x1 LB: > { %s1749_s13 = sadd.s32 4294967295, %s2007_s12   ;;  %p1753_p0 = scmp.ge.s32.totalorder %s2007_s12, 1  ;;  %s2007_s12 = sphi %s2029_s12, %s13_s12  }
   0x2   : > { %p137_p1 = scmp.lt.s32.totalorder %s2007_s12, 3 }
   0x4   : > { %p138_p2 = pnand %p1753_p0, %p137_p1 }
   0x5   : > { %p161_p3 = scmp.lt.s32.totalorder (!%p138_p2), %s1749_s13, 1 }
   0x6   : > { %141 = sbr.rel (%p138_p2) target bundleno = 378 (0x17a), region = 32 }
   0xb   : > { %v1756_v0 = vld [vmem:[%s2534_s1 + $0x2] sm:$0x3]  ;;  %vm186_vm0 = vcmask 1041408   ;;  %v176_v1 = vld [vmem:[%s2534_s1] sm:$0x3]  ;;  %s2538_s13 = smov (!%p161_p3, %s1749_s13), 1 }
   0xc   : > { %v188_v2 = vsel %vm186_vm0, %v1756_v0, 0  ;;  %v208_v3 = vsel %vm186_vm0, %v176_v1, 0  ;;  %v1761_v4 = vld [vmem:[%s2534_s1 + $0x4] sm:$0x3]  ;;  %v1765_v5 = vld [vmem:[%s2534_s1 + $0x6] sm:$0x3] }
   0xd   : > { %197 = vmatpush.bf16.msra.mxu0 %v188_v2  ;;  %217 = vmatpush.bf16.msra.mxu1 %v208_v3  ;;  %v234_v6 = vsel %vm186_vm0, %v1761_v4, 0  ;;  %v261_v7 = vsel %vm186_vm0, %v1765_v5, 0  ;;  %v1776_v8 = vld [vmem:[%s2534_s1 + $0x4] sm:$0x3]  ;;  %v1780_v10 = vld [vmem:[%s2534_s1 + $0x6] sm:$0x3] }
   0xe   : > { %243 = vmatpush.bf16.msra.mxu2 %v234_v6  ;;  %270 = vmatpush.bf16.msra.mxu3 %v261_v7  ;;  %v347_v9 = vsel %vm186_vm0, %v1776_v8, 0  ;;  %v1771_v11 = vld [vmem:[%s2534_s1 + $0x2] sm:$0x3]  ;;  %s1990_s28 = smul.u32 240, %s2538_s13  ;;  %v373_v12 = vsel %vm186_vm0, %v1780_v10, 0  ;;  %vm182_vm1 = vcmask 31744  }
   0xf   : > { %v302_v13 = vsel %vm186_vm0, %v1771_v11, 0  ;;  %v293_v14 = vld [vmem:[%s2534_s1] sm:$0x3]  ;;  %v1793_v16 = vld [vmem:[%s2534_s1 + $0x4] sm:$0x3]  ;;  %s1991_s9 = smul.u32 224, %s2538_s13 }
  0x10   : > { %v322_v15 = vsel %vm186_vm0, %v293_v14, 0  ;;  %s2078_s8 = scalar_lea.vmem %s2533_s0, %s1990_s28  ;;  %v1797_v17 = vld [vmem:[%s2534_s1 + $0x6] sm:$0x3]  ;;  %v1788_v18 = vld [vmem:[%s2534_s1 + $0x2] sm:$0x3]  ;;  %v455_v31 = vsel %vm186_vm0, %v1793_v16, 0 }
  0x11   : > { %311 = vmatpush.bf16.msrb.mxu0 %v302_v13  ;;  %331 = vmatpush.bf16.msrb.mxu1 %v322_v15  ;;  %v401_v19 = vld [vmem:[%s2534_s1] sm:$0x3]  ;;  %v178_v21 = vld [vmem:[%s2078_s8 + $0x9] sm:$0x3f]  ;;  %v1759_v25 = vld [vmem:[%s2078_s8 + $0x10] sm:$0xff]  ;;  %v481_v33 = vsel %vm186_vm0, %v1797_v17, 0  ;;  %s2327_s14 = scalar_lea.vmem %s2536_s3, %s1991_s9 }
  0x12   : > { %356 = vmatpush.bf16.msrb.mxu2 %v347_v9  ;;  %382 = vmatpush.bf16.msrb.mxu3 %v373_v12  ;;  %v177_v20 = vld [vmem:[%s2078_s8 + $0x1] sm:$0xff]  ;;  %v1760_v26 = vld [vmem:[%s2078_s8 + $0x18] sm:$0x3f]  ;;  %v410_v34 = vsel %vm186_vm0, %v1788_v18, 0  ;;  %v430_v35 = vsel %vm186_vm0, %v401_v19, 0  ;;  %v1791_v56 = vld [vmem:[%s2078_s8 + $0x30] sm:$0xff] }
  0x13   : > { %v173_v22 = vld [vmem:[%s2078_s8] sm:$0xff]  ;;  %v179_v23 = vpack.c.bf16 %v178_v21, %v177_v20  ;;  %v174_v24 = vld [vmem:[%s2078_s8 + $0x8] sm:$0x3f]  ;;  %v227_v28 = vpack.c.bf16 %v1760_v26, %v1759_v25  ;;  %v1763_v29 = vld [vmem:[%s2078_s8 + $0x11] sm:$0xff]  ;;  %vm286_vm2 = vcmask 130048   ;;  %vm288_vm3 = vcmask 128000  }
  0x14   : > { %v175_v27 = vpack.c.bf16 %v174_v24, %v173_v22  ;;  %v1764_v30 = vld [vmem:[%s2078_s8 + $0x19] sm:$0x3f]  ;;  %v1774_v38 = vld [vmem:[%s2078_s8 + $0x20] sm:$0xff]  ;;  %v1775_v39 = vld [vmem:[%s2078_s8 + $0x28] sm:$0x3f] }
  0x15   : > { %1757 = vmatmul.msk.bf16.vlgmr.msra.gmra.mxu0 %vm182_vm1, %v179_v23  ;;  %v254_v32 = vpack.c.bf16 %v1764_v30, %v1763_v29  ;;  %1762 = vmatmul.msk.bf16.vlgmr.msra.gmra.mxu2 %vm182_vm1, %v227_v28  ;;  %v1770_v36 = vld [vmem:[%s2078_s8 + $0x19] sm:$0x3f]  ;;  %v1778_v40 = vld [vmem:[%s2078_s8 + $0x21] sm:$0xff]  ;;  %v1779_v41 = vld [vmem:[%s2078_s8 + $0x29] sm:$0x3f]  ;;  %v341_v45 = vpack.c.bf16 %v1775_v39, %v1774_v38 }
  0x16   : > { %1758 = vmatmul.msk.bf16.vlgmr.msra.gmra.mxu1 %vm182_vm1, %v175_v27  ;;  %464 = vmatpush.bf16.msra.mxu2 %v455_v31  ;;  %v1768_v37 = vld [vmem:[%s2078_s8 + $0x18] sm:$0x3f]  ;;  %v296_v42 = vpack.c.bf16 %v1770_v36, %v1763_v29  ;;  %v1810_v43 = vld [vmem:[%s2534_s1 + $0x4] sm:$0x3]  ;;  %v1814_v46 = vld [vmem:[%s2534_s1 + $0x6] sm:$0x3]  ;;  %v367_v48 = vpack.c.bf16 %v1779_v41, %v1778_v40 }
  0x17   : > { %1766 = vmatmul.msk.bf16.vlgmr.msra.gmra.mxu3 %vm182_vm1, %v254_v32  ;;  %419 = vmatpush.bf16.msra.mxu0 %v410_v34  ;;  %v292_v44 = vpack.c.bf16 %v1768_v37, %v1759_v25  ;;  %v1805_v47 = vld [vmem:[%s2534_s1 + $0x2] sm:$0x3]  ;;  %v509_v49 = vld [vmem:[%s2534_s1] sm:$0x3]  ;;  %v563_v50 = vsel %vm186_vm0, %v1810_v43, 0  ;;  %v589_v51 = vsel %vm186_vm0, %v1814_v46, 0 }
  0x18   : > { %490 = vmatpush.bf16.msra.mxu3 %v481_v33  ;;  %439 = vmatpush.bf16.msra.mxu1 %v430_v35  ;;  %v518_v52 = vsel %vm186_vm0, %v1805_v47, 0  ;;  %v538_v53 = vsel %vm186_vm0, %v509_v49, 0  ;;  %v1787_v54 = vld [vmem:[%s2078_s8 + $0x29] sm:$0x3f]  ;;  %v1792_v57 = vld [vmem:[%s2078_s8 + $0x38] sm:$0x3f] }
  0x19   : > { %v1785_v55 = vld [vmem:[%s2078_s8 + $0x28] sm:$0x3f]  ;;  %v1795_v58 = vld [vmem:[%s2078_s8 + $0x31] sm:$0xff]  ;;  %v1796_v59 = vld [vmem:[%s2078_s8 + $0x39] sm:$0x3f]  ;;  %v404_v60 = vpack.c.bf16 %v1787_v54, %v1778_v40  ;;  %v449_v63 = vpack.c.bf16 %v1792_v57, %v1791_v56 }
  0x1a   : > { %v1827_v61 = vld [vmem:[%s2534_s1 + $0x4] sm:$0x3]  ;;  %v400_v62 = vpack.c.bf16 %v1785_v55, %v1774_v38  ;;  %v1831_v0 = vld [vmem:[%s2534_s1 + $0x6] sm:$0x3]  ;;  %v1822_v1 = vld [vmem:[%s2534_s1 + $0x2] sm:$0x3]  ;;  %v475_v2 = vpack.c.bf16 %v1796_v59, %v1795_v58 }
  0x1b   : > { %v617_v3 = vld [vmem:[%s2534_s1] sm:$0x3]  ;;  %v671_v4 = vsel %vm186_vm0, %v1827_v61, 0  ;;  %v697_v5 = vsel %vm186_vm0, %v1831_v0, 0  ;;  %v626_v6 = vsel %vm186_vm0, %v1822_v1, 0  ;;  %v1825_v28 = vld [vmem:[%s2078_s8 + $0x50] sm:$0xff] }
  0x1c   : > { %v646_v7 = vsel %vm186_vm0, %v617_v3, 0  ;;  %v1804_v8 = vld [vmem:[%s2078_s8 + $0x39] sm:$0x3f]  ;;  %v1808_v10 = vld [vmem:[%s2078_s8 + $0x40] sm:$0xff]  ;;  %v1809_v11 = vld [vmem:[%s2078_s8 + $0x48] sm:$0x3f] }
  0x1d   : > { %v1802_v9 = vld [vmem:[%s2078_s8 + $0x38] sm:$0x3f]  ;;  %v1812_v12 = vld [vmem:[%s2078_s8 + $0x41] sm:$0xff]  ;;  %v1813_v13 = vld [vmem:[%s2078_s8 + $0x49] sm:$0x3f]  ;;  %v512_v14 = vpack.c.bf16 %v1804_v8, %v1795_v58  ;;  %v557_v17 = vpack.c.bf16 %v1809_v11, %v1808_v10 }
  0x1e   : > { %v1844_v15 = vld [vmem:[%s2534_s1 + $0x4] sm:$0x3]  ;;  %v508_v16 = vpack.c.bf16 %v1802_v9, %v1791_v56  ;;  %v1848_v18 = vld [vmem:[%s2534_s1 + $0x6] sm:$0x3]  ;;  %v1839_v19 = vld [vmem:[%s2534_s1 + $0x2] sm:$0x3]  ;;  %v583_v20 = vpack.c.bf16 %v1813_v13, %v1812_v12 }
  0x1f   : > { %v725_v21 = vld [vmem:[%s2534_s1] sm:$0x3]  ;;  %v779_v22 = vsel %vm186_vm0, %v1844_v15, 0  ;;  %v805_v23 = vsel %vm186_vm0, %v1848_v18, 0  ;;  %v734_v24 = vsel %vm186_vm0, %v1839_v19, 0  ;;  %v1829_v30 = vld [vmem:[%s2078_s8 + $0x51] sm:$0xff] }
  0x20   : > { %v754_v25 = vsel %vm186_vm0, %v725_v21, 0  ;;  %v1821_v26 = vld [vmem:[%s2078_s8 + $0x49] sm:$0x3f]  ;;  %v1826_v29 = vld [vmem:[%s2078_s8 + $0x58] sm:$0x3f]  ;;  %v1842_v46 = vld [vmem:[%s2078_s8 + $0x60] sm:$0xff] }
  0x21   : > { %v1819_v27 = vld [vmem:[%s2078_s8 + $0x48] sm:$0x3f]  ;;  %v1830_v31 = vld [vmem:[%s2078_s8 + $0x59] sm:$0x3f]  ;;  %v620_v32 = vpack.c.bf16 %v1821_v26, %v1812_v12  ;;  %v1861_v33 = vld [vmem:[%s2534_s1 + $0x4] sm:$0x3]  ;;  %v665_v35 = vpack.c.bf16 %v1826_v29, %v1825_v28 }
  0x22   : > { %v616_v34 = vpack.c.bf16 %v1819_v27, %v1808_v10  ;;  %v1865_v36 = vld [vmem:[%s2534_s1 + $0x6] sm:$0x3]  ;;  %v1856_v37 = vld [vmem:[%s2534_s1 + $0x2] sm:$0x3]  ;;  %v691_v38 = vpack.c.bf16 %v1830_v31, %v1829_v30  ;;  %v833_v39 = vld [vmem:[%s2534_s1] sm:$0x3] }
  0x23   : > { %v887_v40 = vsel %vm186_vm0, %v1861_v33, 0  ;;  %v913_v41 = vsel %vm186_vm0, %v1865_v36, 0  ;;  %v862_v43 = vsel %vm186_vm0, %v833_v39, 0  ;;  %v1843_v47 = vld [vmem:[%s2078_s8 + $0x68] sm:$0x3f]  ;;  %v1859_v0 = vld [vmem:[%s2078_s8 + $0x70] sm:$0xff] }
  0x24   : > { %v1847_v49 = vld [vmem:[%s2078_s8 + $0x69] sm:$0x3f]  ;;  %v1882_v54 = vld [vmem:[%s2534_s1 + $0x6] sm:$0x3]  ;;  %v1873_v55 = vld [vmem:[%s2534_s1 + $0x2] sm:$0x3] }
  0x25   : > { %1772 = vmatmul.msk.bf16.vlgmr.msrb.gmra.mxu0 %vm182_vm1, %v296_v42  ;;  %1777 = vmatmul.msk.bf16.vlgmr.msrb.gmra.mxu2 %vm182_vm1, %v341_v45  ;;  %v842_v42 = vsel %vm186_vm0, %v1856_v37, 0  ;;  %v1836_v45 = vld [vmem:[%s2078_s8 + $0x58] sm:$0x3f]  ;;  %v941_v57 = vld [vmem:[%s2534_s1] sm:$0x3]  ;;  %v1021_v59 = vsel %vm186_vm0, %v1882_v54, 0 }
  0x26   : > { %1773 = vmatmul.msk.bf16.vlgmr.msrb.gmra.mxu1 %vm182_vm1, %v292_v44  ;;  %572 = vmatpush.bf16.msrb.mxu2 %v563_v50  ;;  %v1838_v44 = vld [vmem:[%s2078_s8 + $0x59] sm:$0x3f]  ;;  %v970_v61 = vsel %vm186_vm0, %v941_v57, 0  ;;  %v1899_v8 = vld [vmem:[%s2534_s1 + $0x6] sm:$0x3]  ;;  %v2290_v36 = vld [vmem:[%s2078_s8 + $0x90] sm:$0xff] }
  0x27   : > { %1781 = vmatmul.msk.bf16.vlgmr.msrb.gmra.mxu3 %vm182_vm1, %v367_v48  ;;  %527 = vmatpush.bf16.msrb.mxu0 %v518_v52  ;;  %v1846_v48 = vld [vmem:[%s2078_s8 + $0x61] sm:$0xff]  ;;  %v728_v50 = vpack.c.bf16 %v1838_v44, %v1829_v30  ;;  %v724_v52 = vpack.c.bf16 %v1836_v45, %v1825_v28  ;;  %v1860_v1 = vld [vmem:[%s2078_s8 + $0x78] sm:$0x3f]  ;;  %v1129_v13 = vsel %vm186_vm0, %v1899_v8, 0  ;;  %v1881_v21 = vld [vmem:[%s2078_s8 + $0x89] sm:$0x3f] }
  0x28   : > { %598 = vmatpush.bf16.msrb.mxu3 %v589_v51  ;;  %547 = vmatpush.bf16.msrb.mxu1 %v538_v53  ;;  %v1878_v51 = vld [vmem:[%s2534_s1 + $0x4] sm:$0x3]  ;;  %v773_v53 = vpack.c.bf16 %v1843_v47, %v1842_v46  ;;  %v799_v56 = vpack.c.bf16 %v1847_v49, %v1846_v48  ;;  %v1864_v3 = vld [vmem:[%s2078_s8 + $0x79] sm:$0x3f]  ;;  %v1890_v9 = vld [vmem:[%s2534_s1 + $0x2] sm:$0x3] }
  0x29   : > { %v995_v58 = vsel %vm186_vm0, %v1878_v51, 0  ;;  %v1049_v11 = vld [vmem:[%s2534_s1] sm:$0x3]  ;;  %v1877_v19 = vld [vmem:[%s2078_s8 + $0x88] sm:$0x3f] }
  0x2a   : > { %v1078_v15 = vsel %vm186_vm0, %v1049_v11, 0  ;;  %v1876_v18 = vld [vmem:[%s2078_s8 + $0x80] sm:$0xff]  ;;  %v1894_v37 = vld [vmem:[%s2078_s8 + $0x98] sm:$0x3f] }
  0x2b   : > { %v1916_v26 = vld [vmem:[%s2534_s1 + $0x6] sm:$0x3]  ;;  %v1907_v27 = vld [vmem:[%s2534_s1 + $0x2] sm:$0x3]  ;;  %v1157_v29 = vld [vmem:[%s2534_s1] sm:$0x3]  ;;  %v1097_v44 = vpack.c.bf16 %v1894_v37, %v2290_v36 }
  0x2c   : > { %v1237_v31 = vsel %vm186_vm0, %v1916_v26, 0  ;;  %v1186_v33 = vsel %vm186_vm0, %v1157_v29, 0  ;;  %v1898_v39 = vld [vmem:[%s2078_s8 + $0x99] sm:$0x3f]  ;;  %v1933_v45 = vld [vmem:[%s2534_s1 + $0x6] sm:$0x3] }
  0x2d   : > { %v1265_v49 = vld [vmem:[%s2534_s1] sm:$0x3]  ;;  %v1345_v51 = vsel %vm186_vm0, %v1933_v45, 0  ;;  %v2370_v37 = vld [vmem:[%s2078_s8 + $0xb0] sm:$0xff]  ;;  %v1963_v45 = vld [vmem:[%s2534_s1 + $0x4] sm:$0x3] }
  0x2e   : > { %v1294_v54 = vsel %vm186_vm0, %v1265_v49, 0 }
  0x35   : > { %1789 = vmatmul.msk.bf16.vlgmr.msra.gmra.mxu0 %vm182_vm1, %v404_v60  ;;  %1794 = vmatmul.msk.bf16.vlgmr.msra.gmra.mxu2 %vm182_vm1, %v449_v63  ;;  %v950_v60 = vsel %vm186_vm0, %v1873_v55, 0  ;;  %v1853_v63 = vld [vmem:[%s2078_s8 + $0x68] sm:$0x3f] }
  0x36   : > { %1790 = vmatmul.msk.bf16.vlgmr.msra.gmra.mxu1 %vm182_vm1, %v400_v62  ;;  %680 = vmatpush.bf16.msra.mxu2 %v671_v4  ;;  %v1855_v62 = vld [vmem:[%s2078_s8 + $0x69] sm:$0x3f] }
  0x37   : > { %1798 = vmatmul.msk.bf16.vlgmr.msra.gmra.mxu3 %vm182_vm1, %v475_v2  ;;  %635 = vmatpush.bf16.msra.mxu0 %v626_v6  ;;  %v1863_v2 = vld [vmem:[%s2078_s8 + $0x71] sm:$0xff]  ;;  %v836_v4 = vpack.c.bf16 %v1855_v62, %v1846_v48  ;;  %v832_v6 = vpack.c.bf16 %v1853_v63, %v1842_v46  ;;  %v1924_v46 = vld [vmem:[%s2534_s1 + $0x2] sm:$0x3]  ;;  %v1906_v63 = vld [vmem:[%s2078_s8 + $0x99] sm:$0x3f] }
  0x38   : > { %706 = vmatpush.bf16.msra.mxu3 %v697_v5  ;;  %655 = vmatpush.bf16.msra.mxu1 %v646_v7  ;;  %v1895_v5 = vld [vmem:[%s2534_s1 + $0x4] sm:$0x3]  ;;  %v881_v7 = vpack.c.bf16 %v1860_v1, %v1859_v0  ;;  %v907_v10 = vpack.c.bf16 %v1864_v3, %v1863_v2 }
  0x39   : > { %v1103_v12 = vsel %vm186_vm0, %v1895_v5, 0  ;;  %v2331_v1 = vld [vmem:[%s2078_s8 + $0xa0] sm:$0xff] }
  0x3a   : > { %v2335_v5 = vld [vmem:[%s2078_s8 + $0xa1] sm:$0xff] }
  0x45   : > { %1806 = vmatmul.msk.bf16.vlgmr.msrb.gmra.mxu0 %vm182_vm1, %v512_v14  ;;  %1811 = vmatmul.msk.bf16.vlgmr.msrb.gmra.mxu2 %vm182_vm1, %v557_v17  ;;  %v1058_v14 = vsel %vm186_vm0, %v1890_v9, 0  ;;  %v1870_v17 = vld [vmem:[%s2078_s8 + $0x78] sm:$0x3f]  ;;  %v1946_v9 = vld [vmem:[%s2534_s1 + $0x4] sm:$0x3] }
  0x46   : > { %1807 = vmatmul.msk.bf16.vlgmr.msrb.gmra.mxu1 %vm182_vm1, %v508_v16  ;;  %788 = vmatpush.bf16.msrb.mxu2 %v779_v22  ;;  %v1872_v16 = vld [vmem:[%s2078_s8 + $0x79] sm:$0x3f] }
  0x47   : > { %1815 = vmatmul.msk.bf16.vlgmr.msrb.gmra.mxu3 %vm182_vm1, %v583_v20  ;;  %743 = vmatpush.bf16.msrb.mxu0 %v734_v24  ;;  %v1880_v20 = vld [vmem:[%s2078_s8 + $0x81] sm:$0xff]  ;;  %v944_v22 = vpack.c.bf16 %v1872_v16, %v1863_v2  ;;  %v940_v24 = vpack.c.bf16 %v1870_v17, %v1859_v0  ;;  %v1904_v0 = vld [vmem:[%s2078_s8 + $0x98] sm:$0x3f] }
  0x48   : > { %814 = vmatpush.bf16.msrb.mxu3 %v805_v23  ;;  %763 = vmatpush.bf16.msrb.mxu1 %v754_v25  ;;  %v1912_v23 = vld [vmem:[%s2534_s1 + $0x4] sm:$0x3]  ;;  %v989_v25 = vpack.c.bf16 %v1877_v19, %v1876_v18  ;;  %v1015_v28 = vpack.c.bf16 %v1881_v21, %v1880_v20  ;;  %v1911_v2 = vld [vmem:[%s2078_s8 + $0xa8] sm:$0x3f]  ;;  %v1941_v16 = vld [vmem:[%s2534_s1 + $0x2] sm:$0x3] }
  0x49   : > { %v1211_v30 = vsel %vm186_vm0, %v1912_v23, 0  ;;  %v1373_v19 = vld [vmem:[%s2534_s1] sm:$0x3]  ;;  %v1427_v21 = vsel %vm186_vm0, %v1946_v9, 0  ;;  %v1382_v23 = vsel %vm186_vm0, %v1941_v16, 0 }
  0x4a   : > { %v1402_v26 = vsel %vm186_vm0, %v1373_v19, 0  ;;  %v1938_v9 = vld [vmem:[%s2078_s8 + $0xb8] sm:$0x3f] }
  0x55   : > { %1823 = vmatmul.msk.bf16.vlgmr.msra.gmra.mxu0 %vm182_vm1, %v620_v32  ;;  %1828 = vmatmul.msk.bf16.vlgmr.msra.gmra.mxu2 %vm182_vm1, %v665_v35  ;;  %v1166_v32 = vsel %vm186_vm0, %v1907_v27, 0  ;;  %v1887_v35 = vld [vmem:[%s2078_s8 + $0x88] sm:$0x3f] }
  0x56   : > { %1824 = vmatmul.msk.bf16.vlgmr.msra.gmra.mxu1 %vm182_vm1, %v616_v34  ;;  %896 = vmatpush.bf16.msra.mxu2 %v887_v40  ;;  %v1889_v34 = vld [vmem:[%s2078_s8 + $0x89] sm:$0x3f] }
  0x57   : > { %1832 = vmatmul.msk.bf16.vlgmr.msra.gmra.mxu3 %vm182_vm1, %v691_v38  ;;  %851 = vmatpush.bf16.msra.mxu0 %v842_v42  ;;  %v1897_v38 = vld [vmem:[%s2078_s8 + $0x91] sm:$0xff]  ;;  %v1052_v40 = vpack.c.bf16 %v1889_v34, %v1880_v20 }
  0x58   : > { %922 = vmatpush.bf16.msra.mxu3 %v913_v41  ;;  %871 = vmatpush.bf16.msra.mxu1 %v862_v43  ;;  %v1929_v41 = vld [vmem:[%s2534_s1 + $0x4] sm:$0x3]  ;;  %v1048_v43 = vpack.c.bf16 %v1887_v35, %v1876_v18  ;;  %v1123_v48 = vpack.c.bf16 %v1898_v39, %v1897_v38  ;;  %v1160_v8 = vpack.c.bf16 %v1906_v63, %v1897_v38  ;;  %v1923_v35 = vld [vmem:[%s2078_s8 + $0xa9] sm:$0x3f]  ;;  %v1928_v38 = vld [vmem:[%s2078_s8 + $0xb8] sm:$0x3f] }
  0x65   : > { %1840 = vmatmul.msk.bf16.vlgmr.msrb.gmra.mxu0 %vm182_vm1, %v728_v50  ;;  %1845 = vmatmul.msk.bf16.vlgmr.msrb.gmra.mxu2 %vm182_vm1, %v773_v53  ;;  %v1319_v50 = vsel %vm186_vm0, %v1929_v41, 0  ;;  %v2374_v41 = vld [vmem:[%s2078_s8 + $0xb1] sm:$0xff] }
  0x66   : > { %1841 = vmatmul.msk.bf16.vlgmr.msrb.gmra.mxu1 %vm182_vm1, %v724_v52  ;;  %1004 = vmatpush.bf16.msrb.mxu2 %v995_v58  ;;  %v1274_v52 = vsel %vm186_vm0, %v1924_v46, 0  ;;  %v2319_v58 = vld [vmem:[%s2535_s2] ss:$0 sm:$0xff] }
  0x67   : > { %1849 = vmatmul.msk.bf16.vlgmr.msrb.gmra.mxu3 %vm182_vm1, %v799_v56  ;;  %959 = vmatpush.bf16.msrb.mxu0 %v950_v60 }
  0x68   : > { %1030 = vmatpush.bf16.msrb.mxu3 %v1021_v59  ;;  %979 = vmatpush.bf16.msrb.mxu1 %v970_v61 }
  0x75   : > { %1857 = vmatmul.msk.bf16.vlgmr.msra.gmra.mxu0 %vm182_vm1, %v836_v4  ;;  %1862 = vmatmul.msk.bf16.vlgmr.msra.gmra.mxu2 %vm182_vm1, %v881_v7 }
  0x76   : > { %1858 = vmatmul.msk.bf16.vlgmr.msra.gmra.mxu1 %vm182_vm1, %v832_v6  ;;  %1112 = vmatpush.bf16.msra.mxu2 %v1103_v12  ;;  %v1915_v6 = vld [vmem:[%s2078_s8 + $0xa9] sm:$0x3f] }
  0x77   : > { %1866 = vmatmul.msk.bf16.vlgmr.msra.gmra.mxu3 %vm182_vm1, %v907_v10  ;;  %1067 = vmatpush.bf16.msra.mxu0 %v1058_v14  ;;  %v1205_v14 = vpack.c.bf16 %v1911_v2, %v2331_v1  ;;  %v1231_v18 = vpack.c.bf16 %v1915_v6, %v2335_v5 }
  0x78   : > { %1138 = vmatpush.bf16.msra.mxu3 %v1129_v13  ;;  %1087 = vmatpush.bf16.msra.mxu1 %v1078_v15  ;;  %v1156_v13 = vpack.c.bf16 %v1904_v0, %v2290_v36  ;;  %v1950_v15 = vld [vmem:[%s2534_s1 + $0x6] sm:$0x3]  ;;  %v1921_v36 = vld [vmem:[%s2078_s8 + $0xa8] sm:$0x3f] }
  0x79   : > { %v1264_v49 = vpack.c.bf16 %v1921_v36, %v2331_v1 }
  0x85   : > { %1874 = vmatmul.msk.bf16.vlgmr.msrb.gmra.mxu0 %vm182_vm1, %v944_v22  ;;  %1879 = vmatmul.msk.bf16.vlgmr.msrb.gmra.mxu2 %vm182_vm1, %v989_v25  ;;  %v1453_v22 = vsel %vm186_vm0, %v1950_v15, 0  ;;  %v1949_v15 = vld [vmem:[%s2078_s8 + $0xc9] sm:$0x3f] }
  0x86   : > { %1875 = vmatmul.msk.bf16.vlgmr.msrb.gmra.mxu1 %vm182_vm1, %v940_v24  ;;  %1220 = vmatpush.bf16.msrb.mxu2 %v1211_v30 }
  0x87   : > { %1883 = vmatmul.msk.bf16.vlgmr.msrb.gmra.mxu3 %vm182_vm1, %v1015_v28  ;;  %1175 = vmatpush.bf16.msrb.mxu0 %v1166_v32 }
  0x88   : > { %1246 = vmatpush.bf16.msrb.mxu3 %v1237_v31  ;;  %1195 = vmatpush.bf16.msrb.mxu1 %v1186_v33 }
  0x92   : > { %v199_v42 = vpop.f32.mrf.mxu0 }
  0x93   : > { %v219_v47 = vpop.f32.mrf.mxu1 }
  0x94   : > { %v220_v53 = vadd.f32 %v219_v47, %v199_v42  ;;  %v1932_v42 = vld [vmem:[%s2078_s8 + $0xb9] sm:$0x3f] }
  0x95   : > { %1891 = vmatmul.msk.bf16.vlgmr.msra.gmra.mxu0 %vm182_vm1, %v1052_v40  ;;  %1896 = vmatmul.msk.bf16.vlgmr.msra.gmra.mxu2 %vm182_vm1, %v1097_v44  ;;  %v1268_v44 = vpack.c.bf16 %v1923_v35, %v2335_v5 }
  0x96   : > { %1892 = vmatmul.msk.bf16.vlgmr.msra.gmra.mxu1 %vm182_vm1, %v1048_v43  ;;  %1328 = vmatpush.bf16.msra.mxu2 %v1319_v50  ;;  %v1313_v50 = vpack.c.bf16 %v1928_v38, %v2370_v37 }
  0x97   : > { %1900 = vmatmul.msk.bf16.vlgmr.msra.gmra.mxu3 %vm182_vm1, %v1123_v48  ;;  %1283 = vmatpush.bf16.msra.mxu0 %v1274_v52  ;;  %v1958_v52 = vld [vmem:[%s2534_s1 + $0x2] sm:$0x3] }
  0x98   : > { %1354 = vmatpush.bf16.msra.mxu3 %v1345_v51  ;;  %v245_v55 = vpop.f32.mrf.mxu2  ;;  %1303 = vmatpush.bf16.msra.mxu1 %v1294_v54  ;;  %v1967_v51 = vld [vmem:[%s2534_s1 + $0x6] sm:$0x3]  ;;  %v1339_v54 = vpack.c.bf16 %v1932_v42, %v2374_v41 }
  0x99   : > { %v250_v56 = vadd.f32 %v245_v55, %v220_v53  ;;  %v1481_v55 = vld [vmem:[%s2534_s1] sm:$0x3] }
  0x9a   : > { %v272_v57 = vpop.f32.mrf.mxu3  ;;  %v201_v59 = vpop.f32.mrf.mxu0  ;;  %v1510_v63 = vsel %vm186_vm0, %v1481_v55, 0 }
  0x9b   : > { %v221_v60 = vpop.f32.mrf.mxu1  ;;  %v277_v61 = vadd.f32 %v272_v57, %v250_v56  ;;  %v1535_v57 = vsel %vm186_vm0, %v1963_v45, 0  ;;  %v1955_v45 = vld [vmem:[%s2078_s8 + $0xc8] sm:$0x3f] }
  0x9c   : > { %v222_v4 = vadd.f32 %v221_v60, %v201_v59  ;;  %v1561_v59 = vsel %vm186_vm0, %v1967_v51, 0  ;;  %v1490_v60 = vsel %vm186_vm0, %v1958_v52, 0  ;;  %v1966_v51 = vld [vmem:[%s2078_s8 + $0xd9] sm:$0x3f] }
  0x9d   : > { %v282_v62 = vadd.f32 %v2319_v58, %v277_v61 }
  0x9f   : > { %v284_v3 = vmax.f32 %v282_v62, 0.0 }
  0xa0   : > { %v247_v7 = vpop.f32.mrf.mxu2 }
  0xa1   : > { %287 = vst.msk [vmem:[%s2327_s14] sm:$0xff] %vm286_vm2, %v284_v3  ;;  %v251_v10 = vadd.f32 %v247_v7, %v222_v4 }
  0xa2   : > { %v274_v11 = vpop.f32.mrf.mxu3  ;;  %v313_v12 = vpop.f32.mrf.mxu0 }
  0xa3   : > { %v333_v17 = vpop.f32.mrf.mxu1  ;;  %v278_v20 = vadd.f32 %v274_v11, %v251_v10  ;;  %v2410_v10 = vld [vmem:[%s2078_s8 + $0xc0] sm:$0xff]  ;;  %v1945_v11 = vld [vmem:[%s2078_s8 + $0xc8] sm:$0x3f] }
  0xa4   : > { %v334_v25 = vadd.f32 %v333_v17, %v313_v12 }
  0xa5   : > { %1908 = vmatmul.msk.bf16.vlgmr.msrb.gmra.mxu0 %vm182_vm1, %v1160_v8  ;;  %v283_v24 = vadd.f32 %v2319_v58, %v278_v20  ;;  %1913 = vmatmul.msk.bf16.vlgmr.msrb.gmra.mxu2 %vm182_vm1, %v1205_v14  ;;  %v1940_v8 = vld [vmem:[%s2078_s8 + $0xb9] sm:$0x3f]  ;;  %v1948_v14 = vld [vmem:[%s2078_s8 + $0xc1] sm:$0xff] }
  0xa6   : > { %1909 = vmatmul.msk.bf16.vlgmr.msrb.gmra.mxu1 %vm182_vm1, %v1156_v13  ;;  %1436 = vmatpush.bf16.msrb.mxu2 %v1427_v21  ;;  %v1376_v17 = vpack.c.bf16 %v1940_v8, %v2374_v41 }
  0xa7   : > { %1917 = vmatmul.msk.bf16.vlgmr.msrb.gmra.mxu3 %vm182_vm1, %v1231_v18  ;;  %v285_v27 = vmax.f32 %v283_v24, 0.0  ;;  %1391 = vmatpush.bf16.msrb.mxu0 %v1382_v23  ;;  %v1980_v18 = vld [vmem:[%s2534_s1 + $0x4] sm:$0x3]  ;;  %v1421_v23 = vpack.c.bf16 %v1945_v11, %v2410_v10  ;;  %v1984_v24 = vld [vmem:[%s2534_s1 + $0x6] sm:$0x3] }
  0xa8   : > { %1462 = vmatpush.bf16.msrb.mxu3 %v1453_v22  ;;  %v358_v28 = vpop.f32.mrf.mxu2  ;;  %1411 = vmatpush.bf16.msrb.mxu1 %v1402_v26  ;;  %v1372_v22 = vpack.c.bf16 %v1938_v9, %v2370_v37  ;;  %v1974_v9 = vld [vmem:[%s2078_s8 + $0xd9] sm:$0x3f]  ;;  %v1978_v11 = vld [vmem:[%s2078_s8 + $0xe0] sm:$0xff] }
  0xa9   : > { %289 = vst.msk [vmem:[%s2327_s14 + $0x8] sm:$0x3f] %vm288_vm3, %v285_v27  ;;  %v363_v29 = vadd.f32 %v358_v28, %v334_v25  ;;  %v1975_v25 = vld [vmem:[%s2534_s1 + $0x2] sm:$0x3]  ;;  %v1447_v27 = vpack.c.bf16 %v1949_v15, %v1948_v14  ;;  %v1589_v28 = vld [vmem:[%s2534_s1] sm:$0x3] }
  0xaa   : > { %v384_v30 = vpop.f32.mrf.mxu3  ;;  %v315_v31 = vpop.f32.mrf.mxu0  ;;  %v1618_v35 = vsel %vm186_vm0, %v1589_v28, 0  ;;  %v1982_v15 = vld [vmem:[%s2078_s8 + $0xe1] sm:$0xff] }
  0xab   : > { %v335_v32 = vpop.f32.mrf.mxu1  ;;  %v389_v33 = vadd.f32 %v384_v30, %v363_v29  ;;  %v1643_v30 = vsel %vm186_vm0, %v1980_v18, 0 }
  0xac   : > { %v336_v40 = vadd.f32 %v335_v32, %v315_v31  ;;  %v1669_v31 = vsel %vm186_vm0, %v1984_v24, 0  ;;  %v1598_v32 = vsel %vm186_vm0, %v1975_v25, 0 }
  0xad   : > { %v391_v34 = vadd.f32 %v2319_v58, %v389_v33 }
  0xaf   : > { %v393_v39 = vmax.f32 %v391_v34, 0.0 }
  0xb0   : > { %v360_v43 = vpop.f32.mrf.mxu2 }
  0xb1   : > { %1782 = vst.msk [vmem:[%s2327_s14 + $0x10] sm:$0xff] %vm286_vm2, %v393_v39  ;;  %v364_v46 = vadd.f32 %v360_v43, %v336_v40 }
  0xb2   : > { %v386_v47 = vpop.f32.mrf.mxu3  ;;  %v421_v48 = vpop.f32.mrf.mxu0 }
  0xb3   : > { %v441_v53 = vpop.f32.mrf.mxu1  ;;  %v390_v56 = vadd.f32 %v386_v47, %v364_v46  ;;  %v1961_v46 = vld [vmem:[%s2078_s8 + $0xd0] sm:$0xff]  ;;  %v1962_v47 = vld [vmem:[%s2078_s8 + $0xd8] sm:$0x3f] }
  0xb4   : > { %v442_v62 = vadd.f32 %v441_v53, %v421_v48 }
  0xb5   : > { %1925 = vmatmul.msk.bf16.vlgmr.msra.gmra.mxu0 %vm182_vm1, %v1268_v44  ;;  %v392_v61 = vadd.f32 %v2319_v58, %v390_v56  ;;  %1930 = vmatmul.msk.bf16.vlgmr.msra.gmra.mxu2 %vm182_vm1, %v1313_v50  ;;  %v1957_v44 = vld [vmem:[%s2078_s8 + $0xc9] sm:$0x3f]  ;;  %v1965_v50 = vld [vmem:[%s2078_s8 + $0xd1] sm:$0xff] }
  0xb6   : > { %1926 = vmatmul.msk.bf16.vlgmr.msra.gmra.mxu1 %vm182_vm1, %v1264_v49  ;;  %1544 = vmatpush.bf16.msra.mxu2 %v1535_v57  ;;  %v1484_v53 = vpack.c.bf16 %v1957_v44, %v1948_v14  ;;  %v1480_v57 = vpack.c.bf16 %v1955_v45, %v2410_v10  ;;  %v1972_v10 = vld [vmem:[%s2078_s8 + $0xd8] sm:$0x3f]  ;;  %v1592_v18 = vpack.c.bf16 %v1974_v9, %v1965_v50 }
  0xb7   : > { %1934 = vmatmul.msk.bf16.vlgmr.msra.gmra.mxu3 %vm182_vm1, %v1339_v54  ;;  %v394_v0 = vmax.f32 %v392_v61, 0.0  ;;  %1499 = vmatpush.bf16.msra.mxu0 %v1490_v60  ;;  %v1555_v61 = vpack.c.bf16 %v1966_v51, %v1965_v50 }
  0xb8   : > { %1570 = vmatpush.bf16.msra.mxu3 %v1561_v59  ;;  %v466_v1 = vpop.f32.mrf.mxu2  ;;  %1519 = vmatpush.bf16.msra.mxu1 %v1510_v63  ;;  %v1529_v59 = vpack.c.bf16 %v1962_v47, %v1961_v46 }
  0xb9   : > { %1783 = vst.msk [vmem:[%s2327_s14 + $0x18] sm:$0x3f] %vm288_vm3, %v394_v0  ;;  %v471_v2 = vadd.f32 %v466_v1, %v442_v62 }
  0xba   : > { %v492_v3 = vpop.f32.mrf.mxu3  ;;  %v423_v4 = vpop.f32.mrf.mxu0 }
  0xbb   : > { %v443_v5 = vpop.f32.mrf.mxu1  ;;  %v497_v6 = vadd.f32 %v492_v3, %v471_v2 }
  0xbc   : > { %v444_v13 = vadd.f32 %v443_v5, %v423_v4 }
  0xbd   : > { %v499_v7 = vadd.f32 %v2319_v58, %v497_v6 }
  0xbf   : > { %v501_v12 = vmax.f32 %v499_v7, 0.0 }
  0xc0   : > { %v468_v16 = vpop.f32.mrf.mxu2 }
  0xc1   : > { %1799 = vst.msk [vmem:[%s2327_s14 + $0x20] sm:$0xff] %vm286_vm2, %v501_v12  ;;  %v472_v19 = vadd.f32 %v468_v16, %v444_v13  ;;  %v1979_v12 = vld [vmem:[%s2078_s8 + $0xe8] sm:$0x3f] }
  0xc2   : > { %v494_v20 = vpop.f32.mrf.mxu3  ;;  %v529_v21 = vpop.f32.mrf.mxu0  ;;  %v1983_v16 = vld [vmem:[%s2078_s8 + $0xe9] sm:$0x3f] }
  0xc3   : > { %v549_v26 = vpop.f32.mrf.mxu1  ;;  %v498_v29 = vadd.f32 %v494_v20, %v472_v19  ;;  %v1663_v25 = vpack.c.bf16 %v1983_v16, %v1982_v15 }
  0xc4   : > { %v550_v34 = vadd.f32 %v549_v26, %v529_v21 }
  0xc5   : > { %1942 = vmatmul.msk.bf16.vlgmr.msrb.gmra.mxu0 %vm182_vm1, %v1376_v17  ;;  %v500_v33 = vadd.f32 %v2319_v58, %v498_v29  ;;  %1947 = vmatmul.msk.bf16.vlgmr.msrb.gmra.mxu2 %vm182_vm1, %v1421_v23  ;;  %v1637_v23 = vpack.c.bf16 %v1979_v12, %v1978_v11 }
  0xc6   : > { %1943 = vmatmul.msk.bf16.vlgmr.msrb.gmra.mxu1 %vm182_vm1, %v1372_v22  ;;  %1652 = vmatpush.bf16.msrb.mxu2 %v1643_v30  ;;  %v1588_v22 = vpack.c.bf16 %v1972_v10, %v1961_v46 }
  0xc7   : > { %1951 = vmatmul.msk.bf16.vlgmr.msrb.gmra.mxu3 %vm182_vm1, %v1447_v27  ;;  %v502_v36 = vmax.f32 %v500_v33, 0.0  ;;  %1607 = vmatpush.bf16.msrb.mxu0 %v1598_v32 }
  0xc8   : > { %1678 = vmatpush.bf16.msrb.mxu3 %v1669_v31  ;;  %v574_v37 = vpop.f32.mrf.mxu2  ;;  %1627 = vmatpush.bf16.msrb.mxu1 %v1618_v35 }
  0xc9   : > { %1800 = vst.msk [vmem:[%s2327_s14 + $0x28] sm:$0x3f] %vm288_vm3, %v502_v36  ;;  %v579_v38 = vadd.f32 %v574_v37, %v550_v34 }
  0xca   : > { %v600_v39 = vpop.f32.mrf.mxu3  ;;  %v531_v40 = vpop.f32.mrf.mxu0 }
  0xcb   : > { %v551_v41 = vpop.f32.mrf.mxu1  ;;  %v605_v42 = vadd.f32 %v600_v39, %v579_v38 }
  0xcc   : > { %v552_v49 = vadd.f32 %v551_v41, %v531_v40 }
  0xcd   : > { %v607_v43 = vadd.f32 %v2319_v58, %v605_v42 }
  0xcf   : > { %v609_v48 = vmax.f32 %v607_v43, 0.0 }
  0xd0   : > { %v576_v52 = vpop.f32.mrf.mxu2 }
  0xd1   : > { %1816 = vst.msk [vmem:[%s2327_s14 + $0x30] sm:$0xff] %vm286_vm2, %v609_v48  ;;  %v580_v54 = vadd.f32 %v576_v52, %v552_v49 }
  0xd2   : > { %v602_v55 = vpop.f32.mrf.mxu3  ;;  %v637_v56 = vpop.f32.mrf.mxu0 }
  0xd3   : > { %v657_v60 = vpop.f32.mrf.mxu1  ;;  %v606_v62 = vadd.f32 %v602_v55, %v580_v54 }
  0xd4   : > { %v658_v0 = vadd.f32 %v657_v60, %v637_v56 }
  0xd5   : > { %1959 = vmatmul.msk.bf16.vlgmr.msra.gmra.mxu0 %vm182_vm1, %v1484_v53  ;;  %v608_v63 = vadd.f32 %v2319_v58, %v606_v62  ;;  %1964 = vmatmul.msk.bf16.vlgmr.msra.gmra.mxu2 %vm182_vm1, %v1529_v59 }
  0xd6   : > { %1960 = vmatmul.msk.bf16.vlgmr.msra.gmra.mxu1 %vm182_vm1, %v1480_v57 }
  0xd7   : > { %1968 = vmatmul.msk.bf16.vlgmr.msra.gmra.mxu3 %vm182_vm1, %v1555_v61  ;;  %v610_v1 = vmax.f32 %v608_v63, 0.0 }
  0xd8   : > { %v682_v2 = vpop.f32.mrf.mxu2 }
  0xd9   : > { %1817 = vst.msk [vmem:[%s2327_s14 + $0x38] sm:$0x3f] %vm288_vm3, %v610_v1  ;;  %v687_v3 = vadd.f32 %v682_v2, %v658_v0 }
  0xda   : > { %v708_v4 = vpop.f32.mrf.mxu3  ;;  %v639_v5 = vpop.f32.mrf.mxu0 }
  0xdb   : > { %v659_v6 = vpop.f32.mrf.mxu1  ;;  %v713_v7 = vadd.f32 %v708_v4, %v687_v3 }
  0xdc   : > { %v660_v14 = vadd.f32 %v659_v6, %v639_v5 }
  0xdd   : > { %v715_v8 = vadd.f32 %v2319_v58, %v713_v7 }
  0xdf   : > { %v717_v13 = vmax.f32 %v715_v8, 0.0 }
  0xe0   : > { %v684_v17 = vpop.f32.mrf.mxu2 }
  0xe1   : > { %1833 = vst.msk [vmem:[%s2327_s14 + $0x40] sm:$0xff] %vm286_vm2, %v717_v13  ;;  %v688_v19 = vadd.f32 %v684_v17, %v660_v14 }
  0xe2   : > { %v710_v20 = vpop.f32.mrf.mxu3  ;;  %v745_v21 = vpop.f32.mrf.mxu0 }
  0xe3   : > { %v765_v24 = vpop.f32.mrf.mxu1  ;;  %v714_v26 = vadd.f32 %v710_v20, %v688_v19 }
  0xe4   : > { %v766_v28 = vadd.f32 %v765_v24, %v745_v21 }
  0xe5   : > { %1976 = vmatmul.msk.bf16.vlgmr.msrb.gmra.mxu0 %vm182_vm1, %v1592_v18  ;;  %v716_v27 = vadd.f32 %v2319_v58, %v714_v26  ;;  %1981 = vmatmul.msk.bf16.vlgmr.msrb.gmra.mxu2 %vm182_vm1, %v1637_v23 }
  0xe6   : > { %1977 = vmatmul.msk.bf16.vlgmr.msrb.gmra.mxu1 %vm182_vm1, %v1588_v22 }
  0xe7   : > { %1985 = vmatmul.msk.bf16.vlgmr.msrb.gmra.mxu3 %vm182_vm1, %v1663_v25  ;;  %v718_v29 = vmax.f32 %v716_v27, 0.0 }
  0xe8   : > { %v790_v30 = vpop.f32.mrf.mxu2 }
  0xe9   : > { %1834 = vst.msk [vmem:[%s2327_s14 + $0x48] sm:$0x3f] %vm288_vm3, %v718_v29  ;;  %v795_v31 = vadd.f32 %v790_v30, %v766_v28 }
  0xea   : > { %v816_v32 = vpop.f32.mrf.mxu3  ;;  %v747_v33 = vpop.f32.mrf.mxu0 }
  0xeb   : > { %v767_v34 = vpop.f32.mrf.mxu1  ;;  %v821_v35 = vadd.f32 %v816_v32, %v795_v31 }
  0xec   : > { %v768_v38 = vadd.f32 %v767_v34, %v747_v33 }
  0xed   : > { %v823_v36 = vadd.f32 %v2319_v58, %v821_v35 }
  0xef   : > { %v825_v37 = vmax.f32 %v823_v36, 0.0 }
  0xf0   : > { %v792_v39 = vpop.f32.mrf.mxu2 }
  0xf1   : > { %1850 = vst.msk [vmem:[%s2327_s14 + $0x50] sm:$0xff] %vm286_vm2, %v825_v37  ;;  %v796_v40 = vadd.f32 %v792_v39, %v768_v38 }
  0xf2   : > { %v818_v41 = vpop.f32.mrf.mxu3  ;;  %v853_v42 = vpop.f32.mrf.mxu0 }
  0xf3   : > { %v873_v43 = vpop.f32.mrf.mxu1  ;;  %v822_v44 = vadd.f32 %v818_v41, %v796_v40 }
  0xf4   : > { %v874_v46 = vadd.f32 %v873_v43, %v853_v42 }
  0xf5   : > { %v824_v45 = vadd.f32 %v2319_v58, %v822_v44 }
  0xf7   : > { %v826_v47 = vmax.f32 %v824_v45, 0.0 }
  0xf8   : > { %v898_v48 = vpop.f32.mrf.mxu2 }
  0xf9   : > { %1851 = vst.msk [vmem:[%s2327_s14 + $0x58] sm:$0x3f] %vm288_vm3, %v826_v47  ;;  %v903_v49 = vadd.f32 %v898_v48, %v874_v46 }
  0xfa   : > { %v924_v50 = vpop.f32.mrf.mxu3  ;;  %v855_v51 = vpop.f32.mrf.mxu0 }
  0xfb   : > { %v875_v52 = vpop.f32.mrf.mxu1  ;;  %v929_v53 = vadd.f32 %v924_v50, %v903_v49 }
  0xfc   : > { %v876_v56 = vadd.f32 %v875_v52, %v855_v51 }
  0xfd   : > { %v931_v54 = vadd.f32 %v2319_v58, %v929_v53 }
  0xff   : > { %v933_v55 = vmax.f32 %v931_v54, 0.0 }
 0x100   : > { %v900_v57 = vpop.f32.mrf.mxu2 }
 0x101   : > { %1867 = vst.msk [vmem:[%s2327_s14 + $0x60] sm:$0xff] %vm286_vm2, %v933_v55  ;;  %v904_v59 = vadd.f32 %v900_v57, %v876_v56 }
 0x102   : > { %v926_v60 = vpop.f32.mrf.mxu3  ;;  %v961_v61 = vpop.f32.mrf.mxu0 }
 0x103   : > { %v981_v62 = vpop.f32.mrf.mxu1  ;;  %v930_v63 = vadd.f32 %v926_v60, %v904_v59 }
 0x104   : > { %v982_v1 = vadd.f32 %v981_v62, %v961_v61 }
 0x105   : > { %v932_v0 = vadd.f32 %v2319_v58, %v930_v63 }
 0x107   : > { %v934_v2 = vmax.f32 %v932_v0, 0.0 }
 0x108   : > { %v1006_v3 = vpop.f32.mrf.mxu2 }
 0x109   : > { %1868 = vst.msk [vmem:[%s2327_s14 + $0x68] sm:$0x3f] %vm288_vm3, %v934_v2  ;;  %v1011_v4 = vadd.f32 %v1006_v3, %v982_v1 }
 0x10a   : > { %v1032_v5 = vpop.f32.mrf.mxu3  ;;  %v963_v6 = vpop.f32.mrf.mxu0 }
 0x10b   : > { %v983_v7 = vpop.f32.mrf.mxu1  ;;  %v1037_v8 = vadd.f32 %v1032_v5, %v1011_v4 }
 0x10c   : > { %v984_v11 = vadd.f32 %v983_v7, %v963_v6 }
 0x10d   : > { %v1039_v9 = vadd.f32 %v2319_v58, %v1037_v8 }
 0x10f   : > { %v1041_v10 = vmax.f32 %v1039_v9, 0.0 }
 0x110   : > { %v1008_v12 = vpop.f32.mrf.mxu2 }
 0x111   : > { %1884 = vst.msk [vmem:[%s2327_s14 + $0x70] sm:$0xff] %vm286_vm2, %v1041_v10  ;;  %v1012_v13 = vadd.f32 %v1008_v12, %v984_v11 }
 0x112   : > { %v1034_v14 = vpop.f32.mrf.mxu3  ;;  %v1069_v15 = vpop.f32.mrf.mxu0 }
 0x113   : > { %v1089_v16 = vpop.f32.mrf.mxu1  ;;  %v1038_v17 = vadd.f32 %v1034_v14, %v1012_v13 }
 0x114   : > { %v1090_v19 = vadd.f32 %v1089_v16, %v1069_v15 }
 0x115   : > { %v1040_v18 = vadd.f32 %v2319_v58, %v1038_v17 }
 0x117   : > { %v1042_v20 = vmax.f32 %v1040_v18, 0.0 }
 0x118   : > { %v1114_v21 = vpop.f32.mrf.mxu2 }
 0x119   : > { %1885 = vst.msk [vmem:[%s2327_s14 + $0x78] sm:$0x3f] %vm288_vm3, %v1042_v20  ;;  %v1119_v22 = vadd.f32 %v1114_v21, %v1090_v19 }
 0x11a   : > { %v1140_v23 = vpop.f32.mrf.mxu3  ;;  %v1071_v24 = vpop.f32.mrf.mxu0 }
 0x11b   : > { %v1091_v25 = vpop.f32.mrf.mxu1  ;;  %v1145_v26 = vadd.f32 %v1140_v23, %v1119_v22 }
 0x11c   : > { %v1092_v29 = vadd.f32 %v1091_v25, %v1071_v24 }
 0x11d   : > { %v1147_v27 = vadd.f32 %v2319_v58, %v1145_v26 }
 0x11f   : > { %v1149_v28 = vmax.f32 %v1147_v27, 0.0 }
 0x120   : > { %v1116_v30 = vpop.f32.mrf.mxu2 }
 0x121   : > { %1901 = vst.msk [vmem:[%s2327_s14 + $0x80] sm:$0xff] %vm286_vm2, %v1149_v28  ;;  %v1120_v31 = vadd.f32 %v1116_v30, %v1092_v29 }
 0x122   : > { %v1142_v32 = vpop.f32.mrf.mxu3  ;;  %v1177_v33 = vpop.f32.mrf.mxu0 }
 0x123   : > { %v1197_v34 = vpop.f32.mrf.mxu1  ;;  %v1146_v35 = vadd.f32 %v1142_v32, %v1120_v31 }
 0x124   : > { %v1198_v37 = vadd.f32 %v1197_v34, %v1177_v33 }
 0x125   : > { %v1148_v36 = vadd.f32 %v2319_v58, %v1146_v35 }
 0x127   : > { %v1150_v38 = vmax.f32 %v1148_v36, 0.0 }
 0x128   : > { %v1222_v39 = vpop.f32.mrf.mxu2 }
 0x129   : > { %1902 = vst.msk [vmem:[%s2327_s14 + $0x88] sm:$0x3f] %vm288_vm3, %v1150_v38  ;;  %v1227_v40 = vadd.f32 %v1222_v39, %v1198_v37 }
 0x12a   : > { %v1248_v41 = vpop.f32.mrf.mxu3  ;;  %v1179_v42 = vpop.f32.mrf.mxu0 }
 0x12b   : > { %v1199_v43 = vpop.f32.mrf.mxu1  ;;  %v1253_v44 = vadd.f32 %v1248_v41, %v1227_v40 }
 0x12c   : > { %v1200_v47 = vadd.f32 %v1199_v43, %v1179_v42 }
 0x12d   : > { %v1255_v45 = vadd.f32 %v2319_v58, %v1253_v44 }
 0x12f   : > { %v1257_v46 = vmax.f32 %v1255_v45, 0.0 }
 0x130   : > { %v1224_v48 = vpop.f32.mrf.mxu2 }
 0x131   : > { %1918 = vst.msk [vmem:[%s2327_s14 + $0x90] sm:$0xff] %vm286_vm2, %v1257_v46  ;;  %v1228_v49 = vadd.f32 %v1224_v48, %v1200_v47 }
 0x132   : > { %v1250_v50 = vpop.f32.mrf.mxu3  ;;  %v1285_v51 = vpop.f32.mrf.mxu0 }
 0x133   : > { %v1305_v52 = vpop.f32.mrf.mxu1  ;;  %v1254_v53 = vadd.f32 %v1250_v50, %v1228_v49 }
 0x134   : > { %v1306_v55 = vadd.f32 %v1305_v52, %v1285_v51 }
 0x135   : > { %v1256_v54 = vadd.f32 %v2319_v58, %v1254_v53 }
 0x137   : > { %v1258_v56 = vmax.f32 %v1256_v54, 0.0 }
 0x138   : > { %v1330_v57 = vpop.f32.mrf.mxu2 }
 0x139   : > { %1919 = vst.msk [vmem:[%s2327_s14 + $0x98] sm:$0x3f] %vm288_vm3, %v1258_v56  ;;  %v1335_v59 = vadd.f32 %v1330_v57, %v1306_v55 }
 0x13a   : > { %v1356_v60 = vpop.f32.mrf.mxu3  ;;  %v1287_v61 = vpop.f32.mrf.mxu0 }
 0x13b   : > { %v1307_v62 = vpop.f32.mrf.mxu1  ;;  %v1361_v63 = vadd.f32 %v1356_v60, %v1335_v59 }
 0x13c   : > { %v1308_v2 = vadd.f32 %v1307_v62, %v1287_v61 }
 0x13d   : > { %v1363_v0 = vadd.f32 %v2319_v58, %v1361_v63 }
 0x13f   : > { %v1365_v1 = vmax.f32 %v1363_v0, 0.0 }
 0x140   : > { %v1332_v3 = vpop.f32.mrf.mxu2 }
 0x141   : > { %1935 = vst.msk [vmem:[%s2327_s14 + $0xa0] sm:$0xff] %vm286_vm2, %v1365_v1  ;;  %v1336_v4 = vadd.f32 %v1332_v3, %v1308_v2 }
 0x142   : > { %v1358_v5 = vpop.f32.mrf.mxu3  ;;  %v1393_v6 = vpop.f32.mrf.mxu0 }
 0x143   : > { %v1413_v7 = vpop.f32.mrf.mxu1  ;;  %v1362_v8 = vadd.f32 %v1358_v5, %v1336_v4 }
 0x144   : > { %v1414_v10 = vadd.f32 %v1413_v7, %v1393_v6 }
 0x145   : > { %v1364_v9 = vadd.f32 %v2319_v58, %v1362_v8 }
 0x147   : > { %v1366_v11 = vmax.f32 %v1364_v9, 0.0 }
 0x148   : > { %v1438_v12 = vpop.f32.mrf.mxu2 }
 0x149   : > { %1936 = vst.msk [vmem:[%s2327_s14 + $0xa8] sm:$0x3f] %vm288_vm3, %v1366_v11  ;;  %v1443_v13 = vadd.f32 %v1438_v12, %v1414_v10 }
 0x14a   : > { %v1464_v14 = vpop.f32.mrf.mxu3  ;;  %v1395_v15 = vpop.f32.mrf.mxu0 }
 0x14b   : > { %v1415_v16 = vpop.f32.mrf.mxu1  ;;  %v1469_v17 = vadd.f32 %v1464_v14, %v1443_v13 }
 0x14c   : > { %v1416_v20 = vadd.f32 %v1415_v16, %v1395_v15 }
 0x14d   : > { %v1471_v18 = vadd.f32 %v2319_v58, %v1469_v17 }
 0x14f   : > { %v1473_v19 = vmax.f32 %v1471_v18, 0.0 }
 0x150   : > { %v1440_v21 = vpop.f32.mrf.mxu2 }
 0x151   : > { %1952 = vst.msk [vmem:[%s2327_s14 + $0xb0] sm:$0xff] %vm286_vm2, %v1473_v19  ;;  %v1444_v22 = vadd.f32 %v1440_v21, %v1416_v20 }
 0x152   : > { %v1466_v23 = vpop.f32.mrf.mxu3  ;;  %v1501_v24 = vpop.f32.mrf.mxu0 }
 0x153   : > { %v1521_v25 = vpop.f32.mrf.mxu1  ;;  %v1470_v26 = vadd.f32 %v1466_v23, %v1444_v22 }
 0x154   : > { %v1522_v28 = vadd.f32 %v1521_v25, %v1501_v24 }
 0x155   : > { %v1472_v27 = vadd.f32 %v2319_v58, %v1470_v26 }
 0x157   : > { %v1474_v29 = vmax.f32 %v1472_v27, 0.0 }
 0x158   : > { %v1546_v30 = vpop.f32.mrf.mxu2 }
 0x159   : > { %1953 = vst.msk [vmem:[%s2327_s14 + $0xb8] sm:$0x3f] %vm288_vm3, %v1474_v29  ;;  %v1551_v31 = vadd.f32 %v1546_v30, %v1522_v28 }
 0x15a   : > { %v1572_v32 = vpop.f32.mrf.mxu3  ;;  %v1503_v33 = vpop.f32.mrf.mxu0 }
 0x15b   : > { %v1523_v34 = vpop.f32.mrf.mxu1  ;;  %v1577_v35 = vadd.f32 %v1572_v32, %v1551_v31 }
 0x15c   : > { %v1524_v38 = vadd.f32 %v1523_v34, %v1503_v33 }
 0x15d   : > { %v1579_v36 = vadd.f32 %v2319_v58, %v1577_v35 }
 0x15f   : > { %v1581_v37 = vmax.f32 %v1579_v36, 0.0 }
 0x160   : > { %v1548_v39 = vpop.f32.mrf.mxu2 }
 0x161   : > { %1969 = vst.msk [vmem:[%s2327_s14 + $0xc0] sm:$0xff] %vm286_vm2, %v1581_v37  ;;  %v1552_v40 = vadd.f32 %v1548_v39, %v1524_v38 }
 0x162   : > { %v1574_v41 = vpop.f32.mrf.mxu3  ;;  %v1609_v42 = vpop.f32.mrf.mxu0 }
 0x163   : > { %v1629_v43 = vpop.f32.mrf.mxu1  ;;  %v1578_v44 = vadd.f32 %v1574_v41, %v1552_v40 }
 0x164   : > { %v1630_v46 = vadd.f32 %v1629_v43, %v1609_v42 }
 0x165   : > { %v1580_v45 = vadd.f32 %v2319_v58, %v1578_v44 }
 0x167   : > { %v1582_v47 = vmax.f32 %v1580_v45, 0.0 }
 0x168   : > { %v1654_v48 = vpop.f32.mrf.mxu2 }
 0x169   : > { %1970 = vst.msk [vmem:[%s2327_s14 + $0xc8] sm:$0x3f] %vm288_vm3, %v1582_v47  ;;  %v1659_v49 = vadd.f32 %v1654_v48, %v1630_v46 }
 0x16a   : > { %v1680_v50 = vpop.f32.mrf.mxu3  ;;  %v1611_v52 = vpop.f32.mrf.mxu0 }
 0x16b   : > { %v1685_v51 = vadd.f32 %v1680_v50, %v1659_v49  ;;  %v1631_v53 = vpop.f32.mrf.mxu1 }
 0x16c   : > { %v1632_v56 = vadd.f32 %v1631_v53, %v1611_v52 }
 0x16d   : > { %v1687_v54 = vadd.f32 %v2319_v58, %v1685_v51 }
 0x16f   : > { %v1689_v55 = vmax.f32 %v1687_v54, 0.0 }
 0x170   : > { %v1656_v57 = vpop.f32.mrf.mxu2 }
 0x171   : > { %1986 = vst.msk [vmem:[%s2327_s14 + $0xd0] sm:$0xff] %vm286_vm2, %v1689_v55  ;;  %v1660_v59 = vadd.f32 %v1656_v57, %v1632_v56 }
 0x172   : > { %v1682_v60 = vpop.f32.mrf.mxu3 }
 0x173   : > { %v1686_v61 = vadd.f32 %v1682_v60, %v1660_v59 }
 0x175   : > { %v1688_v62 = vadd.f32 %v2319_v58, %v1686_v61 }
 0x177   : > { %v1690_v63 = vmax.f32 %v1688_v62, 0.0 }
 0x179   : > { %1987 = vst.msk [vmem:[%s2327_s14 + $0xd8] sm:$0x3f] %vm288_vm3, %v1690_v63 }
 0x17a PF: > { %s13_s12 = sadd.s32 1, %s2007_s12  }
 0x17b   : > { %p10_p4 = scmp.ge.s32.totalorder %s13_s12, 4  }
 0x17d   :  { %12 = sbr.rel (!%p10_p4) target bundleno = 1 (0x1), region = 92 }

// kernel: autoencoder_forward.7
= control target key start
LH: loop header
LB: loop body
LE: loop exit
PB: predicated region body
PF: predicated region fallthrough
CT: control target
= control target key end

     0   :  { %s2682_s18 = smov 0   ;;  %s3390_s0 = inlined_call_operand.vmem [shape: f32[2,1,1568], index: 0, kind: input, shape index: {}]   ;;  %s3391_s1 = inlined_call_operand.vmem [shape: bf16[1568,64], index: 1, kind: input, shape index: {}]   ;;  %s3392_s2 = inlined_call_operand.vmem [shape: f32[1,64], index: 2, kind: input, shape index: {}]   ;;  %s3393_s3 = inlined_call_operand.vmem [shape: bf16[64,1568], index: 3, kind: input, shape index: {}]   ;;  %s3394_s4 = inlined_call_operand.vmem [shape: f32[1,1568], index: 4, kind: input, shape index: {}]   ;;  %s3395_s5 = inlined_call_operand.vmem [shape: f32[2,1,1568], index: 5, kind: output, shape index: {}]  }
   0x1 LB: > { %s1864_s19 = sadd.s32 4294967295, %s2650_s18   ;;  %p1868_p0 = scmp.ge.s32.totalorder %s2650_s18, 1  ;;  %s2650_s18 = sphi %s2682_s18, %s15_s18  }
   0x2   : > { %p186_p1 = scmp.lt.s32.totalorder %s2650_s18, 3 }
   0x4   : > { %p187_p2 = pnand %p1868_p0, %p186_p1 }
   0x5   : > { %p212_p3 = scmp.lt.s32.totalorder (!%p187_p2), %s1864_s19, 1 }
   0x6   : > { %190 = sbr.rel (%p187_p2) target bundleno = 436 (0x1b4), region = 40 }
   0xb   : > { %v2492_v0 = vld [vmem:[%s3391_s1 + $0x38] sm:$0xff]  ;;  %v2491_v4 = vld [vmem:[%s3391_s1 + $0x30] sm:$0xff]  ;;  %v2490_v8 = vld [vmem:[%s3391_s1 + $0x28] sm:$0xff]  ;;  %s3397_s19 = smov (!%p212_p3, %s1864_s19), 1  ;;  %vm1049_vm0 = vcmask 261120   ;;  %vm1573_vm1 = vcmask 523264  }
   0xc   : > { %v2508_v1 = vld [vmem:[%s3391_s1 + $0xb8] sm:$0xff]  ;;  %1053 = vmatpush.bf16.msra.mxu0 %v2492_v0  ;;  %v2507_v5 = vld [vmem:[%s3391_s1 + $0xb0] sm:$0xff]  ;;  %v2506_v9 = vld [vmem:[%s3391_s1 + $0xa8] sm:$0xff]  ;;  %s2635_s12 = smul.u32 13, %s3397_s19  ;;  %vm1783_vm2 = vcmask 1040384   ;;  %vm1785_vm3 = vcmask 1042434  }
   0xd   : > { %v2516_v2 = vld [vmem:[%s3391_s1 + $0xf8] sm:$0xff]  ;;  %1079 = vmatpush.bf16.msra.mxu2 %v2508_v1  ;;  %v2515_v6 = vld [vmem:[%s3391_s1 + $0xf0] sm:$0xff]  ;;  %v2514_v10 = vld [vmem:[%s3391_s1 + $0xe8] sm:$0xff]  ;;  %vm1787_vm4 = vcmask 1041408   ;;  %vm1789_vm5 = vcmask 1044484   ;;  %vm1791_vm6 = vcmask 1046534  }
   0xe   : > { %v2500_v3 = vld [vmem:[%s3391_s1 + $0x78] sm:$0xff]  ;;  %1092 = vmatpush.bf16.msra.mxu3 %v2516_v2  ;;  %v2499_v7 = vld [vmem:[%s3391_s1 + $0x70] sm:$0xff]  ;;  %v2498_v11 = vld [vmem:[%s3391_s1 + $0x68] sm:$0xff]  ;;  %s2774_s25 = scalar_lea.vmem %s3390_s0, %s2635_s12  ;;  %vm1793_vm7 = vcmask 1045508   ;;  %vm1795_vm8 = vcmask 1043456   ;;  %s3377_s17 = scalar_lea.vmem %s3395_s5, %s2635_s12  ;;  %vm1799_vm9 = vcmask 1043459  }
   0xf   : > { %1066 = vmatpush.bf16.msra.mxu1 %v2500_v3  ;;  %v2489_v12 = vld [vmem:[%s3391_s1 + $0x20] sm:$0xff]  ;;  %v2488_v16 = vld [vmem:[%s3391_s1 + $0x18] sm:$0xff]  ;;  %v2487_v20 = vld [vmem:[%s3391_s1 + $0x10] sm:$0xff]  ;;  %vm1801_vm10 = vcmask 1042432  }
  0x10   : > { %1054 = vmatpush.bf16.msra.mxu0 %v2491_v4  ;;  %v2505_v13 = vld [vmem:[%s3391_s1 + $0xa0] sm:$0xff]  ;;  %v2504_v17 = vld [vmem:[%s3391_s1 + $0x98] sm:$0xff]  ;;  %v2503_v21 = vld [vmem:[%s3391_s1 + $0x90] sm:$0xff] }
  0x11   : > { %1080 = vmatpush.bf16.msra.mxu2 %v2507_v5  ;;  %v2513_v14 = vld [vmem:[%s3391_s1 + $0xe0] sm:$0xff]  ;;  %v2512_v18 = vld [vmem:[%s3391_s1 + $0xd8] sm:$0xff]  ;;  %v2511_v22 = vld [vmem:[%s3391_s1 + $0xd0] sm:$0xff] }
  0x12   : > { %1093 = vmatpush.bf16.msra.mxu3 %v2515_v6  ;;  %v2497_v15 = vld [vmem:[%s3391_s1 + $0x60] sm:$0xff]  ;;  %v2496_v19 = vld [vmem:[%s3391_s1 + $0x58] sm:$0xff]  ;;  %v2495_v23 = vld [vmem:[%s3391_s1 + $0x50] sm:$0xff] }
  0x13   : > { %1067 = vmatpush.bf16.msra.mxu1 %v2499_v7  ;;  %v2486_v24 = vld [vmem:[%s3391_s1 + $0x8] sm:$0xff]  ;;  %v2783_v26 = vld [vmem:[%s2774_s25] sm:$0xff]  ;;  %v2524_v34 = vld [vmem:[%s3391_s1 + $0x138] sm:$0xff] }
  0x14   : > { %1055 = vmatpush.bf16.msra.mxu0 %v2490_v8  ;;  %v2502_v25 = vld [vmem:[%s3391_s1 + $0x88] sm:$0xff]  ;;  %v227_v29 = vperm.slane %v2783_v26, 2  ;;  %v2485_v30 = vld [vmem:[%s3391_s1] sm:$0xff]  ;;  %v225_v32 = vperm.slane %v2783_v26, 0  ;;  %v228_v35 = vperm.slane %v2783_v26, 3  ;;  %v2540_v36 = vld [vmem:[%s3391_s1 + $0x1b8] sm:$0xff] }
  0x15   : > { %1081 = vmatpush.bf16.msra.mxu2 %v2506_v9  ;;  %v2510_v27 = vld [vmem:[%s3391_s1 + $0xc8] sm:$0xff]  ;;  %v2501_v31 = vld [vmem:[%s3391_s1 + $0x80] sm:$0xff]  ;;  %v2548_v37 = vld [vmem:[%s3391_s1 + $0x1f8] sm:$0xff]  ;;  %v226_v40 = vperm.slane %v2783_v26, 1  ;;  %v231_v6 = vperm.slane %v2783_v26, 6  ;;  %v229_v9 = vperm.slane %v2783_v26, 4 }
  0x16   : > { %1094 = vmatpush.bf16.msra.mxu3 %v2514_v10  ;;  %v2494_v28 = vld [vmem:[%s3391_s1 + $0x48] sm:$0xff]  ;;  %v2509_v33 = vld [vmem:[%s3391_s1 + $0xc0] sm:$0xff]  ;;  %v253_v39 = vpack.c.bf16 %v227_v29, %v227_v29  ;;  %v2532_v41 = vld [vmem:[%s3391_s1 + $0x178] sm:$0xff]  ;;  %v251_v42 = vpack.c.bf16 %v225_v32, %v225_v32  ;;  %v254_v44 = vpack.c.bf16 %v228_v35, %v228_v35  ;;  %v232_v10 = vperm.slane %v2783_v26, 7 }
  0x17   : > { %1068 = vmatpush.bf16.msra.mxu1 %v2498_v11  ;;  %v2493_v38 = vld [vmem:[%s3391_s1 + $0x40] sm:$0xff]  ;;  %v2523_v43 = vld [vmem:[%s3391_s1 + $0x130] sm:$0xff]  ;;  %v252_v47 = vpack.c.bf16 %v226_v40, %v226_v40  ;;  %v2522_v49 = vld [vmem:[%s3391_s1 + $0x128] sm:$0xff] }
  0x18   : > { %1056 = vmatpush.bf16.msra.mxu0 %v2489_v12  ;;  %v2539_v45 = vld [vmem:[%s3391_s1 + $0x1b0] sm:$0xff]  ;;  %v2538_v50 = vld [vmem:[%s3391_s1 + $0x1a8] sm:$0xff]  ;;  %v2521_v53 = vld [vmem:[%s3391_s1 + $0x120] sm:$0xff] }
  0x19   : > { %1082 = vmatpush.bf16.msra.mxu2 %v2505_v13  ;;  %v2547_v46 = vld [vmem:[%s3391_s1 + $0x1f0] sm:$0xff]  ;;  %v2546_v51 = vld [vmem:[%s3391_s1 + $0x1e8] sm:$0xff]  ;;  %v2537_v54 = vld [vmem:[%s3391_s1 + $0x1a0] sm:$0xff] }
  0x1a   : > { %1095 = vmatpush.bf16.msra.mxu3 %v2513_v14  ;;  %v2531_v48 = vld [vmem:[%s3391_s1 + $0x170] sm:$0xff]  ;;  %v2530_v52 = vld [vmem:[%s3391_s1 + $0x168] sm:$0xff]  ;;  %v2545_v55 = vld [vmem:[%s3391_s1 + $0x1e0] sm:$0xff] }
  0x1b   : > { %1069 = vmatpush.bf16.msra.mxu1 %v2497_v15  ;;  %v2529_v56 = vld [vmem:[%s3391_s1 + $0x160] sm:$0xff]  ;;  %v2520_v57 = vld [vmem:[%s3391_s1 + $0x118] sm:$0xff]  ;;  %v2519_v61 = vld [vmem:[%s3391_s1 + $0x110] sm:$0xff]  ;;  %v230_v15 = vperm.slane %v2783_v26, 5 }
  0x1c   : > { %1057 = vmatpush.bf16.msra.mxu0 %v2488_v16  ;;  %v2536_v58 = vld [vmem:[%s3391_s1 + $0x198] sm:$0xff]  ;;  %v2535_v62 = vld [vmem:[%s3391_s1 + $0x190] sm:$0xff]  ;;  %v2518_v1 = vld [vmem:[%s3391_s1 + $0x108] sm:$0xff] }
  0x1d   : > { %1083 = vmatpush.bf16.msra.mxu2 %v2504_v17  ;;  %v2544_v59 = vld [vmem:[%s3391_s1 + $0x1d8] sm:$0xff]  ;;  %v2543_v63 = vld [vmem:[%s3391_s1 + $0x1d0] sm:$0xff]  ;;  %v2534_v2 = vld [vmem:[%s3391_s1 + $0x188] sm:$0xff]  ;;  %v257_v17 = vpack.c.bf16 %v231_v6, %v231_v6 }
  0x1e   : > { %1096 = vmatpush.bf16.msra.mxu3 %v2512_v18  ;;  %v2528_v60 = vld [vmem:[%s3391_s1 + $0x158] sm:$0xff]  ;;  %v2527_v0 = vld [vmem:[%s3391_s1 + $0x150] sm:$0xff]  ;;  %v2542_v3 = vld [vmem:[%s3391_s1 + $0x1c8] sm:$0xff]  ;;  %v255_v18 = vpack.c.bf16 %v229_v9, %v229_v9 }
  0x1f   : > { %1070 = vmatpush.bf16.msra.mxu1 %v2496_v19  ;;  %v2526_v4 = vld [vmem:[%s3391_s1 + $0x148] sm:$0xff]  ;;  %v2517_v5 = vld [vmem:[%s3391_s1 + $0x100] sm:$0xff]  ;;  %v2556_v11 = vld [vmem:[%s3391_s1 + $0x238] sm:$0xff]  ;;  %v258_v19 = vpack.c.bf16 %v232_v10, %v232_v10 }
  0x20   : > { %1058 = vmatpush.bf16.msra.mxu0 %v2487_v20  ;;  %v2533_v7 = vld [vmem:[%s3391_s1 + $0x180] sm:$0xff]  ;;  %v2572_v12 = vld [vmem:[%s3391_s1 + $0x2b8] sm:$0xff]  ;;  %v2555_v20 = vld [vmem:[%s3391_s1 + $0x230] sm:$0xff] }
  0x21   : > { %1084 = vmatpush.bf16.msra.mxu2 %v2503_v21  ;;  %v2541_v8 = vld [vmem:[%s3391_s1 + $0x1c0] sm:$0xff]  ;;  %v2580_v13 = vld [vmem:[%s3391_s1 + $0x2f8] sm:$0xff]  ;;  %v2571_v21 = vld [vmem:[%s3391_s1 + $0x2b0] sm:$0xff] }
  0x22   : > { %1097 = vmatpush.bf16.msra.mxu3 %v2511_v22  ;;  %v2525_v14 = vld [vmem:[%s3391_s1 + $0x140] sm:$0xff]  ;;  %v2564_v16 = vld [vmem:[%s3391_s1 + $0x278] sm:$0xff]  ;;  %v2579_v22 = vld [vmem:[%s3391_s1 + $0x2f0] sm:$0xff] }
  0x23   : > { %1071 = vmatpush.bf16.msra.mxu1 %v2495_v23  ;;  %v256_v23 = vpack.c.bf16 %v230_v15, %v230_v15  ;;  %v2570_v26 = vld [vmem:[%s3391_s1 + $0x2a8] sm:$0xff]  ;;  %v2553_v29 = vld [vmem:[%s3391_s1 + $0x220] sm:$0xff]  ;;  %v2576_v35 = vld [vmem:[%s3391_s1 + $0x2d8] sm:$0xff] }
  0x24   : > { %1059 = vmatpush.bf16.msra.mxu0 %v2486_v24  ;;  %v2563_v24 = vld [vmem:[%s3391_s1 + $0x270] sm:$0xff]  ;;  %v2561_v32 = vld [vmem:[%s3391_s1 + $0x260] sm:$0xff] }
  0x25   : > { %1085 = vmatpush.bf16.msra.mxu2 %v2502_v25  ;;  %v2554_v25 = vld [vmem:[%s3391_s1 + $0x228] sm:$0xff]  ;;  %v2559_v40 = vld [vmem:[%s3391_s1 + $0x250] sm:$0xff]  ;;  %v460_v6 = vld [vmem:[%s3392_s2] sm:$0x1] }
  0x26   : > { %1098 = vmatpush.bf16.msra.mxu3 %v2510_v27  ;;  %v2578_v27 = vld [vmem:[%s3391_s1 + $0x2e8] sm:$0xff]  ;;  %v2629_v15 = vld [vmem:[%s3393_s3 + $0x170] sm:$0xf0] }
  0x27   : > { %1072 = vmatpush.bf16.msra.mxu1 %v2494_v28  ;;  %v2562_v28 = vld [vmem:[%s3391_s1 + $0x268] sm:$0xff] }
  0x28   : > { %1060 = vmatpush.bf16.msra.mxu0 %v2485_v30  ;;  %v2569_v30 = vld [vmem:[%s3391_s1 + $0x2a0] sm:$0xff] }
  0x29   : > { %1086 = vmatpush.bf16.msra.mxu2 %v2501_v31  ;;  %v2577_v31 = vld [vmem:[%s3391_s1 + $0x2e0] sm:$0xff] }
  0x2a   : > { %1099 = vmatpush.bf16.msra.mxu3 %v2509_v33  ;;  %v2552_v33 = vld [vmem:[%s3391_s1 + $0x218] sm:$0xff] }
  0x2b   : > { %1073 = vmatpush.bf16.msra.mxu1 %v2493_v38  ;;  %1061 = vmatmul.bf16.vlgmr.msra.gmra.mxu0 %v251_v42  ;;  %v2567_v38 = vld [vmem:[%s3391_s1 + $0x290] sm:$0xff]  ;;  %v2566_v42 = vld [vmem:[%s3391_s1 + $0x288] sm:$0xff] }
  0x2c   : > { %1105 = vmatpush.bf16.msrb.mxu0 %v2524_v34  ;;  %1087 = vmatmul.bf16.vlgmr.msra.gmra.mxu2 %v253_v39  ;;  %v2568_v34 = vld [vmem:[%s3391_s1 + $0x298] sm:$0xff]  ;;  %v2575_v39 = vld [vmem:[%s3391_s1 + $0x2d0] sm:$0xff] }
  0x2d   : > { %1131 = vmatpush.bf16.msrb.mxu2 %v2540_v36  ;;  %1100 = vmatmul.bf16.vlgmr.msra.gmra.mxu3 %v254_v44  ;;  %v2560_v36 = vld [vmem:[%s3391_s1 + $0x258] sm:$0xff]  ;;  %v2574_v44 = vld [vmem:[%s3391_s1 + $0x2c8] sm:$0xff] }
  0x2e   : > { %1144 = vmatpush.bf16.msrb.mxu3 %v2548_v37  ;;  %1074 = vmatmul.bf16.vlgmr.msra.gmra.mxu1 %v252_v47  ;;  %v2551_v37 = vld [vmem:[%s3391_s1 + $0x210] sm:$0xff] }
  0x2f   : > { %1118 = vmatpush.bf16.msrb.mxu1 %v2532_v41  ;;  %v2550_v41 = vld [vmem:[%s3391_s1 + $0x208] sm:$0xff] }
  0x30   : > { %1106 = vmatpush.bf16.msrb.mxu0 %v2523_v43  ;;  %v222_v43 = vld [vmem:[%s2774_s25 + $0x8] sm:$0x1f] }
  0x31   : > { %1132 = vmatpush.bf16.msrb.mxu2 %v2539_v45  ;;  %v2558_v45 = vld [vmem:[%s3391_s1 + $0x248] sm:$0xff]  ;;  %v235_v47 = vperm.slane %v222_v43, 2 }
  0x32   : > { %1145 = vmatpush.bf16.msrb.mxu3 %v2547_v46  ;;  %v233_v46 = vperm.slane %v222_v43, 0 }
  0x33   : > { %1119 = vmatpush.bf16.msrb.mxu1 %v2531_v48  ;;  %v2549_v48 = vld [vmem:[%s3391_s1 + $0x200] sm:$0xff] }
  0x34   : > { %1107 = vmatpush.bf16.msrb.mxu0 %v2522_v49  ;;  %v2565_v49 = vld [vmem:[%s3391_s1 + $0x280] sm:$0xff] }
  0x35   : > { %1133 = vmatpush.bf16.msrb.mxu2 %v2538_v50  ;;  %v236_v50 = vperm.slane %v222_v43, 3 }
  0x36   : > { %1146 = vmatpush.bf16.msrb.mxu3 %v2546_v51  ;;  %v2573_v51 = vld [vmem:[%s3391_s1 + $0x2c0] sm:$0xff] }
  0x37   : > { %1120 = vmatpush.bf16.msrb.mxu1 %v2530_v52  ;;  %v2582_v52 = vld [vmem:[%s3391_s1 + $0x308] sm:$0xff] }
  0x38   : > { %1108 = vmatpush.bf16.msrb.mxu0 %v2521_v53  ;;  %v234_v53 = vperm.slane %v222_v43, 1 }
  0x39   : > { %1134 = vmatpush.bf16.msrb.mxu2 %v2537_v54  ;;  %v2557_v54 = vld [vmem:[%s3391_s1 + $0x240] sm:$0xff] }
  0x3a   : > { %1147 = vmatpush.bf16.msrb.mxu3 %v2545_v55  ;;  %v259_v55 = vpack.c.bf16 %v233_v46, %v233_v46  ;;  %v2597_v46 = vld [vmem:[%s3393_s3 + $0x74] sm:$0xf] }
  0x3b   : > { %1121 = vmatpush.bf16.msrb.mxu1 %v2529_v56  ;;  %v261_v56 = vpack.c.bf16 %v235_v47, %v235_v47  ;;  %v2326_v47 = vld [vmem:[%s3393_s3 + $0xa4] sm:$0xf0] }
  0x3c   : > { %1109 = vmatpush.bf16.msrb.mxu0 %v2520_v57  ;;  %v262_v57 = vpack.c.bf16 %v236_v50, %v236_v50  ;;  %v2329_v50 = vor.u32 %v2597_v46, %v2326_v47  ;;  %v2282_v46 = vld [vmem:[%s3393_s3 + $0x44] sm:$0xf0]  ;;  %v2288_v47 = vld [vmem:[%s3393_s3 + $0x18] sm:$0xf] }
  0x3d   : > { %1135 = vmatpush.bf16.msrb.mxu2 %v2536_v58  ;;  %v260_v58 = vpack.c.bf16 %v234_v53, %v234_v53  ;;  %v2589_v53 = vld [vmem:[%s3393_s3 + $0x30] sm:$0xf0] }
  0x3e   : > { %1148 = vmatpush.bf16.msrb.mxu3 %v2544_v59  ;;  %v2581_v59 = vld [vmem:[%s3391_s1 + $0x300] sm:$0xff] }
  0x3f   : > { %1122 = vmatpush.bf16.msrb.mxu1 %v2528_v60  ;;  %v237_v60 = vperm.slane %v222_v43, 4  ;;  %v2324_v43 = vld [vmem:[%s3393_s3 + $0x70] sm:$0xf] }
  0x40   : > { %1110 = vmatpush.bf16.msrb.mxu0 %v2519_v61 }
  0x41   : > { %1136 = vmatpush.bf16.msrb.mxu2 %v2535_v62  ;;  %v263_v61 = vpack.c.bf16 %v237_v60, %v237_v60 }
  0x42   : > { %1149 = vmatpush.bf16.msrb.mxu3 %v2543_v63 }
  0x43   : > { %1123 = vmatpush.bf16.msrb.mxu1 %v2527_v0 }
  0x44   : > { %1111 = vmatpush.bf16.msrb.mxu0 %v2518_v1 }
  0x45   : > { %1137 = vmatpush.bf16.msrb.mxu2 %v2534_v2 }
  0x46   : > { %1150 = vmatpush.bf16.msrb.mxu3 %v2542_v3 }
  0x47   : > { %1124 = vmatpush.bf16.msrb.mxu1 %v2526_v4 }
  0x48   : > { %1112 = vmatpush.bf16.msrb.mxu0 %v2517_v5 }
  0x49   : > { %1138 = vmatpush.bf16.msrb.mxu2 %v2533_v7  ;;  %v2420_v7 = vld [vmem:[%s3393_s3 + $0x138] sm:$0xf] }
  0x4a   : > { %1151 = vmatpush.bf16.msrb.mxu3 %v2541_v8  ;;  %v2628_v8 = vld [vmem:[%s3393_s3 + $0x168] sm:$0xf0] }
  0x4b   : > { %1125 = vmatpush.bf16.msrb.mxu1 %v2525_v14  ;;  %1113 = vmatmul.bf16.vlgmr.msrb.gmra.mxu0 %v255_v18  ;;  %v2421_v10 = vor.u32 %v2628_v8, %v2420_v7  ;;  %v2444_v8 = vld [vmem:[%s3393_s3 + $0x150] sm:$0xf] }
  0x4c   : > { %1157 = vmatpush.bf16.msra.mxu0 %v2556_v11  ;;  %1139 = vmatmul.bf16.vlgmr.msrb.gmra.mxu2 %v257_v17  ;;  %v2622_v11 = vld [vmem:[%s3393_s3 + $0x13c] sm:$0xf]  ;;  %v2430_v17 = vld [vmem:[%s3393_s3 + $0x174] sm:$0xf0] }
  0x4d   : > { %1183 = vmatpush.bf16.msra.mxu2 %v2572_v12  ;;  %1152 = vmatmul.bf16.vlgmr.msrb.gmra.mxu3 %v258_v19  ;;  %v2422_v12 = vld [vmem:[%s3393_s3 + $0x16c] sm:$0xf0] }
  0x4e   : > { %1196 = vmatpush.bf16.msra.mxu3 %v2580_v13  ;;  %1126 = vmatmul.bf16.vlgmr.msrb.gmra.mxu1 %v256_v23  ;;  %v2428_v13 = vld [vmem:[%s3393_s3 + $0x140] sm:$0xf]  ;;  %v2425_v14 = vor.u32 %v2622_v11, %v2422_v12  ;;  %v2615_v23 = vld [vmem:[%s3393_s3 + $0x100] sm:$0xf0] }
  0x4f   : > { %1170 = vmatpush.bf16.msra.mxu1 %v2564_v16  ;;  %v2623_v16 = vld [vmem:[%s3393_s3 + $0x144] sm:$0xf]  ;;  %v2429_v19 = vor.u32 %v2629_v15, %v2428_v13  ;;  %v2625_v13 = vld [vmem:[%s3393_s3 + $0x154] sm:$0xf] }
  0x50   : > { %1158 = vmatpush.bf16.msra.mxu0 %v2555_v20  ;;  %v2433_v20 = vor.u32 %v2623_v16, %v2430_v17  ;;  %v2384_v17 = vld [vmem:[%s3393_s3 + $0xe0] sm:$0xf] }
  0x51   : > { %1184 = vmatpush.bf16.msra.mxu2 %v2571_v21 }
  0x52   : > { %1197 = vmatpush.bf16.msra.mxu3 %v2579_v22  ;;  %v2368_v22 = vld [vmem:[%s3393_s3 + $0xd0] sm:$0xf] }
  0x53   : > { %1171 = vmatpush.bf16.msra.mxu1 %v2563_v24  ;;  %v2609_v24 = vld [vmem:[%s3393_s3 + $0xd4] sm:$0xf] }
  0x54   : > { %1159 = vmatpush.bf16.msra.mxu0 %v2554_v25 }
  0x55   : > { %1185 = vmatpush.bf16.msra.mxu2 %v2570_v26  ;;  %v2369_v26 = vor.u32 %v2615_v23, %v2368_v22  ;;  %v2392_v22 = vld [vmem:[%s3393_s3 + $0xe8] sm:$0xf]  ;;  %v2618_v23 = vld [vmem:[%s3393_s3 + $0x118] sm:$0xf0] }
  0x56   : > { %1198 = vmatpush.bf16.msra.mxu3 %v2578_v27  ;;  %v2370_v27 = vld [vmem:[%s3393_s3 + $0x104] sm:$0xf0] }
  0x57   : > { %1172 = vmatpush.bf16.msra.mxu1 %v2562_v28  ;;  %v2376_v28 = vld [vmem:[%s3393_s3 + $0xd8] sm:$0xf] }
  0x58   : > { %1160 = vmatpush.bf16.msra.mxu0 %v2553_v29  ;;  %v2616_v29 = vld [vmem:[%s3393_s3 + $0x108] sm:$0xf0] }
  0x59   : > { %1186 = vmatpush.bf16.msra.mxu2 %v2569_v30 }
  0x5a   : > { %1199 = vmatpush.bf16.msra.mxu3 %v2577_v31  ;;  %v2373_v31 = vor.u32 %v2609_v24, %v2370_v27  ;;  %v2612_v27 = vld [vmem:[%s3393_s3 + $0xec] sm:$0xf] }
  0x5b   : > { %1173 = vmatpush.bf16.msra.mxu1 %v2561_v32  ;;  %v2377_v32 = vor.u32 %v2616_v29, %v2376_v28  ;;  %v2394_v28 = vld [vmem:[%s3393_s3 + $0x11c] sm:$0xf0]  ;;  %v2332_v29 = vld [vmem:[%s3393_s3 + $0x78] sm:$0xf] }
  0x5c   : > { %1161 = vmatpush.bf16.msra.mxu0 %v2552_v33  ;;  %v2610_v33 = vld [vmem:[%s3393_s3 + $0xdc] sm:$0xf] }
  0x5d   : > { %1187 = vmatpush.bf16.msra.mxu2 %v2568_v34  ;;  %v2378_v34 = vld [vmem:[%s3393_s3 + $0x10c] sm:$0xf0] }
  0x5e   : > { %1200 = vmatpush.bf16.msra.mxu3 %v2576_v35  ;;  %v2316_v35 = vld [vmem:[%s3393_s3 + $0x68] sm:$0xf] }
  0x5f   : > { %1174 = vmatpush.bf16.msra.mxu1 %v2560_v36 }
  0x60   : > { %1162 = vmatpush.bf16.msra.mxu0 %v2551_v37  ;;  %v2381_v37 = vor.u32 %v2610_v33, %v2378_v34  ;;  %v2604_v33 = vld [vmem:[%s3393_s3 + $0xa8] sm:$0xf0]  ;;  %v2598_v34 = vld [vmem:[%s3393_s3 + $0x7c] sm:$0xf] }
  0x61   : > { %1188 = vmatpush.bf16.msra.mxu2 %v2567_v38  ;;  %v2602_v38 = vld [vmem:[%s3393_s3 + $0x98] sm:$0xf0] }
  0x62   : > { %1201 = vmatpush.bf16.msra.mxu3 %v2575_v39 }
  0x63   : > { %1175 = vmatpush.bf16.msra.mxu1 %v2559_v40  ;;  %v2317_v40 = vor.u32 %v2602_v38, %v2316_v35  ;;  %v2334_v35 = vld [vmem:[%s3393_s3 + $0xac] sm:$0xf0]  ;;  %v2605_v38 = vld [vmem:[%s3393_s3 + $0xb0] sm:$0xf0] }
  0x64   : > { %1163 = vmatpush.bf16.msra.mxu0 %v2550_v41  ;;  %v2596_v41 = vld [vmem:[%s3393_s3 + $0x6c] sm:$0xf] }
  0x65   : > { %1189 = vmatpush.bf16.msra.mxu2 %v2566_v42  ;;  %v2318_v42 = vld [vmem:[%s3393_s3 + $0x9c] sm:$0xf0] }
  0x66   : > { %1202 = vmatpush.bf16.msra.mxu3 %v2574_v44  ;;  %v2321_v44 = vor.u32 %v2596_v41, %v2318_v42  ;;  %v2342_v41 = vld [vmem:[%s3393_s3 + $0xb4] sm:$0xf0]  ;;  %v2280_v42 = vld [vmem:[%s3393_s3 + $0x10] sm:$0xf] }
  0x67   : > { %1176 = vmatpush.bf16.msra.mxu1 %v2558_v45  ;;  %v2603_v45 = vld [vmem:[%s3393_s3 + $0xa0] sm:$0xf0] }
  0x68   : > { %1164 = vmatpush.bf16.msra.mxu0 %v2549_v48 }
  0x69   : > { %1190 = vmatpush.bf16.msra.mxu2 %v2565_v49  ;;  %v2325_v49 = vor.u32 %v2603_v45, %v2324_v43  ;;  %v2591_v43 = vld [vmem:[%s3393_s3 + $0x40] sm:$0xf0]  ;;  %v2585_v45 = vld [vmem:[%s3393_s3 + $0x14] sm:$0xf] }
  0x6a   : > { %1203 = vmatpush.bf16.msra.mxu3 %v2573_v51 }
  0x6b   : > { %1177 = vmatpush.bf16.msra.mxu1 %v2557_v54  ;;  %1165 = vmatmul.bf16.vlgmr.msra.gmra.mxu0 %v259_v55  ;;  %v2583_v54 = vld [vmem:[%s3393_s3 + $0x4] sm:$0xf] }
  0x6c   : > { %1215 = vmatpush.bf16.msrb.mxu0 %v2582_v52  ;;  %1191 = vmatmul.bf16.vlgmr.msra.gmra.mxu2 %v261_v56  ;;  %v2264_v52 = vld [vmem:[%s3393_s3] sm:$0xf] }
  0x6d   : > { %1204 = vmatmul.bf16.vlgmr.msra.gmra.mxu3 %v262_v57  ;;  %1594 = vmatpush.bf16.msrb.mxu2 %v2425_v14  ;;  %v2265_v56 = vor.u32 %v2589_v53, %v2264_v52  ;;  %v2266_v57 = vld [vmem:[%s3393_s3 + $0x34] sm:$0xf0]  ;;  %v2446_v14 = vld [vmem:[%s3393_s3 + $0x184] sm:$0xf0]  ;;  %v2290_v52 = vld [vmem:[%s3393_s3 + $0x4c] sm:$0xf0] }
  0x6e   : > { %1178 = vmatmul.bf16.vlgmr.msra.gmra.mxu1 %v260_v58  ;;  %1607 = vmatpush.bf16.msrb.mxu3 %v2429_v19  ;;  %v2272_v58 = vld [vmem:[%s3393_s3 + $0x8] sm:$0xf]  ;;  %v2449_v16 = vor.u32 %v2625_v13, %v2446_v14  ;;  %v2617_v19 = vld [vmem:[%s3393_s3 + $0x110] sm:$0xf0]  ;;  %v2462_v13 = vld [vmem:[%s3393_s3 + $0x194] sm:$0xf0] }
  0x6f   : > { %1581 = vmatpush.bf16.msrb.mxu1 %v2421_v10  ;;  %v2631_v10 = vld [vmem:[%s3393_s3 + $0x180] sm:$0xf0] }
  0x70   : > { %1216 = vmatpush.bf16.msrb.mxu0 %v2581_v59  ;;  %v2590_v59 = vld [vmem:[%s3393_s3 + $0x38] sm:$0xf0]  ;;  %v2445_v12 = vor.u32 %v2631_v10, %v2444_v8  ;;  %v2460_v8 = vld [vmem:[%s3393_s3 + $0x160] sm:$0xf] }
  0x71   : > { %1595 = vmatpush.bf16.msrb.mxu2 %v2373_v31 }
  0x72   : > { %1608 = vmatpush.bf16.msrb.mxu3 %v2377_v32  ;;  %v2397_v32 = vor.u32 %v2612_v27, %v2394_v28  ;;  %v2410_v27 = vld [vmem:[%s3393_s3 + $0x12c] sm:$0xf0] }
  0x73   : > { %1582 = vmatpush.bf16.msrb.mxu1 %v2369_v26  ;;  %v2393_v26 = vor.u32 %v2618_v23, %v2392_v22  ;;  %v2402_v22 = vld [vmem:[%s3393_s3 + $0x124] sm:$0xf0]  ;;  %v2408_v23 = vld [vmem:[%s3393_s3 + $0xf8] sm:$0xf] }
  0x74   : > { %1620 = vmatpush.bf16.msra.mxu0 %v2433_v20  ;;  %v2611_v20 = vld [vmem:[%s3393_s3 + $0xe4] sm:$0xf] }
  0x75   : > { %1596 = vmatpush.bf16.msrb.mxu2 %v2321_v44 }
  0x76   : > { %1609 = vmatpush.bf16.msrb.mxu3 %v2325_v49  ;;  %v2281_v49 = vor.u32 %v2591_v43, %v2280_v42  ;;  %v2296_v43 = vld [vmem:[%s3393_s3 + $0x20] sm:$0xf] }
  0x77   : > { %1583 = vmatpush.bf16.msrb.mxu1 %v2317_v40 }
  0x78   : > { %1621 = vmatpush.bf16.msra.mxu0 %v2381_v37  ;;  %v2337_v37 = vor.u32 %v2598_v34, %v2334_v35 }
  0x7b   : > { %2261 = vmatmul.msk.bf16.vlgmr.msrb.gmra.mxu0 %vm1049_vm0, %v263_v61  ;;  %v2269_v61 = vor.u32 %v2583_v54, %v2266_v57  ;;  %1584 = vmatpush.bf16.msrb.mxu1 %v2265_v56  ;;  %v2285_v54 = vor.u32 %v2585_v45, %v2282_v46 }
  0x7c   : > { %1622 = vmatpush.bf16.msra.mxu0 %v2329_v50  ;;  %v2592_v50 = vld [vmem:[%s3393_s3 + $0x48] sm:$0xf0] }
  0x7d   : > { %1597 = vmatpush.bf16.msrb.mxu2 %v2269_v61 }
  0xa8   : > { %v1062_v62 = vpop.f32.mrf.mxu0 }
  0xa9   : > { %v1063_v21 = vadd.f32 %v1062_v62, %v460_v6  ;;  %v2273_v62 = vor.u32 %v2590_v59, %v2272_v58  ;;  %v2624_v6 = vld [vmem:[%s3393_s3 + $0x14c] sm:$0xf] }
  0xab   : > { %v1075_v63 = vpop.f32.mrf.mxu1  ;;  %1610 = vmatpush.bf16.msrb.mxu3 %v2273_v62 }
  0xac   : > { %v1076_v36 = vadd.f32 %v1075_v63, %v1063_v21  ;;  %v2584_v63 = vld [vmem:[%s3393_s3 + $0xc] sm:$0xf]  ;;  %v2385_v21 = vor.u32 %v2617_v19, %v2384_v17  ;;  %v2400_v17 = vld [vmem:[%s3393_s3 + $0xf0] sm:$0xf]  ;;  %v2619_v19 = vld [vmem:[%s3393_s3 + $0x120] sm:$0xf0] }
  0xad   : > { %v2401_v28 = vor.u32 %v2619_v19, %v2400_v17 }
  0xaf   : > { %v1088_v0 = vpop.f32.mrf.mxu2  ;;  %1659 = vmatpush.bf16.msra.mxu3 %v2445_v12  ;;  %v2627_v12 = vld [vmem:[%s3393_s3 + $0x164] sm:$0xf] }
  0xb0   : > { %v3010_v1 = vpop.f32.mrf.mxu3  ;;  %v1064_v2 = vpop.f32.mrf.mxu0  ;;  %v1089_v51 = vadd.f32 %v1088_v0, %v1076_v36  ;;  %v2274_v0 = vld [vmem:[%s3393_s3 + $0x3c] sm:$0xf0]  ;;  %v2333_v36 = vor.u32 %v2604_v33, %v2332_v29 }
  0xb2   : > { %v1102_v2 = vadd.f32 %v3010_v1, %v1089_v51  ;;  %v2438_v1 = vld [vmem:[%s3393_s3 + $0x17c] sm:$0xf0]  ;;  %v2586_v51 = vld [vmem:[%s3393_s3 + $0x1c] sm:$0xf] }
  0xb3   : > { %v1077_v3 = vpop.f32.mrf.mxu1  ;;  %v2441_v11 = vor.u32 %v2624_v6, %v2438_v1  ;;  %1660 = vmatpush.bf16.msra.mxu3 %v2393_v26  ;;  %v2454_v1 = vld [vmem:[%s3393_s3 + $0x18c] sm:$0xf0]  ;;  %v2614_v26 = vld [vmem:[%s3393_s3 + $0xfc] sm:$0xf] }
  0xb4   : > { %v2277_v3 = vor.u32 %v2584_v63, %v2274_v0  ;;  %v2413_v35 = vor.u32 %v2614_v26, %v2410_v27 }
  0xb5   : > { %1646 = vmatpush.bf16.msra.mxu2 %v2441_v11  ;;  %v2633_v11 = vld [vmem:[%s3393_s3 + $0x190] sm:$0xf0] }
  0xb6   : > { %1623 = vmatpush.bf16.msra.mxu0 %v2277_v3 }
  0xb7   : > { %v1090_v4 = vpop.f32.mrf.mxu2 }
  0xb8   : > { %v1103_v5 = vpop.f32.mrf.mxu3  ;;  %v2436_v4 = vld [vmem:[%s3393_s3 + $0x148] sm:$0xf] }
  0xb9   : > { %v2630_v5 = vld [vmem:[%s3393_s3 + $0x178] sm:$0xf0] }
  0xba   : > { %v2437_v7 = vor.u32 %v2630_v5, %v2436_v4  ;;  %1672 = vmatpush.bf16.msrb.mxu0 %v2449_v16  ;;  %v2452_v5 = vld [vmem:[%s3393_s3 + $0x158] sm:$0xf] }
  0xbc   : > { %1633 = vmatpush.bf16.msra.mxu1 %v2437_v7  ;;  %v2626_v7 = vld [vmem:[%s3393_s3 + $0x15c] sm:$0xf] }
  0xbd   : > { %v2457_v16 = vor.u32 %v2626_v7, %v2454_v1 }
  0xbe   : > { %1673 = vmatpush.bf16.msrb.mxu0 %v2397_v32  ;;  %v2606_v32 = vld [vmem:[%s3393_s3 + $0xb8] sm:$0xf0] }
  0xc0   : > { %1634 = vmatpush.bf16.msra.mxu1 %v2385_v21  ;;  %v2465_v21 = vor.u32 %v2627_v12, %v2462_v13 }
  0xc4   : > { %1635 = vmatpush.bf16.msra.mxu1 %v2333_v36  ;;  %v2600_v36 = vld [vmem:[%s3393_s3 + $0x8c] sm:$0xf] }
  0xc8   : > { %v3021_v9 = vpop.f32.mrf.mxu0  ;;  %1636 = vmatpush.bf16.msra.mxu1 %v2281_v49  ;;  %v2304_v49 = vld [vmem:[%s3393_s3 + $0x28] sm:$0xf] }
  0xc9   : > { %v1115_v15 = vadd.f32 %v3021_v9, %v1102_v2  ;;  %v2386_v9 = vld [vmem:[%s3393_s3 + $0x114] sm:$0xf0] }
  0xca   : > { %v2389_v24 = vor.u32 %v2611_v20, %v2386_v9  ;;  %v2461_v20 = vor.u32 %v2633_v11, %v2460_v8  ;;  %v2613_v9 = vld [vmem:[%s3393_s3 + $0xf4] sm:$0xf] }
  0xcb   : > { %v3041_v18 = vpop.f32.mrf.mxu1  ;;  %v2405_v29 = vor.u32 %v2613_v9, %v2402_v22 }
  0xcc   : > { %v1128_v31 = vadd.f32 %v3041_v18, %v1115_v15  ;;  %1647 = vmatpush.bf16.msra.mxu2 %v2389_v24  ;;  %v2340_v18 = vld [vmem:[%s3393_s3 + $0x80] sm:$0xf]  ;;  %v2620_v24 = vld [vmem:[%s3393_s3 + $0x128] sm:$0xf0] }
  0xcd   : > { %v2341_v40 = vor.u32 %v2605_v38, %v2340_v18  ;;  %v2409_v34 = vor.u32 %v2620_v24, %v2408_v23  ;;  %v2356_v18 = vld [vmem:[%s3393_s3 + $0x90] sm:$0xf]  ;;  %v2607_v38 = vld [vmem:[%s3393_s3 + $0xc0] sm:$0xf0] }
  0xce   : > { %v2357_v45 = vor.u32 %v2607_v38, %v2356_v18 }
  0xcf   : > { %v3052_v25 = vpop.f32.mrf.mxu2  ;;  %1661 = vmatpush.bf16.msra.mxu3 %v2341_v40  ;;  %v2358_v40 = vld [vmem:[%s3393_s3 + $0xc4] sm:$0xf0] }
  0xd0   : > { %v3063_v30 = vpop.f32.mrf.mxu3  ;;  %v1116_v39 = vpop.f32.mrf.mxu0  ;;  %1648 = vmatpush.bf16.msra.mxu2 %v2337_v37  ;;  %v2350_v37 = vld [vmem:[%s3393_s3 + $0xbc] sm:$0xf0] }
  0xd1   : > { %v2599_v39 = vld [vmem:[%s3393_s3 + $0x84] sm:$0xf]  ;;  %v2353_v42 = vor.u32 %v2600_v36, %v2350_v37 }
  0xd2   : > { %v2345_v44 = vor.u32 %v2599_v39, %v2342_v41  ;;  %v2601_v39 = vld [vmem:[%s3393_s3 + $0x94] sm:$0xf] }
  0xd3   : > { %v1129_v48 = vpop.f32.mrf.mxu1  ;;  %v2361_v46 = vor.u32 %v2601_v39, %v2358_v40 }
  0xd4   : > { %v1141_v48 = vadd.f32 %v3052_v25, %v1128_v31  ;;  %1674 = vmatpush.bf16.msrb.mxu0 %v2345_v44  ;;  %v2293_v25 = vor.u32 %v2586_v51, %v2290_v52  ;;  %1649 = vmatpush.bf16.msra.mxu2 %v2285_v54  ;;  %v2348_v31 = vld [vmem:[%s3393_s3 + $0x88] sm:$0xf]  ;;  %v2593_v44 = vld [vmem:[%s3393_s3 + $0x50] sm:$0xf0]  ;;  %v2588_v51 = vld [vmem:[%s3393_s3 + $0x2c] sm:$0xf] }
  0xd5   : > { %v2349_v41 = vor.u32 %v2606_v32, %v2348_v31  ;;  %v2306_v52 = vld [vmem:[%s3393_s3 + $0x5c] sm:$0xf0] }
  0xd6   : > { %v1154_v57 = vadd.f32 %v3063_v30, %v1141_v48  ;;  %v2632_v30 = vld [vmem:[%s3393_s3 + $0x188] sm:$0xf0]  ;;  %v2298_v48 = vld [vmem:[%s3393_s3 + $0x54] sm:$0xf0] }
  0xd7   : > { %v1142_v55 = vpop.f32.mrf.mxu2  ;;  %v2453_v15 = vor.u32 %v2632_v30, %v2452_v5 }
  0xd8   : > { %v1155_v60 = vpop.f32.mrf.mxu3  ;;  %v2289_v55 = vor.u32 %v2592_v50, %v2288_v47  ;;  %1675 = vmatpush.bf16.msrb.mxu0 %v2293_v25  ;;  %v2587_v47 = vld [vmem:[%s3393_s3 + $0x24] sm:$0xf]  ;;  %v2594_v50 = vld [vmem:[%s3393_s3 + $0x58] sm:$0xf0]  ;;  %v2309_v25 = vor.u32 %v2588_v51, %v2306_v52 }
  0xd9   : > { %v2301_v54 = vor.u32 %v2587_v47, %v2298_v48 }
  0xda   : > { %1662 = vmatpush.bf16.msra.mxu3 %v2289_v55  ;;  %v2305_v55 = vor.u32 %v2594_v50, %v2304_v49 }
  0xe8   : > { %v1166_v53 = vpop.f32.mrf.mxu0 }
  0xe9   : > { %v1167_v58 = vadd.f32 %v1166_v53, %v1154_v57  ;;  %v2297_v53 = vor.u32 %v2593_v44, %v2296_v43  ;;  %v2634_v57 = vld [vmem:[%s3393_s3 + $0x198] sm:$0xf0] }
  0xeb   : > { %v1179_v56 = vpop.f32.mrf.mxu1 }
  0xec   : > { %v1180_v62 = vadd.f32 %v1179_v56, %v1167_v58  ;;  %v2468_v56 = vld [vmem:[%s3393_s3 + $0x168] sm:$0xf] }
  0xed   : > { %v2469_v58 = vor.u32 %v2634_v57, %v2468_v56 }
  0xef   : > { %v1192_v59 = vpop.f32.mrf.mxu2 }
  0xf0   : > { %v1205_v60 = vpop.f32.mrf.mxu3  ;;  %v1168_v61 = vpop.f32.mrf.mxu0  ;;  %v1193_v0 = vadd.f32 %v1192_v59, %v1180_v62  ;;  %v2416_v59 = vld [vmem:[%s3393_s3 + $0x100] sm:$0xf]  ;;  %v2364_v62 = vld [vmem:[%s3393_s3 + $0x98] sm:$0xf] }
  0xf2   : > { %v1206_v3 = vadd.f32 %v1205_v60, %v1193_v0  ;;  %v2621_v60 = vld [vmem:[%s3393_s3 + $0x130] sm:$0xf0] }
  0xf3   : > { %v1181_v63 = vpop.f32.mrf.mxu1  ;;  %v2417_v61 = vor.u32 %v2621_v60, %v2416_v59 }
  0xf4   : > { %v2608_v63 = vld [vmem:[%s3393_s3 + $0xc8] sm:$0xf0] }
  0xf5   : > { %v2365_v0 = vor.u32 %v2608_v63, %v2364_v62 }
  0xf7   : > { %v1194_v2 = vpop.f32.mrf.mxu2 }
  0xf8   : > { %v1207_v4 = vpop.f32.mrf.mxu3  ;;  %v1218_v6 = vpop.f32.mrf.mxu0  ;;  %v2312_v2 = vld [vmem:[%s3393_s3 + $0x30] sm:$0xf] }
  0xf9   : > { %v1219_v10 = vadd.f32 %v1218_v6, %v1206_v3  ;;  %v2595_v3 = vld [vmem:[%s3393_s3 + $0x60] sm:$0xf0] }
  0xfa   : > { %v2313_v4 = vor.u32 %v2595_v3, %v2312_v2 }
  0xfb   : > { %v3244_v14 = vpack.c.bf16 %v1219_v10, %v1219_v10  ;;  %v1279_v10 = vld [vmem:[%s3394_s4] sm:$0xff] }
  0xfc   : > { %v1548_v11 = vperm.slane %v1279_v10, 1  ;;  %v1549_v12 = vperm.slane %v1279_v10, 2  ;;  %v1550_v13 = vperm.slane %v1279_v10, 3  ;;  %v1551_v17 = vperm.slane %v1279_v10, 4 }
  0xfd   : > { %2470 = vmatmul.msk.bf16.vlgmr.msrb.gmra.mxu1 %vm1573_vm1, %v3244_v14  ;;  %2471 = vmatmul.msk.bf16.vlgmr.msrb.gmra.mxu2 %vm1573_vm1, %v3244_v14  ;;  %v1547_v22 = vperm.slane %v1279_v10, 0  ;;  %v1552_v26 = vperm.slane %v1279_v10, 5  ;;  %v1553_v31 = vperm.slane %v1279_v10, 6 }
  0xfe   : > { %2472 = vmatmul.msk.bf16.vlgmr.msrb.gmra.mxu3 %vm1573_vm1, %v3244_v14  ;;  %2473 = vmatmul.msk.bf16.vlgmr.msra.gmra.mxu0 %vm1573_vm1, %v3244_v14 }
  0xff   : > { %1685 = vmatpush.bf16.msrb.mxu1 %v2453_v15  ;;  %1698 = vmatpush.bf16.msrb.mxu2 %v2457_v16 }
 0x100   : > { %v1220_v33 = vpop.f32.mrf.mxu0  ;;  %1711 = vmatpush.bf16.msrb.mxu3 %v2461_v20  ;;  %1724 = vmatpush.bf16.msra.mxu0 %v2465_v21 }
 0x103   : > { %1686 = vmatpush.bf16.msrb.mxu1 %v2401_v28  ;;  %1699 = vmatpush.bf16.msrb.mxu2 %v2405_v29 }
 0x104   : > { %1712 = vmatpush.bf16.msrb.mxu3 %v2409_v34  ;;  %1725 = vmatpush.bf16.msra.mxu0 %v2413_v35 }
 0x107   : > { %1687 = vmatpush.bf16.msrb.mxu1 %v2349_v41  ;;  %1700 = vmatpush.bf16.msrb.mxu2 %v2353_v42 }
 0x108   : > { %1713 = vmatpush.bf16.msrb.mxu3 %v2357_v45  ;;  %1726 = vmatpush.bf16.msra.mxu0 %v2361_v46 }
 0x10b   : > { %1688 = vmatpush.bf16.msrb.mxu1 %v2297_v53  ;;  %1701 = vmatpush.bf16.msrb.mxu2 %v2301_v54 }
 0x10c   : > { %1714 = vmatpush.bf16.msrb.mxu3 %v2305_v55  ;;  %1727 = vmatpush.bf16.msra.mxu0 %v2309_v25 }
 0x10d   : > { %2474 = vmatmul.msk.bf16.vlgmr.msra.gmra.mxu1 %vm1573_vm1, %v3244_v14  ;;  %2475 = vmatmul.msk.bf16.vlgmr.msra.gmra.mxu2 %vm1573_vm1, %v3244_v14 }
 0x10e   : > { %2476 = vmatmul.msk.bf16.vlgmr.msra.gmra.mxu3 %vm1573_vm1, %v3244_v14  ;;  %2477 = vmatmul.msk.bf16.vlgmr.msrb.gmra.mxu0 %vm1573_vm1, %v3244_v14 }
 0x10f   : > { %1737 = vmatpush.bf16.msra.mxu1 %v2469_v58 }
 0x113   : > { %1738 = vmatpush.bf16.msra.mxu1 %v2417_v61  ;;  %v1280_v61 = vld [vmem:[%s3394_s4 + $0x8] sm:$0x1f] }
 0x114   : > { %v1556_v62 = vperm.slane %v1280_v61, 1 }
 0x117   : > { %1739 = vmatpush.bf16.msra.mxu1 %v2365_v0  ;;  %v1557_v0 = vperm.slane %v1280_v61, 2 }
 0x11b   : > { %1740 = vmatpush.bf16.msra.mxu1 %v2313_v4 }
 0x11d   : > { %2478 = vmatmul.msk.bf16.vlgmr.msrb.gmra.mxu1 %vm1573_vm1, %v3244_v14  ;;  %2479 = vmatmul.msk.bf16.vlgmr.msrb.gmra.mxu2 %vm1573_vm1, %v3244_v14 }
 0x11e   : > { %2480 = vmatmul.msk.bf16.vlgmr.msrb.gmra.mxu3 %vm1573_vm1, %v3244_v14  ;;  %2481 = vmatmul.msk.bf16.vlgmr.msra.gmra.mxu0 %vm1573_vm1, %v3244_v14 }
 0x12d   : > { %2482 = vmatmul.msk.bf16.vlgmr.msra.gmra.mxu1 %vm1573_vm1, %v3244_v14  ;;  %v1554_v14 = vperm.slane %v1279_v10, 7  ;;  %v1559_v10 = vperm.slane %v1280_v61, 4 }
 0x17a   : > { %v1586_v5 = vpop.f32.mrf.mxu1 }
 0x17b   : > { %v1625_v30 = vpop.f32.mrf.mxu0  ;;  %v1587_v32 = vadd.f32 %v1586_v5, %v1547_v22  ;;  %v1558_v5 = vperm.slane %v1280_v61, 3 }
 0x17c   : > { %v1626_v23 = vadd.f32 %v1625_v30, %v1550_v13 }
 0x17d   : > { %v1746_v44 = vmax.f32 %v1587_v32, 0.0 }
 0x17e   : > { %v1749_v33 = vmax.f32 %v1626_v23, 0.0 }
 0x180   : > { %v1599_v6 = vpop.f32.mrf.mxu2  ;;  %v1774_v45 = vrot.slane %v1749_v33, 5 }
 0x181   : > { %v1612_v7 = vpop.f32.mrf.mxu3  ;;  %v1600_v19 = vadd.f32 %v1599_v6, %v1548_v11  ;;  %v1555_v6 = vperm.slane %v1280_v61, 0 }
 0x182   : > { %v1588_v1 = vpop.f32.mrf.mxu1  ;;  %v1613_v20 = vadd.f32 %v1612_v7, %v1549_v12 }
 0x183   : > { %v1627_v8 = vpop.f32.mrf.mxu0  ;;  %v1747_v27 = vmax.f32 %v1600_v19, 0.0 }
 0x184   : > { %v1748_v28 = vmax.f32 %v1613_v20, 0.0 }
 0x185   : > { %v1772_v18 = vrot.slane %v1747_v27, 7 }
 0x186   : > { %v1773_v38 = vrot.slane %v1748_v28, 6 }
 0x187   : > { %v1784_v49 = vsel %vm1783_vm2, %v1746_v44, %v1772_v18 }
 0x188   : > { %v1601_v15 = vpop.f32.mrf.mxu2  ;;  %v1786_v50 = vsel %vm1785_vm3, %v1773_v38, %v1774_v45 }
 0x189   : > { %v1614_v16 = vpop.f32.mrf.mxu3  ;;  %v1788_v25 = vsel %vm1787_vm4, %v1784_v49, %v1786_v50 }
 0x18a   : > { %v1638_v21 = vpop.f32.mrf.mxu1 }
 0x18b   : > { %v1677_v9 = vpop.f32.mrf.mxu0  ;;  %v1639_v24 = vadd.f32 %v1638_v21, %v1551_v17 }
 0x18c   : > { %v1678_v29 = vadd.f32 %v1677_v9, %v1554_v14  ;;  %v1806_v14 = vlaneseq }
 0x18d   : > { %v1750_v35 = vmax.f32 %v1639_v24, 0.0 }
 0x18e   : > { %v1753_v39 = vmax.f32 %v1678_v29, 0.0  ;;  %vm1808_vm11 = vcmp.lt.s32.totalorder %v1806_v14, 544 }
 0x18f   : > { %v1775_v47 = vrot.slane %v1750_v35, 4 }
 0x190   : > { %v1651_v34 = vpop.f32.mrf.mxu2  ;;  %v1778_v51 = vrot.slane %v1753_v39, 1 }
 0x191   : > { %v1652_v36 = vadd.f32 %v1651_v34, %v1552_v26  ;;  %v1664_v37 = vpop.f32.mrf.mxu3 }
 0x192   : > { %v1665_v40 = vadd.f32 %v1664_v37, %v1553_v31  ;;  %v1640_v41 = vpop.f32.mrf.mxu1 }
 0x193   : > { %v1751_v42 = vmax.f32 %v1652_v36, 0.0  ;;  %v1679_v43 = vpop.f32.mrf.mxu0 }
 0x194   : > { %v1752_v46 = vmax.f32 %v1665_v40, 0.0 }
 0x195   : > { %v1776_v48 = vrot.slane %v1751_v42, 3 }
 0x196   : > { %v1777_v52 = vrot.slane %v1752_v46, 2 }
 0x197   : > { %v1790_v53 = vsel %vm1789_vm5, %v1775_v47, %v1776_v48 }
 0x198   : > { %v1792_v54 = vsel %vm1791_vm6, %v1777_v52, %v1778_v51  ;;  %v1653_v55 = vpop.f32.mrf.mxu2 }
 0x199   : > { %v1794_v56 = vsel %vm1793_vm7, %v1790_v53, %v1792_v54  ;;  %v1666_v57 = vpop.f32.mrf.mxu3 }
 0x19a   : > { %v1796_v58 = vsel %vm1795_vm8, %v1788_v25, %v1794_v56  ;;  %v1690_v59 = vpop.f32.mrf.mxu1 }
 0x19b   : > { %1805 = vst [vmem:[%s3377_s17] sm:$0xff] %v1796_v58  ;;  %v1729_v60 = vpop.f32.mrf.mxu0  ;;  %v1691_v11 = vadd.f32 %v1690_v59, %v1555_v6 }
 0x19c   : > { %v1730_v8 = vadd.f32 %v1729_v60, %v1558_v5 }
 0x19d   : > { %v1754_v21 = vmax.f32 %v1691_v11, 0.0 }
 0x19e   : > { %v1757_v19 = vmax.f32 %v1730_v8, 0.0 }
 0x1a0   : > { %v1703_v63 = vpop.f32.mrf.mxu2  ;;  %v1781_v24 = vrot.slane %v1757_v19, 5 }
 0x1a1   : > { %v1716_v2 = vpop.f32.mrf.mxu3  ;;  %v1704_v3 = vadd.f32 %v1703_v63, %v1556_v62 }
 0x1a2   : > { %v1692_v4 = vpop.f32.mrf.mxu1  ;;  %v1717_v7 = vadd.f32 %v1716_v2, %v1557_v0 }
 0x1a3   : > { %v1731_v30 = vpop.f32.mrf.mxu0  ;;  %v1755_v1 = vmax.f32 %v1704_v3, 0.0 }
 0x1a4   : > { %v1756_v13 = vmax.f32 %v1717_v7, 0.0 }
 0x1a5   : > { %v1779_v16 = vrot.slane %v1755_v1, 7 }
 0x1a6   : > { %v1780_v9 = vrot.slane %v1756_v13, 6 }
 0x1a7   : > { %v1797_v23 = vsel %vm1783_vm2, %v1754_v21, %v1779_v16 }
 0x1a8   : > { %v1705_v12 = vpop.f32.mrf.mxu2  ;;  %v1798_v27 = vsel %vm1787_vm4, %v1797_v23, %v1780_v9 }
 0x1a9   : > { %v1718_v15 = vpop.f32.mrf.mxu3 }
 0x1aa   : > { %v1742_v17 = vpop.f32.mrf.mxu1 }
 0x1ab   : > { %v1743_v20 = vadd.f32 %v1742_v17, %v1559_v10 }
 0x1ad   : > { %v1758_v22 = vmax.f32 %v1743_v20, 0.0 }
 0x1af   : > { %v1782_v26 = vrot.slane %v1758_v22, 4 }
 0x1b1   : > { %v1800_v28 = vsel %vm1799_vm9, %v1781_v24, %v1782_v26 }
 0x1b2   : > { %v1802_v29 = vsel %vm1801_vm10, %v1798_v27, %v1800_v28  ;;  %v1744_v31 = vpop.f32.mrf.mxu1 }
 0x1b3   : > { %1810 = vst.msk [vmem:[%s3377_s17 + $0x8] sm:$0x1f] %vm1808_vm11, %v1802_v29 }
 0x1b4 PF: > { %s15_s18 = sadd.s32 1, %s2650_s18  }
 0x1b5   : > { %p12_p4 = scmp.ge.s32.totalorder %s15_s18, 4  }
 0x1b7   :  { %14 = sbr.rel (!%p12_p4) target bundleno = 1 (0x1), region = 70 }

// kernel: autoencoder_forward.8
= control target key start
LH: loop header
LB: loop body
LE: loop exit
PB: predicated region body
PF: predicated region fallthrough
CT: control target
= control target key end

     0   :  { %s1709_s12 = smov 0   ;;  %s1984_s0 = inlined_call_operand.vmem [shape: f32[2,8,8,32], index: 0, kind: input, shape index: {}]   ;;  %s1985_s1 = inlined_call_operand.vmem [shape: bf16[4,32,64], index: 1, kind: input, shape index: {}]   ;;  %s1986_s2 = inlined_call_operand.vmem [shape: f32[1,64], index: 2, kind: input, shape index: {}]   ;;  %s1987_s3 = inlined_call_operand.vmem [shape: f32[2,7,7,64], index: 3, kind: output, shape index: {}]  }
   0x1 LB: > { %s1236_s13 = sadd.s32 4294967295, %s1687_s12   ;;  %p1240_p0 = scmp.ge.s32.totalorder %s1687_s12, 1  ;;  %s1687_s12 = sphi %s1709_s12, %s13_s12  }
   0x2   : > { %p137_p1 = scmp.lt.s32.totalorder %s1687_s12, 3 }
   0x4   : > { %p138_p2 = pnand %p1240_p0, %p137_p1 }
   0x5   : > { %p161_p3 = scmp.lt.s32.totalorder (!%p138_p2), %s1236_s13, 1 }
   0x6   : > { %141 = sbr.rel (%p138_p2) target bundleno = 257 (0x101), region = 32 }
   0xb   : > { %v1618_v0 = vld [vmem:[%s1985_s1 + $0x18] sm:$0xff]  ;;  %v1616_v1 = vld [vmem:[%s1985_s1 + $0x8] sm:$0xff]  ;;  %v1617_v4 = vld [vmem:[%s1985_s1 + $0x10] sm:$0xff]  ;;  %s1989_s13 = smov (!%p161_p3, %s1236_s13), 1  ;;  %vm198_vm0 = vcmask 261120   ;;  %vm321_vm1 = vcmask 522240  }
   0xc   : > { %v1620_v2 = vld [vmem:[%s1985_s1 + $0x28] sm:$0xff]  ;;  %v1622_v3 = vld [vmem:[%s1985_s1 + $0x38] sm:$0xff]  ;;  %208 = vmatpush.bf16.msra.mxu0 %v1618_v0  ;;  %236 = vmatpush.bf16.msra.mxu1 %v1616_v1  ;;  %v1615_v5 = vld [vmem:[%s1985_s1] sm:$0xff]  ;;  %s1614_s30 = sshll.u32 %s1989_s13, 6  ;;  %s1671_s7 = smul.u32 56, %s1989_s13 }
   0xd   : > { %272 = vmatpush.bf16.msra.mxu2 %v1620_v2  ;;  %308 = vmatpush.bf16.msra.mxu3 %v1622_v3  ;;  %v1619_v6 = vld [vmem:[%s1985_s1 + $0x20] sm:$0xff]  ;;  %v1621_v7 = vld [vmem:[%s1985_s1 + $0x30] sm:$0xff]  ;;  %v1628_v8 = vld [vmem:[%s1985_s1 + $0x28] sm:$0xff]  ;;  %s1753_s10 = scalar_lea.vmem %s1984_s0, %s1614_s30 }
   0xe   : > { %v1630_v9 = vld [vmem:[%s1985_s1 + $0x38] sm:$0xff]  ;;  %v179_v10 = vld [vmem:[%s1753_s10 + $0x1] sm:$0x7f]  ;;  %v1266_v12 = vld [vmem:[%s1753_s10 + $0x8] sm:$0x7f]  ;;  %s1959_s11 = scalar_lea.vmem %s1987_s3, %s1671_s7 }
   0xf   : > { %v173_v11 = vld [vmem:[%s1753_s10] sm:$0x7f]  ;;  %v180_v13 = vpack.c.bf16 %v179_v10, %v179_v10  ;;  %v245_v15 = vpack.c.bf16 %v1266_v12, %v1266_v12  ;;  %v1280_v16 = vld [vmem:[%s1753_s10 + $0x9] sm:$0x7f]  ;;  %v1626_v17 = vld [vmem:[%s1985_s1 + $0x18] sm:$0xff] }
  0x10   : > { %209 = vmatpush.bf16.msra.mxu0 %v1617_v4  ;;  %237 = vmatpush.bf16.msra.mxu1 %v1615_v5  ;;  %v174_v14 = vpack.c.bf16 %v173_v11, %v173_v11  ;;  %v1624_v18 = vld [vmem:[%s1985_s1 + $0x8] sm:$0xff]  ;;  %v281_v19 = vpack.c.bf16 %v1280_v16, %v1280_v16  ;;  %v1627_v20 = vld [vmem:[%s1985_s1 + $0x20] sm:$0xff]  ;;  %v1629_v21 = vld [vmem:[%s1985_s1 + $0x30] sm:$0xff] }
  0x11   : > { %273 = vmatpush.bf16.msra.mxu2 %v1619_v6  ;;  %309 = vmatpush.bf16.msra.mxu3 %v1621_v7  ;;  %v1636_v22 = vld [vmem:[%s1985_s1 + $0x28] sm:$0xff]  ;;  %v1638_v23 = vld [vmem:[%s1985_s1 + $0x38] sm:$0xff]  ;;  %v1625_v24 = vld [vmem:[%s1985_s1 + $0x10] sm:$0xff] }
  0x12   : > { %v1623_v25 = vld [vmem:[%s1985_s1] sm:$0xff]  ;;  %v1634_v26 = vld [vmem:[%s1985_s1 + $0x18] sm:$0xff]  ;;  %v1632_v27 = vld [vmem:[%s1985_s1 + $0x8] sm:$0xff] }
  0x13   : > { %1256 = vmatmul.msk.bf16.vlgmr.msra.gmra.mxu0 %vm198_vm0, %v180_v13  ;;  %1265 = vmatmul.msk.bf16.vlgmr.msra.gmra.mxu1 %vm198_vm0, %v174_v14  ;;  %v1635_v28 = vld [vmem:[%s1985_s1 + $0x20] sm:$0xff]  ;;  %v1637_v29 = vld [vmem:[%s1985_s1 + $0x30] sm:$0xff]  ;;  %v1295_v32 = vld [vmem:[%s1753_s10 + $0x9] sm:$0x7f] }
  0x14   : > { %1279 = vmatmul.msk.bf16.vlgmr.msra.gmra.mxu2 %vm198_vm0, %v245_v15  ;;  %1293 = vmatmul.msk.bf16.vlgmr.msra.gmra.mxu3 %vm198_vm0, %v281_v19  ;;  %v1633_v30 = vld [vmem:[%s1985_s1 + $0x10] sm:$0xff]  ;;  %v1631_v31 = vld [vmem:[%s1985_s1] sm:$0xff]  ;;  %v1294_v33 = vld [vmem:[%s1753_s10 + $0x8] sm:$0x7f]  ;;  %v330_v36 = vpack.c.bf16 %v1295_v32, %v1295_v32 }
  0x15   : > { %419 = vmatpush.bf16.msrb.mxu2 %v1628_v8  ;;  %454 = vmatpush.bf16.msrb.mxu3 %v1630_v9  ;;  %v1318_v34 = vld [vmem:[%s1753_s10 + $0x10] sm:$0x7f]  ;;  %v324_v37 = vpack.c.bf16 %v1294_v33, %v1294_v33  ;;  %v1644_v40 = vld [vmem:[%s1985_s1 + $0x28] sm:$0xff]  ;;  %v1646_v41 = vld [vmem:[%s1985_s1 + $0x38] sm:$0xff] }
  0x16   : > { %356 = vmatpush.bf16.msrb.mxu0 %v1626_v17  ;;  %384 = vmatpush.bf16.msrb.mxu1 %v1624_v18  ;;  %v1332_v35 = vld [vmem:[%s1753_s10 + $0x11] sm:$0x7f]  ;;  %v393_v38 = vpack.c.bf16 %v1318_v34, %v1318_v34  ;;  %v1642_v42 = vld [vmem:[%s1985_s1 + $0x18] sm:$0xff]  ;;  %v1640_v43 = vld [vmem:[%s1985_s1 + $0x8] sm:$0xff] }
  0x17   : > { %v428_v39 = vpack.c.bf16 %v1332_v35, %v1332_v35  ;;  %v1643_v44 = vld [vmem:[%s1985_s1 + $0x20] sm:$0xff]  ;;  %v1645_v45 = vld [vmem:[%s1985_s1 + $0x30] sm:$0xff]  ;;  %v1371_v50 = vld [vmem:[%s1753_s10 + $0x18] sm:$0x7f] }
  0x18   : > { %v1641_v46 = vld [vmem:[%s1985_s1 + $0x10] sm:$0xff]  ;;  %v1639_v47 = vld [vmem:[%s1985_s1] sm:$0xff]  ;;  %v1385_v51 = vld [vmem:[%s1753_s10 + $0x19] sm:$0x7f]  ;;  %v536_v54 = vpack.c.bf16 %v1371_v50, %v1371_v50 }
  0x19   : > { %420 = vmatpush.bf16.msrb.mxu2 %v1627_v20  ;;  %455 = vmatpush.bf16.msrb.mxu3 %v1629_v21  ;;  %v1348_v48 = vld [vmem:[%s1753_s10 + $0x11] sm:$0x7f]  ;;  %v571_v55 = vpack.c.bf16 %v1385_v51, %v1385_v51  ;;  %v1652_v56 = vld [vmem:[%s1985_s1 + $0x28] sm:$0xff]  ;;  %v1654_v57 = vld [vmem:[%s1985_s1 + $0x38] sm:$0xff] }
  0x1a   : > { %357 = vmatpush.bf16.msrb.mxu0 %v1625_v24  ;;  %385 = vmatpush.bf16.msrb.mxu1 %v1623_v25  ;;  %v1347_v49 = vld [vmem:[%s1753_s10 + $0x10] sm:$0x7f]  ;;  %v473_v52 = vpack.c.bf16 %v1348_v48, %v1348_v48  ;;  %v1650_v58 = vld [vmem:[%s1985_s1 + $0x18] sm:$0xff]  ;;  %v1648_v59 = vld [vmem:[%s1985_s1 + $0x8] sm:$0xff] }
  0x1b   : > { %v467_v53 = vpack.c.bf16 %v1347_v49, %v1347_v49  ;;  %v1651_v60 = vld [vmem:[%s1985_s1 + $0x20] sm:$0xff]  ;;  %v1653_v61 = vld [vmem:[%s1985_s1 + $0x30] sm:$0xff]  ;;  %v1401_v0 = vld [vmem:[%s1753_s10 + $0x19] sm:$0x7f] }
  0x1c   : > { %v1649_v62 = vld [vmem:[%s1985_s1 + $0x10] sm:$0xff]  ;;  %v1647_v63 = vld [vmem:[%s1985_s1] sm:$0xff]  ;;  %v1400_v1 = vld [vmem:[%s1753_s10 + $0x18] sm:$0x7f]  ;;  %v616_v4 = vpack.c.bf16 %v1401_v0, %v1401_v0 }
  0x1d   : > { %562 = vmatpush.bf16.msra.mxu2 %v1636_v22  ;;  %597 = vmatpush.bf16.msra.mxu3 %v1638_v23  ;;  %v1424_v2 = vld [vmem:[%s1753_s10 + $0x20] sm:$0x7f]  ;;  %v610_v5 = vpack.c.bf16 %v1400_v1, %v1400_v1  ;;  %v1660_v8 = vld [vmem:[%s1985_s1 + $0x28] sm:$0xff]  ;;  %v1662_v9 = vld [vmem:[%s1985_s1 + $0x38] sm:$0xff] }
  0x1e   : > { %499 = vmatpush.bf16.msra.mxu0 %v1634_v26  ;;  %527 = vmatpush.bf16.msra.mxu1 %v1632_v27  ;;  %v1438_v3 = vld [vmem:[%s1753_s10 + $0x21] sm:$0x7f]  ;;  %v679_v6 = vpack.c.bf16 %v1424_v2, %v1424_v2  ;;  %v1658_v10 = vld [vmem:[%s1985_s1 + $0x18] sm:$0xff]  ;;  %v1656_v11 = vld [vmem:[%s1985_s1 + $0x8] sm:$0xff] }
  0x1f   : > { %v714_v7 = vpack.c.bf16 %v1438_v3, %v1438_v3  ;;  %v1659_v12 = vld [vmem:[%s1985_s1 + $0x20] sm:$0xff]  ;;  %v1661_v13 = vld [vmem:[%s1985_s1 + $0x30] sm:$0xff]  ;;  %v1477_v18 = vld [vmem:[%s1753_s10 + $0x28] sm:$0x7f] }
  0x20   : > { %v1657_v14 = vld [vmem:[%s1985_s1 + $0x10] sm:$0xff]  ;;  %v1655_v15 = vld [vmem:[%s1985_s1] sm:$0xff]  ;;  %v1491_v19 = vld [vmem:[%s1753_s10 + $0x29] sm:$0x7f]  ;;  %v822_v22 = vpack.c.bf16 %v1477_v18, %v1477_v18 }
  0x21   : > { %563 = vmatpush.bf16.msra.mxu2 %v1635_v28  ;;  %598 = vmatpush.bf16.msra.mxu3 %v1637_v29  ;;  %v1454_v16 = vld [vmem:[%s1753_s10 + $0x21] sm:$0x7f]  ;;  %v857_v23 = vpack.c.bf16 %v1491_v19, %v1491_v19  ;;  %v1668_v24 = vld [vmem:[%s1985_s1 + $0x28] sm:$0xff]  ;;  %v1670_v25 = vld [vmem:[%s1985_s1 + $0x38] sm:$0xff] }
  0x22   : > { %500 = vmatpush.bf16.msra.mxu0 %v1633_v30  ;;  %528 = vmatpush.bf16.msra.mxu1 %v1631_v31  ;;  %v1453_v17 = vld [vmem:[%s1753_s10 + $0x20] sm:$0x7f]  ;;  %v759_v20 = vpack.c.bf16 %v1454_v16, %v1454_v16  ;;  %v1666_v26 = vld [vmem:[%s1985_s1 + $0x18] sm:$0xff]  ;;  %v1664_v27 = vld [vmem:[%s1985_s1 + $0x8] sm:$0xff] }
  0x23   : > { %1308 = vmatmul.msk.bf16.vlgmr.msrb.gmra.mxu0 %vm198_vm0, %v330_v36  ;;  %1317 = vmatmul.msk.bf16.vlgmr.msrb.gmra.mxu1 %vm198_vm0, %v324_v37  ;;  %v753_v21 = vpack.c.bf16 %v1453_v17, %v1453_v17  ;;  %v1667_v28 = vld [vmem:[%s1985_s1 + $0x20] sm:$0xff]  ;;  %v1669_v29 = vld [vmem:[%s1985_s1 + $0x30] sm:$0xff]  ;;  %v1507_v32 = vld [vmem:[%s1753_s10 + $0x29] sm:$0x7f] }
  0x24   : > { %1331 = vmatmul.msk.bf16.vlgmr.msrb.gmra.mxu2 %vm198_vm0, %v393_v38  ;;  %1345 = vmatmul.msk.bf16.vlgmr.msrb.gmra.mxu3 %vm198_vm0, %v428_v39  ;;  %v1665_v30 = vld [vmem:[%s1985_s1 + $0x10] sm:$0xff]  ;;  %v1663_v31 = vld [vmem:[%s1985_s1] sm:$0xff]  ;;  %v1506_v33 = vld [vmem:[%s1753_s10 + $0x28] sm:$0x7f]  ;;  %v902_v36 = vpack.c.bf16 %v1507_v32, %v1507_v32 }
  0x25   : > { %705 = vmatpush.bf16.msrb.mxu2 %v1644_v40  ;;  %740 = vmatpush.bf16.msrb.mxu3 %v1646_v41  ;;  %v1530_v34 = vld [vmem:[%s1753_s10 + $0x30] sm:$0x7f]  ;;  %v896_v37 = vpack.c.bf16 %v1506_v33, %v1506_v33 }
  0x26   : > { %642 = vmatpush.bf16.msrb.mxu0 %v1642_v42  ;;  %670 = vmatpush.bf16.msrb.mxu1 %v1640_v43  ;;  %v1544_v35 = vld [vmem:[%s1753_s10 + $0x31] sm:$0x7f]  ;;  %v965_v38 = vpack.c.bf16 %v1530_v34, %v1530_v34  ;;  %v1583_v42 = vld [vmem:[%s1753_s10 + $0x38] sm:$0x7f] }
  0x27   : > { %v1000_v39 = vpack.c.bf16 %v1544_v35, %v1544_v35  ;;  %v1560_v40 = vld [vmem:[%s1753_s10 + $0x31] sm:$0x7f]  ;;  %v1597_v43 = vld [vmem:[%s1753_s10 + $0x39] sm:$0x7f] }
  0x28   : > { %v1559_v41 = vld [vmem:[%s1753_s10 + $0x30] sm:$0x7f] }
  0x29   : > { %706 = vmatpush.bf16.msrb.mxu2 %v1643_v44  ;;  %741 = vmatpush.bf16.msrb.mxu3 %v1645_v45  ;;  %v1045_v44 = vpack.c.bf16 %v1560_v40, %v1560_v40  ;;  %v1039_v45 = vpack.c.bf16 %v1559_v41, %v1559_v41 }
  0x2a   : > { %643 = vmatpush.bf16.msrb.mxu0 %v1641_v46  ;;  %671 = vmatpush.bf16.msrb.mxu1 %v1639_v47  ;;  %v1108_v46 = vpack.c.bf16 %v1583_v42, %v1583_v42  ;;  %v1143_v47 = vpack.c.bf16 %v1597_v43, %v1597_v43 }
  0x33   : > { %1361 = vmatmul.msk.bf16.vlgmr.msra.gmra.mxu0 %vm198_vm0, %v473_v52  ;;  %1370 = vmatmul.msk.bf16.vlgmr.msra.gmra.mxu1 %vm198_vm0, %v467_v53 }
  0x34   : > { %1384 = vmatmul.msk.bf16.vlgmr.msra.gmra.mxu2 %vm198_vm0, %v536_v54  ;;  %1398 = vmatmul.msk.bf16.vlgmr.msra.gmra.mxu3 %vm198_vm0, %v571_v55  ;;  %v1952_v54 = vld [vmem:[%s1986_s2] ss:$0 sm:$0xff] }
  0x35   : > { %848 = vmatpush.bf16.msra.mxu2 %v1652_v56  ;;  %883 = vmatpush.bf16.msra.mxu3 %v1654_v57 }
  0x36   : > { %785 = vmatpush.bf16.msra.mxu0 %v1650_v58  ;;  %813 = vmatpush.bf16.msra.mxu1 %v1648_v59 }
  0x39   : > { %849 = vmatpush.bf16.msra.mxu2 %v1651_v60  ;;  %884 = vmatpush.bf16.msra.mxu3 %v1653_v61 }
  0x3a   : > { %786 = vmatpush.bf16.msra.mxu0 %v1649_v62  ;;  %814 = vmatpush.bf16.msra.mxu1 %v1647_v63 }
  0x43   : > { %1414 = vmatmul.msk.bf16.vlgmr.msrb.gmra.mxu0 %vm198_vm0, %v616_v4  ;;  %1423 = vmatmul.msk.bf16.vlgmr.msrb.gmra.mxu1 %vm198_vm0, %v610_v5 }
  0x44   : > { %1437 = vmatmul.msk.bf16.vlgmr.msrb.gmra.mxu2 %vm198_vm0, %v679_v6  ;;  %1451 = vmatmul.msk.bf16.vlgmr.msrb.gmra.mxu3 %vm198_vm0, %v714_v7 }
  0x45   : > { %991 = vmatpush.bf16.msrb.mxu2 %v1660_v8  ;;  %1026 = vmatpush.bf16.msrb.mxu3 %v1662_v9 }
  0x46   : > { %928 = vmatpush.bf16.msrb.mxu0 %v1658_v10  ;;  %956 = vmatpush.bf16.msrb.mxu1 %v1656_v11 }
  0x49   : > { %992 = vmatpush.bf16.msrb.mxu2 %v1659_v12  ;;  %1027 = vmatpush.bf16.msrb.mxu3 %v1661_v13 }
  0x4a   : > { %929 = vmatpush.bf16.msrb.mxu0 %v1657_v14  ;;  %957 = vmatpush.bf16.msrb.mxu1 %v1655_v15 }
  0x53   : > { %1467 = vmatmul.msk.bf16.vlgmr.msra.gmra.mxu0 %vm198_vm0, %v759_v20  ;;  %1476 = vmatmul.msk.bf16.vlgmr.msra.gmra.mxu1 %vm198_vm0, %v753_v21 }
  0x54   : > { %1490 = vmatmul.msk.bf16.vlgmr.msra.gmra.mxu2 %vm198_vm0, %v822_v22  ;;  %1504 = vmatmul.msk.bf16.vlgmr.msra.gmra.mxu3 %vm198_vm0, %v857_v23 }
  0x55   : > { %1134 = vmatpush.bf16.msra.mxu2 %v1668_v24  ;;  %1169 = vmatpush.bf16.msra.mxu3 %v1670_v25 }
  0x56   : > { %1071 = vmatpush.bf16.msra.mxu0 %v1666_v26  ;;  %1099 = vmatpush.bf16.msra.mxu1 %v1664_v27 }
  0x59   : > { %1135 = vmatpush.bf16.msra.mxu2 %v1667_v28  ;;  %1170 = vmatpush.bf16.msra.mxu3 %v1669_v29 }
  0x5a   : > { %1072 = vmatpush.bf16.msra.mxu0 %v1665_v30  ;;  %1100 = vmatpush.bf16.msra.mxu1 %v1663_v31 }
  0x63   : > { %1520 = vmatmul.msk.bf16.vlgmr.msrb.gmra.mxu0 %vm198_vm0, %v902_v36  ;;  %1529 = vmatmul.msk.bf16.vlgmr.msrb.gmra.mxu1 %vm198_vm0, %v896_v37 }
  0x64   : > { %1543 = vmatmul.msk.bf16.vlgmr.msrb.gmra.mxu2 %vm198_vm0, %v965_v38  ;;  %1557 = vmatmul.msk.bf16.vlgmr.msrb.gmra.mxu3 %vm198_vm0, %v1000_v39 }
  0x73   : > { %1573 = vmatmul.msk.bf16.vlgmr.msra.gmra.mxu0 %vm198_vm0, %v1045_v44  ;;  %1582 = vmatmul.msk.bf16.vlgmr.msra.gmra.mxu1 %vm198_vm0, %v1039_v45 }
  0x74   : > { %1596 = vmatmul.msk.bf16.vlgmr.msra.gmra.mxu2 %vm198_vm0, %v1108_v46  ;;  %1610 = vmatmul.msk.bf16.vlgmr.msra.gmra.mxu3 %vm198_vm0, %v1143_v47 }
  0x90   : > { %v211_v48 = vpop.f32.mrf.mxu0  ;;  %v239_v49 = vpop.f32.mrf.mxu1 }
  0x91   : > { %v240_v50 = vadd.f32 %v239_v49, %v211_v48 }
  0x97   : > { %v275_v51 = vpop.f32.mrf.mxu2  ;;  %v311_v52 = vpop.f32.mrf.mxu3 }
  0x98   : > { %v279_v53 = vadd.f32 %v275_v51, %v240_v50  ;;  %v213_v55 = vpop.f32.mrf.mxu0  ;;  %v241_v56 = vpop.f32.mrf.mxu1 }
  0x9a   : > { %v315_v57 = vadd.f32 %v311_v52, %v279_v53 }
  0x9c   : > { %v319_v58 = vadd.f32 %v1952_v54, %v315_v57 }
  0x9e   : > { %v320_v59 = vmax.f32 %v319_v58, 0.0 }
  0x9f   : > { %v277_v60 = vpop.f32.mrf.mxu2  ;;  %v313_v61 = vpop.f32.mrf.mxu3 }
  0xa0   : > { %322 = vst.msk [vmem:[%s1959_s11] sm:$0x7f] %vm321_vm1, %v320_v59  ;;  %v359_v62 = vpop.f32.mrf.mxu0  ;;  %v387_v63 = vpop.f32.mrf.mxu1 }
  0xa1   : > { %v388_v0 = vadd.f32 %v387_v63, %v359_v62 }
  0xa7   : > { %v422_v1 = vpop.f32.mrf.mxu2  ;;  %v457_v2 = vpop.f32.mrf.mxu3 }
  0xa8   : > { %v426_v3 = vadd.f32 %v422_v1, %v388_v0  ;;  %v361_v4 = vpop.f32.mrf.mxu0  ;;  %v389_v5 = vpop.f32.mrf.mxu1 }
  0xaa   : > { %v461_v6 = vadd.f32 %v457_v2, %v426_v3 }
  0xac   : > { %v462_v7 = vadd.f32 %v1952_v54, %v461_v6 }
  0xae   : > { %v463_v8 = vmax.f32 %v462_v7, 0.0 }
  0xaf   : > { %v424_v9 = vpop.f32.mrf.mxu2  ;;  %v459_v10 = vpop.f32.mrf.mxu3 }
  0xb0   : > { %1346 = vst.msk [vmem:[%s1959_s11 + $0x8] sm:$0x7f] %vm321_vm1, %v463_v8  ;;  %v502_v11 = vpop.f32.mrf.mxu0  ;;  %v530_v12 = vpop.f32.mrf.mxu1 }
  0xb1   : > { %v531_v13 = vadd.f32 %v530_v12, %v502_v11 }
  0xb7   : > { %v565_v14 = vpop.f32.mrf.mxu2  ;;  %v600_v15 = vpop.f32.mrf.mxu3 }
  0xb8   : > { %v569_v16 = vadd.f32 %v565_v14, %v531_v13  ;;  %v504_v17 = vpop.f32.mrf.mxu0  ;;  %v532_v18 = vpop.f32.mrf.mxu1 }
  0xba   : > { %v604_v19 = vadd.f32 %v600_v15, %v569_v16 }
  0xbc   : > { %v605_v20 = vadd.f32 %v1952_v54, %v604_v19 }
  0xbe   : > { %v606_v21 = vmax.f32 %v605_v20, 0.0 }
  0xbf   : > { %v567_v22 = vpop.f32.mrf.mxu2  ;;  %v602_v23 = vpop.f32.mrf.mxu3 }
  0xc0   : > { %1399 = vst.msk [vmem:[%s1959_s11 + $0x10] sm:$0x7f] %vm321_vm1, %v606_v21  ;;  %v645_v24 = vpop.f32.mrf.mxu0  ;;  %v673_v25 = vpop.f32.mrf.mxu1 }
  0xc1   : > { %v674_v26 = vadd.f32 %v673_v25, %v645_v24 }
  0xc7   : > { %v708_v27 = vpop.f32.mrf.mxu2  ;;  %v743_v28 = vpop.f32.mrf.mxu3 }
  0xc8   : > { %v712_v29 = vadd.f32 %v708_v27, %v674_v26  ;;  %v647_v30 = vpop.f32.mrf.mxu0  ;;  %v675_v31 = vpop.f32.mrf.mxu1 }
  0xca   : > { %v747_v32 = vadd.f32 %v743_v28, %v712_v29 }
  0xcc   : > { %v748_v33 = vadd.f32 %v1952_v54, %v747_v32 }
  0xce   : > { %v749_v34 = vmax.f32 %v748_v33, 0.0 }
  0xcf   : > { %v710_v35 = vpop.f32.mrf.mxu2  ;;  %v745_v36 = vpop.f32.mrf.mxu3 }
  0xd0   : > { %1452 = vst.msk [vmem:[%s1959_s11 + $0x18] sm:$0x7f] %vm321_vm1, %v749_v34  ;;  %v788_v37 = vpop.f32.mrf.mxu0  ;;  %v816_v38 = vpop.f32.mrf.mxu1 }
  0xd1   : > { %v817_v39 = vadd.f32 %v816_v38, %v788_v37 }
  0xd7   : > { %v851_v40 = vpop.f32.mrf.mxu2  ;;  %v886_v41 = vpop.f32.mrf.mxu3 }
  0xd8   : > { %v855_v42 = vadd.f32 %v851_v40, %v817_v39  ;;  %v790_v43 = vpop.f32.mrf.mxu0  ;;  %v818_v44 = vpop.f32.mrf.mxu1 }
  0xda   : > { %v890_v45 = vadd.f32 %v886_v41, %v855_v42 }
  0xdc   : > { %v891_v46 = vadd.f32 %v1952_v54, %v890_v45 }
  0xde   : > { %v892_v47 = vmax.f32 %v891_v46, 0.0 }
  0xdf   : > { %v853_v48 = vpop.f32.mrf.mxu2  ;;  %v888_v49 = vpop.f32.mrf.mxu3 }
  0xe0   : > { %1505 = vst.msk [vmem:[%s1959_s11 + $0x20] sm:$0x7f] %vm321_vm1, %v892_v47  ;;  %v931_v50 = vpop.f32.mrf.mxu0  ;;  %v959_v51 = vpop.f32.mrf.mxu1 }
  0xe1   : > { %v960_v52 = vadd.f32 %v959_v51, %v931_v50 }
  0xe7   : > { %v994_v53 = vpop.f32.mrf.mxu2  ;;  %v1029_v55 = vpop.f32.mrf.mxu3 }
  0xe8   : > { %v998_v56 = vadd.f32 %v994_v53, %v960_v52  ;;  %v933_v57 = vpop.f32.mrf.mxu0  ;;  %v961_v58 = vpop.f32.mrf.mxu1 }
  0xea   : > { %v1033_v59 = vadd.f32 %v1029_v55, %v998_v56 }
  0xec   : > { %v1034_v60 = vadd.f32 %v1952_v54, %v1033_v59 }
  0xee   : > { %v1035_v61 = vmax.f32 %v1034_v60, 0.0 }
  0xef   : > { %v996_v62 = vpop.f32.mrf.mxu2  ;;  %v1031_v63 = vpop.f32.mrf.mxu3 }
  0xf0   : > { %1558 = vst.msk [vmem:[%s1959_s11 + $0x28] sm:$0x7f] %vm321_vm1, %v1035_v61  ;;  %v1074_v0 = vpop.f32.mrf.mxu0  ;;  %v1102_v1 = vpop.f32.mrf.mxu1 }
  0xf1   : > { %v1103_v2 = vadd.f32 %v1102_v1, %v1074_v0 }
  0xf7   : > { %v1137_v3 = vpop.f32.mrf.mxu2  ;;  %v1172_v4 = vpop.f32.mrf.mxu3 }
  0xf8   : > { %v1141_v5 = vadd.f32 %v1137_v3, %v1103_v2  ;;  %v1076_v6 = vpop.f32.mrf.mxu0  ;;  %v1104_v7 = vpop.f32.mrf.mxu1 }
  0xfa   : > { %v1176_v8 = vadd.f32 %v1172_v4, %v1141_v5 }
  0xfc   : > { %v1177_v9 = vadd.f32 %v1952_v54, %v1176_v8 }
  0xfe   : > { %v1178_v10 = vmax.f32 %v1177_v9, 0.0 }
  0xff   : > { %v1139_v11 = vpop.f32.mrf.mxu2  ;;  %v1174_v12 = vpop.f32.mrf.mxu3 }
 0x100   : > { %1611 = vst.msk [vmem:[%s1959_s11 + $0x30] sm:$0x7f] %vm321_vm1, %v1178_v10 }
 0x101 PF: > { %s13_s12 = sadd.s32 1, %s1687_s12  }
 0x102   : > { %p10_p4 = scmp.ge.s32.totalorder %s13_s12, 4  }
 0x104   :  { %12 = sbr.rel (!%p10_p4) target bundleno = 1 (0x1), region = 78 }

// kernel: autoencoder_forward.9
= control target key start
LH: loop header
LB: loop body
LE: loop exit
PB: predicated region body
PF: predicated region fallthrough
CT: control target
= control target key end

     0   :  { %s2855_s12 = smov 0   ;;  %s3310_s0 = inlined_call_operand.vmem [shape: f32[2,15,15,16], index: 0, kind: input, shape index: {}]   ;;  %s3311_s1 = inlined_call_operand.vmem [shape: bf16[4,16,4], index: 1, kind: input, shape index: {}]   ;;  %s3312_s2 = inlined_call_operand.vmem [shape: f32[1,4], index: 2, kind: input, shape index: {}]   ;;  %s3313_s3 = inlined_call_operand.vmem [shape: f32[2,14,14,4], index: 3, kind: output, shape index: {}]  }
   0x1 LB: > { %s2140_s13 = sadd.s32 4294967295, %s2833_s12   ;;  %p2144_p0 = scmp.ge.s32.totalorder %s2833_s12, 1  ;;  %s2833_s12 = sphi %s2855_s12, %s13_s12  }
   0x2   : > { %p137_p1 = scmp.lt.s32.totalorder %s2833_s12, 3 }
   0x4   : > { %p138_p2 = pnand %p2144_p0, %p137_p1 }
   0x5   : > { %p161_p3 = scmp.lt.s32.totalorder (!%p138_p2), %s2140_s13, 1 }
   0x6   : > { %141 = sbr.rel (%p138_p2) target bundleno = 398 (0x18e), region = 32 }
   0xb   : > { %v2648_v0 = vld [vmem:[%s3311_s1 + $0x8] sm:$0xff]  ;;  %v2647_v1 = vld [vmem:[%s3311_s1] sm:$0xff]  ;;  %v2649_v2 = vld [vmem:[%s3311_s1 + $0x10] sm:$0xff]  ;;  %s3315_s13 = smov (!%p161_p3, %s2140_s13), 1  ;;  %vm190_vm0 = vcmask 130048   ;;  %vm313_vm1 = vcmask 31744  }
   0xc   : > { %v2650_v3 = vld [vmem:[%s3311_s1 + $0x18] sm:$0xff]  ;;  %v2653_v4 = vld [vmem:[%s3311_s1 + $0x10] sm:$0xff]  ;;  %201 = vmatpush.bf16.msra.mxu0 %v2648_v0  ;;  %224 = vmatpush.bf16.msra.mxu1 %v2647_v1  ;;  %v2652_v6 = vld [vmem:[%s3311_s1 + $0x8] sm:$0xff]  ;;  %s2703_s30 = smul.u32 240, %s3315_s13  ;;  %vm315_vm2 = vcmask 29696  }
   0xd   : > { %v2654_v5 = vld [vmem:[%s3311_s1 + $0x18] sm:$0xff]  ;;  %v2651_v7 = vld [vmem:[%s3311_s1] sm:$0xff]  ;;  %254 = vmatpush.bf16.msra.mxu2 %v2649_v2  ;;  %285 = vmatpush.bf16.msra.mxu3 %v2650_v3  ;;  %v2657_v8 = vld [vmem:[%s3311_s1 + $0x10] sm:$0xff]  ;;  %s2704_s19 = smul.u32 224, %s3315_s13 }
   0xe   : > { %s2893_s6 = scalar_lea.vmem %s3310_s0, %s2703_s30  ;;  %v2658_v12 = vld [vmem:[%s3311_s1 + $0x18] sm:$0xff]  ;;  %v2656_v21 = vld [vmem:[%s3311_s1 + $0x8] sm:$0xff]  ;;  %v2655_v23 = vld [vmem:[%s3311_s1] sm:$0xff] }
   0xf   : > { %v178_v9 = vld [vmem:[%s2893_s6 + $0x1] sm:$0xff]  ;;  %v179_v10 = vld [vmem:[%s2893_s6 + $0x9] sm:$0x3f]  ;;  %v2159_v15 = vld [vmem:[%s2893_s6 + $0x10] sm:$0xff]  ;;  %s3158_s27 = scalar_lea.vmem %s3313_s3, %s2704_s19 }
  0x10   : > { %343 = vmatpush.bf16.msrb.mxu0 %v2652_v6  ;;  %366 = vmatpush.bf16.msrb.mxu1 %v2651_v7  ;;  %v173_v11 = vld [vmem:[%s2893_s6] sm:$0xff]  ;;  %v180_v13 = vpack.c.bf16 %v179_v10, %v178_v9  ;;  %v174_v14 = vld [vmem:[%s2893_s6 + $0x8] sm:$0x3f]  ;;  %v2160_v16 = vld [vmem:[%s2893_s6 + $0x18] sm:$0x3f] }
  0x11   : > { %395 = vmatpush.bf16.msrb.mxu2 %v2653_v4  ;;  %425 = vmatpush.bf16.msrb.mxu3 %v2654_v5  ;;  %v175_v17 = vpack.c.bf16 %v174_v14, %v173_v11  ;;  %v234_v18 = vpack.c.bf16 %v2160_v16, %v2159_v15  ;;  %v2168_v19 = vld [vmem:[%s2893_s6 + $0x11] sm:$0xff]  ;;  %v2169_v20 = vld [vmem:[%s2893_s6 + $0x19] sm:$0x3f]  ;;  %v2193_v26 = vld [vmem:[%s2893_s6 + $0x20] sm:$0xff] }
  0x12   : > { %2153 = vmatmul.msk.bf16.vlgmr.msra.gmra.mxu0 %vm190_vm0, %v180_v13  ;;  %v265_v22 = vpack.c.bf16 %v2169_v20, %v2168_v19  ;;  %v2180_v24 = vld [vmem:[%s2893_s6 + $0x19] sm:$0x3f]  ;;  %v2194_v27 = vld [vmem:[%s2893_s6 + $0x28] sm:$0x3f]  ;;  %v2661_v34 = vld [vmem:[%s3311_s1 + $0x10] sm:$0xff] }
  0x13   : > { %2158 = vmatmul.msk.bf16.vlgmr.msra.gmra.mxu1 %vm190_vm0, %v175_v17  ;;  %2167 = vmatmul.msk.bf16.vlgmr.msra.gmra.mxu2 %vm190_vm0, %v234_v18  ;;  %v2178_v25 = vld [vmem:[%s2893_s6 + $0x18] sm:$0x3f]  ;;  %v2202_v28 = vld [vmem:[%s2893_s6 + $0x21] sm:$0xff]  ;;  %v2203_v29 = vld [vmem:[%s2893_s6 + $0x29] sm:$0x3f]  ;;  %v324_v30 = vpack.c.bf16 %v2180_v24, %v2168_v19  ;;  %v376_v32 = vpack.c.bf16 %v2194_v27, %v2193_v26 }
  0x14   : > { %2176 = vmatmul.msk.bf16.vlgmr.msra.gmra.mxu3 %vm190_vm0, %v265_v22  ;;  %479 = vmatpush.bf16.msra.mxu0 %v2656_v21  ;;  %v319_v31 = vpack.c.bf16 %v2178_v25, %v2159_v15  ;;  %v406_v33 = vpack.c.bf16 %v2203_v29, %v2202_v28  ;;  %v2662_v35 = vld [vmem:[%s3311_s1 + $0x18] sm:$0xff]  ;;  %v2660_v36 = vld [vmem:[%s3311_s1 + $0x8] sm:$0xff]  ;;  %v2659_v37 = vld [vmem:[%s3311_s1] sm:$0xff] }
  0x15   : > { %531 = vmatpush.bf16.msra.mxu2 %v2657_v8  ;;  %561 = vmatpush.bf16.msra.mxu3 %v2658_v12  ;;  %v2216_v38 = vld [vmem:[%s2893_s6 + $0x29] sm:$0x3f]  ;;  %v2229_v40 = vld [vmem:[%s2893_s6 + $0x30] sm:$0xff]  ;;  %v2230_v41 = vld [vmem:[%s2893_s6 + $0x38] sm:$0x3f] }
  0x16   : > { %502 = vmatpush.bf16.msra.mxu1 %v2655_v23  ;;  %v2214_v39 = vld [vmem:[%s2893_s6 + $0x28] sm:$0x3f]  ;;  %v2238_v42 = vld [vmem:[%s2893_s6 + $0x31] sm:$0xff]  ;;  %v2239_v43 = vld [vmem:[%s2893_s6 + $0x39] sm:$0x3f]  ;;  %v460_v44 = vpack.c.bf16 %v2216_v38, %v2202_v28  ;;  %v512_v46 = vpack.c.bf16 %v2230_v41, %v2229_v40 }
  0x17   : > { %v455_v45 = vpack.c.bf16 %v2214_v39, %v2193_v26  ;;  %v542_v47 = vpack.c.bf16 %v2239_v43, %v2238_v42  ;;  %v2665_v48 = vld [vmem:[%s3311_s1 + $0x10] sm:$0xff]  ;;  %v2666_v49 = vld [vmem:[%s3311_s1 + $0x18] sm:$0xff]  ;;  %v2664_v50 = vld [vmem:[%s3311_s1 + $0x8] sm:$0xff] }
  0x18   : > { %v2663_v51 = vld [vmem:[%s3311_s1] sm:$0xff]  ;;  %v2252_v52 = vld [vmem:[%s2893_s6 + $0x39] sm:$0x3f]  ;;  %v2266_v55 = vld [vmem:[%s2893_s6 + $0x48] sm:$0x3f] }
  0x19   : > { %v2250_v53 = vld [vmem:[%s2893_s6 + $0x38] sm:$0x3f]  ;;  %v2265_v54 = vld [vmem:[%s2893_s6 + $0x40] sm:$0xff]  ;;  %v2275_v57 = vld [vmem:[%s2893_s6 + $0x49] sm:$0x3f]  ;;  %v596_v58 = vpack.c.bf16 %v2252_v52, %v2238_v42 }
  0x1a   : > { %v2274_v56 = vld [vmem:[%s2893_s6 + $0x41] sm:$0xff]  ;;  %v591_v59 = vpack.c.bf16 %v2250_v53, %v2229_v40  ;;  %v648_v60 = vpack.c.bf16 %v2266_v55, %v2265_v54  ;;  %v2669_v62 = vld [vmem:[%s3311_s1 + $0x10] sm:$0xff]  ;;  %v2670_v63 = vld [vmem:[%s3311_s1 + $0x18] sm:$0xff] }
  0x1b   : > { %v678_v61 = vpack.c.bf16 %v2275_v57, %v2274_v56  ;;  %v2668_v0 = vld [vmem:[%s3311_s1 + $0x8] sm:$0xff]  ;;  %v2667_v1 = vld [vmem:[%s3311_s1] sm:$0xff]  ;;  %v2301_v4 = vld [vmem:[%s2893_s6 + $0x50] sm:$0xff] }
  0x1c   : > { %v2288_v2 = vld [vmem:[%s2893_s6 + $0x49] sm:$0x3f]  ;;  %v2302_v5 = vld [vmem:[%s2893_s6 + $0x58] sm:$0x3f]  ;;  %v2673_v12 = vld [vmem:[%s3311_s1 + $0x10] sm:$0xff] }
  0x1d   : > { %v2286_v3 = vld [vmem:[%s2893_s6 + $0x48] sm:$0x3f]  ;;  %v2310_v6 = vld [vmem:[%s2893_s6 + $0x51] sm:$0xff]  ;;  %v2311_v7 = vld [vmem:[%s2893_s6 + $0x59] sm:$0x3f]  ;;  %v732_v8 = vpack.c.bf16 %v2288_v2, %v2274_v56  ;;  %v784_v10 = vpack.c.bf16 %v2302_v5, %v2301_v4 }
  0x1e   : > { %v727_v9 = vpack.c.bf16 %v2286_v3, %v2265_v54  ;;  %v814_v11 = vpack.c.bf16 %v2311_v7, %v2310_v6  ;;  %v2674_v13 = vld [vmem:[%s3311_s1 + $0x18] sm:$0xff]  ;;  %v2672_v14 = vld [vmem:[%s3311_s1 + $0x8] sm:$0xff]  ;;  %v2671_v15 = vld [vmem:[%s3311_s1] sm:$0xff] }
  0x1f   : > { %v2324_v16 = vld [vmem:[%s2893_s6 + $0x59] sm:$0x3f]  ;;  %v2337_v18 = vld [vmem:[%s2893_s6 + $0x60] sm:$0xff]  ;;  %v2338_v19 = vld [vmem:[%s2893_s6 + $0x68] sm:$0x3f] }
  0x20   : > { %v2322_v17 = vld [vmem:[%s2893_s6 + $0x58] sm:$0x3f]  ;;  %v2346_v20 = vld [vmem:[%s2893_s6 + $0x61] sm:$0xff]  ;;  %v2347_v21 = vld [vmem:[%s2893_s6 + $0x69] sm:$0x3f]  ;;  %v868_v22 = vpack.c.bf16 %v2324_v16, %v2310_v6  ;;  %v920_v24 = vpack.c.bf16 %v2338_v19, %v2337_v18 }
  0x21   : > { %v863_v23 = vpack.c.bf16 %v2322_v17, %v2301_v4  ;;  %v950_v25 = vpack.c.bf16 %v2347_v21, %v2346_v20  ;;  %v2677_v26 = vld [vmem:[%s3311_s1 + $0x10] sm:$0xff]  ;;  %v2678_v27 = vld [vmem:[%s3311_s1 + $0x18] sm:$0xff]  ;;  %v2676_v28 = vld [vmem:[%s3311_s1 + $0x8] sm:$0xff] }
  0x22   : > { %2187 = vmatmul.msk.bf16.vlgmr.msrb.gmra.mxu0 %vm190_vm0, %v324_v30  ;;  %v2675_v29 = vld [vmem:[%s3311_s1] sm:$0xff]  ;;  %v2360_v30 = vld [vmem:[%s2893_s6 + $0x69] sm:$0x3f]  ;;  %v2681_v40 = vld [vmem:[%s3311_s1 + $0x10] sm:$0xff] }
  0x23   : > { %2192 = vmatmul.msk.bf16.vlgmr.msrb.gmra.mxu1 %vm190_vm0, %v319_v31  ;;  %2201 = vmatmul.msk.bf16.vlgmr.msrb.gmra.mxu2 %vm190_vm0, %v376_v32  ;;  %v2358_v31 = vld [vmem:[%s2893_s6 + $0x68] sm:$0x3f]  ;;  %v2373_v32 = vld [vmem:[%s2893_s6 + $0x70] sm:$0xff]  ;;  %v2682_v41 = vld [vmem:[%s3311_s1 + $0x18] sm:$0xff] }
  0x24   : > { %2210 = vmatmul.msk.bf16.vlgmr.msrb.gmra.mxu3 %vm190_vm0, %v406_v33  ;;  %667 = vmatpush.bf16.msrb.mxu2 %v2661_v34  ;;  %v2374_v33 = vld [vmem:[%s2893_s6 + $0x78] sm:$0x3f]  ;;  %v2680_v42 = vld [vmem:[%s3311_s1 + $0x8] sm:$0xff]  ;;  %v2679_v43 = vld [vmem:[%s3311_s1] sm:$0xff] }
  0x25   : > { %697 = vmatpush.bf16.msrb.mxu3 %v2662_v35  ;;  %615 = vmatpush.bf16.msrb.mxu0 %v2660_v36  ;;  %v2382_v34 = vld [vmem:[%s2893_s6 + $0x71] sm:$0xff]  ;;  %v2383_v35 = vld [vmem:[%s2893_s6 + $0x79] sm:$0x3f]  ;;  %v1004_v36 = vpack.c.bf16 %v2360_v30, %v2346_v20  ;;  %v1056_v38 = vpack.c.bf16 %v2374_v33, %v2373_v32  ;;  %v2684_v56 = vld [vmem:[%s3311_s1 + $0x8] sm:$0xff] }
  0x26   : > { %638 = vmatpush.bf16.msrb.mxu1 %v2659_v37  ;;  %v999_v37 = vpack.c.bf16 %v2358_v31, %v2337_v18  ;;  %v1086_v39 = vpack.c.bf16 %v2383_v35, %v2382_v34  ;;  %v2685_v54 = vld [vmem:[%s3311_s1 + $0x10] sm:$0xff]  ;;  %v2686_v55 = vld [vmem:[%s3311_s1 + $0x18] sm:$0xff]  ;;  %v2683_v57 = vld [vmem:[%s3311_s1] sm:$0xff] }
  0x27   : > { %v2689_v6 = vld [vmem:[%s3311_s1 + $0x10] sm:$0xff]  ;;  %v2690_v7 = vld [vmem:[%s3311_s1 + $0x18] sm:$0xff]  ;;  %v3104_v21 = vld [vmem:[%s2893_s6 + $0xa0] sm:$0xff] }
  0x28   : > { %v2468_v19 = vld [vmem:[%s2893_s6 + $0x99] sm:$0x3f] }
  0x29   : > { %v2466_v20 = vld [vmem:[%s2893_s6 + $0x98] sm:$0x3f] }
  0x32   : > { %2223 = vmatmul.msk.bf16.vlgmr.msra.gmra.mxu0 %vm190_vm0, %v460_v44  ;;  %v2396_v44 = vld [vmem:[%s2893_s6 + $0x79] sm:$0x3f] }
  0x33   : > { %2228 = vmatmul.msk.bf16.vlgmr.msra.gmra.mxu1 %vm190_vm0, %v455_v45  ;;  %2237 = vmatmul.msk.bf16.vlgmr.msra.gmra.mxu2 %vm190_vm0, %v512_v46  ;;  %v2394_v45 = vld [vmem:[%s2893_s6 + $0x78] sm:$0x3f]  ;;  %v2409_v46 = vld [vmem:[%s2893_s6 + $0x80] sm:$0xff] }
  0x34   : > { %2246 = vmatmul.msk.bf16.vlgmr.msra.gmra.mxu3 %vm190_vm0, %v542_v47  ;;  %803 = vmatpush.bf16.msra.mxu2 %v2665_v48  ;;  %v2410_v47 = vld [vmem:[%s2893_s6 + $0x88] sm:$0x3f] }
  0x35   : > { %833 = vmatpush.bf16.msra.mxu3 %v2666_v49  ;;  %751 = vmatpush.bf16.msra.mxu0 %v2664_v50  ;;  %v2418_v48 = vld [vmem:[%s2893_s6 + $0x81] sm:$0xff]  ;;  %v2419_v49 = vld [vmem:[%s2893_s6 + $0x89] sm:$0x3f]  ;;  %v1140_v50 = vpack.c.bf16 %v2396_v44, %v2382_v34  ;;  %v1192_v52 = vpack.c.bf16 %v2410_v47, %v2409_v46 }
  0x36   : > { %774 = vmatpush.bf16.msra.mxu1 %v2663_v51  ;;  %v1135_v51 = vpack.c.bf16 %v2394_v45, %v2373_v32  ;;  %v1222_v53 = vpack.c.bf16 %v2419_v49, %v2418_v48 }
  0x42   : > { %2259 = vmatmul.msk.bf16.vlgmr.msrb.gmra.mxu0 %vm190_vm0, %v596_v58  ;;  %v2432_v58 = vld [vmem:[%s2893_s6 + $0x89] sm:$0x3f] }
  0x43   : > { %2264 = vmatmul.msk.bf16.vlgmr.msrb.gmra.mxu1 %vm190_vm0, %v591_v59  ;;  %2273 = vmatmul.msk.bf16.vlgmr.msrb.gmra.mxu2 %vm190_vm0, %v648_v60  ;;  %v2430_v59 = vld [vmem:[%s2893_s6 + $0x88] sm:$0x3f]  ;;  %v2445_v60 = vld [vmem:[%s2893_s6 + $0x90] sm:$0xff] }
  0x44   : > { %2282 = vmatmul.msk.bf16.vlgmr.msrb.gmra.mxu3 %vm190_vm0, %v678_v61  ;;  %939 = vmatpush.bf16.msrb.mxu2 %v2669_v62  ;;  %v2446_v61 = vld [vmem:[%s2893_s6 + $0x98] sm:$0x3f]  ;;  %v1271_v2 = vpack.c.bf16 %v2430_v59, %v2409_v46  ;;  %v1407_v33 = vpack.c.bf16 %v2466_v20, %v2445_v60 }
  0x45   : > { %969 = vmatpush.bf16.msrb.mxu3 %v2670_v63  ;;  %887 = vmatpush.bf16.msrb.mxu0 %v2668_v0  ;;  %v2454_v62 = vld [vmem:[%s2893_s6 + $0x91] sm:$0xff]  ;;  %v2455_v63 = vld [vmem:[%s2893_s6 + $0x99] sm:$0x3f]  ;;  %v1276_v0 = vpack.c.bf16 %v2432_v58, %v2418_v48  ;;  %v1328_v3 = vpack.c.bf16 %v2446_v61, %v2445_v60 }
  0x46   : > { %910 = vmatpush.bf16.msrb.mxu1 %v2667_v1  ;;  %v1358_v5 = vpack.c.bf16 %v2455_v63, %v2454_v62  ;;  %v2518_v58 = vld [vmem:[%s2893_s6 + $0xb8] sm:$0x3f] }
  0x47   : > { %v3138_v61 = vld [vmem:[%s2893_s6 + $0xb1] sm:$0xff] }
  0x52   : > { %2295 = vmatmul.msk.bf16.vlgmr.msra.gmra.mxu0 %vm190_vm0, %v732_v8  ;;  %v2688_v8 = vld [vmem:[%s3311_s1 + $0x8] sm:$0xff] }
  0x53   : > { %2300 = vmatmul.msk.bf16.vlgmr.msra.gmra.mxu1 %vm190_vm0, %v727_v9  ;;  %2309 = vmatmul.msk.bf16.vlgmr.msra.gmra.mxu2 %vm190_vm0, %v784_v10  ;;  %v2687_v9 = vld [vmem:[%s3311_s1] sm:$0xff] }
  0x54   : > { %2318 = vmatmul.msk.bf16.vlgmr.msra.gmra.mxu3 %vm190_vm0, %v814_v11  ;;  %1075 = vmatpush.bf16.msra.mxu2 %v2673_v12 }
  0x55   : > { %1105 = vmatpush.bf16.msra.mxu3 %v2674_v13  ;;  %1023 = vmatpush.bf16.msra.mxu0 %v2672_v14  ;;  %v3098_v14 = vld [vmem:[%s3312_s2] ss:$0 sm:$0xff] }
  0x56   : > { %1046 = vmatpush.bf16.msra.mxu1 %v2671_v15 }
  0x62   : > { %2331 = vmatmul.msk.bf16.vlgmr.msrb.gmra.mxu0 %vm190_vm0, %v868_v22  ;;  %v2482_v22 = vld [vmem:[%s2893_s6 + $0xa8] sm:$0x3f] }
  0x63   : > { %2336 = vmatmul.msk.bf16.vlgmr.msrb.gmra.mxu1 %vm190_vm0, %v863_v23  ;;  %2345 = vmatmul.msk.bf16.vlgmr.msrb.gmra.mxu2 %vm190_vm0, %v920_v24  ;;  %v1464_v34 = vpack.c.bf16 %v2482_v22, %v3104_v21 }
  0x64   : > { %2354 = vmatmul.msk.bf16.vlgmr.msrb.gmra.mxu3 %vm190_vm0, %v950_v25  ;;  %1211 = vmatpush.bf16.msrb.mxu2 %v2677_v26  ;;  %v3108_v25 = vld [vmem:[%s2893_s6 + $0xa1] sm:$0xff]  ;;  %v2491_v26 = vld [vmem:[%s2893_s6 + $0xa9] sm:$0x3f] }
  0x65   : > { %1241 = vmatpush.bf16.msrb.mxu3 %v2678_v27  ;;  %1159 = vmatpush.bf16.msrb.mxu0 %v2676_v28  ;;  %v1412_v28 = vpack.c.bf16 %v2468_v19, %v2454_v62  ;;  %v2527_v62 = vld [vmem:[%s2893_s6 + $0xb9] sm:$0x3f] }
  0x66   : > { %1182 = vmatpush.bf16.msrb.mxu1 %v2675_v29 }
  0x72   : > { %2367 = vmatmul.msk.bf16.vlgmr.msra.gmra.mxu0 %vm190_vm0, %v1004_v36  ;;  %v1494_v36 = vpack.c.bf16 %v2491_v26, %v3108_v25 }
  0x73   : > { %2372 = vmatmul.msk.bf16.vlgmr.msra.gmra.mxu1 %vm190_vm0, %v999_v37  ;;  %2381 = vmatmul.msk.bf16.vlgmr.msra.gmra.mxu2 %vm190_vm0, %v1056_v38  ;;  %v2693_v37 = vld [vmem:[%s3311_s1 + $0x10] sm:$0xff] }
  0x74   : > { %2390 = vmatmul.msk.bf16.vlgmr.msra.gmra.mxu3 %vm190_vm0, %v1086_v39  ;;  %1347 = vmatpush.bf16.msra.mxu2 %v2681_v40  ;;  %v2694_v39 = vld [vmem:[%s3311_s1 + $0x18] sm:$0xff]  ;;  %v2692_v40 = vld [vmem:[%s3311_s1 + $0x8] sm:$0xff] }
  0x75   : > { %1377 = vmatpush.bf16.msra.mxu3 %v2682_v41  ;;  %1295 = vmatpush.bf16.msra.mxu0 %v2680_v42  ;;  %v2691_v41 = vld [vmem:[%s3311_s1] sm:$0xff] }
  0x76   : > { %1318 = vmatpush.bf16.msra.mxu1 %v2679_v43 }
  0x82   : > { %2403 = vmatmul.msk.bf16.vlgmr.msrb.gmra.mxu0 %vm190_vm0, %v1140_v50 }
  0x83   : > { %2408 = vmatmul.msk.bf16.vlgmr.msrb.gmra.mxu1 %vm190_vm0, %v1135_v51  ;;  %2417 = vmatmul.msk.bf16.vlgmr.msrb.gmra.mxu2 %vm190_vm0, %v1192_v52 }
  0x84   : > { %2426 = vmatmul.msk.bf16.vlgmr.msrb.gmra.mxu3 %vm190_vm0, %v1222_v53  ;;  %1483 = vmatpush.bf16.msrb.mxu2 %v2685_v54 }
  0x85   : > { %1513 = vmatpush.bf16.msrb.mxu3 %v2686_v55  ;;  %1431 = vmatpush.bf16.msrb.mxu0 %v2684_v56  ;;  %v2504_v55 = vld [vmem:[%s2893_s6 + $0xa9] sm:$0x3f] }
  0x86   : > { %1454 = vmatpush.bf16.msrb.mxu1 %v2683_v57  ;;  %v2502_v56 = vld [vmem:[%s2893_s6 + $0xa8] sm:$0x3f]  ;;  %v3134_v57 = vld [vmem:[%s2893_s6 + $0xb0] sm:$0xff] }
  0x8f   : > { %v203_v1 = vpop.f32.mrf.mxu0 }
  0x90   : > { %v226_v4 = vpop.f32.mrf.mxu1 }
  0x91   : > { %v227_v10 = vadd.f32 %v226_v4, %v203_v1 }
  0x92   : > { %2439 = vmatmul.msk.bf16.vlgmr.msra.gmra.mxu0 %vm190_vm0, %v1276_v0  ;;  %v1548_v0 = vpack.c.bf16 %v2504_v55, %v3108_v25 }
  0x93   : > { %2444 = vmatmul.msk.bf16.vlgmr.msra.gmra.mxu1 %vm190_vm0, %v1271_v2  ;;  %2453 = vmatmul.msk.bf16.vlgmr.msra.gmra.mxu2 %vm190_vm0, %v1328_v3 }
  0x94   : > { %2462 = vmatmul.msk.bf16.vlgmr.msra.gmra.mxu3 %vm190_vm0, %v1358_v5  ;;  %1619 = vmatpush.bf16.msra.mxu2 %v2689_v6  ;;  %v1543_v6 = vpack.c.bf16 %v2502_v56, %v3104_v21 }
  0x95   : > { %1649 = vmatpush.bf16.msra.mxu3 %v2690_v7  ;;  %1567 = vmatpush.bf16.msra.mxu0 %v2688_v8  ;;  %v1600_v7 = vpack.c.bf16 %v2518_v58, %v3134_v57  ;;  %v2701_v58 = vld [vmem:[%s3311_s1 + $0x10] sm:$0xff] }
  0x96   : > { %v256_v11 = vpop.f32.mrf.mxu2  ;;  %1590 = vmatpush.bf16.msra.mxu1 %v2687_v9 }
  0x97   : > { %v261_v12 = vadd.f32 %v256_v11, %v227_v10  ;;  %v287_v13 = vpop.f32.mrf.mxu3  ;;  %v205_v15 = vpop.f32.mrf.mxu0  ;;  %v1630_v11 = vpack.c.bf16 %v2527_v62, %v3138_v61  ;;  %v2699_v62 = vld [vmem:[%s3311_s1] sm:$0xff] }
  0x98   : > { %v228_v16 = vpop.f32.mrf.mxu1 }
  0x99   : > { %v292_v17 = vadd.f32 %v287_v13, %v261_v12  ;;  %v229_v24 = vadd.f32 %v228_v16, %v205_v15  ;;  %v2697_v12 = vld [vmem:[%s3311_s1 + $0x10] sm:$0xff]  ;;  %v2698_v16 = vld [vmem:[%s3311_s1 + $0x18] sm:$0xff] }
  0x9b   : > { %v297_v18 = vadd.f32 %v3098_v14, %v292_v17  ;;  %v2696_v17 = vld [vmem:[%s3311_s1 + $0x8] sm:$0xff] }
  0x9d   : > { %v299_v23 = vsub.f32 0.0, %v297_v18  ;;  %v2695_v18 = vld [vmem:[%s3311_s1] sm:$0xff] }
  0x9e   : > { %v258_v27 = vpop.f32.mrf.mxu2 }
  0x9f   : > { %v301_v29 = vmul.f32 1.442695, %v299_v23  ;;  %v262_v30 = vadd.f32 %v258_v27, %v229_v24  ;;  %v289_v31 = vpop.f32.mrf.mxu3  ;;  %v345_v32 = vpop.f32.mrf.mxu0 }
  0xa0   : > { %v368_v35 = vpop.f32.mrf.mxu1 }
  0xa1   : > { %2714 = vpow2.f32 %v301_v29  ;;  %v293_v38 = vadd.f32 %v289_v31, %v262_v30  ;;  %v369_v43 = vadd.f32 %v368_v35, %v345_v32 }
  0xa2   : > { %2475 = vmatmul.msk.bf16.vlgmr.msrb.gmra.mxu0 %vm190_vm0, %v1412_v28 }
  0xa3   : > { %v298_v42 = vadd.f32 %v3098_v14, %v293_v38  ;;  %2480 = vmatmul.msk.bf16.vlgmr.msrb.gmra.mxu1 %vm190_vm0, %v1407_v33  ;;  %2489 = vmatmul.msk.bf16.vlgmr.msrb.gmra.mxu2 %vm190_vm0, %v1464_v34  ;;  %v3174_v38 = vld [vmem:[%s2893_s6 + $0xc0] sm:$0xff] }
  0xa4   : > { %2498 = vmatmul.msk.bf16.vlgmr.msrb.gmra.mxu3 %vm190_vm0, %v1494_v36  ;;  %1755 = vmatpush.bf16.msrb.mxu2 %v2693_v37  ;;  %v2540_v36 = vld [vmem:[%s2893_s6 + $0xb9] sm:$0x3f] }
  0xa5   : > { %v300_v44 = vsub.f32 0.0, %v298_v42  ;;  %1785 = vmatpush.bf16.msrb.mxu3 %v2694_v39  ;;  %1703 = vmatpush.bf16.msrb.mxu0 %v2692_v40  ;;  %v2538_v37 = vld [vmem:[%s2893_s6 + $0xb8] sm:$0x3f]  ;;  %v2554_v39 = vld [vmem:[%s2893_s6 + $0xc8] sm:$0x3f] }
  0xa6   : > { %v397_v45 = vpop.f32.mrf.mxu2  ;;  %1726 = vmatpush.bf16.msrb.mxu1 %v2691_v41  ;;  %v3180_v42 = vld [vmem:[%s2893_s6 + $0xc1] sm:$0xff] }
  0xa7   : > { %v2715_v46 = vpop.eup %2714  ;;  %v303_v47 = vmul.f32 1.442695, %v300_v44  ;;  %v402_v48 = vadd.f32 %v397_v45, %v369_v43  ;;  %v427_v49 = vpop.f32.mrf.mxu3  ;;  %v2563_v43 = vld [vmem:[%s2893_s6 + $0xc9] sm:$0x3f]  ;;  %v1684_v45 = vpack.c.bf16 %v2540_v36, %v3138_v61  ;;  %v2702_v61 = vld [vmem:[%s3311_s1 + $0x18] sm:$0xff] }
  0xa8   : > { %v347_v50 = vpop.f32.mrf.mxu0  ;;  %v305_v51 = vadd.f32 1.0, %v2715_v46  ;;  %v370_v52 = vpop.f32.mrf.mxu1  ;;  %v1766_v56 = vpack.c.bf16 %v2563_v43, %v3180_v42 }
  0xa9   : > { %2716 = vpow2.f32 %v303_v47  ;;  %v432_v53 = vadd.f32 %v427_v49, %v402_v48  ;;  %v371_v60 = vadd.f32 %v370_v52, %v347_v50  ;;  %v1736_v52 = vpack.c.bf16 %v2554_v39, %v3174_v38 }
  0xaa   : > { %2718 = vrcp.f32 %v305_v51  ;;  %v1679_v51 = vpack.c.bf16 %v2538_v37, %v3134_v57  ;;  %v2700_v57 = vld [vmem:[%s3311_s1 + $0x8] sm:$0xff] }
  0xab   : > { %v434_v54 = vadd.f32 %v3098_v14, %v432_v53 }
  0xad   : > { %v436_v59 = vsub.f32 0.0, %v434_v54 }
  0xae   : > { %v399_v63 = vpop.f32.mrf.mxu2 }
  0xaf   : > { %v2717_v1 = vpop.eup %2716  ;;  %v438_v2 = vmul.f32 1.442695, %v436_v59  ;;  %v403_v3 = vadd.f32 %v399_v63, %v371_v60  ;;  %v429_v4 = vpop.f32.mrf.mxu3 }
  0xb0   : > { %v481_v5 = vpop.f32.mrf.mxu0  ;;  %v2719_v8 = vpop.eup %2718  ;;  %v306_v9 = vadd.f32 1.0, %v2717_v1 }
  0xb1   : > { %v504_v10 = vpop.f32.mrf.mxu1  ;;  %v309_v13 = vmax.f32 %v2719_v8, 0.0  ;;  %2720 = vpow2.f32 %v438_v2  ;;  %v433_v15 = vadd.f32 %v429_v4, %v403_v3 }
  0xb2   : > { %2722 = vrcp.f32 %v306_v9  ;;  %2511 = vmatmul.msk.bf16.vlgmr.msra.gmra.mxu0 %vm190_vm0, %v1548_v0  ;;  %v505_v21 = vadd.f32 %v504_v10, %v481_v5 }
  0xb3   : > { %v311_v19 = vmin.f32 %v309_v13, 1.0  ;;  %v435_v20 = vadd.f32 %v3098_v14, %v433_v15  ;;  %2516 = vmatmul.msk.bf16.vlgmr.msra.gmra.mxu1 %vm190_vm0, %v1543_v6  ;;  %2525 = vmatmul.msk.bf16.vlgmr.msra.gmra.mxu2 %vm190_vm0, %v1600_v7 }
  0xb4   : > { %2534 = vmatmul.msk.bf16.vlgmr.msra.gmra.mxu3 %vm190_vm0, %v1630_v11  ;;  %1891 = vmatpush.bf16.msra.mxu2 %v2697_v12 }
  0xb5   : > { %314 = vst.msk [vmem:[%s3158_s27] sm:$0xff] %vm313_vm1, %v311_v19  ;;  %v437_v22 = vsub.f32 0.0, %v435_v20  ;;  %1921 = vmatpush.bf16.msra.mxu3 %v2698_v16  ;;  %1839 = vmatpush.bf16.msra.mxu0 %v2696_v17  ;;  %v2576_v17 = vld [vmem:[%s2893_s6 + $0xc9] sm:$0x3f]  ;;  %v3210_v19 = vld [vmem:[%s2893_s6 + $0xd0] sm:$0xff] }
  0xb6   : > { %v533_v23 = vpop.f32.mrf.mxu2  ;;  %1862 = vmatpush.bf16.msra.mxu1 %v2695_v18  ;;  %v2574_v18 = vld [vmem:[%s2893_s6 + $0xc8] sm:$0x3f]  ;;  %v2590_v20 = vld [vmem:[%s2893_s6 + $0xd8] sm:$0x3f] }
  0xb7   : > { %v2721_v24 = vpop.eup %2720  ;;  %v440_v25 = vmul.f32 1.442695, %v437_v22  ;;  %v538_v26 = vadd.f32 %v533_v23, %v505_v21  ;;  %v563_v27 = vpop.f32.mrf.mxu3  ;;  %v3216_v23 = vld [vmem:[%s2893_s6 + $0xd1] sm:$0xff] }
  0xb8   : > { %v483_v28 = vpop.f32.mrf.mxu0  ;;  %v2723_v29 = vpop.eup %2722  ;;  %v442_v30 = vadd.f32 1.0, %v2721_v24  ;;  %v2599_v24 = vld [vmem:[%s2893_s6 + $0xd9] sm:$0x3f] }
  0xb9   : > { %v506_v31 = vpop.f32.mrf.mxu1  ;;  %v310_v32 = vmax.f32 %v2723_v29, 0.0  ;;  %2724 = vpow2.f32 %v440_v25  ;;  %v568_v33 = vadd.f32 %v563_v27, %v538_v26  ;;  %v1820_v26 = vpack.c.bf16 %v2576_v17, %v3180_v42 }
  0xba   : > { %2726 = vrcp.f32 %v442_v30  ;;  %v507_v41 = vadd.f32 %v506_v31, %v483_v28  ;;  %v1902_v37 = vpack.c.bf16 %v2599_v24, %v3216_v23 }
  0xbb   : > { %v312_v34 = vmin.f32 %v310_v32, 1.0  ;;  %v570_v35 = vadd.f32 %v3098_v14, %v568_v33  ;;  %v1815_v32 = vpack.c.bf16 %v2574_v18, %v3174_v38  ;;  %v1872_v33 = vpack.c.bf16 %v2590_v20, %v3210_v19 }
  0xbd   : > { %316 = vst.msk [vmem:[%s3158_s27 + $0x8] sm:$0x3f] %vm315_vm2, %v312_v34  ;;  %v572_v40 = vsub.f32 0.0, %v570_v35 }
  0xbe   : > { %v535_v44 = vpop.f32.mrf.mxu2 }
  0xbf   : > { %v2725_v46 = vpop.eup %2724  ;;  %v574_v47 = vmul.f32 1.442695, %v572_v40  ;;  %v539_v48 = vadd.f32 %v535_v44, %v507_v41  ;;  %v565_v49 = vpop.f32.mrf.mxu3 }
  0xc0   : > { %v617_v50 = vpop.f32.mrf.mxu0  ;;  %v2727_v53 = vpop.eup %2726  ;;  %v443_v54 = vadd.f32 1.0, %v2725_v46 }
  0xc1   : > { %v640_v55 = vpop.f32.mrf.mxu1  ;;  %v446_v59 = vmax.f32 %v2727_v53, 0.0  ;;  %2728 = vpow2.f32 %v574_v47  ;;  %v569_v60 = vadd.f32 %v565_v49, %v539_v48 }
  0xc2   : > { %2730 = vrcp.f32 %v443_v54  ;;  %2547 = vmatmul.msk.bf16.vlgmr.msrb.gmra.mxu0 %vm190_vm0, %v1684_v45  ;;  %v641_v1 = vadd.f32 %v640_v55, %v617_v50 }
  0xc3   : > { %v448_v63 = vmin.f32 %v446_v59, 1.0  ;;  %v571_v0 = vadd.f32 %v3098_v14, %v569_v60  ;;  %2552 = vmatmul.msk.bf16.vlgmr.msrb.gmra.mxu1 %vm190_vm0, %v1679_v51  ;;  %2561 = vmatmul.msk.bf16.vlgmr.msrb.gmra.mxu2 %vm190_vm0, %v1736_v52  ;;  %v2610_v59 = vld [vmem:[%s2893_s6 + $0xd8] sm:$0x3f]  ;;  %v2625_v60 = vld [vmem:[%s2893_s6 + $0xe0] sm:$0xff] }
  0xc4   : > { %2570 = vmatmul.msk.bf16.vlgmr.msrb.gmra.mxu3 %vm190_vm0, %v1766_v56  ;;  %2027 = vmatpush.bf16.msrb.mxu2 %v2701_v58  ;;  %v2612_v58 = vld [vmem:[%s2893_s6 + $0xd9] sm:$0x3f] }
  0xc5   : > { %2211 = vst.msk [vmem:[%s3158_s27 + $0x10] sm:$0xff] %vm313_vm1, %v448_v63  ;;  %v573_v2 = vsub.f32 0.0, %v571_v0  ;;  %2057 = vmatpush.bf16.msrb.mxu3 %v2702_v61  ;;  %1975 = vmatpush.bf16.msrb.mxu0 %v2700_v57  ;;  %v2626_v61 = vld [vmem:[%s2893_s6 + $0xe8] sm:$0x3f] }
  0xc6   : > { %v669_v3 = vpop.f32.mrf.mxu2  ;;  %1998 = vmatpush.bf16.msrb.mxu1 %v2699_v62  ;;  %v2634_v63 = vld [vmem:[%s2893_s6 + $0xe1] sm:$0xff]  ;;  %v2635_v0 = vld [vmem:[%s2893_s6 + $0xe9] sm:$0x3f] }
  0xc7   : > { %v2729_v4 = vpop.eup %2728  ;;  %v576_v5 = vmul.f32 1.442695, %v573_v2  ;;  %v674_v6 = vadd.f32 %v669_v3, %v641_v1  ;;  %v699_v7 = vpop.f32.mrf.mxu3  ;;  %v1956_v2 = vpack.c.bf16 %v2612_v58, %v3216_v23 }
  0xc8   : > { %v619_v8 = vpop.f32.mrf.mxu0  ;;  %v2731_v9 = vpop.eup %2730  ;;  %v578_v10 = vadd.f32 1.0, %v2729_v4 }
  0xc9   : > { %v642_v11 = vpop.f32.mrf.mxu1  ;;  %v447_v12 = vmax.f32 %v2731_v9, 0.0  ;;  %2732 = vpow2.f32 %v576_v5  ;;  %v704_v13 = vadd.f32 %v699_v7, %v674_v6  ;;  %v2008_v9 = vpack.c.bf16 %v2626_v61, %v2625_v60 }
  0xca   : > { %2734 = vrcp.f32 %v578_v10  ;;  %v643_v22 = vadd.f32 %v642_v11, %v619_v8  ;;  %v1951_v8 = vpack.c.bf16 %v2610_v59, %v3210_v19 }
  0xcb   : > { %v449_v15 = vmin.f32 %v447_v12, 1.0  ;;  %v706_v16 = vadd.f32 %v3098_v14, %v704_v13  ;;  %v2038_v13 = vpack.c.bf16 %v2635_v0, %v2634_v63 }
  0xcd   : > { %2212 = vst.msk [vmem:[%s3158_s27 + $0x18] sm:$0x3f] %vm315_vm2, %v449_v15  ;;  %v708_v21 = vsub.f32 0.0, %v706_v16 }
  0xce   : > { %v671_v25 = vpop.f32.mrf.mxu2 }
  0xcf   : > { %v2733_v27 = vpop.eup %2732  ;;  %v710_v28 = vmul.f32 1.442695, %v708_v21  ;;  %v675_v29 = vadd.f32 %v671_v25, %v643_v22  ;;  %v701_v30 = vpop.f32.mrf.mxu3 }
  0xd0   : > { %v753_v31 = vpop.f32.mrf.mxu0  ;;  %v2735_v34 = vpop.eup %2734  ;;  %v579_v35 = vadd.f32 1.0, %v2733_v27 }
  0xd1   : > { %v776_v36 = vpop.f32.mrf.mxu1  ;;  %v582_v39 = vmax.f32 %v2735_v34, 0.0  ;;  %2736 = vpow2.f32 %v710_v28  ;;  %v705_v40 = vadd.f32 %v701_v30, %v675_v29 }
  0xd2   : > { %2738 = vrcp.f32 %v579_v35  ;;  %2583 = vmatmul.msk.bf16.vlgmr.msra.gmra.mxu0 %vm190_vm0, %v1820_v26  ;;  %v777_v43 = vadd.f32 %v776_v36, %v753_v31 }
  0xd3   : > { %v584_v41 = vmin.f32 %v582_v39, 1.0  ;;  %v707_v42 = vadd.f32 %v3098_v14, %v705_v40  ;;  %2588 = vmatmul.msk.bf16.vlgmr.msra.gmra.mxu1 %vm190_vm0, %v1815_v32  ;;  %2597 = vmatmul.msk.bf16.vlgmr.msra.gmra.mxu2 %vm190_vm0, %v1872_v33 }
  0xd4   : > { %2606 = vmatmul.msk.bf16.vlgmr.msra.gmra.mxu3 %vm190_vm0, %v1902_v37 }
  0xd5   : > { %2247 = vst.msk [vmem:[%s3158_s27 + $0x20] sm:$0xff] %vm313_vm1, %v584_v41  ;;  %v709_v38 = vsub.f32 0.0, %v707_v42 }
  0xd6   : > { %v805_v44 = vpop.f32.mrf.mxu2 }
  0xd7   : > { %v2737_v45 = vpop.eup %2736  ;;  %v712_v46 = vmul.f32 1.442695, %v709_v38  ;;  %v810_v47 = vadd.f32 %v805_v44, %v777_v43  ;;  %v835_v48 = vpop.f32.mrf.mxu3 }
  0xd8   : > { %v755_v49 = vpop.f32.mrf.mxu0  ;;  %v2739_v50 = vpop.eup %2738  ;;  %v714_v51 = vadd.f32 1.0, %v2737_v45 }
  0xd9   : > { %v778_v52 = vpop.f32.mrf.mxu1  ;;  %v583_v53 = vmax.f32 %v2739_v50, 0.0  ;;  %2740 = vpow2.f32 %v712_v46  ;;  %v840_v54 = vadd.f32 %v835_v48, %v810_v47 }
  0xda   : > { %2742 = vrcp.f32 %v714_v51  ;;  %v779_v62 = vadd.f32 %v778_v52, %v755_v49 }
  0xdb   : > { %v585_v55 = vmin.f32 %v583_v53, 1.0  ;;  %v842_v56 = vadd.f32 %v3098_v14, %v840_v54 }
  0xdd   : > { %2248 = vst.msk [vmem:[%s3158_s27 + $0x28] sm:$0x3f] %vm315_vm2, %v585_v55  ;;  %v844_v57 = vsub.f32 0.0, %v842_v56 }
  0xde   : > { %v807_v1 = vpop.f32.mrf.mxu2 }
  0xdf   : > { %v2741_v3 = vpop.eup %2740  ;;  %v846_v4 = vmul.f32 1.442695, %v844_v57  ;;  %v811_v5 = vadd.f32 %v807_v1, %v779_v62  ;;  %v837_v6 = vpop.f32.mrf.mxu3 }
  0xe0   : > { %v889_v7 = vpop.f32.mrf.mxu0  ;;  %v2743_v10 = vpop.eup %2742  ;;  %v715_v11 = vadd.f32 1.0, %v2741_v3 }
  0xe1   : > { %v912_v12 = vpop.f32.mrf.mxu1  ;;  %v718_v15 = vmax.f32 %v2743_v10, 0.0  ;;  %2744 = vpow2.f32 %v846_v4  ;;  %v841_v16 = vadd.f32 %v837_v6, %v811_v5 }
  0xe2   : > { %2746 = vrcp.f32 %v715_v11  ;;  %2619 = vmatmul.msk.bf16.vlgmr.msrb.gmra.mxu0 %vm190_vm0, %v1956_v2  ;;  %v913_v20 = vadd.f32 %v912_v12, %v889_v7 }
  0xe3   : > { %v720_v17 = vmin.f32 %v718_v15, 1.0  ;;  %v843_v18 = vadd.f32 %v3098_v14, %v841_v16  ;;  %2624 = vmatmul.msk.bf16.vlgmr.msrb.gmra.mxu1 %vm190_vm0, %v1951_v8  ;;  %2633 = vmatmul.msk.bf16.vlgmr.msrb.gmra.mxu2 %vm190_vm0, %v2008_v9 }
  0xe4   : > { %2642 = vmatmul.msk.bf16.vlgmr.msrb.gmra.mxu3 %vm190_vm0, %v2038_v13 }
  0xe5   : > { %2283 = vst.msk [vmem:[%s3158_s27 + $0x30] sm:$0xff] %vm313_vm1, %v720_v17  ;;  %v845_v19 = vsub.f32 0.0, %v843_v18 }
  0xe6   : > { %v941_v21 = vpop.f32.mrf.mxu2 }
  0xe7   : > { %v2745_v22 = vpop.eup %2744  ;;  %v848_v23 = vmul.f32 1.442695, %v845_v19  ;;  %v946_v24 = vadd.f32 %v941_v21, %v913_v20  ;;  %v971_v25 = vpop.f32.mrf.mxu3 }
  0xe8   : > { %v891_v26 = vpop.f32.mrf.mxu0  ;;  %v2747_v27 = vpop.eup %2746  ;;  %v850_v28 = vadd.f32 1.0, %v2745_v22 }
  0xe9   : > { %v914_v29 = vpop.f32.mrf.mxu1  ;;  %v719_v30 = vmax.f32 %v2747_v27, 0.0  ;;  %2748 = vpow2.f32 %v848_v23  ;;  %v976_v31 = vadd.f32 %v971_v25, %v946_v24 }
  0xea   : > { %2750 = vrcp.f32 %v850_v28  ;;  %v915_v35 = vadd.f32 %v914_v29, %v891_v26 }
  0xeb   : > { %v721_v32 = vmin.f32 %v719_v30, 1.0  ;;  %v978_v33 = vadd.f32 %v3098_v14, %v976_v31 }
  0xed   : > { %2284 = vst.msk [vmem:[%s3158_s27 + $0x38] sm:$0x3f] %vm315_vm2, %v721_v32  ;;  %v980_v34 = vsub.f32 0.0, %v978_v33 }
  0xee   : > { %v943_v36 = vpop.f32.mrf.mxu2 }
  0xef   : > { %v2749_v37 = vpop.eup %2748  ;;  %v982_v39 = vmul.f32 1.442695, %v980_v34  ;;  %v947_v40 = vadd.f32 %v943_v36, %v915_v35  ;;  %v973_v41 = vpop.f32.mrf.mxu3 }
  0xf0   : > { %v1025_v42 = vpop.f32.mrf.mxu0  ;;  %v2751_v43 = vpop.eup %2750  ;;  %v851_v38 = vadd.f32 1.0, %v2749_v37 }
  0xf1   : > { %v1048_v44 = vpop.f32.mrf.mxu1  ;;  %v854_v45 = vmax.f32 %v2751_v43, 0.0  ;;  %2752 = vpow2.f32 %v982_v39  ;;  %v977_v46 = vadd.f32 %v973_v41, %v947_v40 }
  0xf2   : > { %2754 = vrcp.f32 %v851_v38  ;;  %v1049_v49 = vadd.f32 %v1048_v44, %v1025_v42 }
  0xf3   : > { %v856_v47 = vmin.f32 %v854_v45, 1.0  ;;  %v979_v48 = vadd.f32 %v3098_v14, %v977_v46 }
  0xf5   : > { %2319 = vst.msk [vmem:[%s3158_s27 + $0x40] sm:$0xff] %vm313_vm1, %v856_v47  ;;  %v981_v50 = vsub.f32 0.0, %v979_v48 }
  0xf6   : > { %v1077_v51 = vpop.f32.mrf.mxu2 }
  0xf7   : > { %v2753_v52 = vpop.eup %2752  ;;  %v984_v53 = vmul.f32 1.442695, %v981_v50  ;;  %v1082_v54 = vadd.f32 %v1077_v51, %v1049_v49  ;;  %v1107_v55 = vpop.f32.mrf.mxu3 }
  0xf8   : > { %v1027_v56 = vpop.f32.mrf.mxu0  ;;  %v2755_v58 = vpop.eup %2754  ;;  %v986_v59 = vadd.f32 1.0, %v2753_v52 }
  0xf9   : > { %v1050_v60 = vpop.f32.mrf.mxu1  ;;  %v855_v61 = vmax.f32 %v2755_v58, 0.0  ;;  %2756 = vpow2.f32 %v984_v53  ;;  %v1112_v57 = vadd.f32 %v1107_v55, %v1082_v54 }
  0xfa   : > { %2758 = vrcp.f32 %v986_v59  ;;  %v1051_v1 = vadd.f32 %v1050_v60, %v1027_v56 }
  0xfb   : > { %v857_v62 = vmin.f32 %v855_v61, 1.0  ;;  %v1114_v63 = vadd.f32 %v3098_v14, %v1112_v57 }
  0xfd   : > { %2320 = vst.msk [vmem:[%s3158_s27 + $0x48] sm:$0x3f] %vm315_vm2, %v857_v62  ;;  %v1116_v0 = vsub.f32 0.0, %v1114_v63 }
  0xfe   : > { %v1079_v2 = vpop.f32.mrf.mxu2 }
  0xff   : > { %v2757_v3 = vpop.eup %2756  ;;  %v1118_v4 = vmul.f32 1.442695, %v1116_v0  ;;  %v1083_v5 = vadd.f32 %v1079_v2, %v1051_v1  ;;  %v1109_v6 = vpop.f32.mrf.mxu3 }
 0x100   : > { %v1161_v7 = vpop.f32.mrf.mxu0  ;;  %v2759_v8 = vpop.eup %2758  ;;  %v987_v9 = vadd.f32 1.0, %v2757_v3 }
 0x101   : > { %v1184_v10 = vpop.f32.mrf.mxu1  ;;  %v990_v11 = vmax.f32 %v2759_v8, 0.0  ;;  %2760 = vpow2.f32 %v1118_v4  ;;  %v1113_v12 = vadd.f32 %v1109_v6, %v1083_v5 }
 0x102   : > { %2762 = vrcp.f32 %v987_v9  ;;  %v1185_v16 = vadd.f32 %v1184_v10, %v1161_v7 }
 0x103   : > { %v992_v13 = vmin.f32 %v990_v11, 1.0  ;;  %v1115_v15 = vadd.f32 %v3098_v14, %v1113_v12 }
 0x105   : > { %2355 = vst.msk [vmem:[%s3158_s27 + $0x50] sm:$0xff] %vm313_vm1, %v992_v13  ;;  %v1117_v17 = vsub.f32 0.0, %v1115_v15 }
 0x106   : > { %v1213_v18 = vpop.f32.mrf.mxu2 }
 0x107   : > { %v2761_v20 = vpop.eup %2760  ;;  %v1120_v19 = vmul.f32 1.442695, %v1117_v17  ;;  %v1218_v21 = vadd.f32 %v1213_v18, %v1185_v16  ;;  %v1243_v22 = vpop.f32.mrf.mxu3 }
 0x108   : > { %v1163_v23 = vpop.f32.mrf.mxu0  ;;  %v2763_v24 = vpop.eup %2762  ;;  %v1122_v25 = vadd.f32 1.0, %v2761_v20 }
 0x109   : > { %v1186_v26 = vpop.f32.mrf.mxu1  ;;  %v991_v27 = vmax.f32 %v2763_v24, 0.0  ;;  %2764 = vpow2.f32 %v1120_v19  ;;  %v1248_v28 = vadd.f32 %v1243_v22, %v1218_v21 }
 0x10a   : > { %2766 = vrcp.f32 %v1122_v25  ;;  %v1187_v32 = vadd.f32 %v1186_v26, %v1163_v23 }
 0x10b   : > { %v993_v29 = vmin.f32 %v991_v27, 1.0  ;;  %v1250_v30 = vadd.f32 %v3098_v14, %v1248_v28 }
 0x10d   : > { %2356 = vst.msk [vmem:[%s3158_s27 + $0x58] sm:$0x3f] %vm315_vm2, %v993_v29  ;;  %v1252_v31 = vsub.f32 0.0, %v1250_v30 }
 0x10e   : > { %v1215_v33 = vpop.f32.mrf.mxu2 }
 0x10f   : > { %v2765_v34 = vpop.eup %2764  ;;  %v1254_v35 = vmul.f32 1.442695, %v1252_v31  ;;  %v1219_v36 = vadd.f32 %v1215_v33, %v1187_v32  ;;  %v1245_v37 = vpop.f32.mrf.mxu3 }
 0x110   : > { %v1297_v39 = vpop.f32.mrf.mxu0  ;;  %v2767_v40 = vpop.eup %2766  ;;  %v1123_v41 = vadd.f32 1.0, %v2765_v34 }
 0x111   : > { %v1320_v42 = vpop.f32.mrf.mxu1  ;;  %v1126_v43 = vmax.f32 %v2767_v40, 0.0  ;;  %2768 = vpow2.f32 %v1254_v35  ;;  %v1249_v38 = vadd.f32 %v1245_v37, %v1219_v36 }
 0x112   : > { %2770 = vrcp.f32 %v1123_v41  ;;  %v1321_v46 = vadd.f32 %v1320_v42, %v1297_v39 }
 0x113   : > { %v1128_v44 = vmin.f32 %v1126_v43, 1.0  ;;  %v1251_v45 = vadd.f32 %v3098_v14, %v1249_v38 }
 0x115   : > { %2391 = vst.msk [vmem:[%s3158_s27 + $0x60] sm:$0xff] %vm313_vm1, %v1128_v44  ;;  %v1253_v47 = vsub.f32 0.0, %v1251_v45 }
 0x116   : > { %v1349_v48 = vpop.f32.mrf.mxu2 }
 0x117   : > { %v2769_v49 = vpop.eup %2768  ;;  %v1256_v50 = vmul.f32 1.442695, %v1253_v47  ;;  %v1354_v51 = vadd.f32 %v1349_v48, %v1321_v46  ;;  %v1379_v52 = vpop.f32.mrf.mxu3 }
 0x118   : > { %v1299_v53 = vpop.f32.mrf.mxu0  ;;  %v2771_v54 = vpop.eup %2770  ;;  %v1258_v55 = vadd.f32 1.0, %v2769_v49 }
 0x119   : > { %v1322_v56 = vpop.f32.mrf.mxu1  ;;  %v1127_v58 = vmax.f32 %v2771_v54, 0.0  ;;  %2772 = vpow2.f32 %v1256_v50  ;;  %v1384_v59 = vadd.f32 %v1379_v52, %v1354_v51 }
 0x11a   : > { %2774 = vrcp.f32 %v1258_v55  ;;  %v1323_v62 = vadd.f32 %v1322_v56, %v1299_v53 }
 0x11b   : > { %v1129_v60 = vmin.f32 %v1127_v58, 1.0  ;;  %v1386_v61 = vadd.f32 %v3098_v14, %v1384_v59 }
 0x11d   : > { %2392 = vst.msk [vmem:[%s3158_s27 + $0x68] sm:$0x3f] %vm315_vm2, %v1129_v60  ;;  %v1388_v57 = vsub.f32 0.0, %v1386_v61 }
 0x11e   : > { %v1351_v63 = vpop.f32.mrf.mxu2 }
 0x11f   : > { %v2773_v0 = vpop.eup %2772  ;;  %v1390_v1 = vmul.f32 1.442695, %v1388_v57  ;;  %v1355_v2 = vadd.f32 %v1351_v63, %v1323_v62  ;;  %v1381_v3 = vpop.f32.mrf.mxu3 }
 0x120   : > { %v1433_v4 = vpop.f32.mrf.mxu0  ;;  %v2775_v5 = vpop.eup %2774  ;;  %v1259_v6 = vadd.f32 1.0, %v2773_v0 }
 0x121   : > { %v1456_v7 = vpop.f32.mrf.mxu1  ;;  %v1262_v8 = vmax.f32 %v2775_v5, 0.0  ;;  %2776 = vpow2.f32 %v1390_v1  ;;  %v1385_v9 = vadd.f32 %v1381_v3, %v1355_v2 }
 0x122   : > { %2778 = vrcp.f32 %v1259_v6  ;;  %v1457_v12 = vadd.f32 %v1456_v7, %v1433_v4 }
 0x123   : > { %v1264_v10 = vmin.f32 %v1262_v8, 1.0  ;;  %v1387_v11 = vadd.f32 %v3098_v14, %v1385_v9 }
 0x125   : > { %2427 = vst.msk [vmem:[%s3158_s27 + $0x70] sm:$0xff] %vm313_vm1, %v1264_v10  ;;  %v1389_v13 = vsub.f32 0.0, %v1387_v11 }
 0x126   : > { %v1485_v15 = vpop.f32.mrf.mxu2 }
 0x127   : > { %v2777_v16 = vpop.eup %2776  ;;  %v1392_v17 = vmul.f32 1.442695, %v1389_v13  ;;  %v1490_v18 = vadd.f32 %v1485_v15, %v1457_v12  ;;  %v1515_v20 = vpop.f32.mrf.mxu3 }
 0x128   : > { %v1435_v19 = vpop.f32.mrf.mxu0  ;;  %v2779_v21 = vpop.eup %2778  ;;  %v1394_v22 = vadd.f32 1.0, %v2777_v16 }
 0x129   : > { %v1458_v23 = vpop.f32.mrf.mxu1  ;;  %v1263_v24 = vmax.f32 %v2779_v21, 0.0  ;;  %2780 = vpow2.f32 %v1392_v17  ;;  %v1520_v25 = vadd.f32 %v1515_v20, %v1490_v18 }
 0x12a   : > { %2782 = vrcp.f32 %v1394_v22  ;;  %v1459_v29 = vadd.f32 %v1458_v23, %v1435_v19 }
 0x12b   : > { %v1265_v26 = vmin.f32 %v1263_v24, 1.0  ;;  %v1522_v27 = vadd.f32 %v3098_v14, %v1520_v25 }
 0x12d   : > { %2428 = vst.msk [vmem:[%s3158_s27 + $0x78] sm:$0x3f] %vm315_vm2, %v1265_v26  ;;  %v1524_v28 = vsub.f32 0.0, %v1522_v27 }
 0x12e   : > { %v1487_v30 = vpop.f32.mrf.mxu2 }
 0x12f   : > { %v2781_v31 = vpop.eup %2780  ;;  %v1526_v32 = vmul.f32 1.442695, %v1524_v28  ;;  %v1491_v33 = vadd.f32 %v1487_v30, %v1459_v29  ;;  %v1517_v34 = vpop.f32.mrf.mxu3 }
 0x130   : > { %v1569_v35 = vpop.f32.mrf.mxu0  ;;  %v2783_v36 = vpop.eup %2782  ;;  %v1395_v37 = vadd.f32 1.0, %v2781_v31 }
 0x131   : > { %v1592_v39 = vpop.f32.mrf.mxu1  ;;  %v1398_v40 = vmax.f32 %v2783_v36, 0.0  ;;  %2784 = vpow2.f32 %v1526_v32  ;;  %v1521_v41 = vadd.f32 %v1517_v34, %v1491_v33 }
 0x132   : > { %2786 = vrcp.f32 %v1395_v37  ;;  %v1593_v38 = vadd.f32 %v1592_v39, %v1569_v35 }
 0x133   : > { %v1400_v42 = vmin.f32 %v1398_v40, 1.0  ;;  %v1523_v43 = vadd.f32 %v3098_v14, %v1521_v41 }
 0x135   : > { %2463 = vst.msk [vmem:[%s3158_s27 + $0x80] sm:$0xff] %vm313_vm1, %v1400_v42  ;;  %v1525_v44 = vsub.f32 0.0, %v1523_v43 }
 0x136   : > { %v1621_v45 = vpop.f32.mrf.mxu2 }
 0x137   : > { %v2785_v46 = vpop.eup %2784  ;;  %v1528_v47 = vmul.f32 1.442695, %v1525_v44  ;;  %v1626_v48 = vadd.f32 %v1621_v45, %v1593_v38  ;;  %v1651_v49 = vpop.f32.mrf.mxu3 }
 0x138   : > { %v1571_v50 = vpop.f32.mrf.mxu0  ;;  %v2787_v51 = vpop.eup %2786  ;;  %v1530_v52 = vadd.f32 1.0, %v2785_v46 }
 0x139   : > { %v1594_v53 = vpop.f32.mrf.mxu1  ;;  %v1399_v54 = vmax.f32 %v2787_v51, 0.0  ;;  %2788 = vpow2.f32 %v1528_v47  ;;  %v1656_v55 = vadd.f32 %v1651_v49, %v1626_v48 }
 0x13a   : > { %2790 = vrcp.f32 %v1530_v52  ;;  %v1595_v60 = vadd.f32 %v1594_v53, %v1571_v50 }
 0x13b   : > { %v1401_v56 = vmin.f32 %v1399_v54, 1.0  ;;  %v1658_v58 = vadd.f32 %v3098_v14, %v1656_v55 }
 0x13d   : > { %2464 = vst.msk [vmem:[%s3158_s27 + $0x88] sm:$0x3f] %vm315_vm2, %v1401_v56  ;;  %v1660_v59 = vsub.f32 0.0, %v1658_v58 }
 0x13e   : > { %v1623_v61 = vpop.f32.mrf.mxu2 }
 0x13f   : > { %v2789_v57 = vpop.eup %2788  ;;  %v1662_v62 = vmul.f32 1.442695, %v1660_v59  ;;  %v1627_v63 = vadd.f32 %v1623_v61, %v1595_v60  ;;  %v1653_v0 = vpop.f32.mrf.mxu3 }
 0x140   : > { %v1705_v1 = vpop.f32.mrf.mxu0  ;;  %v2791_v2 = vpop.eup %2790  ;;  %v1531_v3 = vadd.f32 1.0, %v2789_v57 }
 0x141   : > { %v1728_v4 = vpop.f32.mrf.mxu1  ;;  %v1534_v5 = vmax.f32 %v2791_v2, 0.0  ;;  %2792 = vpow2.f32 %v1662_v62  ;;  %v1657_v6 = vadd.f32 %v1653_v0, %v1627_v63 }
 0x142   : > { %2794 = vrcp.f32 %v1531_v3  ;;  %v1729_v9 = vadd.f32 %v1728_v4, %v1705_v1 }
 0x143   : > { %v1536_v7 = vmin.f32 %v1534_v5, 1.0  ;;  %v1659_v8 = vadd.f32 %v3098_v14, %v1657_v6 }
 0x145   : > { %2499 = vst.msk [vmem:[%s3158_s27 + $0x90] sm:$0xff] %vm313_vm1, %v1536_v7  ;;  %v1661_v10 = vsub.f32 0.0, %v1659_v8 }
 0x146   : > { %v1757_v11 = vpop.f32.mrf.mxu2 }
 0x147   : > { %v2793_v12 = vpop.eup %2792  ;;  %v1664_v13 = vmul.f32 1.442695, %v1661_v10  ;;  %v1762_v15 = vadd.f32 %v1757_v11, %v1729_v9  ;;  %v1787_v16 = vpop.f32.mrf.mxu3 }
 0x148   : > { %v1707_v17 = vpop.f32.mrf.mxu0  ;;  %v2795_v18 = vpop.eup %2794  ;;  %v1666_v20 = vadd.f32 1.0, %v2793_v12 }
 0x149   : > { %v1730_v19 = vpop.f32.mrf.mxu1  ;;  %v1535_v21 = vmax.f32 %v2795_v18, 0.0  ;;  %2796 = vpow2.f32 %v1664_v13  ;;  %v1792_v22 = vadd.f32 %v1787_v16, %v1762_v15 }
 0x14a   : > { %2798 = vrcp.f32 %v1666_v20  ;;  %v1731_v26 = vadd.f32 %v1730_v19, %v1707_v17 }
 0x14b   : > { %v1537_v23 = vmin.f32 %v1535_v21, 1.0  ;;  %v1794_v24 = vadd.f32 %v3098_v14, %v1792_v22 }
 0x14d   : > { %2500 = vst.msk [vmem:[%s3158_s27 + $0x98] sm:$0x3f] %vm315_vm2, %v1537_v23  ;;  %v1796_v25 = vsub.f32 0.0, %v1794_v24 }
 0x14e   : > { %v1759_v27 = vpop.f32.mrf.mxu2 }
 0x14f   : > { %v2797_v28 = vpop.eup %2796  ;;  %v1798_v29 = vmul.f32 1.442695, %v1796_v25  ;;  %v1763_v30 = vadd.f32 %v1759_v27, %v1731_v26  ;;  %v1789_v31 = vpop.f32.mrf.mxu3 }
 0x150   : > { %v1841_v32 = vpop.f32.mrf.mxu0  ;;  %v2799_v33 = vpop.eup %2798  ;;  %v1667_v34 = vadd.f32 1.0, %v2797_v28 }
 0x151   : > { %v1864_v35 = vpop.f32.mrf.mxu1  ;;  %v1670_v36 = vmax.f32 %v2799_v33, 0.0  ;;  %2800 = vpow2.f32 %v1798_v29  ;;  %v1793_v37 = vadd.f32 %v1789_v31, %v1763_v30 }
 0x152   : > { %2802 = vrcp.f32 %v1667_v34  ;;  %v1865_v41 = vadd.f32 %v1864_v35, %v1841_v32 }
 0x153   : > { %v1672_v39 = vmin.f32 %v1670_v36, 1.0  ;;  %v1795_v40 = vadd.f32 %v3098_v14, %v1793_v37  ;;  %v2826_v14 = vld [vmem:[%s3312_s2] ss:$0 sm:$0xff] }
 0x155   : > { %2535 = vst.msk [vmem:[%s3158_s27 + $0xa0] sm:$0xff] %vm313_vm1, %v1672_v39  ;;  %v1797_v42 = vsub.f32 0.0, %v1795_v40 }
 0x156   : > { %v1893_v43 = vpop.f32.mrf.mxu2 }
 0x157   : > { %v2801_v38 = vpop.eup %2800  ;;  %v1800_v44 = vmul.f32 1.442695, %v1797_v42  ;;  %v1898_v45 = vadd.f32 %v1893_v43, %v1865_v41  ;;  %v1923_v46 = vpop.f32.mrf.mxu3 }
 0x158   : > { %v1843_v47 = vpop.f32.mrf.mxu0  ;;  %v2803_v48 = vpop.eup %2802  ;;  %v1802_v49 = vadd.f32 1.0, %v2801_v38 }
 0x159   : > { %v1866_v50 = vpop.f32.mrf.mxu1  ;;  %v1671_v51 = vmax.f32 %v2803_v48, 0.0  ;;  %2804 = vpow2.f32 %v1800_v44  ;;  %v1928_v52 = vadd.f32 %v1923_v46, %v1898_v45 }
 0x15a   : > { %2806 = vrcp.f32 %v1802_v49  ;;  %v1867_v56 = vadd.f32 %v1866_v50, %v1843_v47 }
 0x15b   : > { %v1673_v53 = vmin.f32 %v1671_v51, 1.0  ;;  %v1930_v54 = vadd.f32 %v2826_v14, %v1928_v52 }
 0x15d   : > { %2536 = vst.msk [vmem:[%s3158_s27 + $0xa8] sm:$0x3f] %vm315_vm2, %v1673_v53  ;;  %v1932_v55 = vsub.f32 0.0, %v1930_v54 }
 0x15e   : > { %v1895_v58 = vpop.f32.mrf.mxu2 }
 0x15f   : > { %v2805_v59 = vpop.eup %2804  ;;  %v1934_v60 = vmul.f32 1.442695, %v1932_v55  ;;  %v1899_v61 = vadd.f32 %v1895_v58, %v1867_v56  ;;  %v1925_v57 = vpop.f32.mrf.mxu3 }
 0x160   : > { %v2807_v62 = vpop.eup %2806  ;;  %v1803_v63 = vadd.f32 1.0, %v2805_v59  ;;  %v1977_v0 = vpop.f32.mrf.mxu0 }
 0x161   : > { %v2000_v1 = vpop.f32.mrf.mxu1  ;;  %v1806_v2 = vmax.f32 %v2807_v62, 0.0  ;;  %2808 = vpow2.f32 %v1934_v60  ;;  %v1929_v3 = vadd.f32 %v1925_v57, %v1899_v61 }
 0x162   : > { %2810 = vrcp.f32 %v1803_v63  ;;  %v2001_v6 = vadd.f32 %v2000_v1, %v1977_v0 }
 0x163   : > { %v1808_v4 = vmin.f32 %v1806_v2, 1.0  ;;  %v1931_v5 = vadd.f32 %v2826_v14, %v1929_v3 }
 0x165   : > { %2571 = vst.msk [vmem:[%s3158_s27 + $0xb0] sm:$0xff] %vm313_vm1, %v1808_v4  ;;  %v1933_v7 = vsub.f32 0.0, %v1931_v5 }
 0x166   : > { %v2029_v8 = vpop.f32.mrf.mxu2 }
 0x167   : > { %v2809_v9 = vpop.eup %2808  ;;  %v1936_v10 = vmul.f32 1.442695, %v1933_v7  ;;  %v2034_v11 = vadd.f32 %v2029_v8, %v2001_v6  ;;  %v2059_v12 = vpop.f32.mrf.mxu3 }
 0x168   : > { %v2811_v13 = vpop.eup %2810  ;;  %v1938_v15 = vadd.f32 1.0, %v2809_v9  ;;  %v1979_v18 = vpop.f32.mrf.mxu0 }
 0x169   : > { %v1807_v16 = vmax.f32 %v2811_v13, 0.0  ;;  %2812 = vpow2.f32 %v1936_v10  ;;  %v2064_v17 = vadd.f32 %v2059_v12, %v2034_v11  ;;  %v2002_v20 = vpop.f32.mrf.mxu1 }
 0x16a   : > { %2814 = vrcp.f32 %v1938_v15  ;;  %v2003_v23 = vadd.f32 %v2002_v20, %v1979_v18 }
 0x16b   : > { %v1809_v19 = vmin.f32 %v1807_v16, 1.0  ;;  %v2066_v21 = vadd.f32 %v2826_v14, %v2064_v17 }
 0x16d   : > { %2572 = vst.msk [vmem:[%s3158_s27 + $0xb8] sm:$0x3f] %vm315_vm2, %v1809_v19  ;;  %v2068_v22 = vsub.f32 0.0, %v2066_v21 }
 0x16e   : > { %v2031_v24 = vpop.f32.mrf.mxu2 }
 0x16f   : > { %v2813_v25 = vpop.eup %2812  ;;  %v2070_v26 = vmul.f32 1.442695, %v2068_v22  ;;  %v2035_v27 = vadd.f32 %v2031_v24, %v2003_v23  ;;  %v2061_v30 = vpop.f32.mrf.mxu3 }
 0x170   : > { %v2815_v28 = vpop.eup %2814  ;;  %v1939_v29 = vadd.f32 1.0, %v2813_v25 }
 0x171   : > { %v1942_v31 = vmax.f32 %v2815_v28, 0.0  ;;  %2816 = vpow2.f32 %v2070_v26  ;;  %v2065_v32 = vadd.f32 %v2061_v30, %v2035_v27 }
 0x172   : > { %2818 = vrcp.f32 %v1939_v29 }
 0x173   : > { %v1944_v33 = vmin.f32 %v1942_v31, 1.0  ;;  %v2067_v34 = vadd.f32 %v2826_v14, %v2065_v32 }
 0x175   : > { %2607 = vst.msk [vmem:[%s3158_s27 + $0xc0] sm:$0xff] %vm313_vm1, %v1944_v33  ;;  %v2069_v35 = vsub.f32 0.0, %v2067_v34 }
 0x177   : > { %v2817_v36 = vpop.eup %2816  ;;  %v2072_v37 = vmul.f32 1.442695, %v2069_v35 }
 0x178   : > { %v2819_v39 = vpop.eup %2818  ;;  %v2074_v40 = vadd.f32 1.0, %v2817_v36 }
 0x179   : > { %v1943_v41 = vmax.f32 %v2819_v39, 0.0  ;;  %2820 = vpow2.f32 %v2072_v37 }
 0x17a   : > { %2822 = vrcp.f32 %v2074_v40 }
 0x17b   : > { %v1945_v42 = vmin.f32 %v1943_v41, 1.0 }
 0x17d   : > { %2608 = vst.msk [vmem:[%s3158_s27 + $0xc8] sm:$0x3f] %vm315_vm2, %v1945_v42 }
 0x17f   : > { %v2821_v43 = vpop.eup %2820 }
 0x180   : > { %v2823_v38 = vpop.eup %2822  ;;  %v2075_v44 = vadd.f32 1.0, %v2821_v43 }
 0x181   : > { %v2078_v45 = vmax.f32 %v2823_v38, 0.0 }
 0x182   : > { %2824 = vrcp.f32 %v2075_v44 }
 0x183   : > { %v2080_v46 = vmin.f32 %v2078_v45, 1.0 }
 0x185   : > { %2643 = vst.msk [vmem:[%s3158_s27 + $0xd0] sm:$0xff] %vm313_vm1, %v2080_v46 }
 0x188   : > { %v2825_v47 = vpop.eup %2824 }
 0x189   : > { %v2079_v48 = vmax.f32 %v2825_v47, 0.0 }
 0x18b   : > { %v2081_v49 = vmin.f32 %v2079_v48, 1.0 }
 0x18d   : > { %2644 = vst.msk [vmem:[%s3158_s27 + $0xd8] sm:$0x3f] %vm315_vm2, %v2081_v49 }
 0x18e PF: > { %s13_s12 = sadd.s32 1, %s2833_s12  }
 0x18f   : > { %p10_p4 = scmp.ge.s32.totalorder %s13_s12, 4  }
 0x191   :  { %12 = sbr.rel (!%p10_p4) target bundleno = 1 (0x1), region = 92 }

</bundles_post_ra>
